<compile_context>
chip_gen: v5e
topology: v5e:2x2
jax: 0.10.0
libtpu: 0.0.40
codegen_flags: <defaults>
</compile_context>

<pallas_src>
import functools

import jax
import jax.numpy as jnp
from jax import lax
from jax.experimental import pallas as pl
from jax.experimental.pallas import tpu as pltpu

EMBED_DIM = 128           # divisible by 8 heads (module default is 384; kept small here)
NUM_HEADS = 8
LN_EPS = 1e-5             # torch.nn.LayerNorm default
ATTN_EPS = 1e-6           # softmax_with_policy eps
NEG_BIG = -1e30           # additive mask for cross-sample score entries


def _cdiv(a, b):
    return -(-a // b)


def _gelu_exact(x):
    # exact (erf-based) GELU == torch.nn.GELU() default
    return 0.5 * x * (1.0 + lax.erf(x * 0.7071067811865476))


def predictor_kernel(x_ref, pol_ref, msk_ref, wq_ref, wp_ref, w1_ref, w2_ref,
                     wh_ref, vec_ref, out_ref, *, n_tok, num_heads,
                     heads_per_group, use_bf16):
    x = x_ref[0].astype(jnp.float32)           # (T, C), T = Bb * n_tok
    T, C = x.shape
    H = num_heads
    hd = C // H
    scale = hd ** -0.5

    def mm(a, b, contract, batch=((), ())):
        # MXU matmul; optionally bf16 operands, always f32 accumulation.
        if use_bf16:
            a = a.astype(jnp.bfloat16)
            b = b.astype(jnp.bfloat16)
        return lax.dot_general(a, b, dimension_numbers=(contract, batch),
                               preferred_element_type=jnp.float32)

    # single layout change: everything below works on (features, tokens) slabs
    x_t = x.T                                   # (C, T)

    # packed per-feature bias / LayerNorm columns (sliced once, tiny)
    b_qkv = vec_ref[:, 0:1]                     # (3C, 1)
    b_proj = vec_ref[0:C, 1:2]
    ln_g = vec_ref[0:C, 2:3]
    ln_b = vec_ref[0:C, 3:4]
    b1 = vec_ref[0:C // 2, 4:5]
    b2 = vec_ref[0:C // 4, 5:6]
    b_hd = vec_ref[0:4, 6:7]

    # static masks, precomputed host-side (DMA'd once: constant index map)
    bias = msk_ref[0]                           # (T,T): 0 same-sample, -1e30 cross-sample
    same_f = msk_ref[1]                         # (T,T): 1 same-sample else 0
    eye_f = msk_ref[2]                          # (T,T) identity
    pol = pol_ref[0]                            # (1,T) keep/drop policy

    # DynamicViT policy mask; cross-sample entries are killed by `bias` (exp underflows to 0)
    attn_pol = pol + (1.0 - pol) * eye_f        # (T,T)
    eps_row = same_f * (ATTN_EPS / n_tok)       # eps/N only on in-sample pairs

    # ---------------- fused QKV: (3C, T) = W_qkv(3C,C) @ x_t(C,T) ----------------
    qkv_t = mm(wq_ref[...], x_t, ((1,), (0,))) + b_qkv

    # head split = tile-aligned reshape on the sublane axis; scale folded into q once
    q_all = jnp.transpose(qkv_t[0:C].reshape(H, hd, T), (0, 2, 1)) * scale   # (H, T, hd)
    k_all = qkv_t[C:2 * C].reshape(H, hd, T)                                  # (H, hd, T)
    v_all = qkv_t[2 * C:3 * C].reshape(H, hd, T)                              # (H, hd, T)

    # ------------- attention, head-group at a time (bounds live (g,T,T) tensors) -------
    parts = []
    ng = H // heads_per_group
    for g in range(ng):
        lo, hi = g * heads_per_group, (g + 1) * heads_per_group
        q_g, k_g, v_g = q_all[lo:hi], k_all[lo:hi], v_all[lo:hi]
        # scores: batched (T,hd)x(hd,T); additive bias replaces the old where-select
        s = mm(q_g, k_g, ((2,), (1,)), ((0,), (0,))) + bias       # (g, T, T) f32
        m = jnp.max(s, axis=-1, keepdims=True)                    # per-sample row max (exact)
        e = jnp.exp(s - m) * attn_pol                             # cross-sample e == 0
        denom = jnp.sum(e, axis=-1, keepdims=True) + ATTN_EPS
        # exact divide kept to stay bit-faithful to softmax_with_policy
        p = (e + eps_row) / denom                                 # (g, T, T)
        # weighted values: contract the key axis of v and p (A @ B^T form)
        av = mm(v_g, p, ((2,), (2,)), ((0,), (0,)))               # (g, hd, T)
        parts.append(av.reshape(heads_per_group * hd, T))
    attn_t = parts[0] if ng == 1 else jnp.concatenate(parts, axis=0)   # (C, T)

    # projection + residual (still transposed space, no extra transpose)
    xr_t = x_t + mm(wp_ref[...], attn_t, ((1,), (0,))) + b_proj        # (C, T)

    # ------------- out_conv: LayerNorm (over feature axis) -> Linear -> GELU x2 -------
    mean = jnp.mean(xr_t, axis=0, keepdims=True)
    var = jnp.mean(jnp.square(xr_t - mean), axis=0, keepdims=True)
    xn_t = (xr_t - mean) * lax.rsqrt(var + LN_EPS) * ln_g + ln_b

    h1 = _gelu_exact(mm(w1_ref[...], xn_t, ((1,), (0,))) + b1)         # (C/2, T)
    h2 = _gelu_exact(mm(w2_ref[...], h1, ((1,), (0,))) + b2)           # (C/4, T)

    # ------------- fused dy/st heads + paired log-softmax, lane-dense (4, T) store ----
    logits = mm(wh_ref[...], h2, ((1,), (0,))) + b_hd                  # (4, T)
    l0, l1, l2, l3 = logits[0:1], logits[1:2], logits[2:3], logits[3:4]
    m_dy = jnp.maximum(l0, l1)
    lse_dy = m_dy + jnp.log(jnp.exp(l0 - m_dy) + jnp.exp(l1 - m_dy))
    m_st = jnp.maximum(l2, l3)
    lse_st = m_st + jnp.log(jnp.exp(l2 - m_st) + jnp.exp(l3 - m_st))
    lse4 = jnp.concatenate([lse_dy, lse_dy, lse_st, lse_st], axis=0)   # (4, T)
    out_ref[0] = (logits - lse4).astype(out_ref.dtype)


def predictor_lg_attn_st(x, policy, params, use_bf16_matmul=False):
    """x: (B, N, C) f32, policy: (B, N, 1) f32 -> (x_dy, x_st), each (B, N, 2)."""
    B, N, C = x.shape
    H = NUM_HEADS

    # ---------------- generation-aware sizing ----------------
    try:
        kind = jax.devices()[0].device_kind.lower()
    except Exception:
        kind = ""
    multi_tc = "v7" in kind                      # v7x: 2 TensorCores per chip
    if "v5" in kind:
        t_cap = 256                              # v5e: 16 MiB default scoped VMEM, 128-wide MXU
    elif multi_tc:
        t_cap = 384                              # v7x: 64 MiB physical VMEM
    else:
        t_cap = 512                              # v6e/default: 128 MiB VMEM, 256-wide MXU
    t_cap = max(t_cap, N)

    bb_cap = max(1, t_cap // N)
    num_blocks = _cdiv(B, bb_cap)
    if multi_tc and B > 1:
        num_blocks = max(num_blocks, 2)          # keep both TensorCores busy on v7x
    bb = _cdiv(B, num_blocks)
    num_blocks = _cdiv(B, bb)
    B_pad = num_blocks * bb
    if B_pad != B:
        x = jnp.pad(x, ((0, B_pad - B), (0, 0), (0, 0)))
        policy = jnp.pad(policy, ((0, B_pad - B), (0, 0), (0, 0)))
    T = bb * N

    # head-group looping bounds the live (g, T, T) f32 attention temporaries (~<=12 MiB)
    # TODO(synk): for very long sequences (N >~ 1500) a flash-style kv-tiled inner loop is
    # still needed; head grouping alone cannot bound a single (T, T) score tile.
    hg = H
    while hg > 1 and 3 * hg * T * T * 4 > 12 * 1024 * 1024:
        hg //= 2

    x_r = x.reshape(num_blocks, T, C)
    pol_r = policy.reshape(num_blocks, 1, T)

    # static block-diagonal masks, shared by all grid steps (constant index map)
    tok = jnp.arange(T, dtype=jnp.int32)
    same = (tok[:, None] // N) == (tok[None, :] // N)
    same_f = same.astype(jnp.float32)
    eye_f = jnp.eye(T, dtype=jnp.float32)
    bias = jnp.where(same, 0.0, NEG_BIG).astype(jnp.float32)
    masks = jnp.stack([bias, same_f, eye_f], axis=0)                     # (3, T, T)

    # weights pre-transposed host-side to (out, in) == the PyTorch nn.Linear layout,
    # so every kernel matmul uses standard contraction dims (no in-kernel transposes).
    wq_t = params["w_qkv"].T                                             # (3C, C)
    wp_t = params["w_proj"].T                                            # (C, C)
    w1_t = params["w1"].T                                                # (C/2, C)
    w2_t = params["w2"].T                                                # (C/4, C/2)
    wh_t = jnp.concatenate([params["w_dy"], params["w_st"]], axis=1).T   # (4, C/4)
    b_hd = jnp.concatenate([params["b_dy"], params["b_st"]], axis=1)     # (1, 4)
    if use_bf16_matmul:   # halves weight DMA/VMEM; matmuls still accumulate in f32
        wq_t, wp_t, w1_t, w2_t, wh_t = (w.astype(jnp.bfloat16)
                                        for w in (wq_t, wp_t, w1_t, w2_t, wh_t))

    # pack every small bias / LayerNorm vector into one (3C, 8) column slab
    rows = 3 * C

    def _col(v):
        col = v.reshape(-1, 1).astype(jnp.float32)
        return jnp.pad(col, ((0, rows - col.shape[0]), (0, 0)))

    vec_pack = jnp.concatenate(
        [_col(params["b_qkv"]), _col(params["b_proj"]), _col(params["ln_g"]),
         _col(params["ln_b"]), _col(params["b1"]), _col(params["b2"]),
         _col(b_hd), jnp.zeros((rows, 1), jnp.float32)], axis=1)         # (3C, 8)

    # explicit VMEM budget (needed once T grows past the default scoped limits)
    try:
        vmem_phys = int(pltpu.get_tpu_info().vmem_capacity_bytes)
    except Exception:
        vmem_phys = 64 * 1024 * 1024
    wbytes = 4 * (3 * C * C + C * C + (C // 2) * C + (C // 4) * (C // 2)
                  + 4 * (C // 4) + rows * 8)
    est = (3 * hg * T * T * 4          # s / e / p live per head group
           + 5 * T * T * 4             # static masks + attn_pol + eps_row
           + 8 * T * C * 4             # x, x^T, qkv_t, attn_t, residual, xn, ...
           + 2 * wbytes)
    vmem_limit = int(min(0.75 * vmem_phys, max(32 * 1024 * 1024, 2 * est)))

    kernel = functools.partial(predictor_kernel, n_tok=N, num_heads=H,
                               heads_per_group=hg, use_bf16=use_bf16_matmul)

    in_specs = [
        pl.BlockSpec((1, T, C), lambda g: (g, 0, 0)),
        pl.BlockSpec((1, 1, T), lambda g: (g, 0, 0)),
        pl.BlockSpec(masks.shape, lambda g: (0, 0, 0)),   # constant -> DMA'd once
        pl.BlockSpec(wq_t.shape, lambda g: (0, 0)),
        pl.BlockSpec(wp_t.shape, lambda g: (0, 0)),
        pl.BlockSpec(w1_t.shape, lambda g: (0, 0)),
        pl.BlockSpec(w2_t.shape, lambda g: (0, 0)),
        pl.BlockSpec(wh_t.shape, lambda g: (0, 0)),
        pl.BlockSpec(vec_pack.shape, lambda g: (0, 0)),
    ]
    out_spec = pl.BlockSpec((1, 4, T), lambda g: (g, 0, 0))   # lane-dense (T multiple of N)

    out = pl.pallas_call(
        kernel,
        out_shape=jax.ShapeDtypeStruct((num_blocks, 4, T), jnp.float32),
        grid_spec=pltpu.PrefetchScalarGridSpec(
            num_scalar_prefetch=0,
            grid=(num_blocks,),
            in_specs=in_specs,
            out_specs=out_spec,
        ),
        compiler_params=pltpu.CompilerParams(
            dimension_semantics=("parallel",),
            vmem_limit_bytes=vmem_limit),
    )(x_r, pol_r, masks, wq_t, wp_t, w1_t, w2_t, wh_t, vec_pack)

    out = jnp.transpose(out, (0, 2, 1)).reshape(B_pad, N, 4)[:B]
    return out[..., 0:2], out[..., 2:4]


def init_params(key, C=EMBED_DIM):
    ks = jax.random.split(key, 12)
    s = 0.02
    return {
        # attention (weights stored as (in, out) == torch_weight.T)
        "w_qkv": jax.random.normal(ks[0], (C, 3 * C), jnp.float32) * s,
        "b_qkv": jax.random.normal(ks[1], (1, 3 * C), jnp.float32) * s,
        "w_proj": jax.random.normal(ks[2], (C, C), jnp.float32) * s,
        "b_proj": jax.random.normal(ks[3], (1, C), jnp.float32) * s,
        # out_conv
        "ln_g": jnp.ones((1, C), jnp.float32),
        "ln_b": jnp.zeros((1, C), jnp.float32),
        "w1": jax.random.normal(ks[4], (C, C // 2), jnp.float32) * s,
        "b1": jax.random.normal(ks[5], (1, C // 2), jnp.float32) * s,
        "w2": jax.random.normal(ks[6], (C // 2, C // 4), jnp.float32) * s,
        "b2": jax.random.normal(ks[7], (1, C // 4), jnp.float32) * s,
        # dy / st heads
        "w_dy": jax.random.normal(ks[8], (C // 4, 2), jnp.float32) * s,
        "b_dy": jax.random.normal(ks[9], (1, 2), jnp.float32) * s,
        "w_st": jax.random.normal(ks[10], (C // 4, 2), jnp.float32) * s,
        "b_st": jax.random.normal(ks[11], (1, 2), jnp.float32) * s,
    }


def reference_forward(x, policy, params):
    """Pure-JAX mirror of the PyTorch module (per-sample attention)."""
    B, N, C = x.shape
    H, hd = NUM_HEADS, C // NUM_HEADS
    qkv = x @ params["w_qkv"] + params["b_qkv"]
    qkv = qkv.reshape(B, N, 3, H, hd).transpose(2, 0, 3, 1, 4)
    q, k, v = qkv[0], qkv[1], qkv[2]
    attn = jnp.einsum('bhid,bhjd->bhij', q, k) * (hd ** -0.5)
    pol = policy.reshape(B, 1, 1, N)
    eye = jnp.eye(N, dtype=jnp.float32).reshape(1, 1, N, N)
    attn_policy = pol + (1.0 - pol) * eye
    m = jnp.max(attn, axis=-1, keepdims=True)
    e = jnp.exp(attn - m) * attn_policy
    p = (e + ATTN_EPS / N) / (jnp.sum(e, axis=-1, keepdims=True) + ATTN_EPS)
    o = jnp.einsum('bhij,bhjd->bhid', p, v).transpose(0, 2, 1, 3).reshape(B, N, C)
    x = x + o @ params["w_proj"] + params["b_proj"]
    mean = x.mean(-1, keepdims=True)
    var = ((x - mean) ** 2).mean(-1, keepdims=True)
    xn = (x - mean) / jnp.sqrt(var + LN_EPS) * params["ln_g"] + params["ln_b"]
    h1 = jax.nn.gelu(xn @ params["w1"] + params["b1"], approximate=False)
    h2 = jax.nn.gelu(h1 @ params["w2"] + params["b2"], approximate=False)
    dy = jax.nn.log_softmax(h2 @ params["w_dy"] + params["b_dy"], axis=-1)
    st = jax.nn.log_softmax(h2 @ params["w_st"] + params["b_st"], axis=-1)
    return dy, st


if __name__ == "__main__":
    key = jax.random.PRNGKey(0)
    k_x, k_pol, k_param = jax.random.split(key, 3)

    B, N, C = 8, 16, EMBED_DIM
    x = jax.random.normal(k_x, (B, N, C), jnp.float32)
    # binary keep/drop policy, shape (B, N, 1) like the PyTorch module expects
    policy = jax.random.bernoulli(k_pol, p=0.7, shape=(B, N, 1)).astype(jnp.float32)
    params = init_params(k_param, C)

    dy_ref, st_ref = reference_forward(x, policy, params)

    # exact-f32 path (bit-faithful to the PyTorch module)
    x_dy, x_st = predictor_lg_attn_st(x, policy, params, use_bf16_matmul=False)
    jax.block_until_ready((x_dy, x_st))
    assert x_dy.shape == (B, N, 2) and x_st.shape == (B, N, 2)
    assert bool(jnp.all(jnp.isfinite(x_dy))) and bool(jnp.all(jnp.isfinite(x_st)))
    assert bool(jnp.allclose(x_dy, dy_ref, atol=5e-4, rtol=5e-4)), \
        ("x_dy mismatch", float(jnp.max(jnp.abs(x_dy - dy_ref))))
    assert bool(jnp.allclose(x_st, st_ref, atol=5e-4, rtol=5e-4)), \
        ("x_st mismatch", float(jnp.max(jnp.abs(x_st - st_ref))))

    # bf16-MXU path (performance mode; accumulation + statistics stay f32)
    dy_b, st_b = predictor_lg_attn_st(x, policy, params, use_bf16_matmul=True)
    jax.block_until_ready((dy_b, st_b))
    assert bool(jnp.all(jnp.isfinite(dy_b))) and bool(jnp.all(jnp.isfinite(st_b)))
    assert bool(jnp.allclose(dy_b, dy_ref, atol=5e-2, rtol=5e-2)), \
        ("bf16 x_dy drift", float(jnp.max(jnp.abs(dy_b - dy_ref))))
    assert bool(jnp.allclose(st_b, st_ref, atol=5e-2, rtol=5e-2)), \
        ("bf16 x_st drift", float(jnp.max(jnp.abs(st_b - st_ref))))

    print("KERNEL_OK")
</pallas_src>

<mosaic_0001>
module attributes {stable_mosaic.version = 11 : i64} {
  func.func @predictor_kernel(%arg0: i32, %arg1: memref<1x128x128xf32, #tpu.memory_space<vmem>>, %arg2: memref<1x1x128xf32, #tpu.memory_space<vmem>>, %arg3: memref<3x128x128xf32, #tpu.memory_space<vmem>>, %arg4: memref<384x128xf32, #tpu.memory_space<vmem>>, %arg5: memref<128x128xf32, #tpu.memory_space<vmem>>, %arg6: memref<64x128xf32, #tpu.memory_space<vmem>>, %arg7: memref<32x64xf32, #tpu.memory_space<vmem>>, %arg8: memref<4x32xf32, #tpu.memory_space<vmem>>, %arg9: memref<384x8xf32, #tpu.memory_space<vmem>>, %arg10: memref<1x4x128xf32, #tpu.memory_space<vmem>>) attributes {dimension_semantics = [#tpu.dimension_semantics<parallel>], iteration_bounds = array<i64: 1>, scalar_prefetch = 0 : i64, scratch_operands = 0 : i64, tpu.core_type = #tpu.core_type<tc>, window_params = [{transform_indices = @transform_0, window_bounds = array<i64: 1, 128, 128>}, {transform_indices = @transform_1, window_bounds = array<i64: 1, 1, 128>}, {pipeline_mode = #tpu.pipeline_mode<synchronous>, transform_indices = @transform_2, window_bounds = array<i64: 3, 128, 128>}, {pipeline_mode = #tpu.pipeline_mode<synchronous>, transform_indices = @transform_3, window_bounds = array<i64: 384, 128>}, {pipeline_mode = #tpu.pipeline_mode<synchronous>, transform_indices = @transform_4, window_bounds = array<i64: 128, 128>}, {pipeline_mode = #tpu.pipeline_mode<synchronous>, transform_indices = @transform_5, window_bounds = array<i64: 64, 128>}, {pipeline_mode = #tpu.pipeline_mode<synchronous>, transform_indices = @transform_6, window_bounds = array<i64: 32, 64>}, {pipeline_mode = #tpu.pipeline_mode<synchronous>, transform_indices = @transform_7, window_bounds = array<i64: 4, 32>}, {pipeline_mode = #tpu.pipeline_mode<synchronous>, transform_indices = @transform_8, window_bounds = array<i64: 384, 8>}, {transform_indices = @transform_9, window_bounds = array<i64: 1, 4, 128>}]} {
    %c0 = arith.constant 0 : index
    %c0_0 = arith.constant 0 : index
    %c0_1 = arith.constant 0 : index
    %0 = vector.load %arg1[%c0, %c0_0, %c0_1] : memref<1x128x128xf32, #tpu.memory_space<vmem>>, vector<1x128x128xf32>
    %1 = vector.shape_cast %0 : vector<1x128x128xf32> to vector<128x128xf32>
    %2 = tpu.transpose %1, [1, 0] : vector<128x128xf32> -> vector<128x128xf32>
    %c0_2 = arith.constant 0 : index
    %c0_3 = arith.constant 0 : index
    %3 = vector.load %arg9[%c0_2, %c0_3] : memref<384x8xf32, #tpu.memory_space<vmem>>, vector<384x1xf32>
    %c0_4 = arith.constant 0 : index
    %c1 = arith.constant 1 : index
    %4 = vector.load %arg9[%c0_4, %c1] : memref<384x8xf32, #tpu.memory_space<vmem>>, vector<128x1xf32>
    %c0_5 = arith.constant 0 : index
    %c2 = arith.constant 2 : index
    %5 = vector.load %arg9[%c0_5, %c2] : memref<384x8xf32, #tpu.memory_space<vmem>>, vector<128x1xf32>
    %c0_6 = arith.constant 0 : index
    %c3 = arith.constant 3 : index
    %6 = vector.load %arg9[%c0_6, %c3] : memref<384x8xf32, #tpu.memory_space<vmem>>, vector<128x1xf32>
    %c0_7 = arith.constant 0 : index
    %c4 = arith.constant 4 : index
    %7 = vector.load %arg9[%c0_7, %c4] : memref<384x8xf32, #tpu.memory_space<vmem>>, vector<64x1xf32>
    %c0_8 = arith.constant 0 : index
    %c5 = arith.constant 5 : index
    %8 = vector.load %arg9[%c0_8, %c5] : memref<384x8xf32, #tpu.memory_space<vmem>>, vector<32x1xf32>
    %c0_9 = arith.constant 0 : index
    %c6 = arith.constant 6 : index
    %9 = vector.load %arg9[%c0_9, %c6] : memref<384x8xf32, #tpu.memory_space<vmem>>, vector<4x1xf32>
    %c0_10 = arith.constant 0 : index
    %c0_11 = arith.constant 0 : index
    %c0_12 = arith.constant 0 : index
    %10 = vector.load %arg3[%c0_10, %c0_11, %c0_12] : memref<3x128x128xf32, #tpu.memory_space<vmem>>, vector<1x128x128xf32>
    %11 = vector.shape_cast %10 : vector<1x128x128xf32> to vector<128x128xf32>
    %c1_13 = arith.constant 1 : index
    %c0_14 = arith.constant 0 : index
    %c0_15 = arith.constant 0 : index
    %12 = vector.load %arg3[%c1_13, %c0_14, %c0_15] : memref<3x128x128xf32, #tpu.memory_space<vmem>>, vector<1x128x128xf32>
    %13 = vector.shape_cast %12 : vector<1x128x128xf32> to vector<128x128xf32>
    %c2_16 = arith.constant 2 : index
    %c0_17 = arith.constant 0 : index
    %c0_18 = arith.constant 0 : index
    %14 = vector.load %arg3[%c2_16, %c0_17, %c0_18] : memref<3x128x128xf32, #tpu.memory_space<vmem>>, vector<1x128x128xf32>
    %15 = vector.shape_cast %14 : vector<1x128x128xf32> to vector<128x128xf32>
    %c0_19 = arith.constant 0 : index
    %c0_20 = arith.constant 0 : index
    %c0_21 = arith.constant 0 : index
    %16 = vector.load %arg2[%c0_19, %c0_20, %c0_21] : memref<1x1x128xf32, #tpu.memory_space<vmem>>, vector<1x1x128xf32>
    %17 = vector.shape_cast %16 : vector<1x1x128xf32> to vector<1x128xf32>
    %cst = arith.constant 1.000000e+00 : f32
    %18 = vector.broadcast %cst : f32 to vector<1x128xf32>
    %19 = arith.subf %18, %17 : vector<1x128xf32>
    %20 = vector.broadcast %19 : vector<1x128xf32> to vector<128x128xf32>
    %21 = arith.mulf %20, %15 : vector<128x128xf32>
    %22 = vector.broadcast %17 : vector<1x128xf32> to vector<128x128xf32>
    %23 = arith.addf %22, %21 : vector<128x128xf32>
    %cst_22 = arith.constant 6.24999998E-8 : f32
    %24 = vector.broadcast %cst_22 : f32 to vector<128x128xf32>
    %25 = arith.mulf %13, %24 : vector<128x128xf32>
    %c0_23 = arith.constant 0 : index
    %c0_24 = arith.constant 0 : index
    %26 = vector.load %arg4[%c0_23, %c0_24] : memref<384x128xf32, #tpu.memory_space<vmem>>, vector<384x128xf32>
    %cst_25 = arith.constant dense<0.000000e+00> : vector<384x128xf32>
    %27 = tpu.matmul %26, %2, %cst_25 {dimension_numbers = #tpu.dot_dimension_numbers<[1], [0], [0], [1], [0, 0, 1, 1], [], []>} : vector<384x128xf32>, vector<128x128xf32>, vector<384x128xf32> -> vector<384x128xf32>
    %28 = vector.broadcast %3 : vector<384x1xf32> to vector<384x128xf32>
    %29 = arith.addf %27, %28 : vector<384x128xf32>
    %30 = vector.extract_strided_slice %29 {offsets = [0, 0], sizes = [128, 128], strides = [1, 1]} : vector<384x128xf32> to vector<128x128xf32>
    %31 = vector.shape_cast %30 : vector<128x128xf32> to vector<8x16x128xf32>
    %32 = tpu.transpose %31, [0, 2, 1] : vector<8x16x128xf32> -> vector<8x128x16xf32>
    %cst_26 = arith.constant 2.500000e-01 : f32
    %33 = vector.broadcast %cst_26 : f32 to vector<8x128x16xf32>
    %34 = arith.mulf %32, %33 : vector<8x128x16xf32>
    %35 = vector.extract_strided_slice %29 {offsets = [128, 0], sizes = [128, 128], strides = [1, 1]} : vector<384x128xf32> to vector<128x128xf32>
    %36 = vector.shape_cast %35 : vector<128x128xf32> to vector<8x16x128xf32>
    %37 = vector.extract_strided_slice %29 {offsets = [256, 0], sizes = [128, 128], strides = [1, 1]} : vector<384x128xf32> to vector<128x128xf32>
    %38 = vector.shape_cast %37 : vector<128x128xf32> to vector<8x16x128xf32>
    %cst_27 = arith.constant dense<0.000000e+00> : vector<8x128x128xf32>
    %39 = tpu.matmul %34, %36, %cst_27 {dimension_numbers = #tpu.dot_dimension_numbers<[2], [1], [1], [2], [0, 0, 0, 1, 1, 2], [0], [0]>} : vector<8x128x16xf32>, vector<8x16x128xf32>, vector<8x128x128xf32> -> vector<8x128x128xf32>
    %40 = vector.shape_cast %11 : vector<128x128xf32> to vector<1x128x128xf32>
    %41 = vector.broadcast %40 : vector<1x128x128xf32> to vector<8x128x128xf32>
    %42 = arith.addf %39, %41 : vector<8x128x128xf32>
    %cst_28 = arith.constant dense<0xFF800000> : vector<8x128xf32>
    %43 = vector.multi_reduction <maximumf>, %42, %cst_28 [2] : vector<8x128x128xf32> to vector<8x128xf32>
    %44 = vector.shape_cast %43 : vector<8x128xf32> to vector<8x128x1xf32>
    %45 = vector.broadcast %44 : vector<8x128x1xf32> to vector<8x128x128xf32>
    %46 = arith.subf %42, %45 : vector<8x128x128xf32>
    %47 = math.exp %46 : vector<8x128x128xf32>
    %48 = vector.shape_cast %23 : vector<128x128xf32> to vector<1x128x128xf32>
    %49 = vector.broadcast %48 : vector<1x128x128xf32> to vector<8x128x128xf32>
    %50 = arith.mulf %47, %49 : vector<8x128x128xf32>
    %cst_29 = arith.constant dense<0.000000e+00> : vector<8x128xf32>
    %51 = vector.multi_reduction <add>, %50, %cst_29 [2] : vector<8x128x128xf32> to vector<8x128xf32>
    %52 = vector.shape_cast %51 : vector<8x128xf32> to vector<8x128x1xf32>
    %cst_30 = arith.constant 9.99999997E-7 : f32
    %53 = vector.broadcast %cst_30 : f32 to vector<8x128x1xf32>
    %54 = arith.addf %52, %53 : vector<8x128x1xf32>
    %55 = vector.shape_cast %25 : vector<128x128xf32> to vector<1x128x128xf32>
    %56 = vector.broadcast %55 : vector<1x128x128xf32> to vector<8x128x128xf32>
    %57 = arith.addf %50, %56 : vector<8x128x128xf32>
    %58 = vector.broadcast %54 : vector<8x128x1xf32> to vector<8x128x128xf32>
    %59 = arith.divf %57, %58 : vector<8x128x128xf32>
    %cst_31 = arith.constant dense<0.000000e+00> : vector<8x16x128xf32>
    %60 = tpu.matmul %38, %59, %cst_31 {dimension_numbers = #tpu.dot_dimension_numbers<[2], [2], [1], [1], [0, 0, 0, 1, 1, 1], [0], [0]>} : vector<8x16x128xf32>, vector<8x128x128xf32>, vector<8x16x128xf32> -> vector<8x16x128xf32>
    %61 = vector.shape_cast %60 : vector<8x16x128xf32> to vector<128x128xf32>
    %c0_32 = arith.constant 0 : index
    %c0_33 = arith.constant 0 : index
    %62 = vector.load %arg5[%c0_32, %c0_33] : memref<128x128xf32, #tpu.memory_space<vmem>>, vector<128x128xf32>
    %cst_34 = arith.constant dense<0.000000e+00> : vector<128x128xf32>
    %63 = tpu.matmul %62, %61, %cst_34 {dimension_numbers = #tpu.dot_dimension_numbers<[1], [0], [0], [1], [0, 0, 1, 1], [], []>} : vector<128x128xf32>, vector<128x128xf32>, vector<128x128xf32> -> vector<128x128xf32>
    %64 = arith.addf %2, %63 : vector<128x128xf32>
    %65 = vector.broadcast %4 : vector<128x1xf32> to vector<128x128xf32>
    %66 = arith.addf %64, %65 : vector<128x128xf32>
    %cst_35 = arith.constant dense<0.000000e+00> : vector<128xf32>
    %67 = vector.multi_reduction <add>, %66, %cst_35 [0] : vector<128x128xf32> to vector<128xf32>
    %68 = vector.shape_cast %67 : vector<128xf32> to vector<1x128xf32>
    %cst_36 = arith.constant 1.280000e+02 : f32
    %69 = vector.broadcast %cst_36 : f32 to vector<1x128xf32>
    %70 = arith.divf %68, %69 : vector<1x128xf32>
    %71 = vector.broadcast %70 : vector<1x128xf32> to vector<128x128xf32>
    %72 = arith.subf %66, %71 : vector<128x128xf32>
    %73 = arith.mulf %72, %72 : vector<128x128xf32>
    %cst_37 = arith.constant dense<0.000000e+00> : vector<128xf32>
    %74 = vector.multi_reduction <add>, %73, %cst_37 [0] : vector<128x128xf32> to vector<128xf32>
    %75 = vector.shape_cast %74 : vector<128xf32> to vector<1x128xf32>
    %cst_38 = arith.constant 1.280000e+02 : f32
    %76 = vector.broadcast %cst_38 : f32 to vector<1x128xf32>
    %77 = arith.divf %75, %76 : vector<1x128xf32>
    %78 = vector.broadcast %70 : vector<1x128xf32> to vector<128x128xf32>
    %79 = arith.subf %66, %78 : vector<128x128xf32>
    %cst_39 = arith.constant 9.99999974E-6 : f32
    %80 = vector.broadcast %cst_39 : f32 to vector<1x128xf32>
    %81 = arith.addf %77, %80 : vector<1x128xf32>
    %82 = math.rsqrt %81 : vector<1x128xf32>
    %83 = vector.broadcast %82 : vector<1x128xf32> to vector<128x128xf32>
    %84 = arith.mulf %79, %83 : vector<128x128xf32>
    %85 = vector.broadcast %5 : vector<128x1xf32> to vector<128x128xf32>
    %86 = arith.mulf %84, %85 : vector<128x128xf32>
    %87 = vector.broadcast %6 : vector<128x1xf32> to vector<128x128xf32>
    %88 = arith.addf %86, %87 : vector<128x128xf32>
    %c0_40 = arith.constant 0 : index
    %c0_41 = arith.constant 0 : index
    %89 = vector.load %arg6[%c0_40, %c0_41] : memref<64x128xf32, #tpu.memory_space<vmem>>, vector<64x128xf32>
    %cst_42 = arith.constant dense<0.000000e+00> : vector<64x128xf32>
    %90 = tpu.matmul %89, %88, %cst_42 {dimension_numbers = #tpu.dot_dimension_numbers<[1], [0], [0], [1], [0, 0, 1, 1], [], []>} : vector<64x128xf32>, vector<128x128xf32>, vector<64x128xf32> -> vector<64x128xf32>
    %91 = vector.broadcast %7 : vector<64x1xf32> to vector<64x128xf32>
    %92 = arith.addf %90, %91 : vector<64x128xf32>
    %cst_43 = arith.constant 5.000000e-01 : f32
    %93 = vector.broadcast %cst_43 : f32 to vector<64x128xf32>
    %94 = arith.mulf %93, %92 : vector<64x128xf32>
    %cst_44 = arith.constant 0.707106769 : f32
    %95 = vector.broadcast %cst_44 : f32 to vector<64x128xf32>
    %96 = arith.mulf %92, %95 : vector<64x128xf32>
    %97 = math.erf %96 : vector<64x128xf32>
    %cst_45 = arith.constant 1.000000e+00 : f32
    %98 = vector.broadcast %cst_45 : f32 to vector<64x128xf32>
    %99 = arith.addf %98, %97 : vector<64x128xf32>
    %100 = arith.mulf %94, %99 : vector<64x128xf32>
    %c0_46 = arith.constant 0 : index
    %c0_47 = arith.constant 0 : index
    %101 = vector.load %arg7[%c0_46, %c0_47] : memref<32x64xf32, #tpu.memory_space<vmem>>, vector<32x64xf32>
    %cst_48 = arith.constant dense<0.000000e+00> : vector<32x128xf32>
    %102 = tpu.matmul %101, %100, %cst_48 {dimension_numbers = #tpu.dot_dimension_numbers<[1], [0], [0], [1], [0, 0, 1, 1], [], []>} : vector<32x64xf32>, vector<64x128xf32>, vector<32x128xf32> -> vector<32x128xf32>
    %103 = vector.broadcast %8 : vector<32x1xf32> to vector<32x128xf32>
    %104 = arith.addf %102, %103 : vector<32x128xf32>
    %cst_49 = arith.constant 5.000000e-01 : f32
    %105 = vector.broadcast %cst_49 : f32 to vector<32x128xf32>
    %106 = arith.mulf %105, %104 : vector<32x128xf32>
    %cst_50 = arith.constant 0.707106769 : f32
    %107 = vector.broadcast %cst_50 : f32 to vector<32x128xf32>
    %108 = arith.mulf %104, %107 : vector<32x128xf32>
    %109 = math.erf %108 : vector<32x128xf32>
    %cst_51 = arith.constant 1.000000e+00 : f32
    %110 = vector.broadcast %cst_51 : f32 to vector<32x128xf32>
    %111 = arith.addf %110, %109 : vector<32x128xf32>
    %112 = arith.mulf %106, %111 : vector<32x128xf32>
    %c0_52 = arith.constant 0 : index
    %c0_53 = arith.constant 0 : index
    %113 = vector.load %arg8[%c0_52, %c0_53] : memref<4x32xf32, #tpu.memory_space<vmem>>, vector<4x32xf32>
    %cst_54 = arith.constant dense<0.000000e+00> : vector<4x128xf32>
    %114 = tpu.matmul %113, %112, %cst_54 {dimension_numbers = #tpu.dot_dimension_numbers<[1], [0], [0], [1], [0, 0, 1, 1], [], []>} : vector<4x32xf32>, vector<32x128xf32>, vector<4x128xf32> -> vector<4x128xf32>
    %115 = vector.broadcast %9 : vector<4x1xf32> to vector<4x128xf32>
    %116 = arith.addf %114, %115 : vector<4x128xf32>
    %117 = vector.extract_strided_slice %116 {offsets = [0, 0], sizes = [1, 128], strides = [1, 1]} : vector<4x128xf32> to vector<1x128xf32>
    %118 = vector.extract_strided_slice %116 {offsets = [1, 0], sizes = [1, 128], strides = [1, 1]} : vector<4x128xf32> to vector<1x128xf32>
    %119 = vector.extract_strided_slice %116 {offsets = [2, 0], sizes = [1, 128], strides = [1, 1]} : vector<4x128xf32> to vector<1x128xf32>
    %120 = vector.extract_strided_slice %116 {offsets = [3, 0], sizes = [1, 128], strides = [1, 1]} : vector<4x128xf32> to vector<1x128xf32>
    %121 = arith.maximumf %117, %118 : vector<1x128xf32>
    %122 = arith.subf %117, %121 : vector<1x128xf32>
    %123 = math.exp %122 : vector<1x128xf32>
    %124 = arith.subf %118, %121 : vector<1x128xf32>
    %125 = math.exp %124 : vector<1x128xf32>
    %126 = arith.addf %123, %125 : vector<1x128xf32>
    %127 = math.log %126 : vector<1x128xf32>
    %128 = arith.addf %121, %127 : vector<1x128xf32>
    %129 = arith.maximumf %119, %120 : vector<1x128xf32>
    %130 = arith.subf %119, %129 : vector<1x128xf32>
    %131 = math.exp %130 : vector<1x128xf32>
    %132 = arith.subf %120, %129 : vector<1x128xf32>
    %133 = math.exp %132 : vector<1x128xf32>
    %134 = arith.addf %131, %133 : vector<1x128xf32>
    %135 = math.log %134 : vector<1x128xf32>
    %136 = arith.addf %129, %135 : vector<1x128xf32>
    %137 = tpu.concatenate %128, %128, %136, %136 in 0 : vector<1x128xf32>, vector<1x128xf32>, vector<1x128xf32>, vector<1x128xf32> -> vector<4x128xf32>
    %138 = arith.subf %116, %137 : vector<4x128xf32>
    %c0_55 = arith.constant 0 : index
    %c0_56 = arith.constant 0 : index
    %c0_57 = arith.constant 0 : index
    %139 = vector.load %arg10[%c0_55, %c0_56, %c0_57] : memref<1x4x128xf32, #tpu.memory_space<vmem>>, vector<1x4x128xf32>
    %140 = vector.shape_cast %139 : vector<1x4x128xf32> to vector<4x128xf32>
    %141 = vector.shape_cast %138 : vector<4x128xf32> to vector<1x4x128xf32>
    tpu.vector_store %arg10[%c0_55, %c0_56, %c0_57], %141 {strides = array<i32>} : memref<1x4x128xf32, #tpu.memory_space<vmem>>, vector<1x4x128xf32>,
    return
  }
  func.func @transform_0(%arg0: i32) -> (i32, i32, i32) {
    %c0_i32 = arith.constant 0 : i32
    %c0_i32_0 = arith.constant 0 : i32
    %c0_i32_1 = arith.constant 0 : i32
    return %arg0, %c0_i32, %c0_i32_0 : i32, i32, i32
  }
  func.func @transform_1(%arg0: i32) -> (i32, i32, i32) {
    %c0_i32 = arith.constant 0 : i32
    %c0_i32_0 = arith.constant 0 : i32
    %c0_i32_1 = arith.constant 0 : i32
    return %arg0, %c0_i32, %c0_i32_0 : i32, i32, i32
  }
  func.func @transform_2(%arg0: i32) -> (i32, i32, i32) {
    %c0_i32 = arith.constant 0 : i32
    %c0_i32_0 = arith.constant 0 : i32
    %c0_i32_1 = arith.constant 0 : i32
    %c0_i32_2 = arith.constant 0 : i32
    return %c0_i32, %c0_i32_0, %c0_i32_1 : i32, i32, i32
  }
  func.func @transform_3(%arg0: i32) -> (i32, i32) {
    %c0_i32 = arith.constant 0 : i32
    %c0_i32_0 = arith.constant 0 : i32
    %c0_i32_1 = arith.constant 0 : i32
    return %c0_i32, %c0_i32_0 : i32, i32
  }
  func.func @transform_4(%arg0: i32) -> (i32, i32) {
    %c0_i32 = arith.constant 0 : i32
    %c0_i32_0 = arith.constant 0 : i32
    %c0_i32_1 = arith.constant 0 : i32
    return %c0_i32, %c0_i32_0 : i32, i32
  }
  func.func @transform_5(%arg0: i32) -> (i32, i32) {
    %c0_i32 = arith.constant 0 : i32
    %c0_i32_0 = arith.constant 0 : i32
    %c0_i32_1 = arith.constant 0 : i32
    return %c0_i32, %c0_i32_0 : i32, i32
  }
  func.func @transform_6(%arg0: i32) -> (i32, i32) {
    %c0_i32 = arith.constant 0 : i32
    %c0_i32_0 = arith.constant 0 : i32
    %c0_i32_1 = arith.constant 0 : i32
    return %c0_i32, %c0_i32_0 : i32, i32
  }
  func.func @transform_7(%arg0: i32) -> (i32, i32) {
    %c0_i32 = arith.constant 0 : i32
    %c0_i32_0 = arith.constant 0 : i32
    %c0_i32_1 = arith.constant 0 : i32
    return %c0_i32, %c0_i32_0 : i32, i32
  }
  func.func @transform_8(%arg0: i32) -> (i32, i32) {
    %c0_i32 = arith.constant 0 : i32
    %c0_i32_0 = arith.constant 0 : i32
    %c0_i32_1 = arith.constant 0 : i32
    return %c0_i32, %c0_i32_0 : i32, i32
  }
  func.func @transform_9(%arg0: i32) -> (i32, i32, i32) {
    %c0_i32 = arith.constant 0 : i32
    %c0_i32_0 = arith.constant 0 : i32
    %c0_i32_1 = arith.constant 0 : i32
    return %arg0, %c0_i32, %c0_i32_0 : i32, i32, i32
  }
}

</mosaic_0001>

<bundles_post_ra>
// kernel: tpu_custom_call.1
= control target key start
LH: loop header
LB: loop body
LE: loop exit
PB: predicated region body
PF: predicated region fallthrough
CT: control target
= control target key end

     0   :  { %14 = vsyncpa [#allocation3], 0  ;;  %s14510_s0 = inlined_call_operand.hbm [shape: f32[1,128,128], index: 0, kind: input, shape index: {}]   ;;  %s14511_s1 = inlined_call_operand.vmem [shape: f32[1,1,128], index: 1, kind: input, shape index: {}]   ;;  %s14512_s2 = inlined_call_operand.vmem [shape: f32[3,128,128], index: 2, kind: input, shape index: {}]   ;;  %s14513_s3 = inlined_call_operand.hbm [shape: f32[384,128], index: 3, kind: input, shape index: {}]   ;;  %s14514_s4 = inlined_call_operand.hbm [shape: f32[128,128], index: 4, kind: input, shape index: {}]   ;;  %s14515_s5 = inlined_call_operand.hbm [shape: f32[64,128], index: 5, kind: input, shape index: {}]   ;;  %s14516_s6 = inlined_call_operand.hbm [shape: f32[32,64], index: 6, kind: input, shape index: {}]   ;;  %s14517_s7 = inlined_call_operand.vmem [shape: f32[4,32], index: 7, kind: input, shape index: {}]   ;;  %s14518_s8 = inlined_call_operand.vmem [shape: f32[384,8], index: 8, kind: input, shape index: {}]   ;;  %s14519_s9 = inlined_call_operand.hbm [shape: f32[1,4,128], index: 9, kind: output, shape index: {}]  }
   0x1   :  { %15 = vsyncpa [#allocation6], 0 }
   0x2   :  { %16 = vsyncpa [#allocation9], 0 }
   0x3   :  { %17 = vsyncpa [#allocation4], 0  ;;  %s39_s11 = sshll.u32 %s14513_s3, 4  ;;  %s7596_s12 = smov [#allocation5]   ;;  %s40_s11 = int_to_ptr.hbm [resolvable:$true] %s39_s11 }
   0x4   :  { %s41_s13 = sshll.u32 %s7596_s12, 4  ;;  %s65_s16 = sshll.u32 %s14515_s5, 4  ;;  %s42_s13 = int_to_ptr.vmem [resolvable:$true] %s41_s13  ;;  %s66_s16 = int_to_ptr.hbm [resolvable:$true] %s65_s16 }
   0x5   :  { %s7597_s17 = smov 128   ;;  %s7598_s18 = smov 8  }
   0x6   :  { %47 = dma.hbm_to_vmem [thread:$0]  %s40_s11, 6144, %s42_s13, [#allocation6], %s7597_s17, %s7597_s17, %s7598_s18  }
   0x7   :  { %s7599_s19 = smov [#allocation8]   ;;  %s22_s23 = sshll.u32 %s14510_s0, 4  ;;  %s23_s23 = int_to_ptr.hbm [resolvable:$true] %s22_s23 }
   0x8   :  { %s67_s20 = sshll.u32 %s7599_s19, 4  ;;  %s52_s25 = sshll.u32 %s14514_s4, 4  ;;  %s68_s20 = int_to_ptr.vmem [resolvable:$true] %s67_s20  ;;  %s53_s25 = int_to_ptr.hbm [resolvable:$true] %s52_s25 }
   0x9   :  { %73 = dma.hbm_to_vmem [thread:$0]  %s66_s16, 1024, %s68_s20, [#allocation9], %s7597_s17, %s7597_s17, %s7598_s18  }
   0xa   :  { %s7600_s26 = smov [#allocation2]   ;;  %s7601_s5 = smov [#allocation7]  }
   0xb   :  { %s24_s27 = sshll.u32 %s7600_s26, 4  ;;  %s54_s28 = sshll.u32 %s7601_s5, 4  ;;  %s25_s27 = int_to_ptr.vmem [resolvable:$true] %s24_s27  ;;  %s55_s28 = int_to_ptr.vmem [resolvable:$true] %s54_s28 }
   0xc   :  { %30 = dma.hbm_to_vmem [thread:$0]  %s23_s23, 2048, %s25_s27, [#allocation3], %s7597_s17, %s7597_s17, %s7598_s18  }
   0xd   :  { %s78_s10 = sshll.u32 %s14516_s6, 4  ;;  %s7602_s0 = smov [#allocation10]   ;;  %s79_s10 = int_to_ptr.hbm [resolvable:$true] %s78_s10 }
   0xe   :  { %60 = dma.hbm_to_vmem [thread:$0]  %s53_s25, 2048, %s55_s28, [#allocation6], %s7597_s17, %s7597_s17, %s7598_s18  }
   0xf   :  { %s80_s11 = sshll.u32 %s7602_s0, 4  ;;  %s81_s11 = int_to_ptr.vmem [resolvable:$true] %s80_s11 }
  0x10   :  { %86 = dma.hbm_to_vmem [thread:$0]  %s79_s10, 512, %s81_s11, [#allocation9], %s7597_s17, %s7597_s17, %s7598_s18  }
  0x11   :  { %7588 = dma.done.wait [#allocation3], 2048  }
  0x12   :  { %7589 = vsyncadd [#allocation3], 4294965248 }
  0x13   :  { %7590 = dma.done.wait [#allocation6], 8192  }
  0x14   :  { %7591 = vsyncadd [#allocation6], 4294959104 }
  0x15   :  { %7592 = dma.done.wait [#allocation9], 1536  }
  0x16   :  { %7593 = vsyncadd [#allocation9], 4294965760  ;;  %v111_v0 = vld [vmem:[#allocation2] sm:$0xff]  ;;  %v112_v1 = vld [vmem:[#allocation2 + $0x8] sm:$0xff]  ;;  %v7603_v28 = vmov 0   ;;  %vm1147_vm0 = vcmask 130048  }
  0x17   :  { %127 = vxpose.xlu0.b32.start [1/16] %v111_v0, 128  ;;  %v113_v2 = vld [vmem:[#allocation2 + $0x10] sm:$0xff]  ;;  %v114_v3 = vld [vmem:[#allocation2 + $0x18] sm:$0xff]  ;;  %v115_v4 = vld [vmem:[#allocation2 + $0x20] sm:$0xff]  ;;  %6830 = vset.pattern.permute.xlu1 %v7603_v28  ;;  %s6622_s20 = sshll.u32 %s14519_s9, 4  ;;  %s6623_s20 = int_to_ptr.hbm [resolvable:$true] %s6622_s20 }
  0x18   :  { %v116_v5 = vld [vmem:[#allocation2 + $0x28] sm:$0xff]  ;;  %v117_v6 = vld [vmem:[#allocation2 + $0x30] sm:$0xff]  ;;  %v118_v7 = vld [vmem:[#allocation2 + $0x38] sm:$0xff]  ;;  %6831 = vset.pattern.permute.xlu2 %v7603_v28 }
  0x19   :  { %v119_v8 = vld [vmem:[#allocation2 + $0x40] sm:$0xff]  ;;  %v120_v9 = vld [vmem:[#allocation2 + $0x48] sm:$0xff]  ;;  %v121_v10 = vld [vmem:[#allocation2 + $0x50] sm:$0xff] }
  0x1a   :  { %v122_v11 = vld [vmem:[#allocation2 + $0x58] sm:$0xff]  ;;  %v123_v12 = vld [vmem:[#allocation2 + $0x60] sm:$0xff]  ;;  %v124_v13 = vld [vmem:[#allocation2 + $0x68] sm:$0xff] }
  0x1b   :  { %v125_v14 = vld [vmem:[#allocation2 + $0x70] sm:$0xff]  ;;  %v126_v15 = vld [vmem:[#allocation2 + $0x78] sm:$0xff]  ;;  %v163_v34 = vld [vmem:[%s14518_s8 + $0x20] sm:$0xff] }
  0x1c   :  { %v161_v27 = vld [vmem:[%s14518_s8 + $0x10] sm:$0xff]  ;;  %v178_v30 = vld [vmem:[%s14518_s8 + $0x98] sm:$0xff]  ;;  %v159_v37 = vld [vmem:[%s14518_s8] sm:$0xff] }
  0x1d   :  { %374 = vperm.xlu1 %6830, %v161_v27   ;;  %v162_v31 = vld [vmem:[%s14518_s8 + $0x18] sm:$0xff]  ;;  %459 = vperm.xlu2 %6831, %v178_v30   ;;  %v177_v33 = vld [vmem:[%s14518_s8 + $0x90] sm:$0xff]  ;;  %v184_v39 = vld [vmem:[%s14518_s8 + $0xc8] sm:$0xff] }
  0x1e   :  { %v165_v36 = vld [vmem:[%s14518_s8 + $0x30] sm:$0xff]  ;;  %v160_v40 = vld [vmem:[%s14518_s8 + $0x8] sm:$0xff]  ;;  %v166_v42 = vld [vmem:[%s14518_s8 + $0x38] sm:$0xff] }
  0x1f   :  { %128 = vxpose.xlu0.b32.cont [2/16] %v112_v1, 128  ;;  %v176_v43 = vld [vmem:[%s14518_s8 + $0x88] sm:$0xff]  ;;  %v183_v44 = vld [vmem:[%s14518_s8 + $0xc0] sm:$0xff]  ;;  %v181_v47 = vld [vmem:[%s14518_s8 + $0xb0] sm:$0xff] }
  0x20   :  { %v175_v45 = vld [vmem:[%s14518_s8 + $0x80] sm:$0xff]  ;;  %v180_v46 = vld [vmem:[%s14518_s8 + $0xa8] sm:$0xff]  ;;  %v174_v50 = vld [vmem:[%s14518_s8 + $0x78] sm:$0xff] }
  0x21   :  { %v164_v48 = vld [vmem:[%s14518_s8 + $0x28] sm:$0xff]  ;;  %v179_v49 = vld [vmem:[%s14518_s8 + $0xa0] sm:$0xff]  ;;  %v173_v51 = vld [vmem:[%s14518_s8 + $0x70] sm:$0xff] }
  0x22   :  { %v167_v52 = vld [vmem:[%s14518_s8 + $0x40] sm:$0xff]  ;;  %v168_v54 = vld [vmem:[%s14518_s8 + $0x48] sm:$0xff]  ;;  %v182_v56 = vld [vmem:[%s14518_s8 + $0xb8] sm:$0xff] }
  0x23   :  { %v314_v53 = vld [vmem:[#allocation5] sm:$0xff]  ;;  %v315_v55 = vld [vmem:[#allocation5 + $0x8] sm:$0xff]  ;;  %v316_v57 = vld [vmem:[#allocation5 + $0x10] sm:$0xff] }
  0x24   :  { %v169_v58 = vld [vmem:[%s14518_s8 + $0x50] sm:$0xff]  ;;  %v317_v59 = vld [vmem:[#allocation5 + $0x18] sm:$0xff]  ;;  %v171_v60 = vld [vmem:[%s14518_s8 + $0x60] sm:$0xff] }
  0x25   :  { %379 = vperm.xlu1 %6830, %v162_v31   ;;  %454 = vperm.xlu2 %6831, %v177_v33   ;;  %v318_v61 = vld [vmem:[#allocation5 + $0x20] sm:$0xff]  ;;  %v170_v62 = vld [vmem:[%s14518_s8 + $0x58] sm:$0xff]  ;;  %v319_v63 = vld [vmem:[#allocation5 + $0x28] sm:$0xff] }
  0x26   :  { %v320_v0 = vld [vmem:[#allocation5 + $0x30] sm:$0xff]  ;;  %v321_v1 = vld [vmem:[#allocation5 + $0x38] sm:$0xff]  ;;  %v331_v30 = vld [vmem:[#allocation5 + $0x88] sm:$0xff] }
  0x27   :  { %129 = vxpose.xlu0.b32.cont [3/16] %v113_v2, 128  ;;  %v322_v2 = vld [vmem:[#allocation5 + $0x40] sm:$0xff] }
  0x2d   :  { %384 = vperm.xlu1 %6830, %v163_v34   ;;  %364 = vperm.xlu2 %6831, %v159_v37  }
  0x2f   :  { %130 = vxpose.xlu0.b32.cont [4/16] %v114_v3, 128  ;;  %v323_v3 = vld [vmem:[#allocation5 + $0x48] sm:$0xff] }
  0x35   :  { %394 = vperm.xlu1 %6830, %v165_v36   ;;  %369 = vperm.xlu2 %6831, %v160_v40   ;;  %v332_v36 = vld [vmem:[#allocation5 + $0x90] sm:$0xff] }
  0x37   :  { %131 = vxpose.xlu0.b32.cont [5/16] %v115_v4, 128  ;;  %v324_v4 = vld [vmem:[#allocation5 + $0x50] sm:$0xff] }
  0x3d   :  { %489 = vperm.xlu1 %6830, %v184_v39   ;;  %449 = vperm.xlu2 %6831, %v176_v43   ;;  %v333_v43 = vld [vmem:[#allocation5 + $0x98] sm:$0xff] }
  0x3f   :  { %132 = vxpose.xlu0.b32.cont [6/16] %v116_v5, 128  ;;  %v325_v5 = vld [vmem:[#allocation5 + $0x58] sm:$0xff] }
  0x45   :  { %399 = vperm.xlu1 %6830, %v166_v42   ;;  %444 = vperm.xlu2 %6831, %v175_v45  }
  0x47   :  { %133 = vxpose.xlu0.b32.cont [7/16] %v117_v6, 128  ;;  %v326_v6 = vld [vmem:[#allocation5 + $0x60] sm:$0xff] }
  0x4d   :  { %484 = vperm.xlu1 %6830, %v183_v44   ;;  %389 = vperm.xlu2 %6831, %v164_v48   ;;  %v334_v48 = vld [vmem:[#allocation5 + $0xa0] sm:$0xff] }
  0x4f   :  { %134 = vxpose.xlu0.b32.cont [8/16] %v118_v7, 128  ;;  %v327_v7 = vld [vmem:[#allocation5 + $0x68] sm:$0xff] }
  0x55   :  { %474 = vperm.xlu1 %6830, %v181_v47   ;;  %434 = vperm.xlu2 %6831, %v173_v51  }
  0x57   :  { %135 = vxpose.xlu0.b32.cont [9/16] %v119_v8, 128 }
  0x5d   :  { %439 = vperm.xlu1 %6830, %v174_v50  }
  0x5f   :  { %136 = vxpose.xlu0.b32.cont [10/16] %v120_v9, 128  ;;  %v328_v9 = vld [vmem:[#allocation5 + $0x70] sm:$0xff] }
  0x67   :  { %137 = vxpose.xlu0.b32.cont [11/16] %v121_v10, 128 }
  0x6f   :  { %138 = vxpose.xlu0.b32.cont [12/16] %v122_v11, 128  ;;  %v329_v11 = vld [vmem:[#allocation5 + $0x78] sm:$0xff] }
  0x77   :  { %139 = vxpose.xlu0.b32.cont [13/16] %v123_v12, 128  ;;  %v7800_v8 = vpop.permute.xlu2 %459 }
  0x7f   :  { %140 = vxpose.xlu0.b32.cont [14/16] %v124_v13, 128  ;;  %v7802_v10 = vpop.permute.xlu2 %454 }
  0x87   :  { %141 = vxpose.xlu0.b32.cont [15/16] %v125_v14, 128  ;;  %v365_v12 = vpop.permute.xlu2 %364  ;;  %v330_v14 = vld [vmem:[#allocation5 + $0x80] sm:$0xff] }
  0x8f   :  { %142 = vxpose.xlu0.b32.end [16/16] %v126_v15, 128  ;;  %v370_v27 = vpop.permute.xlu2 %369  ;;  %v375_v33 = vpop.permute.xlu1 %374 }
  0x97   :  { %v450_v39 = vpop.permute.xlu2 %449  ;;  %v380_v40 = vpop.permute.xlu1 %379 }
  0x9f   :  { %v445_v45 = vpop.permute.xlu2 %444 }
  0xa7   :  { %v390_v50 = vpop.permute.xlu2 %389 }
  0xbb   :  { %v7677_v16 = vpop.trf.xlu0 }
  0xbc   :  { %14894 = vst [vmem:[#allocation16_spill] sm:$0xff] %v7677_v16 }
  0xc3   :  { %v7679_v17 = vpop.trf.xlu0 }
  0xc4   :  { %14895 = vst [vmem:[#allocation17_spill] sm:$0xff] %v7679_v17 }
  0xcb   :  { %v7681_v18 = vpop.trf.xlu0 }
  0xcc   :  { %14896 = vst [vmem:[#allocation18_spill] sm:$0xff] %v7681_v18 }
  0xd3   :  { %v7683_v19 = vpop.trf.xlu0 }
  0xd4   :  { %14897 = vst [vmem:[#allocation19_spill] sm:$0xff] %v7683_v19 }
  0xdb   :  { %v7685_v20 = vpop.trf.xlu0 }
  0xdc   :  { %14898 = vst [vmem:[#allocation20_spill] sm:$0xff] %v7685_v20 }
  0xe3   :  { %v7687_v21 = vpop.trf.xlu0 }
  0xe4   :  { %14899 = vst [vmem:[#allocation21_spill] sm:$0xff] %v7687_v21 }
  0xeb   :  { %v7689_v22 = vpop.trf.xlu0 }
  0xec   :  { %14900 = vst [vmem:[#allocation22_spill] sm:$0xff] %v7689_v22 }
  0xf3   :  { %v7691_v23 = vpop.trf.xlu0 }
  0xf4   :  { %14901 = vst [vmem:[#allocation23_spill] sm:$0xff] %v7691_v23 }
  0xf6   :  { %6832 = vset.pattern.permute.xlu0 %v7603_v28 }
  0xfb   :  { %v7693_v24 = vpop.trf.xlu0 }
  0xfc   :  { %14902 = vst [vmem:[#allocation24_spill] sm:$0xff] %v7693_v24 }
  0xfd   :  { %469 = vperm.xlu0 %6832, %v180_v46   ;;  %v385_v46 = vpop.permute.xlu1 %384 }
 0x103   :  { %v7695_v25 = vpop.trf.xlu0 }
 0x104   :  { %14903 = vst [vmem:[#allocation25_spill] sm:$0xff] %v7695_v25 }
 0x105   :  { %464 = vperm.xlu0 %6832, %v179_v49  }
 0x10b   :  { %v7697_v26 = vpop.trf.xlu0 }
 0x10c   :  { %14904 = vst [vmem:[#allocation26_spill] sm:$0xff] %v7697_v26 }
 0x10d   :  { %404 = vperm.xlu0 %6832, %v167_v52   ;;  %v335_v52 = vld [vmem:[#allocation5 + $0xa8] sm:$0xff] }
 0x113   :  { %v7702_v29 = vpop.trf.xlu0 }
 0x114   :  { %14905 = vst [vmem:[#allocation27_spill] sm:$0xff] %v7702_v29 }
 0x115   :  { %409 = vperm.xlu0 %6832, %v168_v54  }
 0x11b   :  { %v7710_v32 = vpop.trf.xlu0 }
 0x11c   :  { %14906 = vst [vmem:[#allocation28_spill] sm:$0xff] %v7710_v32 }
 0x11d   :  { %479 = vperm.xlu0 %6832, %v182_v56  }
 0x123   :  { %v7718_v35 = vpop.trf.xlu0 }
 0x124   :  { %14907 = vst [vmem:[#allocation29_spill] sm:$0xff] %v7718_v35 }
 0x125   :  { %414 = vperm.xlu0 %6832, %v169_v58  }
 0x12b   :  { %v7726_v38 = vpop.trf.xlu0 }
 0x12c   :  { %14908 = vst [vmem:[#allocation30_spill] sm:$0xff] %v7726_v38 }
 0x12d   :  { %424 = vperm.xlu0 %6832, %v171_v60  }
 0x133   :  { %v7734_v41 = vpop.trf.xlu0 }
 0x134   :  { %14909 = vst [vmem:[#allocation31_spill] sm:$0xff] %v7734_v41  ;;  %602 = vmatpush.msra.mxu0 %v7734_v41 }
 0x135   :  { %419 = vperm.xlu0 %6832, %v170_v62  }
 0x136   :  { %603 = vmatpush.msra.mxu0 %v7726_v38 }
 0x138   :  { %604 = vmatpush.msra.mxu0 %v7718_v35 }
 0x13a   :  { %605 = vmatpush.msra.mxu0 %v7710_v32 }
 0x13c   :  { %606 = vmatpush.msra.mxu0 %v7702_v29 }
 0x13e   :  { %607 = vmatpush.msra.mxu0 %v7697_v26 }
 0x140   :  { %608 = vmatpush.msra.mxu0 %v7695_v25 }
 0x142   :  { %609 = vmatpush.msra.mxu0 %v7693_v24 }
 0x144   :  { %610 = vmatpush.msra.mxu0 %v7691_v23 }
 0x146   :  { %611 = vmatpush.msra.mxu0 %v7689_v22 }
 0x148   :  { %612 = vmatpush.msra.mxu0 %v7687_v21 }
 0x14a   :  { %613 = vmatpush.msra.mxu0 %v7685_v20 }
 0x14c   :  { %614 = vmatpush.msra.mxu0 %v7683_v19 }
 0x14e   :  { %615 = vmatpush.msra.mxu0 %v7681_v18 }
 0x150   :  { %616 = vmatpush.msra.mxu0 %v7679_v17 }
 0x152   :  { %617 = vmatpush.msra.mxu0 %v7677_v16 }
 0x153   :  { %618 = vmatmul.f32.vlgmr.msra.gmra.mxu0 %v314_v53 }
 0x15b   :  { %621 = vmatmul.f32.gmra.mxu0 %v315_v55  ;;  %v336_v55 = vld [vmem:[#allocation5 + $0xb0] sm:$0xff] }
 0x163   :  { %624 = vmatmul.f32.gmra.mxu0 %v316_v57  ;;  %v337_v57 = vld [vmem:[#allocation5 + $0xb8] sm:$0xff] }
 0x16b   :  { %627 = vmatmul.f32.gmra.mxu0 %v317_v59  ;;  %v338_v59 = vld [vmem:[#allocation5 + $0xc0] sm:$0xff] }
 0x173   :  { %630 = vmatmul.f32.gmra.mxu0 %v318_v61  ;;  %v339_v61 = vld [vmem:[#allocation5 + $0xc8] sm:$0xff] }
 0x17b   :  { %633 = vmatmul.f32.gmra.mxu0 %v319_v63 }
 0x183   :  { %636 = vmatmul.f32.gmra.mxu0 %v320_v0 }
 0x18b   :  { %639 = vmatmul.f32.gmra.mxu0 %v321_v1  ;;  %v470_v1 = vpop.permute.xlu0 %469 }
 0x193   :  { %642 = vmatmul.f32.gmra.mxu0 %v322_v2 }
 0x19b   :  { %645 = vmatmul.f32.gmra.mxu0 %v323_v3  ;;  %v465_v3 = vpop.permute.xlu0 %464 }
 0x1a3   :  { %648 = vmatmul.f32.gmra.mxu0 %v324_v4 }
 0x1ab   :  { %651 = vmatmul.f32.gmra.mxu0 %v325_v5  ;;  %v405_v5 = vpop.permute.xlu0 %404 }
 0x1b3   :  { %654 = vmatmul.f32.gmra.mxu0 %v326_v6 }
 0x1bb   :  { %657 = vmatmul.f32.gmra.mxu0 %v327_v7  ;;  %v395_v7 = vpop.permute.xlu1 %394 }
 0x1c3   :  { %660 = vmatmul.f32.gmra.mxu0 %v328_v9 }
 0x1cb   :  { %663 = vmatmul.f32.gmra.mxu0 %v329_v11  ;;  %v410_v11 = vpop.permute.xlu0 %409 }
 0x1d0   :  { %v619_v13 = vpop.f32.mrf.mxu0 }
 0x1d1   :  { %v620_v15 = vadd.f32 %v619_v13, %v365_v12  ;;  %v7812_v13 = vpop.permute.xlu1 %489 }
 0x1d3   :  { %666 = vmatmul.f32.gmra.mxu0 %v330_v14  ;;  %763 = vxpose.xlu2.b32.start [1/2] (short) %v620_v15, 128 }
 0x1d8   :  { %v622_v28 = vpop.f32.mrf.mxu0 }
 0x1d9   :  { %v623_v31 = vadd.f32 %v622_v28, %v370_v27  ;;  %v480_v28 = vpop.permute.xlu0 %479 }
 0x1db   :  { %669 = vmatmul.f32.gmra.mxu0 %v331_v30  ;;  %764 = vxpose.xlu2.b32.end [2/2] (short) %v623_v31, 128 }
 0x1e0   :  { %v625_v34 = vpop.f32.mrf.mxu0 }
 0x1e1   :  { %v626_v37 = vadd.f32 %v625_v34, %v375_v33  ;;  %v400_v33 = vpop.permute.xlu1 %399 }
 0x1e3   :  { %672 = vmatmul.f32.gmra.mxu0 %v332_v36  ;;  %795 = vxpose.xlu1.b32.start [1/2] (short) %v626_v37, 128  ;;  %v7814_v36 = vpop.permute.xlu2 %434  ;;  %v415_v37 = vpop.permute.xlu0 %414 }
 0x1e8   :  { %v628_v42 = vpop.f32.mrf.mxu0 }
 0x1e9   :  { %v629_v44 = vadd.f32 %v628_v42, %v380_v40 }
 0x1eb   :  { %675 = vmatmul.f32.gmra.mxu0 %v333_v43  ;;  %796 = vxpose.xlu1.b32.end [2/2] (short) %v629_v44, 128  ;;  %v485_v44 = vpop.permute.xlu1 %484 }
 0x1f0   :  { %v631_v47 = vpop.f32.mrf.mxu0 }
 0x1f1   :  { %v632_v49 = vadd.f32 %v631_v47, %v385_v46  ;;  %v7818_v47 = vpop.permute.xlu0 %424 }
 0x1f3   :  { %678 = vmatmul.f32.gmra.mxu0 %v334_v48  ;;  %827 = vxpose.xlu0.b32.start [1/2] (short) %v632_v49, 128 }
 0x1f8   :  { %v634_v51 = vpop.f32.mrf.mxu0 }
 0x1f9   :  { %v635_v53 = vadd.f32 %v634_v51, %v390_v50  ;;  %v475_v50 = vpop.permute.xlu1 %474 }
 0x1fb   :  { %681 = vmatmul.f32.gmra.mxu0 %v335_v52  ;;  %828 = vxpose.xlu0.b32.end [2/2] (short) %v635_v53, 128  ;;  %v420_v53 = vpop.permute.xlu0 %419 }
 0x200   :  { %v637_v54 = vpop.f32.mrf.mxu0 }
 0x201   :  { %v638_v34 = vadd.f32 %v637_v54, %v395_v7 }
 0x203   :  { %684 = vmatmul.f32.gmra.mxu0 %v336_v55 }
 0x208   :  { %v640_v56 = vpop.f32.mrf.mxu0 }
 0x209   :  { %v641_v42 = vadd.f32 %v640_v56, %v400_v33 }
 0x20b   :  { %687 = vmatmul.f32.gmra.mxu0 %v337_v57 }
 0x210   :  { %v643_v58 = vpop.f32.mrf.mxu0 }
 0x211   :  { %v644_v12 = vadd.f32 %v643_v58, %v405_v5  ;;  %v7822_v58 = vpop.permute.xlu1 %439 }
 0x213   :  { %690 = vmatmul.f32.gmra.mxu0 %v338_v59 }
 0x218   :  { %v646_v60 = vpop.f32.mrf.mxu0 }
 0x219   :  { %v647_v15 = vadd.f32 %v646_v60, %v410_v11 }
 0x21b   :  { %693 = vmatmul.f32.gmra.mxu0 %v339_v61 }
 0x220   :  { %v649_v62 = vpop.f32.mrf.mxu0 }
 0x221   :  { %v650_v49 = vadd.f32 %v649_v62, %v415_v37 }
 0x228   :  { %v652_v63 = vpop.f32.mrf.mxu0 }
 0x230   :  { %v7804_v0 = vpop.f32.mrf.mxu0 }
 0x238   :  { %v7806_v2 = vpop.f32.mrf.mxu0 }
 0x240   :  { %v7808_v4 = vpop.f32.mrf.mxu0 }
 0x248   :  { %v7810_v6 = vpop.f32.mrf.mxu0 }
 0x250   :  { %v667_v9 = vpop.f32.mrf.mxu0 }
 0x251   :  { %v668_v30 = vadd.f32 %v667_v9, %v445_v45 }
 0x253   :  { %891 = vxpose.xlu2.b32.start [1/2] (short) %v644_v12, 128 }
 0x258   :  { %v670_v14 = vpop.f32.mrf.mxu0 }
 0x259   :  { %v671_v27 = vadd.f32 %v670_v14, %v450_v39 }
 0x25b   :  { %1210 = vmatpush.msra.mxu1 %v671_v27  ;;  %892 = vxpose.xlu2.b32.end [2/2] (short) %v647_v15, 128 }
 0x25d   :  { %1211 = vmatpush.msra.mxu1 %v668_v30 }
 0x260   :  { %v673_v31 = vpop.f32.mrf.mxu0 }
 0x261   :  { %v674_v39 = vadd.f32 %v673_v31, %v7802_v10  ;;  %v653_v10 = vadd.f32 %v652_v63, %v420_v53 }
 0x263   :  { %859 = vxpose.xlu1.b32.start [1/2] (short) %v638_v34, 128 }
 0x268   :  { %v676_v40 = vpop.f32.mrf.mxu0 }
 0x269   :  { %v677_v43 = vadd.f32 %v676_v40, %v7800_v8 }
 0x26b   :  { %1323 = vmatpush.msra.mxu2 %v677_v43  ;;  %860 = vxpose.xlu1.b32.end [2/2] (short) %v641_v42, 128 }
 0x26c   :  { %v779_v46 = vpop.trf.xlu2 }
 0x26d   :  { %1324 = vmatpush.msra.mxu2 %v674_v39  ;;  %v1019_v45 = vmul.f32 0.25, %v779_v46 }
 0x26f   :  { %6666 = vmatmul.msk.f32.vlgmr.msra.gmra.mxu1 %vm1147_vm0, %v1019_v45 }
 0x270   :  { %v679_v48 = vpop.f32.mrf.mxu0 }
 0x271   :  { %v680_v55 = vadd.f32 %v679_v48, %v465_v3 }
 0x273   :  { %923 = vxpose.xlu0.b32.start [1/2] (short) %v650_v49, 128 }
 0x274   :  { %v780_v51 = vpop.trf.xlu2 }
 0x275   :  { %v1020_v52 = vmul.f32 0.25, %v780_v51 }
 0x277   :  { %6667 = vmatmul.msk.f32.gmra.mxu1 %vm1147_vm0, %v1020_v52 }
 0x278   :  { %v682_v8 = vpop.f32.mrf.mxu0 }
 0x279   :  { %v683_v54 = vadd.f32 %v682_v8, %v470_v1 }
 0x27b   :  { %1436 = vmatpush.msrb.mxu2 %v683_v54  ;;  %6811 = vmatpush.msra.mxu3 %v683_v54 }
 0x27c   :  { %924 = vxpose.xlu0.b32.end [2/2] (short) %v653_v10, 128  ;;  %v781_v56 = vpop.trf.xlu2 }
 0x27d   :  { %1437 = vmatpush.msrb.mxu2 %v680_v55  ;;  %6812 = vmatpush.msra.mxu3 %v680_v55  ;;  %v1021_v57 = vmul.f32 0.25, %v781_v56 }
 0x27f   :  { %6668 = vmatmul.msk.f32.gmra.mxu1 %vm1147_vm0, %v1021_v57 }
 0x280   :  { %v685_v59 = vpop.f32.mrf.mxu0 }
 0x281   :  { %v686_v1 = vadd.f32 %v685_v59, %v475_v50 }
 0x284   :  { %v782_v60 = vpop.trf.xlu2 }
 0x285   :  { %v1022_v61 = vmul.f32 0.25, %v782_v60 }
 0x287   :  { %v811_v62 = vpop.trf.xlu1  ;;  %6669 = vmatmul.msk.f32.gmra.mxu1 %vm1147_vm0, %v1022_v61 }
 0x288   :  { %v1035_v5 = vmul.f32 0.25, %v811_v62  ;;  %v688_v7 = vpop.f32.mrf.mxu0 }
 0x289   :  { %v689_v63 = vadd.f32 %v688_v7, %v480_v28 }
 0x28a   :  { %6682 = vmatmul.msk.f32.vlgmr.msra.gmra.mxu2 %vm1147_vm0, %v1035_v5 }
 0x28b   :  { %1549 = vmatpush.msrb.mxu1 %v689_v63 }
 0x28c   :  { %v783_v3 = vpop.trf.xlu2 }
 0x28d   :  { %1550 = vmatpush.msrb.mxu1 %v686_v1  ;;  %v1023_v9 = vmul.f32 0.25, %v783_v3 }
 0x28f   :  { %v812_v11 = vpop.trf.xlu1  ;;  %6670 = vmatmul.msk.f32.gmra.mxu1 %vm1147_vm0, %v1023_v9 }
 0x290   :  { %v1036_v12 = vmul.f32 0.25, %v812_v11  ;;  %v691_v14 = vpop.f32.mrf.mxu0 }
 0x291   :  { %v692_v34 = vadd.f32 %v691_v14, %v485_v44 }
 0x292   :  { %6683 = vmatmul.msk.f32.gmra.mxu2 %vm1147_vm0, %v1036_v12 }
 0x294   :  { %v784_v15 = vpop.trf.xlu2 }
 0x295   :  { %v1024_v27 = vmul.f32 0.25, %v784_v15  ;;  %v662_v15 = vadd.f32 %v7808_v4, %v7814_v36 }
 0x297   :  { %v813_v30 = vpop.trf.xlu1  ;;  %6671 = vmatmul.msk.f32.gmra.mxu1 %vm1147_vm0, %v1024_v27 }
 0x298   :  { %v1037_v31 = vmul.f32 0.25, %v813_v30  ;;  %v694_v33 = vpop.f32.mrf.mxu0 }
 0x299   :  { %v695_v28 = vadd.f32 %v694_v33, %v7812_v13  ;;  %v7836_v13 = vpop.trf.xlu0 }
 0x29a   :  { %6684 = vmatmul.msk.f32.gmra.mxu2 %vm1147_vm0, %v1037_v31 }
 0x29b   :  { %1662 = vmatpush.msra.mxu2 %v695_v28 }
 0x29c   :  { %v785_v37 = vpop.trf.xlu2 }
 0x29d   :  { %1663 = vmatpush.msra.mxu2 %v692_v34  ;;  %v1025_v40 = vmul.f32 0.25, %v785_v37  ;;  %v665_v37 = vadd.f32 %v7810_v6, %v7822_v58 }
 0x29f   :  { %v814_v42 = vpop.trf.xlu1  ;;  %6672 = vmatmul.msk.f32.gmra.mxu1 %vm1147_vm0, %v1025_v40 }
 0x2a0   :  { %v1038_v43 = vmul.f32 0.25, %v814_v42 }
 0x2a1   :  { %v7840_v52 = vpop.trf.xlu0 }
 0x2a2   :  { %6685 = vmatmul.msk.f32.gmra.mxu2 %vm1147_vm0, %v1038_v43 }
 0x2a4   :  { %v786_v39 = vpop.trf.xlu2 }
 0x2a5   :  { %v1026_v46 = vmul.f32 0.25, %v786_v39 }
 0x2a7   :  { %v815_v45 = vpop.trf.xlu1  ;;  %6673 = vmatmul.msk.f32.gmra.mxu1 %vm1147_vm0, %v1026_v46  ;;  %v656_v46 = vadd.f32 %v7804_v0, %v7818_v47 }
 0x2a8   :  { %v1039_v48 = vmul.f32 0.25, %v815_v45 }
 0x2a9   :  { %v7844_v55 = vpop.trf.xlu0 }
 0x2aa   :  { %6686 = vmatmul.msk.f32.gmra.mxu2 %vm1147_vm0, %v1039_v48 }
 0x2ac   :  { %v787_v44 = vpop.trf.xlu2 }
 0x2ad   :  { %v1027_v49 = vmul.f32 0.25, %v787_v44 }
 0x2af   :  { %v816_v50 = vpop.trf.xlu1  ;;  %6674 = vmatmul.msk.f32.gmra.mxu1 %vm1147_vm0, %v1027_v49 }
 0x2b0   :  { %v1040_v51 = vmul.f32 0.25, %v816_v50 }
 0x2b1   :  { %v7848_v61 = vpop.trf.xlu0 }
 0x2b2   :  { %6687 = vmatmul.msk.f32.gmra.mxu2 %vm1147_vm0, %v1040_v51 }
 0x2b4   :  { %v788_v8 = vpop.trf.xlu2 }
 0x2b5   :  { %v1028_v53 = vmul.f32 0.25, %v788_v8 }
 0x2b7   :  { %v817_v54 = vpop.trf.xlu1  ;;  %6675 = vmatmul.msk.f32.gmra.mxu1 %vm1147_vm0, %v1028_v53 }
 0x2b8   :  { %v1041_v10 = vmul.f32 0.25, %v817_v54 }
 0x2b9   :  { %v847_v1 = vpop.trf.xlu0 }
 0x2ba   :  { %6688 = vmatmul.msk.f32.gmra.mxu2 %vm1147_vm0, %v1041_v10  ;;  %v1055_v3 = vmul.f32 0.25, %v847_v1 }
 0x2bc   :  { %v789_v56 = vpop.trf.xlu2  ;;  %6702 = vmatmul.msk.f32.vlgmr.msra.gmra.mxu3 %vm1147_vm0, %v1055_v3 }
 0x2bd   :  { %v1029_v57 = vmul.f32 0.25, %v789_v56 }
 0x2bf   :  { %v818_v59 = vpop.trf.xlu1  ;;  %6676 = vmatmul.msk.f32.gmra.mxu1 %vm1147_vm0, %v1029_v57 }
 0x2c0   :  { %v1042_v60 = vmul.f32 0.25, %v818_v59 }
 0x2c1   :  { %v848_v27 = vpop.trf.xlu0 }
 0x2c2   :  { %6689 = vmatmul.msk.f32.gmra.mxu2 %vm1147_vm0, %v1042_v60  ;;  %v1056_v30 = vmul.f32 0.25, %v848_v27  ;;  %v1051_v27 = vmul.f32 0.25, %v7836_v13 }
 0x2c4   :  { %v790_v62 = vpop.trf.xlu2  ;;  %6703 = vmatmul.msk.f32.gmra.mxu3 %vm1147_vm0, %v1056_v30 }
 0x2c5   :  { %v1030_v5 = vmul.f32 0.25, %v790_v62 }
 0x2c7   :  { %v819_v7 = vpop.trf.xlu1  ;;  %6677 = vmatmul.msk.f32.gmra.mxu1 %vm1147_vm0, %v1030_v5 }
 0x2c8   :  { %v1043_v63 = vmul.f32 0.25, %v819_v7 }
 0x2c9   :  { %v849_v4 = vpop.trf.xlu0 }
 0x2ca   :  { %6690 = vmatmul.msk.f32.gmra.mxu2 %vm1147_vm0, %v1043_v63  ;;  %v1057_v36 = vmul.f32 0.25, %v849_v4 }
 0x2cc   :  { %v791_v9 = vpop.trf.xlu2  ;;  %6704 = vmatmul.msk.f32.gmra.mxu3 %vm1147_vm0, %v1057_v36  ;;  %v1052_v36 = vmul.f32 0.25, %v7840_v52 }
 0x2cd   :  { %v1031_v11 = vmul.f32 0.25, %v791_v9 }
 0x2cf   :  { %v820_v12 = vpop.trf.xlu1  ;;  %6678 = vmatmul.msk.f32.gmra.mxu1 %vm1147_vm0, %v1031_v11  ;;  %v340_v11 = vld [vmem:[#allocation5 + $0xd0] sm:$0xff] }
 0x2d0   :  { %v1044_v14 = vmul.f32 0.25, %v820_v12  ;;  %696 = vmatmul.f32.gmra.mxu0 %v340_v11 }
 0x2d1   :  { %v850_v6 = vpop.trf.xlu0 }
 0x2d2   :  { %6691 = vmatmul.msk.f32.gmra.mxu2 %vm1147_vm0, %v1044_v14  ;;  %v1058_v58 = vmul.f32 0.25, %v850_v6 }
 0x2d3   :  { %987 = vxpose.xlu2.b32.start [1/2] (short) %v662_v15, 128 }
 0x2d4   :  { %v792_v31 = vpop.trf.xlu2  ;;  %6705 = vmatmul.msk.f32.gmra.mxu3 %vm1147_vm0, %v1058_v58  ;;  %v1053_v58 = vmul.f32 0.25, %v7844_v55 }
 0x2d5   :  { %v1032_v33 = vmul.f32 0.25, %v792_v31 }
 0x2d7   :  { %v821_v28 = vpop.trf.xlu1  ;;  %6679 = vmatmul.msk.f32.gmra.mxu1 %vm1147_vm0, %v1032_v33 }
 0x2d8   :  { %v1045_v34 = vmul.f32 0.25, %v821_v28  ;;  %v341_v28 = vld [vmem:[#allocation5 + $0xd8] sm:$0xff] }
 0x2d9   :  { %v851_v50 = vpop.trf.xlu0  ;;  %699 = vmatmul.f32.gmra.mxu0 %v341_v28 }
 0x2da   :  { %6692 = vmatmul.msk.f32.gmra.mxu2 %vm1147_vm0, %v1045_v34  ;;  %v1059_v51 = vmul.f32 0.25, %v851_v50 }
 0x2db   :  { %988 = vxpose.xlu2.b32.end [2/2] (short) %v665_v37, 128 }
 0x2dc   :  { %v793_v40 = vpop.trf.xlu2  ;;  %6706 = vmatmul.msk.f32.gmra.mxu3 %vm1147_vm0, %v1059_v51 }
 0x2dd   :  { %v1033_v42 = vmul.f32 0.25, %v793_v40 }
 0x2df   :  { %v822_v43 = vpop.trf.xlu1  ;;  %6680 = vmatmul.msk.f32.gmra.mxu1 %vm1147_vm0, %v1033_v42 }
 0x2e0   :  { %v1046_v39 = vmul.f32 0.25, %v822_v43  ;;  %v342_v43 = vld [vmem:[#allocation5 + $0xe0] sm:$0xff] }
 0x2e1   :  { %v852_v53 = vpop.trf.xlu0  ;;  %702 = vmatmul.f32.gmra.mxu0 %v342_v43 }
 0x2e2   :  { %6693 = vmatmul.msk.f32.gmra.mxu2 %vm1147_vm0, %v1046_v39  ;;  %v1060_v54 = vmul.f32 0.25, %v852_v53 }
 0x2e3   :  { %955 = vxpose.xlu1.b32.start [1/2] (short) %v656_v46, 128 }
 0x2e4   :  { %v794_v45 = vpop.trf.xlu2  ;;  %6707 = vmatmul.msk.f32.gmra.mxu3 %vm1147_vm0, %v1060_v54 }
 0x2e5   :  { %v1034_v48 = vmul.f32 0.25, %v794_v45 }
 0x2e7   :  { %v823_v44 = vpop.trf.xlu1  ;;  %6681 = vmatmul.msk.f32.gmra.mxu1 %vm1147_vm0, %v1034_v48 }
 0x2e8   :  { %v1047_v49 = vmul.f32 0.25, %v823_v44  ;;  %v343_v44 = vld [vmem:[#allocation5 + $0xe8] sm:$0xff] }
 0x2e9   :  { %v853_v60 = vpop.trf.xlu0  ;;  %705 = vmatmul.f32.gmra.mxu0 %v343_v44 }
 0x2ea   :  { %6694 = vmatmul.msk.f32.gmra.mxu2 %vm1147_vm0, %v1047_v49  ;;  %v1061_v62 = vmul.f32 0.25, %v853_v60 }
 0x2ec   :  { %v7870_v8 = vpop.trf.xlu2  ;;  %v7877_v56 = vpop.f32.mrf.mxu1  ;;  %6708 = vmatmul.msk.f32.gmra.mxu3 %vm1147_vm0, %v1061_v62 }
 0x2ed   :  { %14910 = vst [vmem:[#allocation32_spill] sm:$0xff] %v7877_v56  ;;  %v1083_v54 = vmul.f32 0.25, %v7870_v8 }
 0x2ef   :  { %v824_v0 = vpop.trf.xlu1 }
 0x2f0   :  { %v1048_v47 = vmul.f32 0.25, %v824_v0  ;;  %v1054_v0 = vmul.f32 0.25, %v7848_v61 }
 0x2f1   :  { %v854_v3 = vpop.trf.xlu0 }
 0x2f2   :  { %6695 = vmatmul.msk.f32.gmra.mxu2 %vm1147_vm0, %v1048_v47  ;;  %v1062_v9 = vmul.f32 0.25, %v854_v3  ;;  %v345_v3 = vld [vmem:[#allocation5 + $0xf8] sm:$0xff] }
 0x2f4   :  { %v7874_v10 = vpop.trf.xlu2  ;;  %v7883_v7 = vpop.f32.mrf.mxu1  ;;  %6709 = vmatmul.msk.f32.gmra.mxu3 %vm1147_vm0, %v1062_v9 }
 0x2f5   :  { %14911 = vst [vmem:[#allocation33_spill] sm:$0xff] %v7883_v7 }
 0x2f7   :  { %v825_v57 = vpop.trf.xlu1 }
 0x2f8   :  { %v1049_v59 = vmul.f32 0.25, %v825_v57  ;;  %v344_v57 = vld [vmem:[#allocation5 + $0xf0] sm:$0xff] }
 0x2f9   :  { %v855_v31 = vpop.trf.xlu0  ;;  %708 = vmatmul.f32.gmra.mxu0 %v344_v57 }
 0x2fa   :  { %6696 = vmatmul.msk.f32.gmra.mxu2 %vm1147_vm0, %v1049_v59  ;;  %v1063_v33 = vmul.f32 0.25, %v855_v31 }
 0x2fc   :  { %v7880_v5 = vpop.trf.xlu2  ;;  %v7889_v14 = vpop.f32.mrf.mxu1  ;;  %6710 = vmatmul.msk.f32.gmra.mxu3 %vm1147_vm0, %v1063_v33 }
 0x2fd   :  { %14912 = vst [vmem:[#allocation34_spill] sm:$0xff] %v7889_v14  ;;  %v8214_v14 = vld [vmem:[%s14512_s2 + $0x48] sm:$0xff] }
 0x2ff   :  { %v826_v63 = vpop.trf.xlu1 }
 0x300   :  { %v1050_v1 = vmul.f32 0.25, %v826_v63 }
 0x301   :  { %v856_v13 = vpop.trf.xlu0  ;;  %711 = vmatmul.f32.gmra.mxu0 %v345_v3 }
 0x302   :  { %6697 = vmatmul.msk.f32.gmra.mxu2 %vm1147_vm0, %v1050_v1  ;;  %v1064_v42 = vmul.f32 0.25, %v856_v13  ;;  %v1084_v1 = vmul.f32 0.25, %v7874_v10 }
 0x304   :  { %v7886_v12 = vpop.trf.xlu2  ;;  %v7897_v37 = vpop.f32.mrf.mxu1  ;;  %6711 = vmatmul.msk.f32.gmra.mxu3 %vm1147_vm0, %v1064_v42 }
 0x307   :  { %v875_v15 = vpop.trf.xlu1 }
 0x308   :  { %v1067_v30 = vmul.f32 0.25, %v875_v15 }
 0x309   :  { %v857_v52 = vpop.trf.xlu0 }
 0x30a   :  { %6698 = vmatmul.msk.f32.vlgmr.msrb.gmra.mxu2 %vm1147_vm0, %v1051_v27  ;;  %6714 = vmatmul.msk.f32.vlgmr.msrb.gmra.mxu1 %vm1147_vm0, %v1067_v30  ;;  %v1065_v48 = vmul.f32 0.25, %v857_v52  ;;  %v1085_v30 = vmul.f32 0.25, %v7880_v5 }
 0x30c   :  { %v7894_v34 = vpop.trf.xlu2  ;;  %v7905_v46 = vpop.f32.mrf.mxu1  ;;  %6712 = vmatmul.msk.f32.gmra.mxu3 %vm1147_vm0, %v1065_v48 }
 0x30d   :  { %v7935_v27 = vpop.f32.mrf.mxu2 }
 0x30e   :  { %14913 = vst [vmem:[#allocation35_spill] sm:$0xff] %v7935_v27 }
 0x30f   :  { %v876_v4 = vpop.trf.xlu1 }
 0x310   :  { %v1068_v40 = vmul.f32 0.25, %v876_v4 }
 0x311   :  { %v858_v55 = vpop.trf.xlu0 }
 0x312   :  { %6699 = vmatmul.msk.f32.gmra.mxu2 %vm1147_vm0, %v1052_v36  ;;  %6715 = vmatmul.msk.f32.gmra.mxu1 %vm1147_vm0, %v1068_v40  ;;  %v1066_v53 = vmul.f32 0.25, %v858_v55  ;;  %v1086_v36 = vmul.f32 0.25, %v7886_v12 }
 0x314   :  { %v7902_v39 = vpop.trf.xlu2  ;;  %v7913_v50 = vpop.f32.mrf.mxu1  ;;  %6713 = vmatmul.msk.f32.gmra.mxu3 %vm1147_vm0, %v1066_v53 }
 0x315   :  { %v7947_v13 = vpop.f32.mrf.mxu2 }
 0x316   :  { %14914 = vst [vmem:[#allocation36_spill] sm:$0xff] %v7947_v13 }
 0x317   :  { %v877_v6 = vpop.trf.xlu1 }
 0x318   :  { %v1069_v45 = vmul.f32 0.25, %v877_v6 }
 0x319   :  { %v7926_v61 = vpop.trf.xlu0 }
 0x31a   :  { %6700 = vmatmul.msk.f32.gmra.mxu2 %vm1147_vm0, %v1053_v58  ;;  %6716 = vmatmul.msk.f32.gmra.mxu1 %vm1147_vm0, %v1069_v45  ;;  %v1087_v58 = vmul.f32 0.25, %v7894_v34 }
 0x31c   :  { %v7910_v49 = vpop.trf.xlu2  ;;  %v7922_v60 = vpop.f32.mrf.mxu1 }
 0x31d   :  { %v7958_v48 = vpop.f32.mrf.mxu2 }
 0x31e   :  { %14915 = vst [vmem:[#allocation37_spill] sm:$0xff] %v7958_v48 }
 0x31f   :  { %v878_v51 = vpop.trf.xlu1 }
 0x320   :  { %v1070_v47 = vmul.f32 0.25, %v878_v51 }
 0x321   :  { %v7938_v31 = vpop.trf.xlu0 }
 0x322   :  { %6701 = vmatmul.msk.f32.gmra.mxu2 %vm1147_vm0, %v1054_v0  ;;  %6717 = vmatmul.msk.f32.gmra.mxu1 %vm1147_vm0, %v1070_v47  ;;  %v1088_v0 = vmul.f32 0.25, %v7902_v39  ;;  %v190_v39 = vld [vmem:[%s14518_s8 + $0xf8] sm:$0xff] }
 0x324   :  { %v7919_v59 = vpop.trf.xlu2  ;;  %v7931_v9 = vpop.f32.mrf.mxu1 }
 0x325   :  { %v7969_v34 = vpop.f32.mrf.mxu2 }
 0x326   :  { %14916 = vst [vmem:[#allocation38_spill] sm:$0xff] %v7969_v34 }
 0x327   :  { %v879_v62 = vpop.trf.xlu1 }
 0x328   :  { %v1071_v63 = vmul.f32 0.25, %v879_v62 }
 0x329   :  { %v7949_v5 = vpop.trf.xlu0 }
 0x32a   :  { %6718 = vmatmul.msk.f32.gmra.mxu1 %vm1147_vm0, %v1071_v63  ;;  %6730 = vmatmul.msk.f32.vlgmr.msra.gmra.mxu2 %vm1147_vm0, %v1083_v54  ;;  %v1089_v63 = vmul.f32 0.25, %v7910_v49  ;;  %v172_v49 = vld [vmem:[%s14518_s8 + $0x68] sm:$0xff] }
 0x32c   :  { %v7929_v8 = vpop.trf.xlu2  ;;  %v7940_v28 = vpop.f32.mrf.mxu1 }
 0x32f   :  { %v880_v11 = vpop.trf.xlu1 }
 0x330   :  { %v1072_v15 = vmul.f32 0.25, %v880_v11  ;;  %v7981_v11 = vpop.f32.mrf.mxu2 }
 0x331   :  { %v7961_v44 = vpop.trf.xlu0  ;;  %14917 = vst [vmem:[#allocation39_spill] sm:$0xff] %v7981_v11 }
 0x332   :  { %6719 = vmatmul.msk.f32.gmra.mxu1 %vm1147_vm0, %v1072_v15  ;;  %6731 = vmatmul.msk.f32.gmra.mxu2 %vm1147_vm0, %v1084_v1 }
 0x334   :  { %v916_v33 = vpop.trf.xlu2  ;;  %v7951_v6 = vpop.f32.mrf.mxu1 }
 0x337   :  { %v881_v10 = vpop.trf.xlu1 }
 0x338   :  { %v1073_v4 = vmul.f32 0.25, %v881_v10  ;;  %v1090_v10 = vmul.f32 0.25, %v7919_v59  ;;  %v1091_v59 = vmul.f32 0.25, %v7929_v8  ;;  %v186_v8 = vld [vmem:[%s14518_s8 + $0xd8] sm:$0xff] }
 0x339   :  { %v7971_v54 = vpop.trf.xlu0 }
 0x33a   :  { %6720 = vmatmul.msk.f32.gmra.mxu1 %vm1147_vm0, %v1073_v4  ;;  %6732 = vmatmul.msk.f32.gmra.mxu2 %vm1147_vm0, %v1085_v30 }
 0x33c   :  { %v7945_v40 = vpop.trf.xlu2  ;;  %v7964_v51 = vpop.f32.mrf.mxu1 }
 0x33f   :  { %v882_v42 = vpop.trf.xlu1 }
 0x340   :  { %v1074_v43 = vmul.f32 0.25, %v882_v42 }
 0x341   :  { %v7983_v15 = vpop.trf.xlu0 }
 0x342   :  { %6721 = vmatmul.msk.f32.gmra.mxu1 %vm1147_vm0, %v1074_v43  ;;  %6733 = vmatmul.msk.f32.gmra.mxu2 %vm1147_vm0, %v1086_v36  ;;  %v7992_v43 = vpop.f32.mrf.mxu3 }
 0x343   :  { %14918 = vst [vmem:[#allocation40_spill] sm:$0xff] %v7992_v43 }
 0x344   :  { %v7956_v45 = vpop.trf.xlu2  ;;  %v7973_v57 = vpop.f32.mrf.mxu1 }
 0x347   :  { %v883_v52 = vpop.trf.xlu1 }
 0x348   :  { %v1075_v12 = vmul.f32 0.25, %v883_v52  ;;  %v7995_v52 = vpop.f32.mrf.mxu2 }
 0x349   :  { %14919 = vst [vmem:[#allocation41_spill] sm:$0xff] %v7995_v52 }
 0x34a   :  { %6722 = vmatmul.msk.f32.gmra.mxu1 %vm1147_vm0, %v1075_v12  ;;  %6734 = vmatmul.msk.f32.gmra.mxu2 %vm1147_vm0, %v1087_v58  ;;  %v189_v12 = vld [vmem:[%s14518_s8 + $0xf0] sm:$0xff] }
 0x34c   :  { %v919_v47 = vpop.trf.xlu2  ;;  %v7989_v36 = vpop.f32.mrf.mxu1 }
 0x34d   :  { %v8064_v21 = vpop.f32.mrf.mxu0 }
 0x34f   :  { %v884_v55 = vpop.trf.xlu1 }
 0x350   :  { %v1076_v53 = vmul.f32 0.25, %v884_v55 }
 0x352   :  { %6723 = vmatmul.msk.f32.gmra.mxu1 %vm1147_vm0, %v1076_v53  ;;  %6735 = vmatmul.msk.f32.gmra.mxu2 %vm1147_vm0, %v1088_v0  ;;  %v8001_v0 = vpop.trf.xlu0  ;;  %v8006_v53 = vpop.f32.mrf.mxu3 }
 0x353   :  { %14920 = vst [vmem:[#allocation42_spill] sm:$0xff] %v8006_v53 }
 0x354   :  { %v920_v62 = vpop.trf.xlu2  ;;  %v8003_v55 = vpop.f32.mrf.mxu1 }
 0x356   :  { %v8085_v16 = vpop.f32.mrf.mxu0 }
 0x357   :  { %v885_v1 = vpop.trf.xlu1 }
 0x358   :  { %v1077_v3 = vmul.f32 0.25, %v885_v1  ;;  %v8013_v1 = vpop.f32.mrf.mxu2 }
 0x359   :  { %14921 = vst [vmem:[#allocation43_spill] sm:$0xff] %v8013_v1 }
 0x35a   :  { %519 = vperm.xlu0 %6832, %v190_v39   ;;  %6724 = vmatmul.msk.f32.gmra.mxu1 %vm1147_vm0, %v1077_v3  ;;  %v1092_v39 = vmul.f32 0.25, %v916_v33  ;;  %v8015_v3 = vpop.trf.xlu0 }
 0x35b   :  { %6736 = vmatmul.msk.f32.gmra.mxu2 %vm1147_vm0, %v1089_v63 }
 0x35c   :  { %v921_v30 = vpop.trf.xlu2 }
 0x35d   :  { %v1097_v23 = vmul.f32 0.25, %v921_v30 }
 0x35f   :  { %v886_v4 = vpop.trf.xlu1 }
 0x360   :  { %v1078_v42 = vmul.f32 0.25, %v886_v4  ;;  %v188_v4 = vld [vmem:[%s14518_s8 + $0xe8] sm:$0xff] }
 0x362   :  { %429 = vperm.xlu0 %6832, %v172_v49   ;;  %6725 = vmatmul.msk.f32.gmra.mxu1 %vm1147_vm0, %v1078_v42  ;;  %v1093_v49 = vmul.f32 0.25, %v7945_v40  ;;  %v8022_v42 = vpop.f32.mrf.mxu3  ;;  %v1094_v40 = vmul.f32 0.25, %v7956_v45 }
 0x363   :  { %6737 = vmatmul.msk.f32.gmra.mxu2 %vm1147_vm0, %v1090_v10  ;;  %v1255_v10 = vpop.f32.mrf.mxu1  ;;  %14922 = vst [vmem:[#allocation44_spill] sm:$0xff] %v8022_v42 }
 0x364   :  { %v922_v58 = vpop.trf.xlu2 }
 0x36a   :  { %514 = vperm.xlu0 %6832, %v189_v12   ;;  %v8029_v12 = vpop.trf.xlu0  ;;  %v8034_v38 = vpop.f32.mrf.mxu3 }
 0x36b   :  { %6738 = vmatmul.msk.f32.gmra.mxu2 %vm1147_vm0, %v1091_v59  ;;  %v8026_v59 = vpop.f32.mrf.mxu2  ;;  %14924 = vst [vmem:[#allocation46_spill] sm:$0xff] %v8034_v38 }
 0x36c   :  { %v8008_v63 = vpop.trf.xlu2  ;;  %14923 = vst [vmem:[#allocation45_spill] sm:$0xff] %v8026_v59 }
 0x372   :  { %499 = vperm.xlu0 %6832, %v186_v8   ;;  %v8031_v8 = vpop.f32.mrf.mxu1  ;;  %v8042_v32 = vpop.trf.xlu0 }
 0x373   :  { %6739 = vmatmul.msk.f32.gmra.mxu2 %vm1147_vm0, %v1092_v39  ;;  %v887_v39 = vpop.trf.xlu1  ;;  %v8046_v26 = vpop.f32.mrf.mxu3 }
 0x374   :  { %v8024_v33 = vpop.trf.xlu2  ;;  %v1079_v41 = vmul.f32 0.25, %v887_v39  ;;  %14927 = vst [vmem:[#allocation49_spill] sm:$0xff] %v8046_v26 }
 0x376   :  { %6726 = vmatmul.msk.f32.gmra.mxu1 %vm1147_vm0, %v1079_v41  ;;  %v1096_v41 = vmul.f32 0.25, %v920_v62  ;;  %v8074_v62 = vld [vmem:[%s14512_s2 + $0x70] sm:$0xff] }
 0x377   :  { %v8081_v30 = vadd.f32 %v1255_v10, %v8074_v62 }
 0x379   :  { %14933 = vst [vmem:[#allocation55_spill] sm:$0xff] %v8081_v30 }
 0x37a   :  { %509 = vperm.xlu0 %6832, %v188_v4   ;;  %v8040_v4 = vpop.f32.mrf.mxu2  ;;  %v8055_v24 = vpop.trf.xlu0 }
 0x37b   :  { %6740 = vmatmul.msk.f32.gmra.mxu2 %vm1147_vm0, %v1093_v49  ;;  %14925 = vst [vmem:[#allocation47_spill] sm:$0xff] %v8040_v4  ;;  %v1095_v49 = vmul.f32 0.25, %v919_v47 }
 0x37c   :  { %v8037_v35 = vpop.trf.xlu2 }
 0x382   :  { %v8051_v39 = vpop.f32.mrf.mxu2  ;;  %v8068_v20 = vpop.trf.xlu0 }
 0x383   :  { %6741 = vmatmul.msk.f32.gmra.mxu2 %vm1147_vm0, %v1094_v40  ;;  %v8058_v40 = vpop.f32.mrf.mxu3 }
 0x384   :  { %v8049_v45 = vpop.trf.xlu2 }
 0x387   :  { %v8044_v29 = vpop.f32.mrf.mxu1 }
 0x388   :  { %14926 = vst [vmem:[#allocation48_spill] sm:$0xff] %v8044_v29 }
 0x38b   :  { %6742 = vmatmul.msk.f32.gmra.mxu2 %vm1147_vm0, %v1095_v49  ;;  %v8066_v49 = vpop.f32.mrf.mxu2  ;;  %v8076_v19 = vpop.f32.mrf.mxu3 }
 0x38c   :  { %v8060_v47 = vpop.trf.xlu2  ;;  %14930 = vst [vmem:[#allocation52_spill] sm:$0xff] %v8066_v49 }
 0x38d   :  { %14931 = vst [vmem:[#allocation53_spill] sm:$0xff] %v8076_v19 }
 0x38f   :  { %v8053_v25 = vpop.f32.mrf.mxu1 }
 0x390   :  { %14928 = vst [vmem:[#allocation50_spill] sm:$0xff] %v8053_v25  ;;  %v8116_v25 = vld [vmem:[%s14512_s2 + $0x40] sm:$0xff] }
 0x391   :  { %v8120_v11 = vadd.f32 %v7940_v28, %v8116_v25  ;;  %v888_v28 = vpop.trf.xlu1 }
 0x392   :  { %v1080_v59 = vmul.f32 0.25, %v888_v28 }
 0x393   :  { %6743 = vmatmul.msk.f32.gmra.mxu2 %vm1147_vm0, %v1096_v41  ;;  %v1098_v41 = vmul.f32 0.25, %v922_v58  ;;  %v8087_v13 = vpop.f32.mrf.mxu2  ;;  %v8096_v58 = vld [vmem:[%s14512_s2 + $0x58] sm:$0xff]  ;;  %v8104_v48 = vpop.f32.mrf.mxu3  ;;  %14936 = vst [vmem:[#allocation58_spill] sm:$0xff] %v8120_v11 }
 0x394   :  { %v8083_v17 = vpop.trf.xlu2  ;;  %v8102_v10 = vadd.f32 %v7973_v57, %v8096_v58  ;;  %v185_v57 = vld [vmem:[%s14518_s8 + $0xd0] sm:$0xff]  ;;  %6727 = vmatmul.msk.f32.gmra.mxu1 %vm1147_vm0, %v1080_v59 }
 0x397   :  { %v8062_v22 = vpop.f32.mrf.mxu1 }
 0x398   :  { %14929 = vst [vmem:[#allocation51_spill] sm:$0xff] %v8062_v22 }
 0x39b   :  { %6744 = vmatmul.msk.f32.gmra.mxu2 %vm1147_vm0, %v1097_v23  ;;  %v8091_v23 = vpop.trf.xlu0  ;;  %v1475_v52 = vpop.f32.mrf.mxu3 }
 0x39c   :  { %v8106_v29 = vpop.trf.xlu2 }
 0x39f   :  { %v8078_v18 = vpop.f32.mrf.mxu1 }
 0x3a0   :  { %14932 = vst [vmem:[#allocation54_spill] sm:$0xff] %v8078_v18  ;;  %v8135_v18 = vld [vmem:[%s14512_s2 + $0x20] sm:$0xff] }
 0x3a1   :  { %14938 = vst [vmem:[#allocation60_spill] sm:$0xff] %v8135_v18  ;;  %v8139_v4 = vadd.f32 %v7905_v46, %v8135_v18  ;;  %v8152_v46 = vld [vmem:[%s14512_s2 + $0x18] sm:$0xff] }
 0x3a2   :  { %14941 = vst [vmem:[#allocation63_spill] sm:$0xff] %v8152_v46  ;;  %v8156_v28 = vadd.f32 %v7897_v37, %v8152_v46 }
 0x3a3   :  { %6745 = vmatmul.msk.f32.gmra.mxu2 %vm1147_vm0, %v1098_v41  ;;  %v8109_v41 = vpop.f32.mrf.mxu0  ;;  %v8111_v34 = vpop.trf.xlu0  ;;  %14939 = vst [vmem:[#allocation61_spill] sm:$0xff] %v8139_v4 }
 0x3a4   :  { %2080 = vmax.xlane.f32.xlu0 %v8081_v30  ;;  %14935 = vst [vmem:[#allocation57_spill] sm:$0xff] %v8109_v41  ;;  %v8128_v53 = vpop.trf.xlu2  ;;  %v889_v30 = vpop.trf.xlu1 }
 0x3a5   :  { %v1081_v1 = vmul.f32 0.25, %v889_v30  ;;  %14942 = vst [vmem:[#allocation64_spill] sm:$0xff] %v8156_v28 }
 0x3a7   :  { %v8098_v27 = vpop.f32.mrf.mxu1  ;;  %6728 = vmatmul.msk.f32.gmra.mxu1 %vm1147_vm0, %v1081_v1 }
 0x3a8   :  { %14934 = vst [vmem:[#allocation56_spill] sm:$0xff] %v8098_v27 }
 0x3ab   :  { %v8130_v27 = vpop.f32.mrf.mxu0  ;;  %v8141_v26 = vpop.trf.xlu0 }
 0x3ac   :  { %2074 = vmax.xlane.f32.xlu0 %v8102_v10  ;;  %v8147_v38 = vpop.trf.xlu2 }
 0x3af   :  { %v8125_v43 = vpop.f32.mrf.mxu1 }
 0x3b0   :  { %14937 = vst [vmem:[#allocation59_spill] sm:$0xff] %v8125_v43 }
 0x3b3   :  { %v709_v22 = vpop.f32.mrf.mxu0  ;;  %v8158_v59 = vpop.trf.xlu0 }
 0x3b4   :  { %2068 = vmax.xlane.f32.xlu0 %v8120_v11  ;;  %494 = vperm.xlu2 %6831, %v185_v57   ;;  %v1478_v11 = vpop.f32.mrf.mxu3  ;;  %v8166_v42 = vpop.trf.xlu2 }
 0x3b7   :  { %v8144_v57 = vpop.f32.mrf.mxu1 }
 0x3b8   :  { %14940 = vst [vmem:[#allocation62_spill] sm:$0xff] %v8144_v57  ;;  %v890_v57 = vpop.trf.xlu1 }
 0x3b9   :  { %v1082_v41 = vmul.f32 0.25, %v890_v57 }
 0x3bb   :  { %v712_v37 = vpop.f32.mrf.mxu0  ;;  %6729 = vmatmul.msk.f32.gmra.mxu1 %vm1147_vm0, %v1082_v41 }
 0x3bc   :  { %2060 = vmax.xlane.f32.xlu0 %v8139_v4  ;;  %v8161_v4 = vpop.f32.mrf.mxu2  ;;  %v1481_v30 = vpop.f32.mrf.mxu3 }
 0x3bd   :  { %v8169_v49 = vadd.f32 %v1481_v30, %v8074_v62  ;;  %v8185_v30 = vpop.trf.xlu2 }
 0x3bf   :  { %v8164_v18 = vpop.f32.mrf.mxu1  ;;  %14943 = vst [vmem:[#allocation65_spill] sm:$0xff] %v8169_v49 }
 0x3c4   :  { %2058 = vmax.xlane.f32.xlu0 %v8156_v28  ;;  %v8173_v19 = vpop.f32.mrf.mxu2  ;;  %v8178_v28 = vld [vmem:[%s14512_s2 + $0x68] sm:$0xff] }
 0x3c5   :  { %v8183_v57 = vadd.f32 %v1478_v11, %v8178_v28 }
 0x3c7   :  { %v8180_v43 = vpop.f32.mrf.mxu1  ;;  %14944 = vst [vmem:[#allocation66_spill] sm:$0xff] %v8183_v57 }
 0x3cc   :  { %2144 = vmax.xlane.f32.xlu0 %v8169_v49  ;;  %v520_v1 = vpop.permute.xlu0 %519  ;;  %v1368_v49 = vpop.f32.mrf.mxu2 }
 0x3cd   :  { %v713_v46 = vadd.f32 %v712_v37, %v520_v1  ;;  %v8192_v1 = vld [vmem:[%s14512_s2 + $0x60] sm:$0xff] }
 0x3ce   :  { %v8204_v56 = vadd.f32 %v1475_v52, %v8192_v1  ;;  %v8222_v52 = vadd.f32 %v7989_v36, %v8192_v1 }
 0x3cf   :  { %2001 = vmatpush.msrb.mxu2 %v713_v46  ;;  %v8197_v46 = vld [vmem:[%s14512_s2 + $0x78] sm:$0xff] }
 0x3d0   :  { %v8201_v11 = vadd.f32 %v8031_v8, %v8197_v46  ;;  %14946 = vst [vmem:[#allocation68_spill] sm:$0xff] %v8204_v56 }
 0x3d2   :  { %14945 = vst [vmem:[#allocation67_spill] sm:$0xff] %v8201_v11 }
 0x3d4   :  { %2142 = vmax.xlane.f32.xlu0 %v8183_v57  ;;  %v430_v41 = vpop.permute.xlu0 %429  ;;  %v1579_v57 = vpop.f32.mrf.mxu1 }
 0x3d5   :  { %v659_v37 = vadd.f32 %v7806_v2, %v430_v41  ;;  %v1131_v2 = vmul.f32 0.25, %v8008_v63  ;;  %v8217_v8 = vadd.f32 %v1579_v57, %v8214_v14  ;;  %v8224_v63 = vpop.f32.mrf.mxu2 }
 0x3d7   :  { %956 = vxpose.xlu1.b32.end [2/2] (short) %v659_v37, 128  ;;  %v8208_v37 = vpop.trf.xlu2  ;;  %14947 = vst [vmem:[#allocation69_spill] sm:$0xff] %v8217_v8 }
 0x3dc   :  { %2140 = vmax.xlane.f32.xlu0 %v8204_v56  ;;  %v515_v41 = vpop.permute.xlu0 %514 }
 0x3dd   :  { %v710_v7 = vadd.f32 %v709_v22, %v515_v41  ;;  %2082 = vmax.xlane.f32.xlu2 %v8201_v11  ;;  %v1582_v22 = vpop.f32.mrf.mxu1  ;;  %v1132_v41 = vmul.f32 0.25, %v8024_v33  ;;  %v8243_v33 = vadd.f32 %v7951_v6, %v8214_v14 }
 0x3df   :  { %2002 = vmatpush.msrb.mxu2 %v710_v7  ;;  %v8230_v57 = vpop.trf.xlu2 }
 0x3e0   :  { %6778 = vmatmul.msk.f32.vlgmr.msrb.gmra.mxu2 %vm1147_vm0, %v1131_v2  ;;  %v8235_v2 = vld [vmem:[%s14512_s2 + $0x50] sm:$0xff] }
 0x3e1   :  { %v8238_v36 = vadd.f32 %v1582_v22, %v8235_v2 }
 0x3e3   :  { %14948 = vst [vmem:[#allocation70_spill] sm:$0xff] %v8238_v36 }
 0x3e4   :  { %2166 = vmax.xlane.f32.xlu0 %v8217_v8  ;;  %v500_v56 = vpop.permute.xlu0 %499  ;;  %v8245_v8 = vpop.f32.mrf.mxu2 }
 0x3e5   :  { %2076 = vmax.xlane.f32.xlu2 %v8222_v52  ;;  %v701_v7 = vadd.f32 %v8085_v16, %v500_v56  ;;  %14949 = vst [vmem:[#allocation71_spill] sm:$0xff] %v8245_v8  ;;  %v1133_v16 = vmul.f32 0.25, %v8037_v35  ;;  %v8260_v35 = vld [vmem:[%s14512_s2 + $0x30] sm:$0xff] }
 0x3e6   :  { %v8264_v6 = vadd.f32 %v7922_v60, %v8260_v35 }
 0x3e7   :  { %1775 = vmatpush.msrb.mxu3 %v701_v7  ;;  %v1585_v7 = vpop.f32.mrf.mxu1 }
 0x3e8   :  { %6779 = vmatmul.msk.f32.gmra.mxu2 %vm1147_vm0, %v1132_v41  ;;  %v8252_v22 = vadd.f32 %v1585_v7, %v8096_v58  ;;  %v8254_v41 = vpop.trf.xlu2 }
 0x3ea   :  { %14950 = vst [vmem:[#allocation72_spill] sm:$0xff] %v8252_v22 }
 0x3ec   :  { %2168 = vmax.xlane.f32.xlu0 %v8238_v36  ;;  %v510_v56 = vpop.permute.xlu0 %509 }
 0x3ed   :  { %v707_v11 = vadd.f32 %v8130_v27, %v510_v56  ;;  %2070 = vmax.xlane.f32.xlu2 %v8243_v33  ;;  %v1134_v27 = vmul.f32 0.25, %v8049_v45  ;;  %v1484_v56 = vpop.f32.mrf.mxu3  ;;  %v1135_v45 = vmul.f32 0.25, %v8060_v47  ;;  %v8302_v47 = vadd.f32 %v8173_v19, %v8178_v28 }
 0x3ee   :  { %v8279_v60 = vadd.f32 %v1484_v56, %v8197_v46  ;;  %v1136_v56 = vmul.f32 0.25, %v8083_v17 }
 0x3ef   :  { %1888 = vmatpush.msra.mxu1 %v707_v11  ;;  %v8269_v11 = vpop.f32.mrf.mxu2  ;;  %14957 = vst [vmem:[#allocation79_spill] sm:$0xff] %v8302_v47 }
 0x3f0   :  { %6780 = vmatmul.msk.f32.gmra.mxu2 %vm1147_vm0, %v1133_v16  ;;  %14951 = vst [vmem:[#allocation73_spill] sm:$0xff] %v8269_v11  ;;  %v8274_v16 = vadd.f32 %v8104_v48, %v8096_v58  ;;  %v8276_v7 = vpop.trf.xlu2  ;;  %v8292_v48 = vadd.f32 %v1368_v49, %v8074_v62 }
 0x3f1   :  { %14953 = vst [vmem:[#allocation75_spill] sm:$0xff] %v8279_v60 }
 0x3f2   :  { %14952 = vst [vmem:[#allocation74_spill] sm:$0xff] %v8274_v16 }
 0x3f3   :  { %14956 = vst [vmem:[#allocation78_spill] sm:$0xff] %v8292_v48 }
 0x3f4   :  { %2170 = vmax.xlane.f32.xlu0 %v8252_v22 }
 0x3f5   :  { %2064 = vmax.xlane.f32.xlu2 %v8264_v6 }
 0x3f7   :  { %v8284_v36 = vpop.f32.mrf.mxu2 }
 0x3f8   :  { %6781 = vmatmul.msk.f32.gmra.mxu2 %vm1147_vm0, %v1134_v27  ;;  %14954 = vst [vmem:[#allocation76_spill] sm:$0xff] %v8284_v36  ;;  %v8288_v27 = vadd.f32 %v8180_v43, %v8116_v25  ;;  %v8295_v8 = vpop.trf.xlu2 }
 0x3fa   :  { %14955 = vst [vmem:[#allocation77_spill] sm:$0xff] %v8288_v27 }
 0x3fc   :  { %2138 = vmax.xlane.f32.xlu0 %v8274_v16  ;;  %v1099_v16 = vmul.f32 0.25, %v7926_v61  ;;  %v8326_v61 = vadd.f32 %v8087_v13, %v8096_v58 }
 0x3fd   :  { %2146 = vmax.xlane.f32.xlu2 %v8279_v60 }
 0x3fe   :  { %14961 = vst [vmem:[#allocation83_spill] sm:$0xff] %v8326_v61 }
 0x3ff   :  { %v8304_v43 = vpop.f32.mrf.mxu2 }
 0x400   :  { %6782 = vmatmul.msk.f32.gmra.mxu2 %vm1147_vm0, %v1135_v45  ;;  %14958 = vst [vmem:[#allocation80_spill] sm:$0xff] %v8304_v43  ;;  %v1137_v45 = vmul.f32 0.25, %v8106_v29  ;;  %v1138_v29 = vmul.f32 0.25, %v8128_v53  ;;  %v1588_v53 = vpop.f32.mrf.mxu1 }
 0x404   :  { %2164 = vmax.xlane.f32.xlu0 %v8288_v27 }
 0x405   :  { %2112 = vmax.xlane.f32.xlu2 %v8292_v48 }
 0x407   :  { %v8316_v19 = vpop.f32.mrf.mxu2 }
 0x408   :  { %6783 = vmatmul.msk.f32.gmra.mxu2 %vm1147_vm0, %v1136_v56  ;;  %v8313_v56 = vadd.f32 %v8161_v4, %v8192_v1  ;;  %14960 = vst [vmem:[#allocation82_spill] sm:$0xff] %v8316_v19  ;;  %v1139_v4 = vmul.f32 0.25, %v8147_v38  ;;  %v258_v38 = vld [vmem:[%s14511_s1] sm:$0x1] }
 0x40a   :  { %14959 = vst [vmem:[#allocation81_spill] sm:$0xff] %v8313_v56 }
 0x40d   :  { %2110 = vmax.xlane.f32.xlu2 %v8302_v47 }
 0x40e   :  { %v495_v49 = vpop.permute.xlu2 %494 }
 0x40f   :  { %v698_v17 = vadd.f32 %v8064_v21, %v495_v49  ;;  %v1100_v21 = vmul.f32 0.25, %v7938_v31  ;;  %v1101_v49 = vmul.f32 0.25, %v7949_v5  ;;  %v8336_v31 = vadd.f32 %v1588_v53, %v8192_v1  ;;  %v6661_v53 = vld [vmem:[%s14512_s2 + $0x158] sm:$0xff] }
 0x410   :  { %6784 = vmatmul.msk.f32.gmra.mxu2 %vm1147_vm0, %v1137_v45 }
 0x411   :  { %1776 = vmatpush.msrb.mxu3 %v698_v17  ;;  %14963 = vst [vmem:[#allocation85_spill] sm:$0xff] %v8336_v31  ;;  %v1140_v17 = vmul.f32 0.25, %v8166_v42 }
 0x412   :  { %6746 = vmatmul.msk.f32.vlgmr.msrb.gmra.mxu3 %vm1147_vm0, %v1099_v16  ;;  %v8330_v16 = vpop.f32.mrf.mxu2 }
 0x413   :  { %14962 = vst [vmem:[#allocation84_spill] sm:$0xff] %v8330_v16 }
 0x415   :  { %2108 = vmax.xlane.f32.xlu2 %v8313_v56 }
 0x417   :  { %v8320_v27 = vpop.xlane.xlu0 %2080 }
 0x418   :  { %6785 = vmatmul.msk.f32.gmra.mxu2 %vm1147_vm0, %v1138_v29  ;;  %v259_v29 = vsub.f32 1.0, %v258_v38 }
 0x41a   :  { %6747 = vmatmul.msk.f32.gmra.mxu3 %vm1147_vm0, %v1100_v21  ;;  %v8345_v5 = vpop.f32.mrf.mxu2 }
 0x41b   :  { %14964 = vst [vmem:[#allocation86_spill] sm:$0xff] %v8345_v5 }
 0x41d   :  { %2106 = vmax.xlane.f32.xlu2 %v8326_v61 }
 0x41f   :  { %v2075_v45 = vpop.xlane.xlu0 %2074 }
 0x420   :  { %6786 = vmatmul.msk.f32.gmra.mxu2 %vm1147_vm0, %v1139_v4  ;;  %v2319_v13 = vsub.f32 %v8102_v10, %v2075_v45  ;;  %v8350_v4 = vld [vmem:[%s14512_s2 + $0x38] sm:$0xff]  ;;  %v1102_v10 = vmul.f32 0.25, %v7961_v44  ;;  %v8361_v45 = vperm.slane %v259_v29, 0  ;;  %v8370_v44 = vld [vmem:[%s14511_s1] ss:$0 sm:$0xff] }
 0x421   :  { %v8359_v42 = vadd.f32 %v8164_v18, %v8350_v4 }
 0x422   :  { %6748 = vmatmul.msk.f32.gmra.mxu3 %vm1147_vm0, %v1101_v49  ;;  %v2458_v21 = vmul.f32 1.442695, %v2319_v13  ;;  %v274_v49 = vmul.f32 %v6661_v53, %v8361_v45  ;;  %v1141_v13 = vmul.f32 0.25, %v8185_v30  ;;  %v8376_v29 = vpop.f32.mrf.mxu2  ;;  %v1143_v53 = vmul.f32 0.25, %v8230_v57 }
 0x423   :  { %14965 = vst [vmem:[#allocation87_spill] sm:$0xff] %v8359_v42 }
 0x424   :  { %6860 = vpow2.f32 %v2458_v21  ;;  %v8373_v38 = vadd.f32 %v8370_v44, %v274_v49  ;;  %14967 = vst [vmem:[#allocation89_spill] sm:$0xff] %v8376_v29  ;;  %v1142_v21 = vmul.f32 0.25, %v8208_v37  ;;  %v1105_v49 = vmul.f32 0.25, %v8001_v0 }
 0x425   :  { %2172 = vmax.xlane.f32.xlu2 %v8336_v31  ;;  %v1144_v37 = vmul.f32 0.25, %v8254_v41  ;;  %v1107_v0 = vmul.f32 0.25, %v8029_v12  ;;  %v8408_v41 = vpop.f32.mrf.mxu1  ;;  %v208_v31 = vld [vmem:[%s14512_s2] sm:$0xff] }
 0x426   :  { %14966 = vst [vmem:[#allocation88_spill] sm:$0xff] %v8373_v38 }
 0x428   :  { %6787 = vmatmul.msk.f32.gmra.mxu2 %vm1147_vm0, %v1140_v17  ;;  %v1103_v17 = vmul.f32 0.25, %v7971_v54 }
 0x42a   :  { %6749 = vmatmul.msk.f32.gmra.mxu3 %vm1147_vm0, %v1102_v10  ;;  %v6861_v18 = vpop.eup %6860  ;;  %v1104_v10 = vmul.f32 0.25, %v7983_v15  ;;  %v8388_v54 = vpop.f32.mrf.mxu2  ;;  %v1106_v15 = vmul.f32 0.25, %v8015_v3  ;;  %v1146_v3 = vmul.f32 0.25, %v8295_v8 }
 0x42b   :  { %v8381_v30 = vmul.f32 %v6861_v18, %v8373_v38  ;;  %14968 = vst [vmem:[#allocation90_spill] sm:$0xff] %v8388_v54  ;;  %v1145_v18 = vmul.f32 0.25, %v8276_v7 }
 0x42d   :  { %2162 = vmax.xlane.f32.xlu2 %v8359_v42  ;;  %v8536_v42 = vadd.f32 %v8224_v63, %v8197_v46 }
 0x42f   :  { %14984 = vst [vmem:[#allocation106_spill] sm:$0xff] %v8536_v42 }
 0x430   :  { %6788 = vmatmul.msk.f32.gmra.mxu2 %vm1147_vm0, %v1141_v13 }
 0x432   :  { %6750 = vmatmul.msk.f32.gmra.mxu3 %vm1147_vm0, %v1103_v17  ;;  %v8395_v13 = vpop.f32.mrf.mxu2 }
 0x433   :  { %14969 = vst [vmem:[#allocation91_spill] sm:$0xff] %v8395_v13  ;;  %v8562_v13 = vld [vmem:[%s14512_s2 + $0x8] sm:$0xff] }
 0x434   :  { %14987 = vst [vmem:[#allocation107_spill] sm:$0xff] %v8562_v13 }
 0x435   :  { %2842 = vadd.xlane.f32.xlu2 %v8381_v30 }
 0x438   :  { %6789 = vmatmul.msk.f32.gmra.mxu2 %vm1147_vm0, %v1142_v21  ;;  %v1108_v21 = vmul.f32 0.25, %v8042_v32  ;;  %v1109_v32 = vmul.f32 0.25, %v8055_v24  ;;  %v1111_v24 = vmul.f32 0.25, %v8091_v23  ;;  %v1113_v23 = vmul.f32 0.25, %v8141_v26  ;;  %v187_v26 = vld [vmem:[%s14518_s8 + $0xe0] sm:$0xff] }
 0x43a   :  { %6751 = vmatmul.msk.f32.gmra.mxu3 %vm1147_vm0, %v1104_v10  ;;  %v8401_v17 = vpop.f32.mrf.mxu2 }
 0x43b   :  { %14970 = vst [vmem:[#allocation92_spill] sm:$0xff] %v8401_v17 }
 0x440   :  { %6790 = vmatmul.msk.f32.gmra.mxu2 %vm1147_vm0, %v1143_v53 }
 0x442   :  { %6752 = vmatmul.msk.f32.gmra.mxu3 %vm1147_vm0, %v1105_v49  ;;  %v8412_v53 = vpop.f32.mrf.mxu2  ;;  %v6662_v49 = vld [vmem:[%s14512_s2 + $0x160] sm:$0xff] }
 0x443   :  { %14971 = vst [vmem:[#allocation93_spill] sm:$0xff] %v8412_v53  ;;  %v275_v8 = vmul.f32 %v6662_v49, %v8361_v45 }
 0x448   :  { %6791 = vmatmul.msk.f32.gmra.mxu2 %vm1147_vm0, %v1144_v37  ;;  %v8420_v37 = vpop.f32.mrf.mxu1 }
 0x44a   :  { %6753 = vmatmul.msk.f32.gmra.mxu3 %vm1147_vm0, %v1106_v15  ;;  %v8426_v15 = vadd.f32 %v8370_v44, %v275_v8  ;;  %v1114_v8 = vmul.f32 0.25, %v8158_v59  ;;  %v8507_v54 = vpop.f32.mrf.mxu2 }
 0x44c   :  { %14972 = vst [vmem:[#allocation94_spill] sm:$0xff] %v8426_v15 }
 0x450   :  { %v8404_v57 = vpop.xlane.xlu2 %2082  ;;  %6792 = vmatmul.msk.f32.gmra.mxu2 %vm1147_vm0, %v1145_v18 }
 0x452   :  { %6754 = vmatmul.msk.f32.gmra.mxu3 %vm1147_vm0, %v1107_v0  ;;  %v1597_v0 = vpop.f32.mrf.mxu1  ;;  %v8523_v16 = vpop.f32.mrf.mxu2 }
 0x458   :  { %v2077_v10 = vpop.xlane.xlu2 %2076  ;;  %6793 = vmatmul.msk.f32.gmra.mxu2 %vm1147_vm0, %v1146_v3  ;;  %v1110_v3 = vmul.f32 0.25, %v8068_v20  ;;  %v1112_v20 = vmul.f32 0.25, %v8111_v34 }
 0x459   :  { %v2320_v7 = vsub.f32 %v8222_v52, %v2077_v10 }
 0x45a   :  { %6755 = vmatmul.msk.f32.gmra.mxu3 %vm1147_vm0, %v1108_v21  ;;  %v8435_v21 = vadd.f32 %v1597_v0, %v8197_v46  ;;  %v8538_v61 = vpop.f32.mrf.mxu2 }
 0x45b   :  { %v2460_v12 = vmul.f32 1.442695, %v2320_v7  ;;  %v8444_v7 = vadd.f32 %v8058_v40, %v8214_v14 }
 0x45d   :  { %6862 = vpow2.f32 %v2460_v12  ;;  %14973 = vst [vmem:[#allocation95_spill] sm:$0xff] %v8444_v7  ;;  %v8451_v12 = vadd.f32 %v8051_v39, %v8214_v14 }
 0x45f   :  { %14974 = vst [vmem:[#allocation96_spill] sm:$0xff] %v8451_v12 }
 0x460   :  { %v2071_v48 = vpop.xlane.xlu2 %2070 }
 0x462   :  { %6756 = vmatmul.msk.f32.gmra.mxu3 %vm1147_vm0, %v1109_v32  ;;  %v1698_v63 = vpop.f32.mrf.mxu2 }
 0x463   :  { %v6863_v52 = vpop.eup %6862 }
 0x464   :  { %v8429_v18 = vmul.f32 %v6863_v52, %v8426_v15 }
 0x466   :  { %2844 = vadd.xlane.f32.xlu0 %v8429_v18 }
 0x46a   :  { %6757 = vmatmul.msk.f32.gmra.mxu3 %vm1147_vm0, %v1110_v3  ;;  %v8573_v15 = vpop.f32.mrf.mxu2 }
 0x46e   :  { %2178 = vmax.xlane.f32.xlu0 %v8435_v21 }
 0x472   :  { %6758 = vmatmul.msk.f32.gmra.mxu3 %vm1147_vm0, %v1111_v24 }
 0x473   :  { %v8440_v10 = vpop.trf.xlu1 }
 0x476   :  { %2134 = vmax.xlane.f32.xlu0 %v8444_v7 }
 0x47a   :  { %6759 = vmatmul.msk.f32.gmra.mxu3 %vm1147_vm0, %v1112_v20 }
 0x47b   :  { %v8453_v49 = vpop.trf.xlu1 }
 0x47e   :  { %2102 = vmax.xlane.f32.xlu0 %v8451_v12 }
 0x482   :  { %6760 = vmatmul.msk.f32.gmra.mxu3 %vm1147_vm0, %v1113_v23 }
 0x483   :  { %v8458_v40 = vpop.trf.xlu1 }
 0x48a   :  { %6761 = vmatmul.msk.f32.gmra.mxu3 %vm1147_vm0, %v1114_v8 }
 0x48b   :  { %v8462_v34 = vpop.trf.xlu1 }
 0x493   :  { %v8466_v39 = vpop.trf.xlu1 }
 0x495   :  { %v8464_v32 = vpop.f32.mrf.mxu3 }
 0x496   :  { %14975 = vst [vmem:[#allocation97_spill] sm:$0xff] %v8464_v32 }
 0x49b   :  { %v8475_v3 = vpop.trf.xlu1 }
 0x49d   :  { %v8468_v52 = vpop.f32.mrf.mxu3 }
 0x49e   :  { %14976 = vst [vmem:[#allocation98_spill] sm:$0xff] %v8468_v52 }
 0x4a1   :  { %504 = vperm.xlu1 %6830, %v187_v26   ;;  %v8493_v26 = vadd.f32 %v8003_v55, %v8178_v28  ;;  %v8513_v55 = vadd.f32 %v7931_v9, %v8350_v4 }
 0x4a3   :  { %v8479_v24 = vpop.trf.xlu1 }
 0x4a5   :  { %v8473_v0 = vpop.f32.mrf.mxu3 }
 0x4a6   :  { %14977 = vst [vmem:[#allocation99_spill] sm:$0xff] %v8473_v0 }
 0x4ab   :  { %v8483_v23 = vpop.trf.xlu1 }
 0x4ad   :  { %v8477_v59 = vpop.f32.mrf.mxu3 }
 0x4ae   :  { %14978 = vst [vmem:[#allocation100_spill] sm:$0xff] %v8477_v59 }
 0x4b3   :  { %v8487_v52 = vpop.trf.xlu1 }
 0x4b5   :  { %v8481_v20 = vpop.f32.mrf.mxu3 }
 0x4b6   :  { %14979 = vst [vmem:[#allocation101_spill] sm:$0xff] %v8481_v20  ;;  %v8502_v20 = vadd.f32 %v7964_v51, %v8235_v2  ;;  %v8521_v51 = vld [vmem:[%s14512_s2 + $0x28] sm:$0xff] }
 0x4b7   :  { %v8527_v19 = vadd.f32 %v7913_v50, %v8521_v51  ;;  %v8548_v50 = vld [vmem:[%s14512_s2 + $0x10] sm:$0xff] }
 0x4bb   :  { %v8498_v59 = vpop.trf.xlu1 }
 0x4bd   :  { %v8485_v8 = vpop.f32.mrf.mxu3 }
 0x4be   :  { %14980 = vst [vmem:[#allocation102_spill] sm:$0xff] %v8485_v8 }
 0x4c3   :  { %v8509_v29 = vpop.trf.xlu1 }
 0x4c5   :  { %v8489_v12 = vpop.f32.mrf.mxu3 }
 0x4c6   :  { %14981 = vst [vmem:[#allocation103_spill] sm:$0xff] %v8489_v12  ;;  %v14985_v12 = vld [vmem:[#allocation34_spill] sm:$0xff] }
 0x4c7   :  { %v8552_v8 = vadd.f32 %v14985_v12, %v8548_v50  ;;  %v2317_v12 = vsub.f32 %v8243_v33, %v2071_v48  ;;  %v6659_v33 = vld [vmem:[%s14512_s2 + $0x148] sm:$0xff]  ;;  %v14993_v48 = vld [vmem:[#allocation59_spill] sm:$0xff] }
 0x4c8   :  { %v272_v60 = vmul.f32 %v6659_v33, %v8361_v45  ;;  %v14998_v33 = vld [vmem:[#allocation52_spill] sm:$0xff] }
 0x4c9   :  { %14986 = vst [vmem:[#allocation34_spill] sm:$0xff] %v8552_v8 }
 0x4cb   :  { %2078 = vmax.xlane.f32.xlu1 %v8493_v26  ;;  %v8529_v7 = vpop.trf.xlu1 }
 0x4cd   :  { %v8496_v0 = vpop.f32.mrf.mxu3 }
 0x4ce   :  { %14982 = vst [vmem:[#allocation104_spill] sm:$0xff] %v8496_v0 }
 0x4d3   :  { %2072 = vmax.xlane.f32.xlu1 %v8502_v20  ;;  %v8541_v56 = vpop.trf.xlu1 }
 0x4d5   :  { %v8505_v32 = vpop.f32.mrf.mxu3 }
 0x4d6   :  { %14983 = vst [vmem:[#allocation105_spill] sm:$0xff] %v8505_v32  ;;  %v15000_v32 = vld [vmem:[#allocation57_spill] sm:$0xff] }
 0x4db   :  { %2066 = vmax.xlane.f32.xlu1 %v8513_v55  ;;  %v8557_v17 = vpop.trf.xlu1 }
 0x4dd   :  { %v8516_v5 = vpop.f32.mrf.mxu3 }
 0x4e3   :  { %2062 = vmax.xlane.f32.xlu1 %v8527_v19  ;;  %v8575_v0 = vpop.trf.xlu1 }
 0x4e5   :  { %v8532_v9 = vpop.f32.mrf.mxu3 }
 0x4eb   :  { %2114 = vmax.xlane.f32.xlu1 %v8536_v42  ;;  %v14988_v42 = vld [vmem:[#allocation33_spill] sm:$0xff] }
 0x4ec   :  { %v8566_v22 = vadd.f32 %v14988_v42, %v8562_v13  ;;  %v14991_v42 = vld [vmem:[#allocation32_spill] sm:$0xff] }
 0x4ed   :  { %v8543_v47 = vpop.f32.mrf.mxu3  ;;  %v8582_v36 = vadd.f32 %v14991_v42, %v208_v31  ;;  %v8600_v42 = vpop.trf.xlu1 }
 0x4ee   :  { %14989 = vst [vmem:[#allocation33_spill] sm:$0xff] %v8566_v22 }
 0x4ef   :  { %14992 = vst [vmem:[#allocation32_spill] sm:$0xff] %v8582_v36 }
 0x4f3   :  { %2056 = vmax.xlane.f32.xlu1 %v8552_v8 }
 0x4f5   :  { %v8555_v38 = vpop.f32.mrf.mxu3 }
 0x4fb   :  { %2054 = vmax.xlane.f32.xlu1 %v8566_v22  ;;  %v2454_v22 = vmul.f32 1.442695, %v2317_v12  ;;  %v8598_v12 = vpop.f32.mrf.mxu2 }
 0x4fd   :  { %v1817_v8 = vpop.f32.mrf.mxu3  ;;  %6864 = vpow2.f32 %v2454_v22 }
 0x4fe   :  { %v8571_v11 = vadd.f32 %v1817_v8, %v8178_v28  ;;  %v8590_v8 = vadd.f32 %v14993_v48, %v8521_v51 }
 0x500   :  { %14990 = vst [vmem:[#allocation108_spill] sm:$0xff] %v8571_v11  ;;  %2238 = vmax.xlane.f32.xlu0 %v8571_v11  ;;  %v14995_v11 = vld [vmem:[#allocation53_spill] sm:$0xff] }
 0x501   :  { %14994 = vst [vmem:[#allocation59_spill] sm:$0xff] %v8590_v8  ;;  %v8596_v31 = vadd.f32 %v14995_v11, %v8235_v2 }
 0x503   :  { %2052 = vmax.xlane.f32.xlu1 %v8582_v36  ;;  %14996 = vst [vmem:[#allocation53_spill] sm:$0xff] %v8596_v31  ;;  %v8603_v36 = vadd.f32 %v8370_v44, %v272_v60  ;;  %v6865_v22 = vpop.eup %6864  ;;  %v1707_v11 = vpop.f32.mrf.mxu2  ;;  %v1115_v60 = vmul.f32 0.25, %v8440_v10 }
 0x504   :  { %v8618_v13 = vadd.f32 %v1707_v11, %v8074_v62 }
 0x505   :  { %14997 = vst [vmem:[#allocation109_spill] sm:$0xff] %v8603_v36  ;;  %v8607_v48 = vmul.f32 %v6865_v22, %v8603_v36  ;;  %v8624_v22 = vadd.f32 %v8408_v41, %v8178_v28  ;;  %v1820_v10 = vpop.f32.mrf.mxu3  ;;  %v1117_v41 = vmul.f32 0.25, %v8458_v40  ;;  %v1119_v40 = vmul.f32 0.25, %v8466_v39 }
 0x506   :  { %15001 = vst [vmem:[#allocation57_spill] sm:$0xff] %v8618_v13 }
 0x508   :  { %2158 = vmax.xlane.f32.xlu0 %v8590_v8  ;;  %v8612_v8 = vadd.f32 %v14998_v33, %v8235_v2  ;;  %v1116_v33 = vmul.f32 0.25, %v8453_v49  ;;  %v15006_v49 = vld [vmem:[#allocation62_spill] sm:$0xff] }
 0x50a   :  { %14999 = vst [vmem:[#allocation52_spill] sm:$0xff] %v8612_v8 }
 0x50b   :  { %2136 = vmax.xlane.f32.xlu1 %v8596_v31 }
 0x510   :  { %2838 = vadd.xlane.f32.xlu0 %v8607_v48 }
 0x513   :  { %2104 = vmax.xlane.f32.xlu1 %v8612_v8  ;;  %v505_v53 = vpop.permute.xlu1 %504 }
 0x514   :  { %v704_v43 = vadd.f32 %v15000_v32, %v505_v53  ;;  %v8629_v53 = vadd.f32 %v1698_v63, %v8096_v58  ;;  %v15004_v32 = vld [vmem:[#allocation44_spill] sm:$0xff]  ;;  %v8646_v63 = vadd.f32 %v15006_v49, %v8260_v35 }
 0x515   :  { %v8640_v11 = vadd.f32 %v15004_v32, %v8260_v35  ;;  %v8661_v32 = vadd.f32 %v8532_v9, %v8235_v2 }
 0x516   :  { %1889 = vmatpush.msra.mxu1 %v704_v43  ;;  %15002 = vst [vmem:[#allocation110_spill] sm:$0xff] %v8629_v53  ;;  %v8634_v43 = vadd.f32 %v1820_v10, %v8074_v62 }
 0x517   :  { %6762 = vmatmul.msk.f32.vlgmr.msra.gmra.mxu1 %vm1147_vm0, %v1115_v60  ;;  %15005 = vst [vmem:[#allocation44_spill] sm:$0xff] %v8640_v11  ;;  %v1118_v60 = vmul.f32 0.25, %v8462_v34  ;;  %v1120_v34 = vmul.f32 0.25, %v8475_v3 }
 0x518   :  { %2208 = vmax.xlane.f32.xlu0 %v8618_v13  ;;  %15003 = vst [vmem:[#allocation111_spill] sm:$0xff] %v8634_v43  ;;  %v15072_v13 = vld [vmem:[#allocation41_spill] sm:$0xff] }
 0x519   :  { %15007 = vst [vmem:[#allocation62_spill] sm:$0xff] %v8646_v63  ;;  %v8909_v8 = vadd.f32 %v15072_v13, %v8521_v51 }
 0x51a   :  { %15010 = vst [vmem:[#allocation112_spill] sm:$0xff] %v8661_v32 }
 0x51b   :  { %2174 = vmax.xlane.f32.xlu1 %v8624_v22  ;;  %15073 = vst [vmem:[#allocation41_spill] sm:$0xff] %v8909_v8 }
 0x51f   :  { %6763 = vmatmul.msk.f32.gmra.mxu1 %vm1147_vm0, %v1116_v33  ;;  %v15008_v33 = vld [vmem:[#allocation43_spill] sm:$0xff] }
 0x520   :  { %2202 = vmax.xlane.f32.xlu0 %v8629_v53  ;;  %v8652_v10 = vadd.f32 %v15008_v33, %v8260_v35  ;;  %v15011_v35 = vld [vmem:[#allocation51_spill] sm:$0xff] }
 0x521   :  { %v8668_v49 = vadd.f32 %v15011_v35, %v8548_v50  ;;  %v1121_v50 = vmul.f32 0.25, %v8479_v24 }
 0x522   :  { %15009 = vst [vmem:[#allocation43_spill] sm:$0xff] %v8652_v10 }
 0x523   :  { %2240 = vmax.xlane.f32.xlu1 %v8634_v43  ;;  %15012 = vst [vmem:[#allocation51_spill] sm:$0xff] %v8668_v49 }
 0x527   :  { %6764 = vmatmul.msk.f32.gmra.mxu1 %vm1147_vm0, %v1117_v41  ;;  %v8657_v41 = vpop.xlane.xlu0 %2068 }
 0x528   :  { %2128 = vmax.xlane.f32.xlu0 %v8640_v11 }
 0x52b   :  { %2160 = vmax.xlane.f32.xlu1 %v8646_v63 }
 0x52f   :  { %6765 = vmatmul.msk.f32.gmra.mxu1 %vm1147_vm0, %v1118_v60  ;;  %v8672_v39 = vpop.xlane.xlu0 %2060 }
 0x530   :  { %2096 = vmax.xlane.f32.xlu0 %v8652_v10  ;;  %v1823_v10 = vpop.f32.mrf.mxu3 }
 0x537   :  { %6766 = vmatmul.msk.f32.gmra.mxu1 %vm1147_vm0, %v1119_v40  ;;  %v6663_v40 = vld [vmem:[%s14512_s2 + $0x168] sm:$0xff] }
 0x538   :  { %2232 = vmax.xlane.f32.xlu0 %v8661_v32  ;;  %v276_v3 = vmul.f32 %v6663_v40, %v8361_v45  ;;  %v8690_v40 = vpop.xlane.xlu0 %2058 }
 0x53e   :  { %v2079_v60 = vpop.xlane.xlu1 %2078 }
 0x53f   :  { %v2321_v33 = vsub.f32 %v8493_v26, %v2079_v60  ;;  %6767 = vmatmul.msk.f32.gmra.mxu1 %vm1147_vm0, %v1120_v34  ;;  %v8683_v26 = vadd.f32 %v8370_v44, %v276_v3  ;;  %v15014_v60 = vld [vmem:[#allocation55_spill] sm:$0xff] }
 0x540   :  { %2152 = vmax.xlane.f32.xlu0 %v8668_v49  ;;  %15015 = vst [vmem:[#allocation55_spill] sm:$0xff] %v8690_v40 }
 0x541   :  { %v2462_v9 = vmul.f32 1.442695, %v2321_v33  ;;  %15013 = vst [vmem:[#allocation113_spill] sm:$0xff] %v8683_v26  ;;  %v2322_v33 = vsub.f32 %v15014_v60, %v8320_v27  ;;  %v6664_v27 = vld [vmem:[%s14512_s2 + $0x170] sm:$0xff]  ;;  %v8709_v60 = vadd.f32 %v8420_v37, %v8074_v62  ;;  %v6665_v62 = vld [vmem:[%s14512_s2 + $0x178] sm:$0xff] }
 0x542   :  { %v15020_v37 = vld [vmem:[#allocation46_spill] sm:$0xff] }
 0x543   :  { %6866 = vpow2.f32 %v2462_v9  ;;  %v6660_v9 = vld [vmem:[%s14512_s2 + $0x150] sm:$0xff]  ;;  %v2464_v3 = vmul.f32 1.442695, %v2322_v33  ;;  %v277_v33 = vmul.f32 %v6664_v27, %v8361_v45  ;;  %v8729_v27 = vadd.f32 %v15020_v37, %v8350_v4 }
 0x545   :  { %15021 = vst [vmem:[#allocation46_spill] sm:$0xff] %v8729_v27 }
 0x546   :  { %v2073_v35 = vpop.xlane.xlu1 %2072 }
 0x547   :  { %v2318_v32 = vsub.f32 %v8502_v20, %v2073_v35  ;;  %6768 = vmatmul.msk.f32.gmra.mxu1 %vm1147_vm0, %v1121_v50  ;;  %v273_v20 = vmul.f32 %v6660_v9, %v8361_v45  ;;  %v1122_v50 = vmul.f32 0.25, %v8483_v23  ;;  %v8715_v9 = vpop.xlane.xlu0 %2144 }
 0x549   :  { %v6867_v34 = vpop.eup %6866  ;;  %v2456_v49 = vmul.f32 1.442695, %v2318_v32  ;;  %v8703_v32 = vadd.f32 %v8370_v44, %v273_v20 }
 0x54a   :  { %v8693_v24 = vmul.f32 %v6867_v34, %v8683_v26 }
 0x54b   :  { %6868 = vpow2.f32 %v2456_v49  ;;  %15016 = vst [vmem:[#allocation114_spill] sm:$0xff] %v8703_v32  ;;  %v15017_v49 = vld [vmem:[#allocation67_spill] sm:$0xff] }
 0x54c   :  { %2846 = vadd.xlane.f32.xlu2 %v8693_v24  ;;  %6870 = vpow2.f32 %v2464_v3  ;;  %v2323_v34 = vsub.f32 %v15017_v49, %v8404_v57  ;;  %15018 = vst [vmem:[#allocation67_spill] sm:$0xff] %v8715_v9  ;;  %v1123_v3 = vmul.f32 0.25, %v8487_v52  ;;  %v8721_v57 = vadd.f32 %v8370_v44, %v277_v33 }
 0x54d   :  { %v278_v52 = vmul.f32 %v6665_v62, %v8361_v45 }
 0x54e   :  { %v2466_v20 = vmul.f32 1.442695, %v2323_v34  ;;  %15019 = vst [vmem:[#allocation115_spill] sm:$0xff] %v8721_v57  ;;  %v2067_v49 = vpop.xlane.xlu1 %2066  ;;  %v1124_v34 = vmul.f32 0.25, %v8498_v59  ;;  %v1125_v59 = vmul.f32 0.25, %v8509_v29  ;;  %v1126_v29 = vmul.f32 0.25, %v8529_v7 }
 0x54f   :  { %6769 = vmatmul.msk.f32.gmra.mxu1 %vm1147_vm0, %v1122_v50  ;;  %v8738_v33 = vpop.xlane.xlu0 %2142  ;;  %v1127_v7 = vmul.f32 0.25, %v8541_v56 }
 0x550   :  { %6872 = vpow2.f32 %v2466_v20  ;;  %15022 = vst [vmem:[#allocation116_spill] sm:$0xff] %v8738_v33  ;;  %v8741_v20 = vadd.f32 %v8370_v44, %v278_v52  ;;  %v8756_v52 = vpop.xlane.xlu2 %2064  ;;  %v6649_v33 = vld [vmem:[%s14512_s2 + $0xf8] sm:$0xff] }
 0x551   :  { %v6869_v35 = vpop.eup %6868  ;;  %v9021_v9 = vmul.f32 6.25e-08, %v6649_v33 }
 0x552   :  { %v8712_v23 = vmul.f32 %v6869_v35, %v8703_v32  ;;  %v6871_v50 = vpop.eup %6870  ;;  %15023 = vst [vmem:[#allocation117_spill] sm:$0xff] %v8741_v20 }
 0x553   :  { %v8732_v35 = vmul.f32 %v6871_v50, %v8721_v57  ;;  %v15024_v50 = vld [vmem:[#allocation45_spill] sm:$0xff] }
 0x554   :  { %2840 = vadd.xlane.f32.xlu1 %v8712_v23  ;;  %2176 = vmax.xlane.f32.xlu2 %v8709_v60  ;;  %v8746_v37 = vadd.f32 %v15024_v50, %v8350_v4  ;;  %v8763_v4 = vadd.f32 %v8573_v15, %v8192_v1  ;;  %v15031_v15 = vld [vmem:[#allocation49_spill] sm:$0xff] }
 0x555   :  { %v8779_v63 = vadd.f32 %v15031_v15, %v8116_v25  ;;  %v15036_v15 = vld [vmem:[#allocation47_spill] sm:$0xff] }
 0x556   :  { %15025 = vst [vmem:[#allocation45_spill] sm:$0xff] %v8746_v37 }
 0x557   :  { %6770 = vmatmul.msk.f32.gmra.mxu1 %vm1147_vm0, %v1123_v3  ;;  %v6873_v3 = vpop.eup %6872  ;;  %15027 = vst [vmem:[#allocation119_spill] sm:$0xff] %v8763_v4 }
 0x558   :  { %v8749_v62 = vmul.f32 %v6873_v3, %v8741_v20  ;;  %v8766_v3 = vadd.f32 %v1823_v10, %v8197_v46  ;;  %15032 = vst [vmem:[#allocation49_spill] sm:$0xff] %v8779_v63 }
 0x55a   :  { %15028 = vst [vmem:[#allocation120_spill] sm:$0xff] %v8766_v3  ;;  %v3219_v40 = vadd.f32 %v8749_v62, %v9021_v9 }
 0x55c   :  { %2130 = vmax.xlane.f32.xlu1 %v8729_v27  ;;  %2848 = vadd.xlane.f32.xlu2 %v8732_v35  ;;  %v8754_v27 = vpop.xlane.xlu1 %2062 }
 0x55f   :  { %6771 = vmatmul.msk.f32.gmra.mxu1 %vm1147_vm0, %v1124_v34  ;;  %v8759_v34 = vpop.xlane.xlu0 %2140 }
 0x560   :  { %15026 = vst [vmem:[#allocation118_spill] sm:$0xff] %v8759_v34 }
 0x564   :  { %2098 = vmax.xlane.f32.xlu1 %v8746_v37  ;;  %2850 = vadd.xlane.f32.xlu2 %v8749_v62  ;;  %v8771_v50 = vpop.xlane.xlu1 %2114  ;;  %v2315_v37 = vsub.f32 %v8513_v55, %v2067_v49  ;;  %v6657_v49 = vld [vmem:[%s14512_s2 + $0x138] sm:$0xff] }
 0x565   :  { %15029 = vst [vmem:[#allocation121_spill] sm:$0xff] %v8771_v50 }
 0x567   :  { %6772 = vmatmul.msk.f32.gmra.mxu1 %vm1147_vm0, %v1125_v59  ;;  %v8774_v59 = vpop.xlane.xlu2 %2146  ;;  %v8781_v10 = vpop.xlane.xlu0 %2166 }
 0x568   :  { %15030 = vst [vmem:[#allocation122_spill] sm:$0xff] %v8774_v59 }
 0x569   :  { %15033 = vst [vmem:[#allocation123_spill] sm:$0xff] %v8781_v10 }
 0x56c   :  { %2204 = vmax.xlane.f32.xlu1 %v8763_v4  ;;  %2242 = vmax.xlane.f32.xlu2 %v8766_v3  ;;  %v8785_v4 = vadd.f32 %v8543_v47, %v8096_v58  ;;  %v8791_v55 = vpop.xlane.xlu1 %2056  ;;  %v8798_v58 = vadd.f32 %v15036_v15, %v8116_v25  ;;  %v15038_v47 = vld [vmem:[#allocation63_spill] sm:$0xff] }
 0x56d   :  { %15035 = vst [vmem:[#allocation125_spill] sm:$0xff] %v8791_v55 }
 0x56e   :  { %15034 = vst [vmem:[#allocation124_spill] sm:$0xff] %v8785_v4 }
 0x56f   :  { %6773 = vmatmul.msk.f32.gmra.mxu1 %vm1147_vm0, %v1126_v29  ;;  %v2450_v29 = vmul.f32 1.442695, %v2315_v37  ;;  %15037 = vst [vmem:[#allocation47_spill] sm:$0xff] %v8798_v58  ;;  %v8806_v56 = vpop.xlane.xlu0 %2168  ;;  %v270_v37 = vmul.f32 %v6657_v49, %v8361_v45  ;;  %v1129_v49 = vmul.f32 0.25, %v8575_v0 }
 0x570   :  { %15042 = vst [vmem:[#allocation126_spill] sm:$0xff] %v8806_v56 }
 0x571   :  { %6874 = vpow2.f32 %v2450_v29  ;;  %v8814_v25 = vadd.f32 %v8370_v44, %v270_v37  ;;  %v8837_v37 = vadd.f32 %v8523_v16, %v8214_v14  ;;  %v6658_v16 = vld [vmem:[%s14512_s2 + $0x140] sm:$0xff] }
 0x573   :  { %15043 = vst [vmem:[#allocation127_spill] sm:$0xff] %v8814_v25 }
 0x574   :  { %2234 = vmax.xlane.f32.xlu1 %v8785_v4  ;;  %2132 = vmax.xlane.f32.xlu2 %v8779_v63  ;;  %v15039_v4 = vld [vmem:[#allocation54_spill] sm:$0xff]  ;;  %v8804_v63 = vpop.xlane.xlu2 %2112 }
 0x575   :  { %v8802_v3 = vadd.f32 %v15039_v4, %v15038_v47  ;;  %15041 = vst [vmem:[#allocation54_spill] sm:$0xff] %v8804_v63  ;;  %v8818_v4 = vadd.f32 %v8555_v38, %v8192_v1  ;;  %v8823_v47 = vpop.xlane.xlu1 %2054  ;;  %v15048_v1 = vld [vmem:[#allocation58_spill] sm:$0xff] }
 0x576   :  { %15045 = vst [vmem:[#allocation129_spill] sm:$0xff] %v8823_v47  ;;  %v2316_v38 = vsub.f32 %v15048_v1, %v8657_v41  ;;  %v1710_v41 = vpop.f32.mrf.mxu2  ;;  %v15055_v1 = vld [vmem:[#allocation56_spill] sm:$0xff] }
 0x577   :  { %6774 = vmatmul.msk.f32.gmra.mxu1 %vm1147_vm0, %v1127_v7  ;;  %15040 = vst [vmem:[#allocation63_spill] sm:$0xff] %v8802_v3  ;;  %v1128_v7 = vmul.f32 0.25, %v8557_v17  ;;  %v6875_v29 = vpop.eup %6874 }
 0x578   :  { %15044 = vst [vmem:[#allocation128_spill] sm:$0xff] %v8818_v4  ;;  %v8821_v15 = vmul.f32 %v6875_v29, %v8814_v25  ;;  %v8841_v29 = vadd.f32 %v8598_v12, %v8178_v28  ;;  %v2452_v0 = vmul.f32 1.442695, %v2316_v38  ;;  %v15054_v12 = vld [vmem:[#allocation60_spill] sm:$0xff]  ;;  %v271_v38 = vmul.f32 %v6658_v16, %v8361_v45 }
 0x579   :  { %15049 = vst [vmem:[#allocation58_spill] sm:$0xff] %v8837_v37 }
 0x57a   :  { %15050 = vst [vmem:[#allocation132_spill] sm:$0xff] %v8841_v29  ;;  %6876 = vpow2.f32 %v2452_v0 }
 0x57c   :  { %2154 = vmax.xlane.f32.xlu1 %v8802_v3  ;;  %2100 = vmax.xlane.f32.xlu2 %v8798_v58  ;;  %v8827_v17 = vpop.xlane.xlu2 %2110 }
 0x57d   :  { %15046 = vst [vmem:[#allocation130_spill] sm:$0xff] %v8827_v17  ;;  %v8846_v58 = vpop.xlane.xlu1 %2052 }
 0x57e   :  { %15051 = vst [vmem:[#allocation133_spill] sm:$0xff] %v8846_v58 }
 0x57f   :  { %6775 = vmatmul.msk.f32.gmra.mxu1 %vm1147_vm0, %v1128_v7  ;;  %v8830_v7 = vpop.xlane.xlu0 %2170 }
 0x580   :  { %15047 = vst [vmem:[#allocation131_spill] sm:$0xff] %v8830_v7  ;;  %v6877_v3 = vpop.eup %6876 }
 0x584   :  { %2834 = vadd.xlane.f32.xlu1 %v8821_v15  ;;  %2236 = vmax.xlane.f32.xlu2 %v8818_v4  ;;  %v1130_v4 = vmul.f32 0.25, %v8600_v42  ;;  %v8861_v42 = vadd.f32 %v1710_v41, %v8197_v46 }
 0x585   :  { %v8871_v0 = vpop.xlane.xlu1 %2136 }
 0x586   :  { %15057 = vst [vmem:[#allocation56_spill] sm:$0xff] %v8861_v42 }
 0x587   :  { %6776 = vmatmul.msk.f32.gmra.mxu1 %vm1147_vm0, %v1129_v49  ;;  %v8848_v49 = vpop.xlane.xlu2 %2108  ;;  %v8854_v28 = vpop.xlane.xlu0 %2138  ;;  %15060 = vst [vmem:[#allocation138_spill] sm:$0xff] %v8871_v0 }
 0x588   :  { %15052 = vst [vmem:[#allocation134_spill] sm:$0xff] %v8848_v49 }
 0x589   :  { %15053 = vst [vmem:[#allocation135_spill] sm:$0xff] %v8854_v28 }
 0x58c   :  { %2198 = vmax.xlane.f32.xlu1 %v8837_v37  ;;  %2206 = vmax.xlane.f32.xlu2 %v8841_v29  ;;  %v8858_v29 = vadd.f32 %v15055_v1, %v15054_v12  ;;  %v8887_v1 = vadd.f32 %v8538_v61, %v8235_v2 }
 0x58d   :  { %v8883_v16 = vpop.xlane.xlu1 %2104 }
 0x58e   :  { %15056 = vst [vmem:[#allocation60_spill] sm:$0xff] %v8858_v29 }
 0x58f   :  { %6777 = vmatmul.msk.f32.gmra.mxu1 %vm1147_vm0, %v1130_v4  ;;  %v8869_v4 = vadd.f32 %v8370_v44, %v271_v38  ;;  %v8873_v11 = vpop.xlane.xlu0 %2164  ;;  %v8875_v12 = vpop.xlane.xlu2 %2106  ;;  %15064 = vst [vmem:[#allocation142_spill] sm:$0xff] %v8883_v16 }
 0x590   :  { %15061 = vst [vmem:[#allocation139_spill] sm:$0xff] %v8873_v11 }
 0x591   :  { %15059 = vst [vmem:[#allocation137_spill] sm:$0xff] %v8869_v4  ;;  %v8878_v46 = vmul.f32 %v6877_v3, %v8869_v4  ;;  %v15068_v3 = vld [vmem:[#allocation42_spill] sm:$0xff] }
 0x592   :  { %15062 = vst [vmem:[#allocation140_spill] sm:$0xff] %v8875_v12 }
 0x593   :  { %15065 = vst [vmem:[#allocation143_spill] sm:$0xff] %v8887_v1 }
 0x594   :  { %2210 = vmax.xlane.f32.xlu1 %v8861_v42  ;;  %v8865_v37 = vpop.f32.mrf.mxu1  ;;  %2156 = vmax.xlane.f32.xlu2 %v8858_v29  ;;  %v8896_v42 = vadd.f32 %v15068_v3, %v8521_v51 }
 0x595   :  { %15058 = vst [vmem:[#allocation136_spill] sm:$0xff] %v8865_v37 }
 0x596   :  { %15069 = vst [vmem:[#allocation42_spill] sm:$0xff] %v8896_v42 }
 0x597   :  { %v2845_v38 = vpop.xlane.xlu0 %2844  ;;  %v8889_v29 = vpop.xlane.xlu2 %2172 }
 0x598   :  { %15066 = vst [vmem:[#allocation144_spill] sm:$0xff] %v8889_v29 }
 0x59c   :  { %v8880_v41 = vpop.f32.mrf.mxu1  ;;  %2836 = vadd.xlane.f32.xlu2 %v8878_v46 }
 0x59d   :  { %15063 = vst [vmem:[#allocation141_spill] sm:$0xff] %v8880_v41  ;;  %v8898_v41 = vpop.xlane.xlu1 %2174 }
 0x59f   :  { %v8900_v53 = vpop.xlane.xlu0 %2178  ;;  %v8905_v61 = vpop.xlane.xlu2 %2162 }
 0x5a0   :  { %15071 = vst [vmem:[#allocation147_spill] sm:$0xff] %v8905_v61 }
 0x5a4   :  { %v8891_v37 = vpop.f32.mrf.mxu1  ;;  %2200 = vmax.xlane.f32.xlu2 %v8887_v1 }
 0x5a5   :  { %15067 = vst [vmem:[#allocation145_spill] sm:$0xff] %v8891_v37  ;;  %v8911_v37 = vpop.f32.mrf.mxu2  ;;  %v8916_v3 = vpop.xlane.xlu1 %2240 }
 0x5a6   :  { %15074 = vst [vmem:[#allocation148_spill] sm:$0xff] %v8911_v37 }
 0x5a7   :  { %15076 = vst [vmem:[#allocation150_spill] sm:$0xff] %v8916_v3  ;;  %v8918_v16 = vpop.xlane.xlu0 %2134  ;;  %v2843_v31 = vpop.xlane.xlu2 %2842 }
 0x5a8   :  { %15077 = vst [vmem:[#allocation151_spill] sm:$0xff] %v8918_v16  ;;  %v8954_v61 = vadd.f32 1e-06, %v2843_v31  ;;  %v6648_v31 = vld [vmem:[%s14512_s2 + $0xf0] sm:$0xff] }
 0x5a9   :  { %v8983_v56 = vmul.f32 6.25e-08, %v6648_v31 }
 0x5ab   :  { %15091 = vst [vmem:[#allocation165_spill] sm:$0xff] %v8983_v56 }
 0x5ac   :  { %v8902_v43 = vpop.f32.mrf.mxu1  ;;  %2126 = vmax.xlane.f32.xlu2 %v8896_v42 }
 0x5ad   :  { %15070 = vst [vmem:[#allocation146_spill] sm:$0xff] %v8902_v43  ;;  %v8920_v0 = vpop.f32.mrf.mxu2  ;;  %v8924_v25 = vpop.xlane.xlu1 %2160 }
 0x5ae   :  { %15078 = vst [vmem:[#allocation152_spill] sm:$0xff] %v8920_v0 }
 0x5af   :  { %15080 = vst [vmem:[#allocation154_spill] sm:$0xff] %v8924_v25  ;;  %v8926_v13 = vpop.xlane.xlu0 %2102 }
 0x5b0   :  { %15081 = vst [vmem:[#allocation155_spill] sm:$0xff] %v8926_v13  ;;  %v8946_v13 = vadd.f32 1e-06, %v2845_v38 }
 0x5b2   :  { %vm3517_vm14 = vweird.f32 %v8946_v13 }
 0x5b4   :  { %v8913_v1 = vpop.f32.mrf.mxu1  ;;  %2094 = vmax.xlane.f32.xlu2 %v8909_v8 }
 0x5b5   :  { %15075 = vst [vmem:[#allocation149_spill] sm:$0xff] %v8913_v1  ;;  %v8930_v43 = vpop.f32.mrf.mxu2 }
 0x5b6   :  { %15083 = vst [vmem:[#allocation157_spill] sm:$0xff] %v8930_v43 }
 0x5b7   :  { %v8934_v3 = vpop.xlane.xlu0 %2238 }
 0x5b8   :  { %15084 = vst [vmem:[#allocation158_spill] sm:$0xff] %v8934_v3 }
 0x5bc   :  { %v8922_v42 = vpop.f32.mrf.mxu1 }
 0x5bd   :  { %15079 = vst [vmem:[#allocation153_spill] sm:$0xff] %v8922_v42  ;;  %v8944_v0 = vpop.f32.mrf.mxu2  ;;  %v9016_v42 = vadd.f32 %v8732_v35, %v8983_v56 }
 0x5be   :  { %15086 = vst [vmem:[#allocation160_spill] sm:$0xff] %v8944_v0 }
 0x5bf   :  { %v2847_v4 = vpop.xlane.xlu2 %2846  ;;  %v8948_v11 = vpop.xlane.xlu0 %2158 }
 0x5c0   :  { %v8938_v32 = vadd.f32 1e-06, %v2847_v4  ;;  %15087 = vst [vmem:[#allocation161_spill] sm:$0xff] %v8948_v11 }
 0x5c2   :  { %vm3532_vm10 = vweird.f32 %v8938_v32 }
 0x5c4   :  { %v8928_v36 = vpop.f32.mrf.mxu1 }
 0x5c5   :  { %15082 = vst [vmem:[#allocation156_spill] sm:$0xff] %v8928_v36  ;;  %v8972_v49 = vpop.f32.mrf.mxu2 }
 0x5c6   :  { %15089 = vst [vmem:[#allocation163_spill] sm:$0xff] %v8972_v49 }
 0x5c7   :  { %v2841_v1 = vpop.xlane.xlu1 %2840  ;;  %v8932_v8 = vpop.xlane.xlu2 %2176 }
 0x5c8   :  { %v8978_v47 = vadd.f32 1e-06, %v2841_v1 }
 0x5cc   :  { %v8936_v37 = vpop.f32.mrf.mxu1 }
 0x5cf   :  { %v8940_v58 = vpop.xlane.xlu1 %2130  ;;  %v2849_v16 = vpop.xlane.xlu2 %2848 }
 0x5d0   :  { %15085 = vst [vmem:[#allocation159_spill] sm:$0xff] %v8940_v58  ;;  %v8942_v25 = vadd.f32 1e-06, %v2849_v16 }
 0x5d2   :  { %6878 = vrcp.f32 %v8942_v25  ;;  %vm3547_vm3 = vweird.f32 %v8942_v25  ;;  %v3553_v49 = vand.u32 2147483648, %v8942_v25  ;;  %v3551_v62 = vand.u32 2147483647, %v8942_v25 }
 0x5d3   :  { %6880 = vrcp.f32 %v8938_v32 }
 0x5d4   :  { %v8952_v3 = vpop.f32.mrf.mxu1  ;;  %6882 = vrcp.f32 %v8946_v13  ;;  %vm3552_vm9 = vcmp.eq.f32.partialorder %v3551_v62, 8.507059e+37 }
 0x5d5   :  { %6884 = vrcp.f32 %v8954_v61 }
 0x5d7   :  { %v2851_v4 = vpop.xlane.xlu2 %2850  ;;  %v8966_v11 = vpop.xlane.xlu1 %2098 }
 0x5d8   :  { %v8957_v58 = vpop.eup %6878  ;;  %v8959_v16 = vadd.f32 1e-06, %v2851_v4  ;;  %15088 = vst [vmem:[#allocation162_spill] sm:$0xff] %v8966_v11  ;;  %v2839_v4 = vpop.xlane.xlu0 %2838 }
 0x5d9   :  { %v8961_v12 = vpop.eup %6880  ;;  %v3543_v38 = vmul.f32 %v8957_v58, %v8942_v25  ;;  %v8992_v50 = vadd.f32 1e-06, %v2839_v4  ;;  %v9007_v4 = vld [vmem:[%s14512_s2 + $0x20] sm:$0xff]  ;;  %vm3548_vm1 = vweird.f32 %v8957_v58 }
 0x5da   :  { %6886 = vrcp.f32 %v8959_v16  ;;  %v8974_v17 = vpop.eup %6882  ;;  %v3528_v10 = vmul.f32 %v8961_v12, %v8938_v32  ;;  %vm3562_vm4 = vweird.f32 %v8959_v16  ;;  %vm9053_vm5 = vmor %vm3547_vm3, %vm3548_vm1  ;;  %vm3533_vm7 = vweird.f32 %v8961_v12 }
 0x5db   :  { %v3544_v28 = vsub.f32 1.0, %v3543_v38  ;;  %v8985_v34 = vpop.eup %6884  ;;  %v3513_v43 = vmul.f32 %v8974_v17, %v8946_v13  ;;  %6888 = vrcp.f32 %v8978_v47  ;;  %vm9076_vm11 = vmor %vm3532_vm10, %vm3533_vm7  ;;  %vm3518_vm12 = vweird.f32 %v8974_v17 }
 0x5dc   :  { %v1918_v55 = vpop.f32.mrf.mxu1  ;;  %v3529_v31 = vsub.f32 1.0, %v3528_v10  ;;  %v2314_v10 = vsub.f32 %v8264_v6, %v8756_v52  ;;  %6890 = vrcp.f32 %v8992_v50  ;;  %v3568_v6 = vand.u32 2147483648, %v8959_v16  ;;  %v9035_v52 = vpop.f32.mrf.mxu2  ;;  %vm9113_vm15 = vmor %vm3517_vm14, %vm3518_vm12 }
 0x5dd   :  { %v8981_v11 = vadd.f32 %v1918_v55, %v8214_v14  ;;  %v6647_v14 = vld [vmem:[%s14512_s2 + $0xe8] sm:$0xff]  ;;  %v6656_v55 = vld [vmem:[%s14512_s2 + $0x130] sm:$0xff]  ;;  %v3545_v63 = vmul.f32 %v8957_v58, %v3544_v28  ;;  %v3514_v26 = vsub.f32 1.0, %v3513_v43  ;;  %v3566_v28 = vand.u32 2147483647, %v8959_v16 }
 0x5de   :  { %v9023_v0 = vmul.f32 6.25e-08, %v6647_v14  ;;  %v269_v36 = vmul.f32 %v6656_v55, %v8361_v45  ;;  %v3530_v33 = vmul.f32 %v8961_v12, %v3529_v31  ;;  %vm3503_vm0 = vweird.f32 %v8985_v34 }
 0x5df   :  { %15090 = vst [vmem:[#allocation164_spill] sm:$0xff] %v8981_v11  ;;  %2262 = vmax.xlane.f32.xlu1 %v8981_v11  ;;  %v8995_v1 = vpop.xlane.xlu2 %2242  ;;  %v15093_v11 = vld [vmem:[#allocation40_spill] sm:$0xff]  ;;  %v9029_v35 = vpop.xlane.xlu1 %2204  ;;  %v3546_v43 = vadd.f32 %v8957_v58, %v3545_v63  ;;  %vm3567_vm8 = vcmp.eq.f32.partialorder %v3566_v28, 8.507059e+37  ;;  %vm3502_vm1 = vweird.f32 %v8954_v61  ;;  %vm3472_vm10 = vweird.f32 %v8992_v50 }
 0x5e0   :  { %15092 = vst [vmem:[#allocation166_spill] sm:$0xff] %v8995_v1  ;;  %v6887_v38 = vpop.eup %6886  ;;  %v9011_v1 = vadd.f32 %v9007_v4, %v15093_v11  ;;  %v3498_v11 = vmul.f32 %v8985_v34, %v8954_v61  ;;  %vm9135_vm3 = vmor %vm3502_vm1, %vm3503_vm0 }
 0x5e1   :  { %v3558_v7 = vmul.f32 %v6887_v38, %v8959_v16  ;;  %15095 = vst [vmem:[#allocation167_spill] sm:$0xff] %v9023_v0  ;;  %vm3563_vm2 = vweird.f32 %v6887_v38 }
 0x5e2   :  { %15094 = vst [vmem:[#allocation40_spill] sm:$0xff] %v9011_v1  ;;  %v3499_v31 = vsub.f32 1.0, %v3498_v11  ;;  %vm3564_vm6 = vmor %vm3562_vm4, %vm3563_vm2 }
 0x5e3   :  { %v3559_v29 = vsub.f32 1.0, %v3558_v7  ;;  %15096 = vst [vmem:[#allocation168_spill] sm:$0xff] %v9029_v35  ;;  %v9041_v7 = vpop.eup %6888  ;;  %v2448_v35 = vmul.f32 1.442695, %v2314_v10  ;;  %v3515_v10 = vmul.f32 %v8974_v17, %v3514_v26  ;;  %v3536_v26 = vand.u32 2147483647, %v8938_v32 }
 0x5e4   :  { %v1921_v56 = vpop.f32.mrf.mxu1  ;;  %v9061_v11 = vpop.eup %6890  ;;  %v3483_v16 = vmul.f32 %v9041_v7, %v8978_v47  ;;  %vm3488_vm4 = vweird.f32 %v9041_v7 }
 0x5e5   :  { %v3560_v14 = vmul.f32 %v6887_v38, %v3559_v29  ;;  %v9038_v55 = vadd.f32 %v1921_v56, %v8235_v2  ;;  %v3569_v56 = vor.u32 1.1754944e-38, %v3568_v6  ;;  %v3531_v29 = vadd.f32 %v8961_v12, %v3530_v33 }
 0x5e6   :  { %6892 = vpow2.f32 %v2448_v35  ;;  %v3554_v6 = vor.u32 1.1754944e-38, %v3553_v49  ;;  %v3538_v33 = vand.u32 2147483648, %v8938_v32  ;;  %v3516_v49 = vadd.f32 %v8974_v17, %v3515_v10 }
 0x5e7   :  { %15097 = vst [vmem:[#allocation169_spill] sm:$0xff] %v9038_v55  ;;  %v9047_v59 = vpop.xlane.xlu2 %2132  ;;  %2264 = vmax.xlane.f32.xlu2 %v9038_v55  ;;  %v3561_v2 = vadd.f32 %v6887_v38, %v3560_v14  ;;  %v3550_v55 = vsel %vm9053_vm5, %v8957_v58, %v3546_v43  ;;  %v3468_v32 = vmul.f32 %v9061_v11, %v8992_v50  ;;  %v3484_v35 = vsub.f32 1.0, %v3483_v16  ;;  %v9085_v43 = vpop.xlane.xlu1 %2234 }
 0x5e8   :  { %15098 = vst [vmem:[#allocation170_spill] sm:$0xff] %v9047_v59  ;;  %v3535_v62 = vsel %vm9076_vm11, %v8961_v12, %v3531_v29  ;;  %v3523_v16 = vand.u32 2147483648, %v8946_v13  ;;  %vm3537_vm13 = vcmp.eq.f32.partialorder %v3536_v26, 8.507059e+37  ;;  %v3521_v12 = vand.u32 2147483647, %v8946_v13 }
 0x5e9   :  { %v3565_v14 = vsel %vm3564_vm6, %v6887_v38, %v3561_v2  ;;  %v6646_v38 = vld [vmem:[%s14512_s2 + $0xe0] sm:$0xff]  ;;  %v3555_v2 = vsel %vm3552_vm9, %v3554_v6, %v3550_v55  ;;  %15103 = vst [vmem:[#allocation171_spill] sm:$0xff] %v9085_v43  ;;  %v9090_v55 = vld [vmem:[%s14512_s2 + $0x58] sm:$0xff]  ;;  %v3469_v26 = vsub.f32 1.0, %v3468_v32  ;;  %v3217_v13 = vadd.f32 %v8693_v24, %v9023_v0 }
 0x5ea   :  { %v3570_v25 = vsel %vm3567_vm8, %v3569_v56, %v3565_v14  ;;  %v9099_v56 = vadd.f32 %v8370_v44, %v269_v36  ;;  %v9101_v10 = vmul.f32 6.25e-08, %v6646_v38  ;;  %v2022_v14 = vpop.f32.mrf.mxu2  ;;  %v6645_v6 = vld [vmem:[%s14512_s2 + $0xd8] sm:$0xff]  ;;  %v3520_v38 = vsel %vm9113_vm15, %v8974_v17, %v3516_v49 }
 0x5eb   :  { %v3571_v59 = vmul.f32 %v3570_v25, %v3219_v40  ;;  %v3500_v40 = vmul.f32 %v8985_v34, %v3499_v31  ;;  %v3539_v31 = vor.u32 1.1754944e-38, %v3538_v33  ;;  %v3506_v58 = vand.u32 2147483647, %v8954_v61 }
 0x5ec   :  { %v1924_v28 = vpop.f32.mrf.mxu1  ;;  %15105 = vst [vmem:[#allocation173_spill] sm:$0xff] %v9099_v56  ;;  %v6893_v36 = vpop.eup %6892  ;;  %vm3522_vm2 = vcmp.eq.f32.partialorder %v3521_v12, 8.507059e+37  ;;  %v9133_v32 = vmul.f32 6.25e-08, %v6645_v6  ;;  %v3470_v12 = vmul.f32 %v9061_v11, %v3469_v26  ;;  %vm3487_vm6 = vweird.f32 %v8978_v47 }
 0x5ed   :  { %v9093_v63 = vadd.f32 %v9090_v55, %v1924_v28  ;;  %5252 = vmatpush.xpose.msra.mxu3 %v3571_v59  ;;  %15106 = vst [vmem:[#allocation174_spill] sm:$0xff] %v9101_v10  ;;  %v3556_v59 = vmul.f32 %v3555_v2, %v9016_v42  ;;  %v3540_v44 = vsel %vm3537_vm13, %v3539_v31, %v3535_v62  ;;  %v3508_v42 = vand.u32 2147483648, %v8954_v61  ;;  %vm9181_vm7 = vmor %vm3487_vm6, %vm3488_vm4 }
 0x5ee   :  { %v3501_v33 = vadd.f32 %v8985_v34, %v3500_v40  ;;  %v3485_v28 = vmul.f32 %v9041_v7, %v3484_v35  ;;  %v3524_v2 = vor.u32 1.1754944e-38, %v3523_v16  ;;  %v3541_v40 = vmul.f32 %v3540_v44, %v3217_v13  ;;  %15110 = vst [vmem:[#allocation176_spill] sm:$0xff] %v9133_v32  ;;  %v6644_v13 = vld [vmem:[%s14512_s2 + $0xd0] sm:$0xff] }
 0x5ef   :  { %15104 = vst [vmem:[#allocation172_spill] sm:$0xff] %v9093_v63  ;;  %2266 = vmax.xlane.f32.xlu0 %v9093_v63  ;;  %v9105_v25 = vpop.xlane.xlu2 %2100  ;;  %2124 = vmax.xlane.f32.xlu2 %v9011_v1  ;;  %v3216_v62 = vadd.f32 %v8429_v18, %v9101_v10  ;;  %v9140_v17 = vmul.f32 %v6893_v36, %v9099_v56  ;;  %v3509_v35 = vor.u32 1.1754944e-38, %v3508_v42  ;;  %v9148_v18 = vld [vmem:[%s14512_s2 + $0x60] sm:$0xff]  ;;  %vm3507_vm5 = vcmp.eq.f32.partialorder %v3506_v58, 8.507059e+37  ;;  %v9165_v29 = vpop.xlane.xlu1 %2154  ;;  %v9540_v1 = vld [vmem:[%s14512_s2 + $0x28] sm:$0xff] }
 0x5f0   :  { %15107 = vst [vmem:[#allocation175_spill] sm:$0xff] %v9105_v25  ;;  %v3525_v49 = vsel %vm3522_vm2, %v3524_v2, %v3520_v38  ;;  %v3505_v61 = vsel %vm9135_vm3, %v8985_v34, %v3501_v33  ;;  %v9159_v34 = vld [vmem:[%s14512_s2 + $0x30] sm:$0xff]  ;;  %v3493_v44 = vand.u32 2147483648, %v8978_v47  ;;  %v3491_v26 = vand.u32 2147483647, %v8978_v47 }
 0x5f1   :  { %5253 = vmatpush.xpose.msra.mxu3 %v3556_v59  ;;  %v3486_v59 = vadd.f32 %v9041_v7, %v3485_v28  ;;  %v9162_v36 = vadd.f32 %v9159_v34, %v2022_v14  ;;  %15115 = vst [vmem:[#allocation179_spill] sm:$0xff] %v9165_v29  ;;  %v3526_v33 = vmul.f32 %v3525_v49, %v3216_v62  ;;  %vm3473_vm8 = vweird.f32 %v9061_v11  ;;  %v15225_v25 = vld [vmem:[#allocation70_spill] sm:$0xff]  ;;  %v15226_v29 = vld [vmem:[#allocation135_spill] sm:$0xff] }
 0x5f2   :  { %v3510_v42 = vsel %vm3507_vm5, %v3509_v35, %v3505_v61  ;;  %v3215_v14 = vadd.f32 %v8381_v30, %v9133_v32  ;;  %v2025_v28 = vpop.f32.mrf.mxu2  ;;  %v6643_v30 = vld [vmem:[%s14512_s2 + $0xc8] sm:$0xff]  ;;  %v3471_v2 = vadd.f32 %v9061_v11, %v3470_v12  ;;  %v3478_v62 = vand.u32 2147483648, %v8992_v50  ;;  %vm9208_vm11 = vmor %vm3472_vm10, %vm3473_vm8 }
 0x5f3   :  { %15114 = vst [vmem:[#allocation178_spill] sm:$0xff] %v9162_v36  ;;  %v3490_v47 = vsel %vm9181_vm7, %v9041_v7, %v3486_v59  ;;  %v9194_v24 = vmul.f32 6.25e-08, %v6644_v13  ;;  %vm3492_vm9 = vcmp.eq.f32.partialorder %v3491_v26, 8.507059e+37  ;;  %v9201_v7 = vld [vmem:[%s14512_s2 + $0x38] sm:$0xff]  ;;  %v7414_v12 = vld [vmem:[%s14512_s2 + $0x48] sm:$0xff] }
 0x5f4   :  { %v1927_v31 = vpop.f32.mrf.mxu1  ;;  %v3511_v58 = vmul.f32 %v3510_v42, %v3215_v14  ;;  %v9204_v49 = vadd.f32 %v9201_v7, %v2025_v28  ;;  %v9206_v59 = vmul.f32 6.25e-08, %v6643_v30  ;;  %v3475_v14 = vsel %vm9208_vm11, %v9061_v11, %v3471_v2 }
 0x5f5   :  { %v9151_v16 = vadd.f32 %v9148_v18, %v1927_v31  ;;  %5254 = vmatpush.xpose.msra.mxu3 %v3541_v40  ;;  %v3494_v40 = vor.u32 1.1754944e-38, %v3493_v44  ;;  %15119 = vst [vmem:[#allocation181_spill] sm:$0xff] %v9194_v24  ;;  %v3476_v31 = vand.u32 2147483647, %v8992_v50  ;;  %v9215_v50 = vld [vmem:[%s14512_s2 + $0x40] sm:$0xff]  ;;  %v3214_v26 = vadd.f32 %v8712_v23, %v9194_v24 }
 0x5f6   :  { %15120 = vst [vmem:[#allocation182_spill] sm:$0xff] %v9204_v49  ;;  %v9219_v44 = vadd.f32 %v9215_v50, %v8952_v3  ;;  %v3479_v13 = vor.u32 1.1754944e-38, %v3478_v62  ;;  %v3213_v23 = vadd.f32 %v8607_v48, %v9206_v59  ;;  %v9250_v62 = vld [vmem:[%s14512_s2 + $0x70] sm:$0xff] }
 0x5f7   :  { %15113 = vst [vmem:[#allocation177_spill] sm:$0xff] %v9151_v16  ;;  %2832 = vadd.xlane.f32.xlu0 %v9140_v17  ;;  %2268 = vmax.xlane.f32.xlu1 %v9151_v16  ;;  %v9169_v6 = vpop.xlane.xlu2 %2236  ;;  %v3495_v35 = vsel %vm3492_vm9, %v3494_v40, %v3490_v47  ;;  %vm3477_vm12 = vcmp.eq.f32.partialorder %v3476_v31, 8.507059e+37  ;;  %v2835_v47 = vpop.xlane.xlu1 %2834  ;;  %v9245_v40 = vadd.f32 %v9215_v50, %v8507_v54 }
 0x5f8   :  { %15116 = vst [vmem:[#allocation180_spill] sm:$0xff] %v9169_v6  ;;  %2288 = vmax.xlane.f32.xlu2 %v9162_v36  ;;  %v3496_v38 = vmul.f32 %v3495_v35, %v3214_v26  ;;  %v3480_v28 = vsel %vm3477_vm12, %v3479_v13, %v3475_v14  ;;  %v9241_v11 = vadd.f32 1e-06, %v2835_v47  ;;  %v2371_v54 = vsub.f32 %v8435_v21, %v8900_v53  ;;  %v15224_v6 = vld [vmem:[#allocation126_spill] sm:$0xff] }
 0x5f9   :  { %5255 = vmatpush.xpose.msra.mxu3 %v3526_v33  ;;  %15121 = vst [vmem:[#allocation183_spill] sm:$0xff] %v9206_v59  ;;  %v9224_v33 = vld [vmem:[%s14512_s2 + $0x68] sm:$0xff]  ;;  %v9271_v26 = vadd.f32 %v7414_v12, %v8516_v5  ;;  %v9280_v47 = vadd.f32 %v9035_v52, %v8521_v51  ;;  %v2370_v51 = vsub.f32 %v8709_v60, %v8932_v8  ;;  %v15135_v52 = vld [vmem:[#allocation107_spill] sm:$0xff] }
 0x5fa   :  { %15124 = vst [vmem:[#allocation184_spill] sm:$0xff] %v9219_v44  ;;  %v2028_v30 = vpop.f32.mrf.mxu2  ;;  %6894 = vrcp.f32 %v9241_v11  ;;  %v2562_v14 = vmul.f32 1.442695, %v2371_v54  ;;  %v9298_v54 = vld [vmem:[%s14512_s2 + $0x78] sm:$0xff]  ;;  %v6642_v8 = vld [vmem:[%s14512_s2 + $0xc0] sm:$0xff]  ;;  %vm3442_vm15 = vweird.f32 %v9241_v11 }
 0x5fb   :  { %15127 = vst [vmem:[#allocation187_spill] sm:$0xff] %v9245_v40  ;;  %v9274_v13 = vadd.f32 %v9215_v50, %v2028_v30  ;;  %v2313_v30 = vsub.f32 %v8527_v19, %v8754_v27 }
 0x5fc   :  { %v1930_v61 = vpop.f32.mrf.mxu1  ;;  %15132 = vst [vmem:[#allocation190_spill] sm:$0xff] %v9271_v26  ;;  %6896 = vpow2.f32 %v2562_v14 }
 0x5fd   :  { %v9227_v42 = vadd.f32 %v9224_v33, %v1930_v61  ;;  %5256 = vmatpush.xpose.msra.mxu3 %v3511_v58  ;;  %v3481_v58 = vmul.f32 %v3480_v28, %v3213_v23  ;;  %v15129_v61 = vld [vmem:[#allocation39_spill] sm:$0xff]  ;;  %15133 = vst [vmem:[#allocation191_spill] sm:$0xff] %v9274_v13  ;;  %v2446_v27 = vmul.f32 1.442695, %v2313_v30  ;;  %v7416_v30 = vld [vmem:[%s14512_s2 + $0x50] sm:$0xff] }
 0x5fe   :  { %v9257_v48 = vadd.f32 %v9007_v4, %v15129_v61  ;;  %15134 = vst [vmem:[#allocation192_spill] sm:$0xff] %v9280_v47 }
 0x5ff   :  { %15125 = vst [vmem:[#allocation185_spill] sm:$0xff] %v9227_v42  ;;  %2290 = vmax.xlane.f32.xlu0 %v9204_v49  ;;  %2260 = vmax.xlane.f32.xlu1 %v9219_v44  ;;  %v9236_v3 = vpop.xlane.xlu2 %2206 }
 0x600   :  { %15126 = vst [vmem:[#allocation186_spill] sm:$0xff] %v9236_v3  ;;  %2270 = vmax.xlane.f32.xlu2 %v9227_v42  ;;  %v9276_v28 = vpop.eup %6894  ;;  %v15222_v3 = vld [vmem:[#allocation68_spill] sm:$0xff] }
 0x601   :  { %5257 = vmatpush.xpose.msra.mxu3 %v3496_v38  ;;  %15130 = vst [vmem:[#allocation39_spill] sm:$0xff] %v9257_v48  ;;  %v3438_v53 = vmul.f32 %v9276_v28, %v9241_v11  ;;  %vm3443_vm13 = vweird.f32 %v9276_v28 }
 0x602   :  { %v2031_v38 = vpop.f32.mrf.mxu2  ;;  %vm9341_vm1 = vmor %vm3442_vm15, %vm3443_vm13 }
 0x603   :  { %v3439_v61 = vsub.f32 1.0, %v3438_v53  ;;  %v2560_v53 = vmul.f32 1.442695, %v2370_v51 }
 0x604   :  { %v1933_v2 = vpop.f32.mrf.mxu1 }
 0x605   :  { %v9253_v31 = vadd.f32 %v9250_v62, %v1933_v2  ;;  %5258 = vmatpush.xpose.msra.mxu3 %v3481_v58  ;;  %v15136_v58 = vld [vmem:[#allocation50_spill] sm:$0xff] }
 0x606   :  { %v9293_v2 = vadd.f32 %v15136_v58, %v15135_v52 }
 0x607   :  { %15128 = vst [vmem:[#allocation188_spill] sm:$0xff] %v9253_v31  ;;  %2272 = vmax.xlane.f32.xlu0 %v9253_v31  ;;  %2196 = vmax.xlane.f32.xlu1 %v9245_v40  ;;  %v9261_v35 = vpop.xlane.xlu2 %2156 }
 0x608   :  { %15131 = vst [vmem:[#allocation189_spill] sm:$0xff] %v9261_v35  ;;  %2092 = vmax.xlane.f32.xlu2 %v9257_v48  ;;  %v15203_v35 = vld [vmem:[#allocation106_spill] sm:$0xff] }
 0x609   :  { %15137 = vst [vmem:[#allocation107_spill] sm:$0xff] %v9293_v2 }
 0x60a   :  { %v2034_v19 = vpop.f32.mrf.mxu2 }
 0x60b   :  { %v9320_v58 = vadd.f32 %v7416_v30, %v2034_v19  ;;  %v9331_v19 = vld [vmem:[%s14512_s2 + $0x18] sm:$0xff] }
 0x60c   :  { %v1936_v23 = vpop.f32.mrf.mxu1 }
 0x60d   :  { %v9301_v14 = vadd.f32 %v9298_v54, %v1936_v23  ;;  %v9315_v23 = vmul.f32 6.25e-08, %v6642_v8  ;;  %15141 = vst [vmem:[#allocation195_spill] sm:$0xff] %v9320_v58 }
 0x60f   :  { %2230 = vmax.xlane.f32.xlu0 %v9271_v26  ;;  %2292 = vmax.xlane.f32.xlu1 %v9274_v13  ;;  %v2837_v21 = vpop.xlane.xlu2 %2836  ;;  %15138 = vst [vmem:[#allocation50_spill] sm:$0xff] %v9301_v14 }
 0x610   :  { %2286 = vmax.xlane.f32.xlu2 %v9280_v47  ;;  %v3084_v5 = vadd.f32 1e-06, %v2837_v21  ;;  %v9303_v21 = vadd.f32 %v7414_v12, %v2031_v38  ;;  %v6897_v47 = vpop.eup %6896  ;;  %v6655_v12 = vld [vmem:[%s14512_s2 + $0x128] sm:$0xff]  ;;  %v3440_v38 = vmul.f32 %v9276_v28, %v3439_v61  ;;  %15140 = vst [vmem:[#allocation194_spill] sm:$0xff] %v9315_v23 }
 0x611   :  { %v9323_v51 = vmul.f32 %v6897_v47, %v8741_v20  ;;  %v268_v26 = vmul.f32 %v6655_v12, %v8361_v45  ;;  %v3446_v12 = vand.u32 2147483647, %v9241_v11 }
 0x612   :  { %6898 = vrcp.f32 %v3084_v5  ;;  %15139 = vst [vmem:[#allocation193_spill] sm:$0xff] %v9303_v21  ;;  %v3461_v8 = vand.u32 2147483647, %v3084_v5  ;;  %v3441_v13 = vadd.f32 %v9276_v28, %v3440_v38  ;;  %vm3457_vm0 = vweird.f32 %v3084_v5 }
 0x613   :  { %6900 = vpow2.f32 %v2446_v27  ;;  %v15142_v27 = vld [vmem:[#allocation80_spill] sm:$0xff]  ;;  %v3212_v38 = vadd.f32 %v8878_v46, %v9315_v23  ;;  %vm3447_vm4 = vcmp.eq.f32.partialorder %v3446_v12, 8.507059e+37  ;;  %v9391_v12 = vadd.f32 %v9201_v7, %v8936_v37 }
 0x614   :  { %6902 = vpow2.f32 %v2560_v53  ;;  %v9335_v47 = vadd.f32 %v9331_v19, %v15142_v27  ;;  %v3448_v53 = vand.u32 2147483648, %v9241_v11  ;;  %v6641_v27 = vld [vmem:[%s14512_s2 + $0xb8] sm:$0xff]  ;;  %vm3462_vm3 = vcmp.eq.f32.partialorder %v3461_v8, 8.507059e+37  ;;  %v9356_v11 = vld [vmem:[%s14511_s1] ss:$0 sm:$0xff] }
 0x615   :  { %v3445_v46 = vsel %vm9341_vm1, %v9276_v28, %v3441_v13  ;;  %v2369_v37 = vsub.f32 %v8624_v22, %v8898_v41 }
 0x616   :  { %15143 = vst [vmem:[#allocation80_spill] sm:$0xff] %v9335_v47  ;;  %v3449_v49 = vor.u32 1.1754944e-38, %v3448_v53  ;;  %v15150_v53 = vld [vmem:[#allocation105_spill] sm:$0xff] }
 0x617   :  { %2150 = vmax.xlane.f32.xlu0 %v9293_v2  ;;  %2274 = vmax.xlane.f32.xlu1 %v9301_v14  ;;  %15152 = vst [vmem:[#allocation105_spill] sm:$0xff] %v9391_v12  ;;  %v2558_v41 = vmul.f32 1.442695, %v2369_v37  ;;  %v9443_v37 = vld [vmem:[%s14512_s2 + $0x10] sm:$0xff] }
 0x618   :  { %v6899_v60 = vpop.eup %6898  ;;  %2294 = vmax.xlane.f32.xlu2 %v9303_v21  ;;  %v3463_v21 = vand.u32 2147483648, %v3084_v5 }
 0x619   :  { %v3453_v52 = vmul.f32 %v6899_v60, %v3084_v5  ;;  %vm3458_vm14 = vweird.f32 %v6899_v60  ;;  %v2037_v5 = vpop.f32.mrf.mxu2 }
 0x61a   :  { %vm3459_vm2 = vmor %vm3457_vm0, %vm3458_vm14  ;;  %v3464_v30 = vor.u32 1.1754944e-38, %v3463_v21 }
 0x61b   :  { %v3454_v2 = vsub.f32 1.0, %v3453_v52  ;;  %v15147_v52 = vld [vmem:[#allocation38_spill] sm:$0xff] }
 0x61c   :  { %v9376_v13 = vadd.f32 %v9331_v19, %v15147_v52 }
 0x61d   :  { %v3455_v61 = vmul.f32 %v6899_v60, %v3454_v2 }
 0x61e   :  { %15148 = vst [vmem:[#allocation38_spill] sm:$0xff] %v9376_v13 }
 0x61f   :  { %2296 = vmax.xlane.f32.xlu0 %v9320_v58  ;;  %2946 = vadd.xlane.f32.xlu1 %v9323_v51  ;;  %v3456_v2 = vadd.f32 %v6899_v60, %v3455_v61  ;;  %v6901_v61 = vpop.eup %6900  ;;  %v9364_v58 = vmul.f32 6.25e-08, %v6641_v27 }
 0x620   :  { %2122 = vmax.xlane.f32.xlu2 %v9335_v47  ;;  %v9359_v47 = vadd.f32 %v9356_v11, %v268_v26  ;;  %v6903_v21 = vpop.eup %6902 }
 0x621   :  { %v3460_v40 = vsel %vm3459_vm2, %v6899_v60, %v3456_v2  ;;  %15146 = vst [vmem:[#allocation196_spill] sm:$0xff] %v9364_v58  ;;  %v3450_v60 = vsel %vm3447_vm4, %v3449_v49, %v3445_v46  ;;  %v9370_v2 = vmul.f32 %v6903_v21, %v8721_v57  ;;  %v3211_v26 = vadd.f32 %v8821_v15, %v9364_v58  ;;  %v9380_v49 = vpop.xlane.xlu0 %2208  ;;  %v15156_v46 = vld [vmem:[#allocation93_spill] sm:$0xff] }
 0x622   :  { %v3465_v48 = vsel %vm3462_vm3, %v3464_v30, %v3460_v40  ;;  %v9367_v8 = vmul.f32 %v6901_v61, %v9359_v47  ;;  %v9387_v15 = vadd.f32 %v9215_v50, %v15150_v53  ;;  %v15154_v50 = vld [vmem:[#allocation48_spill] sm:$0xff]  ;;  %v9417_v21 = vadd.f32 %v9201_v7, %v15156_v46 }
 0x623   :  { %v3466_v42 = vmul.f32 %v3465_v48, %v3212_v38  ;;  %v3451_v40 = vmul.f32 %v3450_v60, %v3211_v26  ;;  %v15149_v48 = vld [vmem:[#allocation61_spill] sm:$0xff]  ;;  %v15158_v60 = vld [vmem:[#allocation122_spill] sm:$0xff]  ;;  %v15159_v26 = vld [vmem:[#allocation75_spill] sm:$0xff] }
 0x624   :  { %v2312_v28 = vsub.f32 %v15149_v48, %v8672_v39  ;;  %15151 = vst [vmem:[#allocation61_spill] sm:$0xff] %v9387_v15  ;;  %v6654_v39 = vld [vmem:[%s14512_s2 + $0x120] sm:$0xff]  ;;  %v2355_v52 = vsub.f32 %v15159_v26, %v15158_v60  ;;  %v9449_v26 = vpop.xlane.xlu2 %2200 }
 0x625   :  { %5259 = vmatpush.xpose.msra.mxu3 %v3466_v42  ;;  %v2040_v42 = vpop.f32.mrf.mxu2  ;;  %15157 = vst [vmem:[#allocation93_spill] sm:$0xff] %v9417_v21  ;;  %v15164_v46 = vld [vmem:[#allocation76_spill] sm:$0xff] }
 0x626   :  { %v9394_v38 = vadd.f32 %v9148_v18, %v2040_v42  ;;  %v2444_v30 = vmul.f32 1.442695, %v2312_v28  ;;  %v9409_v18 = vld [vmem:[%s14512_s2] sm:$0xff]  ;;  %v2530_v48 = vmul.f32 1.442695, %v2355_v52  ;;  %v9447_v60 = vadd.f32 %v9443_v37, %v15164_v46  ;;  %15166 = vst [vmem:[#allocation198_spill] sm:$0xff] %v9449_v26 }
 0x627   :  { %2830 = vadd.xlane.f32.xlu0 %v9367_v8  ;;  %2944 = vadd.xlane.f32.xlu1 %v9370_v2  ;;  %v9413_v61 = vadd.f32 %v9409_v18, %v15154_v50  ;;  %v15160_v42 = vld [vmem:[#allocation163_spill] sm:$0xff] }
 0x628   :  { %2090 = vmax.xlane.f32.xlu2 %v9376_v13  ;;  %15153 = vst [vmem:[#allocation197_spill] sm:$0xff] %v9394_v38  ;;  %6904 = vpow2.f32 %v2444_v30  ;;  %v9424_v22 = vadd.f32 %v9007_v4, %v15160_v42  ;;  %v15167_v52 = vld [vmem:[#allocation55_spill] sm:$0xff]  ;;  %v9491_v13 = vpop.xlane.xlu1 %2198 }
 0x629   :  { %5260 = vmatpush.xpose.msra.mxu3 %v3451_v40  ;;  %v9399_v27 = vpop.xlane.xlu0 %2202  ;;  %15155 = vst [vmem:[#allocation48_spill] sm:$0xff] %v9413_v61  ;;  %v267_v40 = vmul.f32 %v6654_v39, %v8361_v45  ;;  %6906 = vpow2.f32 %v2558_v41  ;;  %v9435_v39 = vadd.f32 %v9090_v55, %v2037_v5  ;;  %v15169_v41 = vld [vmem:[#allocation144_spill] sm:$0xff] }
 0x62a   :  { %15161 = vst [vmem:[#allocation122_spill] sm:$0xff] %v9424_v22  ;;  %6908 = vpow2.f32 %v2530_v48  ;;  %v15170_v48 = vld [vmem:[#allocation85_spill] sm:$0xff] }
 0x62b   :  { %v9430_v28 = vadd.f32 %v9356_v11, %v267_v40  ;;  %15163 = vst [vmem:[#allocation163_spill] sm:$0xff] %v9435_v39  ;;  %v15168_v40 = vld [vmem:[#allocation64_spill] sm:$0xff] }
 0x62c   :  { %15165 = vst [vmem:[#allocation76_spill] sm:$0xff] %v9447_v60  ;;  %v2311_v42 = vsub.f32 %v15168_v40, %v15167_v52  ;;  %v9472_v40 = vpop.xlane.xlu2 %2126 }
 0x62d   :  { %15162 = vst [vmem:[#allocation75_spill] sm:$0xff] %v9430_v28 }
 0x62e   :  { %v6905_v53 = vpop.eup %6904  ;;  %v2442_v52 = vmul.f32 1.442695, %v2311_v42  ;;  %15175 = vst [vmem:[#allocation144_spill] sm:$0xff] %v9472_v40  ;;  %v15200_v40 = vld [vmem:[#allocation131_spill] sm:$0xff] }
 0x62f   :  { %2228 = vmax.xlane.f32.xlu0 %v9387_v15  ;;  %2258 = vmax.xlane.f32.xlu1 %v9391_v12  ;;  %v9438_v50 = vmul.f32 %v6905_v53, %v9430_v28  ;;  %v6907_v55 = vpop.eup %6906  ;;  %v2368_v53 = vsub.f32 %v15170_v48, %v15169_v41  ;;  %v15178_v48 = vld [vmem:[#allocation156_spill] sm:$0xff] }
 0x630   :  { %2300 = vmax.xlane.f32.xlu2 %v9394_v38  ;;  %v6909_v5 = vpop.eup %6908  ;;  %6910 = vpow2.f32 %v2442_v52  ;;  %v9517_v16 = vpop.xlane.xlu1 %2210  ;;  %v15201_v38 = vld [vmem:[#allocation72_spill] sm:$0xff] }
 0x631   :  { %v9432_v30 = vpop.xlane.xlu0 %2128  ;;  %v9468_v12 = vmul.f32 %v6909_v5, %v8741_v20  ;;  %v2556_v41 = vmul.f32 1.442695, %v2368_v53  ;;  %v2043_v5 = vpop.f32.mrf.mxu2  ;;  %v2367_v26 = vsub.f32 %v15201_v38, %v15200_v40 }
 0x632   :  { %v9506_v44 = vadd.f32 %v9224_v33, %v2043_v5  ;;  %v9526_v5 = vld [vmem:[%s14512_s2 + $0x8] sm:$0xff] }
 0x633   :  { %6912 = vpow2.f32 %v2556_v41 }
 0x637   :  { %2148 = vmax.xlane.f32.xlu0 %v9413_v61  ;;  %2194 = vmax.xlane.f32.xlu1 %v9417_v21  ;;  %v15173_v61 = vld [vmem:[#allocation113_spill] sm:$0xff] }
 0x638   :  { %2284 = vmax.xlane.f32.xlu2 %v9424_v22  ;;  %v15171_v22 = vld [vmem:[#allocation104_spill] sm:$0xff]  ;;  %v9463_v21 = vmul.f32 %v6907_v55, %v15173_v61 }
 0x639   :  { %v9460_v46 = vadd.f32 %v9201_v7, %v15171_v22  ;;  %v9465_v15 = vpop.xlane.xlu0 %2096  ;;  %v6653_v7 = vld [vmem:[%s14512_s2 + $0x118] sm:$0xff]  ;;  %v15176_v22 = vld [vmem:[#allocation37_spill] sm:$0xff] }
 0x63a   :  { %15174 = vst [vmem:[#allocation64_spill] sm:$0xff] %v9463_v21  ;;  %v9480_v55 = vadd.f32 %v9443_v37, %v15176_v22  ;;  %v266_v42 = vmul.f32 %v6653_v7, %v8361_v45  ;;  %v6911_v22 = vpop.eup %6910 }
 0x63b   :  { %15172 = vst [vmem:[#allocation55_spill] sm:$0xff] %v9460_v46  ;;  %v6913_v7 = vpop.eup %6912 }
 0x63c   :  { %15177 = vst [vmem:[#allocation85_spill] sm:$0xff] %v9480_v55  ;;  %v9499_v41 = vadd.f32 %v9356_v11, %v266_v42 }
 0x63d   :  { %15182 = vst [vmem:[#allocation37_spill] sm:$0xff] %v9491_v13 }
 0x63e   :  { %15183 = vst [vmem:[#allocation156_spill] sm:$0xff] %v9499_v41 }
 0x63f   :  { %2828 = vadd.xlane.f32.xlu0 %v9438_v50  ;;  %2298 = vmax.xlane.f32.xlu1 %v9435_v39  ;;  %v15185_v39 = vld [vmem:[#allocation67_spill] sm:$0xff] }
 0x640   :  { %2120 = vmax.xlane.f32.xlu2 %v9447_v60  ;;  %v15180_v60 = vld [vmem:[#allocation160_spill] sm:$0xff]  ;;  %15187 = vst [vmem:[#allocation67_spill] sm:$0xff] %v9506_v44 }
 0x641   :  { %v9489_v53 = vadd.f32 %v9331_v19, %v15180_v60  ;;  %v9495_v52 = vpop.xlane.xlu0 %2232  ;;  %v15186_v60 = vld [vmem:[#allocation65_spill] sm:$0xff] }
 0x642   :  { %v2354_v28 = vsub.f32 %v15186_v60, %v15185_v39  ;;  %v15192_v60 = vld [vmem:[#allocation54_spill] sm:$0xff] }
 0x643   :  { %15181 = vst [vmem:[#allocation113_spill] sm:$0xff] %v9489_v53 }
 0x644   :  { %v2528_v42 = vmul.f32 1.442695, %v2354_v28  ;;  %v15193_v28 = vld [vmem:[#allocation78_spill] sm:$0xff] }
 0x646   :  { %6914 = vpow2.f32 %v2528_v42  ;;  %v15195_v42 = vld [vmem:[#allocation153_spill] sm:$0xff] }
 0x647   :  { %2226 = vmax.xlane.f32.xlu0 %v9460_v46  ;;  %2942 = vadd.xlane.f32.xlu1 %v9463_v21  ;;  %v9484_v46 = vadd.f32 %v9159_v34, %v15178_v48  ;;  %v9501_v48 = vpop.xlane.xlu2 %2094 }
 0x648   :  { %2914 = vadd.xlane.f32.xlu2 %v9468_v12  ;;  %15184 = vst [vmem:[#allocation160_spill] sm:$0xff] %v9501_v48 }
 0x649   :  { %15179 = vst [vmem:[#allocation104_spill] sm:$0xff] %v9484_v46  ;;  %v9519_v39 = vpop.xlane.xlu0 %2152 }
 0x64f   :  { %2088 = vmax.xlane.f32.xlu0 %v9480_v55  ;;  %2256 = vmax.xlane.f32.xlu1 %v9484_v46  ;;  %v9509_v55 = vmul.f32 %v6911_v22, %v9499_v41  ;;  %v15188_v46 = vld [vmem:[#allocation94_spill] sm:$0xff]  ;;  %v15190_v22 = vld [vmem:[#allocation73_spill] sm:$0xff]  ;;  %v2338_v41 = vsub.f32 %v15193_v28, %v15192_v60 }
 0x650   :  { %2282 = vmax.xlane.f32.xlu2 %v9489_v53  ;;  %v9512_v36 = vmul.f32 %v6913_v7, %v15188_v46  ;;  %v2046_v53 = vpop.f32.mrf.mxu2  ;;  %v9530_v7 = vadd.f32 %v9526_v5, %v15190_v22 }
 0x651   :  { %v9535_v63 = vadd.f32 %v9250_v62, %v2046_v53  ;;  %v2496_v22 = vmul.f32 1.442695, %v2338_v41  ;;  %v6915_v62 = vpop.eup %6914 }
 0x652   :  { %15191 = vst [vmem:[#allocation73_spill] sm:$0xff] %v9530_v7  ;;  %v9549_v28 = vpop.xlane.xlu1 %2262  ;;  %v9563_v41 = vmul.f32 %v6915_v62, %v8721_v57  ;;  %v15209_v62 = vld [vmem:[#allocation116_spill] sm:$0xff] }
 0x653   :  { %15194 = vst [vmem:[#allocation54_spill] sm:$0xff] %v9535_v63  ;;  %6916 = vpow2.f32 %v2496_v22 }
 0x654   :  { %15197 = vst [vmem:[#allocation153_spill] sm:$0xff] %v9549_v28 }
 0x657   :  { %2826 = vadd.xlane.f32.xlu0 %v9509_v55  ;;  %2302 = vmax.xlane.f32.xlu1 %v9506_v44 }
 0x658   :  { %2940 = vadd.xlane.f32.xlu2 %v9512_v36  ;;  %v2049_v60 = vpop.f32.mrf.mxu2 }
 0x65a   :  { %v9521_v33 = vpop.xlane.xlu2 %2264 }
 0x65b   :  { %15189 = vst [vmem:[#allocation65_spill] sm:$0xff] %v9521_v33  ;;  %v9544_v33 = vadd.f32 %v9540_v1, %v15195_v42  ;;  %v15202_v42 = vld [vmem:[#allocation121_spill] sm:$0xff] }
 0x65c   :  { %v2339_v44 = vsub.f32 %v15203_v35, %v15202_v42 }
 0x65d   :  { %15196 = vst [vmem:[#allocation78_spill] sm:$0xff] %v9544_v33 }
 0x65e   :  { %v2498_v38 = vmul.f32 1.442695, %v2339_v44 }
 0x65f   :  { %2118 = vmax.xlane.f32.xlu0 %v9530_v7  ;;  %2304 = vmax.xlane.f32.xlu1 %v9535_v63  ;;  %v9560_v7 = vadd.f32 %v9298_v54, %v2049_v60  ;;  %v6917_v54 = vpop.eup %6916  ;;  %v15221_v63 = vld [vmem:[#allocation118_spill] sm:$0xff] }
 0x660   :  { %2254 = vmax.xlane.f32.xlu2 %v9544_v33  ;;  %v15205_v33 = vld [vmem:[#allocation91_spill] sm:$0xff] }
 0x661   :  { %15204 = vst [vmem:[#allocation131_spill] sm:$0xff] %v9560_v7  ;;  %v9567_v28 = vadd.f32 %v9540_v1, %v15205_v33  ;;  %v15210_v33 = vld [vmem:[#allocation66_spill] sm:$0xff] }
 0x662   :  { %v9551_v53 = vpop.xlane.xlu2 %2124  ;;  %v9553_v48 = vpop.xlane.xlu0 %2266  ;;  %v2353_v42 = vsub.f32 %v15210_v33, %v15209_v62 }
 0x663   :  { %15198 = vst [vmem:[#allocation199_spill] sm:$0xff] %v9551_v53  ;;  %v2554_v53 = vmul.f32 1.442695, %v2367_v26  ;;  %v15211_v26 = vld [vmem:[#allocation92_spill] sm:$0xff] }
 0x664   :  { %15199 = vst [vmem:[#allocation200_spill] sm:$0xff] %v9553_v48  ;;  %v9580_v48 = vadd.f32 %v9159_v34, %v15211_v26 }
 0x665   :  { %15206 = vst [vmem:[#allocation72_spill] sm:$0xff] %v9567_v28  ;;  %6918 = vpow2.f32 %v2554_v53 }
 0x666   :  { %6920 = vpow2.f32 %v2498_v38  ;;  %15212 = vst [vmem:[#allocation91_spill] sm:$0xff] %v9580_v48  ;;  %v2526_v38 = vmul.f32 1.442695, %v2353_v42  ;;  %v6640_v42 = vld [vmem:[%s14512_s2 + $0xb0] sm:$0xff] }
 0x667   :  { %2912 = vadd.xlane.f32.xlu0 %v9563_v41  ;;  %2306 = vmax.xlane.f32.xlu1 %v9560_v7  ;;  %v15213_v7 = vld [vmem:[#allocation157_spill] sm:$0xff] }
 0x668   :  { %2190 = vmax.xlane.f32.xlu2 %v9567_v28  ;;  %v9584_v44 = vadd.f32 %v9443_v37, %v15213_v7  ;;  %v9587_v28 = vmul.f32 %v6917_v54, %v8721_v57  ;;  %v15218_v54 = vld [vmem:[#allocation88_spill] sm:$0xff]  ;;  %v15233_v57 = vld [vmem:[#allocation129_spill] sm:$0xff] }
 0x66a   :  { %v9572_v35 = vpop.xlane.xlu1 %2268  ;;  %v2833_v40 = vpop.xlane.xlu0 %2832  ;;  %15214 = vst [vmem:[#allocation116_spill] sm:$0xff] %v9584_v44 }
 0x66b   :  { %15207 = vst [vmem:[#allocation121_spill] sm:$0xff] %v9572_v35  ;;  %v9574_v22 = vpop.xlane.xlu2 %2288  ;;  %v3082_v60 = vadd.f32 1e-06, %v2833_v40  ;;  %v6919_v53 = vpop.eup %6918 }
 0x66c   :  { %15208 = vst [vmem:[#allocation106_spill] sm:$0xff] %v9574_v22  ;;  %v6921_v40 = vpop.eup %6920  ;;  %v9599_v35 = vmul.f32 %v6919_v53, %v15218_v54 }
 0x66d   :  { %6922 = vrcp.f32 %v3082_v60  ;;  %v3433_v53 = vand.u32 2147483648, %v3082_v60  ;;  %v3431_v13 = vand.u32 2147483647, %v3082_v60  ;;  %vm3427_vm6 = vweird.f32 %v3082_v60 }
 0x66e   :  { %6924 = vpow2.f32 %v2526_v38  ;;  %v9616_v38 = vmul.f32 6.25e-08, %v6640_v42  ;;  %v15231_v42 = vld [vmem:[#allocation34_spill] sm:$0xff] }
 0x66f   :  { %2280 = vmax.xlane.f32.xlu0 %v9584_v44  ;;  %2192 = vmax.xlane.f32.xlu1 %v9580_v48  ;;  %v9602_v44 = vmul.f32 %v6921_v40, %v8741_v20  ;;  %v15219_v48 = vld [vmem:[#allocation71_spill] sm:$0xff]  ;;  %v3434_v14 = vor.u32 1.1754944e-38, %v3433_v53  ;;  %vm3432_vm8 = vcmp.eq.f32.partialorder %v3431_v13, 8.507059e+37  ;;  %v15240_v13 = vld [vmem:[#allocation69_spill] sm:$0xff] }
 0x670   :  { %2880 = vadd.xlane.f32.xlu2 %v9587_v28  ;;  %15223 = vst [vmem:[#allocation118_spill] sm:$0xff] %v9616_v38 }
 0x672   :  { %v9592_v62 = vpop.xlane.xlu1 %2260  ;;  %v9594_v33 = vpop.xlane.xlu0 %2290 }
 0x673   :  { %15215 = vst [vmem:[#allocation66_spill] sm:$0xff] %v9592_v62  ;;  %v6923_v26 = vpop.eup %6922  ;;  %v9596_v7 = vpop.xlane.xlu2 %2270  ;;  %v9609_v62 = vadd.f32 %v9409_v18, %v15219_v48  ;;  %v2366_v48 = vsub.f32 %v15225_v25, %v15224_v6  ;;  %v15234_v25 = vld [vmem:[#allocation33_spill] sm:$0xff] }
 0x674   :  { %15216 = vst [vmem:[#allocation92_spill] sm:$0xff] %v9594_v33  ;;  %v3423_v22 = vmul.f32 %v6923_v26, %v3082_v60  ;;  %vm3428_vm5 = vweird.f32 %v6923_v26  ;;  %v6925_v43 = vpop.eup %6924  ;;  %v2309_v6 = vsub.f32 %v15234_v25, %v15233_v57 }
 0x675   :  { %15217 = vst [vmem:[#allocation157_spill] sm:$0xff] %v9596_v7  ;;  %v2352_v7 = vsub.f32 %v15222_v3, %v15221_v63  ;;  %vm3429_vm7 = vmor %vm3427_vm6, %vm3428_vm5  ;;  %v9643_v53 = vmul.f32 %v6925_v43, %v15173_v61  ;;  %v15243_v43 = vld [vmem:[#allocation134_spill] sm:$0xff] }
 0x676   :  { %15220 = vst [vmem:[#allocation71_spill] sm:$0xff] %v9609_v62  ;;  %v3424_v33 = vsub.f32 1.0, %v3423_v22  ;;  %v15227_v22 = vld [vmem:[#allocation74_spill] sm:$0xff] }
 0x677   :  { %2938 = vadd.xlane.f32.xlu0 %v9599_v35  ;;  %2882 = vadd.xlane.f32.xlu1 %v9602_v44  ;;  %v2351_v20 = vsub.f32 %v15227_v22, %v15226_v29  ;;  %v2524_v56 = vmul.f32 1.442695, %v2352_v7  ;;  %v3210_v29 = vadd.f32 %v9140_v17, %v9616_v38  ;;  %v15237_v7 = vld [vmem:[#allocation103_spill] sm:$0xff]  ;;  %v15270_v38 = vld [vmem:[#allocation114_spill] sm:$0xff] }
 0x678   :  { %2116 = vmax.xlane.f32.xlu2 %v9609_v62  ;;  %v3425_v40 = vmul.f32 %v6923_v26, %v3424_v33  ;;  %v15230_v62 = vld [vmem:[#allocation125_spill] sm:$0xff]  ;;  %v15239_v17 = vld [vmem:[#allocation123_spill] sm:$0xff] }
 0x679   :  { %v2310_v21 = vsub.f32 %v15231_v42, %v15230_v62  ;;  %v9640_v62 = vadd.f32 %v9159_v34, %v15237_v7  ;;  %6926 = vpow2.f32 %v2524_v56  ;;  %v15241_v34 = vld [vmem:[#allocation130_spill] sm:$0xff]  ;;  %v6651_v56 = vld [vmem:[%s14512_s2 + $0x108] sm:$0xff] }
 0x67a   :  { %v9622_v31 = vpop.xlane.xlu1 %2196  ;;  %v9624_v63 = vpop.xlane.xlu0 %2272  ;;  %v3426_v3 = vadd.f32 %v6923_v26, %v3425_v40  ;;  %v15235_v40 = vld [vmem:[#allocation102_spill] sm:$0xff] }
 0x67b   :  { %15228 = vst [vmem:[#allocation68_spill] sm:$0xff] %v9622_v31  ;;  %v9628_v33 = vpop.xlane.xlu2 %2092  ;;  %v2552_v31 = vmul.f32 1.442695, %v2366_v48  ;;  %v9636_v60 = vadd.f32 %v9540_v1, %v15235_v40  ;;  %v2440_v25 = vmul.f32 1.442695, %v2310_v21  ;;  %v2365_v1 = vsub.f32 %v15240_v13, %v15239_v17  ;;  %v15244_v48 = vld [vmem:[#allocation81_spill] sm:$0xff] }
 0x67c   :  { %15229 = vst [vmem:[#allocation126_spill] sm:$0xff] %v9624_v63  ;;  %v3430_v22 = vsel %vm3429_vm7, %v6923_v26, %v3426_v3  ;;  %v2438_v26 = vmul.f32 1.442695, %v2309_v6  ;;  %v2336_v21 = vsub.f32 %v15244_v48, %v15243_v43  ;;  %v6652_v6 = vld [vmem:[%s14512_s2 + $0x110] sm:$0xff]  ;;  %v15250_v40 = vld [vmem:[#allocation83_spill] sm:$0xff] }
 0x67d   :  { %15232 = vst [vmem:[#allocation70_spill] sm:$0xff] %v9628_v33  ;;  %v3435_v42 = vsel %vm3432_vm8, %v3434_v14, %v3430_v22  ;;  %v2522_v33 = vmul.f32 1.442695, %v2351_v20  ;;  %6928 = vpow2.f32 %v2552_v31  ;;  %v15242_v20 = vld [vmem:[#allocation79_spill] sm:$0xff]  ;;  %v2550_v13 = vmul.f32 1.442695, %v2365_v1 }
 0x67e   :  { %15236 = vst [vmem:[#allocation135_spill] sm:$0xff] %v9636_v60  ;;  %v3436_v57 = vmul.f32 %v3435_v42, %v3210_v29  ;;  %v2337_v14 = vsub.f32 %v15242_v20, %v15241_v34  ;;  %v15247_v31 = vld [vmem:[#allocation35_spill] sm:$0xff]  ;;  %v15284_v63 = vld [vmem:[#allocation165_spill] sm:$0xff] }
 0x67f   :  { %15238 = vst [vmem:[#allocation74_spill] sm:$0xff] %v9640_v62  ;;  %2222 = vmax.xlane.f32.xlu0 %v9636_v60  ;;  %2224 = vmax.xlane.f32.xlu1 %v9640_v62  ;;  %6930 = vpow2.f32 %v2522_v33  ;;  %v9666_v22 = vadd.f32 %v9409_v18, %v15247_v31  ;;  %v15249_v33 = vld [vmem:[#allocation140_spill] sm:$0xff]  ;;  %v15254_v34 = vld [vmem:[#allocation147_spill] sm:$0xff]  ;;  %v15257_v62 = vld [vmem:[#allocation77_spill] sm:$0xff] }
 0x680   :  { %2910 = vadd.xlane.f32.xlu2 %v9643_v53  ;;  %5261 = vmatpush.xpose.msra.mxu3 %v3436_v57  ;;  %v2335_v7 = vsub.f32 %v15250_v40, %v15249_v33  ;;  %6932 = vpow2.f32 %v2440_v25  ;;  %v15252_v57 = vld [vmem:[#allocation36_spill] sm:$0xff]  ;;  %v15255_v20 = vld [vmem:[#allocation87_spill] sm:$0xff]  ;;  %v2494_v48 = vmul.f32 1.442695, %v2337_v14  ;;  %v265_v33 = vmul.f32 %v6652_v6, %v8361_v45  ;;  %v6927_v25 = vpop.eup %6926 }
 0x681   :  { %15248 = vst [vmem:[#allocation129_spill] sm:$0xff] %v9666_v22  ;;  %v9674_v17 = vadd.f32 %v9526_v5, %v15252_v57  ;;  %v2363_v43 = vsub.f32 %v15255_v20, %v15254_v34  ;;  %6934 = vpow2.f32 %v2438_v26  ;;  %v15256_v60 = vld [vmem:[#allocation139_spill] sm:$0xff]  ;;  %v2492_v40 = vmul.f32 1.442695, %v2336_v21 }
 0x682   :  { %v9654_v3 = vpop.xlane.xlu1 %2292  ;;  %v9656_v29 = vpop.xlane.xlu0 %2230  ;;  %v2364_v31 = vsub.f32 %v15257_v62, %v15256_v60  ;;  %v2490_v1 = vmul.f32 1.442695, %v2335_v7  ;;  %6936 = vpow2.f32 %v2550_v13  ;;  %v6638_v6 = vld [vmem:[%s14512_s2 + $0xa0] sm:$0xff]  ;;  %v6637_v34 = vld [vmem:[%s14512_s2 + $0x98] sm:$0xff] }
 0x683   :  { %15245 = vst [vmem:[#allocation125_spill] sm:$0xff] %v9654_v3  ;;  %v9670_v42 = vpop.xlane.xlu2 %2286  ;;  %v6929_v57 = vpop.eup %6928  ;;  %v2546_v14 = vmul.f32 1.442695, %v2363_v43  ;;  %6938 = vpow2.f32 %v2494_v48  ;;  %v15264_v20 = vld [vmem:[#allocation95_spill] sm:$0xff] }
 0x684   :  { %15246 = vst [vmem:[#allocation34_spill] sm:$0xff] %v9656_v29  ;;  %v264_v29 = vmul.f32 %v6651_v56, %v8361_v45  ;;  %v2548_v62 = vmul.f32 1.442695, %v2364_v31  ;;  %v9693_v56 = vadd.f32 %v9356_v11, %v265_v33  ;;  %6940 = vpow2.f32 %v2492_v40  ;;  %v15266_v31 = vld [vmem:[#allocation133_spill] sm:$0xff]  ;;  %v15267_v33 = vld [vmem:[#allocation32_spill] sm:$0xff] }
 0x685   :  { %15251 = vst [vmem:[#allocation33_spill] sm:$0xff] %v9670_v42  ;;  %v15258_v42 = vld [vmem:[#allocation152_spill] sm:$0xff]  ;;  %v6931_v26 = vpop.eup %6930  ;;  %6942 = vpow2.f32 %v2490_v1 }
 0x686   :  { %15253 = vst [vmem:[#allocation102_spill] sm:$0xff] %v9674_v17  ;;  %v9684_v3 = vadd.f32 %v9526_v5, %v15258_v42  ;;  %v6933_v60 = vpop.eup %6932  ;;  %v9690_v21 = vadd.f32 %v9356_v11, %v264_v29  ;;  %v15263_v29 = vld [vmem:[#allocation151_spill] sm:$0xff]  ;;  %6944 = vpow2.f32 %v2546_v14  ;;  %v2736_v14 = vmul.f32 %v6927_v25, %v15188_v46 }
 0x687   :  { %2084 = vmax.xlane.f32.xlu0 %v9666_v22  ;;  %2086 = vmax.xlane.f32.xlu1 %v9674_v17  ;;  %15261 = vst [vmem:[#allocation69_spill] sm:$0xff] %v9693_v56  ;;  %v6935_v7 = vpop.eup %6934  ;;  %v2349_v43 = vsub.f32 %v15264_v20, %v15263_v29  ;;  %v9711_v22 = vmul.f32 6.25e-08, %v6638_v6  ;;  %6946 = vpow2.f32 %v2548_v62  ;;  %v9717_v17 = vmul.f32 %v6933_v60, %v9693_v56  ;;  %v15271_v60 = vld [vmem:[#allocation82_spill] sm:$0xff] }
 0x688   :  { %15259 = vst [vmem:[#allocation103_spill] sm:$0xff] %v9684_v3  ;;  %2278 = vmax.xlane.f32.xlu2 %v9684_v3  ;;  %v2308_v3 = vsub.f32 %v15267_v33, %v15266_v31  ;;  %v9714_v40 = vmul.f32 %v6935_v7, %v9690_v21  ;;  %v6937_v1 = vpop.eup %6936  ;;  %v9722_v29 = vmul.f32 %v6929_v57, %v15270_v38  ;;  %v15275_v33 = vld [vmem:[#allocation86_spill] sm:$0xff] }
 0x689   :  { %15260 = vst [vmem:[#allocation123_spill] sm:$0xff] %v9690_v21  ;;  %v9726_v20 = vmul.f32 %v6931_v26, %v15218_v54  ;;  %v6939_v6 = vpop.eup %6938  ;;  %v2518_v31 = vmul.f32 1.442695, %v2349_v43  ;;  %v9732_v7 = vadd.f32 %v9409_v18, %v15271_v60  ;;  %v9740_v25 = vadd.f32 %v9443_v37, %v15275_v33  ;;  %v15277_v21 = vld [vmem:[#allocation89_spill] sm:$0xff]  ;;  %v15279_v56 = vld [vmem:[#allocation90_spill] sm:$0xff] }
 0x68a   :  { %v9698_v42 = vpop.xlane.xlu1 %2274  ;;  %v9700_v13 = vpop.xlane.xlu0 %2150  ;;  %15268 = vst [vmem:[#allocation134_spill] sm:$0xff] %v9711_v22  ;;  %v2436_v26 = vmul.f32 1.442695, %v2308_v3  ;;  %v9749_v60 = vadd.f32 %v9007_v4, %v15279_v56  ;;  %v9766_v4 = vadd.f32 %v9563_v41, %v15284_v63  ;;  %v9773_v56 = vadd.f32 %v2736_v14, %v9101_v10 }
 0x68b   :  { %15262 = vst [vmem:[#allocation130_spill] sm:$0xff] %v9700_v13  ;;  %v9707_v48 = vpop.xlane.xlu2 %2294  ;;  %v9719_v13 = vmul.f32 6.25e-08, %v6637_v34  ;;  %v6941_v62 = vpop.eup %6940  ;;  %v15273_v34 = vld [vmem:[#allocation84_spill] sm:$0xff]  ;;  %6948 = vpow2.f32 %v2518_v31 }
 0x68c   :  { %15265 = vst [vmem:[#allocation79_spill] sm:$0xff] %v9707_v48  ;;  %v9736_v57 = vadd.f32 %v9526_v5, %v15273_v34  ;;  %v6943_v43 = vpop.eup %6942  ;;  %v9745_v48 = vadd.f32 %v9331_v19, %v15277_v21  ;;  %v9753_v34 = vadd.f32 %v9438_v50, %v9711_v22  ;;  %v6650_v21 = vld [vmem:[%s14512_s2 + $0x100] sm:$0xff]  ;;  %v9770_v50 = vadd.f32 %v9643_v53, %v9023_v0 }
 0x68d   :  { %15269 = vst [vmem:[#allocation81_spill] sm:$0xff] %v9719_v13  ;;  %v9757_v33 = vadd.f32 %v9509_v55, %v9719_v13  ;;  %v6945_v3 = vpop.eup %6944  ;;  %v9777_v55 = vadd.f32 %v9726_v20, %v9133_v32  ;;  %v9781_v13 = vadd.f32 %v9468_v12, %v9021_v9  ;;  %v9788_v53 = vmul.f32 %v6939_v6, %v15173_v61  ;;  %v7423_v12 = vld [vmem:[%s14512_s2 + $0x20] sm:$0xff] }
 0x68e   :  { %15272 = vst [vmem:[#allocation35_spill] sm:$0xff] %v9732_v7  ;;  %v6947_v22 = vpop.eup %6946  ;;  %6950 = vpow2.f32 %v2436_v26  ;;  %v9798_v31 = vmul.f32 %v6941_v62, %v15188_v46  ;;  %v263_v6 = vmul.f32 %v6650_v21, %v8361_v45  ;;  %v9810_v26 = vadd.f32 %v9587_v28, %v15284_v63  ;;  %v15299_v62 = vld [vmem:[#allocation109_spill] sm:$0xff]  ;;  %v15304_v21 = vld [vmem:[#allocation155_spill] sm:$0xff]  ;;  %v15305_v28 = vld [vmem:[#allocation96_spill] sm:$0xff] }
 0x68f   :  { %2822 = vadd.xlane.f32.xlu0 %v9714_v40  ;;  %2824 = vadd.xlane.f32.xlu1 %v9717_v17  ;;  %15274 = vst [vmem:[#allocation140_spill] sm:$0xff] %v9736_v57  ;;  %v15300_v46 = vld [vmem:[#allocation137_spill] sm:$0xff] }
 0x690   :  { %15276 = vst [vmem:[#allocation83_spill] sm:$0xff] %v9740_v25  ;;  %2936 = vadd.xlane.f32.xlu2 %v9722_v29 }
 0x691   :  { %15278 = vst [vmem:[#allocation36_spill] sm:$0xff] %v9745_v48 }
 0x692   :  { %15280 = vst [vmem:[#allocation147_spill] sm:$0xff] %v9749_v60  ;;  %v2947_v7 = vpop.xlane.xlu1 %2946  ;;  %v9759_v57 = vpop.xlane.xlu0 %2296 }
 0x693   :  { %15281 = vst [vmem:[#allocation87_spill] sm:$0xff] %v9753_v34  ;;  %v9785_v41 = vadd.f32 1e-06, %v2947_v7  ;;  %v15294_v7 = vld [vmem:[#allocation149_spill] sm:$0xff] }
 0x694   :  { %15282 = vst [vmem:[#allocation139_spill] sm:$0xff] %v9757_v33  ;;  %v9820_v33 = vmul.f32 %v6947_v22, %v15300_v46  ;;  %v15302_v34 = vld [vmem:[#allocation97_spill] sm:$0xff] }
 0x695   :  { %15283 = vst [vmem:[#allocation77_spill] sm:$0xff] %v9759_v57  ;;  %v9783_v57 = vpop.xlane.xlu2 %2122  ;;  %6952 = vrcp.f32 %v9785_v41  ;;  %v9827_v45 = vadd.f32 %v9409_v18, %v15302_v34  ;;  %v9847_v34 = vadd.f32 %v9798_v31, %v9101_v10  ;;  %vm4282_vm10 = vweird.f32 %v9785_v41 }
 0x696   :  { %15285 = vst [vmem:[#allocation152_spill] sm:$0xff] %v9766_v4  ;;  %v9817_v4 = vmul.f32 %v6937_v1, %v15299_v62  ;;  %v9834_v1 = vadd.f32 %v9788_v53, %v9023_v0 }
 0x697   :  { %15286 = vst [vmem:[#allocation151_spill] sm:$0xff] %v9770_v50  ;;  %v15291_v50 = vld [vmem:[#allocation148_spill] sm:$0xff]  ;;  %2908 = vadd.xlane.f32.xlu0 %v2736_v14 }
 0x698   :  { %15287 = vst [vmem:[#allocation95_spill] sm:$0xff] %v9773_v56  ;;  %v9792_v56 = vadd.f32 %v9409_v18, %v15291_v50 }
 0x699   :  { %15288 = vst [vmem:[#allocation133_spill] sm:$0xff] %v9777_v55  ;;  %v9795_v55 = vmul.f32 %v6943_v43, %v15218_v54  ;;  %v15297_v43 = vld [vmem:[#allocation146_spill] sm:$0xff] }
 0x69a   :  { %15289 = vst [vmem:[#allocation32_spill] sm:$0xff] %v9781_v13  ;;  %v9814_v50 = vadd.f32 %v9331_v19, %v15297_v43  ;;  %v15307_v43 = vld [vmem:[#allocation98_spill] sm:$0xff] }
 0x69b   :  { %15290 = vst [vmem:[#allocation114_spill] sm:$0xff] %v9783_v57  ;;  %v9804_v57 = vadd.f32 %v7423_v12, %v15294_v7  ;;  %v15301_v7 = vld [vmem:[#allocation127_spill] sm:$0xff]  ;;  %v9838_v22 = vadd.f32 %v9526_v5, %v15307_v43  ;;  %v9851_v14 = vadd.f32 %v9795_v55, %v9133_v32  ;;  %v15315_v43 = vld [vmem:[#allocation101_spill] sm:$0xff] }
 0x69c   :  { %15292 = vst [vmem:[#allocation82_spill] sm:$0xff] %v9792_v56  ;;  %v9823_v13 = vmul.f32 %v6945_v3, %v15301_v7  ;;  %v15309_v3 = vld [vmem:[#allocation99_spill] sm:$0xff]  ;;  %2250 = vmax.xlane.f32.xlu2 %v9814_v50  ;;  %v2831_v7 = vpop.xlane.xlu0 %2830 }
 0x69d   :  { %15293 = vst [vmem:[#allocation84_spill] sm:$0xff] %v9798_v31  ;;  %2252 = vmax.xlane.f32.xlu1 %v9804_v57  ;;  %v9842_v46 = vadd.f32 %v9443_v37, %v15309_v3  ;;  %v15317_v3 = vld [vmem:[#allocation158_spill] sm:$0xff]  ;;  %v15328_v31 = vld [vmem:[#allocation53_spill] sm:$0xff] }
 0x69e   :  { %15295 = vst [vmem:[#allocation86_spill] sm:$0xff] %v9804_v57 }
 0x69f   :  { %15296 = vst [vmem:[#allocation89_spill] sm:$0xff] %v9810_v26  ;;  %v2333_v26 = vsub.f32 %v15305_v28, %v15304_v21  ;;  %v6949_v21 = vpop.eup %6948  ;;  %v15313_v28 = vld [vmem:[#allocation100_spill] sm:$0xff] }
 0x6a0   :  { %15298 = vst [vmem:[#allocation90_spill] sm:$0xff] %v9814_v50  ;;  %v9855_v57 = vadd.f32 %v9331_v19, %v15313_v28  ;;  %v9863_v50 = vadd.f32 %v9356_v11, %v263_v6  ;;  %v9871_v19 = vadd.f32 %v9817_v4, %v9206_v59  ;;  %v15324_v28 = vld [vmem:[#allocation161_spill] sm:$0xff] }
 0x6a1   :  { %15303 = vst [vmem:[#allocation148_spill] sm:$0xff] %v9827_v45  ;;  %v15318_v45 = vld [vmem:[#allocation108_spill] sm:$0xff]  ;;  %v2486_v6 = vmul.f32 1.442695, %v2333_v26  ;;  %v9898_v26 = vadd.f32 %v9599_v35, %v9133_v32  ;;  %v9913_v35 = vmul.f32 %v6949_v21, %v15299_v62 }
 0x6a2   :  { %15306 = vst [vmem:[#allocation149_spill] sm:$0xff] %v9834_v1  ;;  %v9858_v1 = vadd.f32 %v7423_v12, %v15315_v43  ;;  %v9875_v12 = vadd.f32 %v9820_v33, %v9315_v23  ;;  %v15325_v43 = vld [vmem:[#allocation59_spill] sm:$0xff]  ;;  %v9894_v23 = vadd.f32 %v9512_v36, %v9101_v10  ;;  %v6639_v36 = vld [vmem:[%s14512_s2 + $0xa8] sm:$0xff] }
 0x6a3   :  { %15308 = vst [vmem:[#allocation146_spill] sm:$0xff] %v9838_v22  ;;  %v2401_v22 = vsub.f32 %v15318_v45, %v15317_v3  ;;  %v9879_v45 = vadd.f32 %v9823_v13, %v9364_v58  ;;  %v2361_v3 = vsub.f32 %v15325_v43, %v15324_v28  ;;  %v15330_v43 = vld [vmem:[#allocation142_spill] sm:$0xff] }
 0x6a4   :  { %15310 = vst [vmem:[#allocation109_spill] sm:$0xff] %v9842_v46  ;;  %v6951_v46 = vpop.eup %6950  ;;  %2276 = vmax.xlane.f32.xlu2 %v9792_v56 }
 0x6a5   :  { %15311 = vst [vmem:[#allocation97_spill] sm:$0xff] %v9847_v34  ;;  %v2945_v34 = vpop.xlane.xlu1 %2944  ;;  %v6953_v11 = vpop.eup %6952  ;;  %v2622_v28 = vmul.f32 1.442695, %v2401_v22  ;;  %v2542_v22 = vmul.f32 1.442695, %v2361_v3  ;;  %2188 = vmax.xlane.f32.xlu1 %v9749_v60 }
 0x6a6   :  { %15312 = vst [vmem:[#allocation155_spill] sm:$0xff] %v9851_v14  ;;  %v9867_v14 = vadd.f32 %v9722_v29, %v9194_v24  ;;  %v9885_v29 = vadd.f32 1e-06, %v2945_v34  ;;  %vm4283_vm9 = vweird.f32 %v6953_v11  ;;  %v9924_v3 = vmul.f32 6.25e-08, %v6639_v36 }
 0x6a7   :  { %15314 = vst [vmem:[#allocation96_spill] sm:$0xff] %v9855_v57  ;;  %v9883_v57 = vpop.xlane.xlu2 %2090  ;;  %vm4284_vm11 = vmor %vm4282_vm10, %vm4283_vm9 }
 0x6a8   :  { %15316 = vst [vmem:[#allocation98_spill] sm:$0xff] %v9858_v1  ;;  %6954 = vrcp.f32 %v9885_v29  ;;  %vm4267_vm15 = vweird.f32 %v9885_v29 }
 0x6a9   :  { %15319 = vst [vmem:[#allocation99_spill] sm:$0xff] %v9863_v50 }
 0x6aa   :  { %15320 = vst [vmem:[#allocation100_spill] sm:$0xff] %v9867_v14  ;;  %v9887_v14 = vadd.f32 1e-06, %v2831_v7  ;;  %v9904_v7 = vmul.f32 %v6951_v46, %v9863_v50 }
 0x6ab   :  { %15321 = vst [vmem:[#allocation101_spill] sm:$0xff] %v9871_v19  ;;  %v15327_v19 = vld [vmem:[#allocation138_spill] sm:$0xff] }
 0x6ac   :  { %15322 = vst [vmem:[#allocation158_spill] sm:$0xff] %v9875_v12  ;;  %v2350_v54 = vsub.f32 %v15328_v31, %v15327_v19  ;;  %v4278_v12 = vmul.f32 %v6953_v11, %v9785_v41  ;;  %v15332_v31 = vld [vmem:[#allocation57_spill] sm:$0xff]  ;;  %6956 = vrcp.f32 %v9887_v14  ;;  %2820 = vadd.xlane.f32.xlu0 %v9904_v7  ;;  %2934 = vadd.xlane.f32.xlu2 %v9817_v4  ;;  %v15343_v4 = vld [vmem:[#allocation43_spill] sm:$0xff]  ;;  %vm3412_vm0 = vweird.f32 %v9887_v14 }
 0x6ad   :  { %15323 = vst [vmem:[#allocation108_spill] sm:$0xff] %v9879_v45  ;;  %v15331_v45 = vld [vmem:[#allocation52_spill] sm:$0xff]  ;;  %v2386_v19 = vsub.f32 %v15332_v31, %v9380_v49  ;;  %6958 = vpow2.f32 %v2486_v6  ;;  %v4288_v49 = vand.u32 2147483648, %v9785_v41  ;;  %v4286_v31 = vand.u32 2147483647, %v9785_v41  ;;  %v9928_v50 = vpop.xlane.xlu1 %2258  ;;  %2878 = vadd.xlane.f32.xlu1 %v9788_v53 }
 0x6ae   :  { %15326 = vst [vmem:[#allocation161_spill] sm:$0xff] %v9883_v57  ;;  %v2334_v34 = vsub.f32 %v15331_v45, %v15330_v43  ;;  %v4279_v57 = vsub.f32 1.0, %v4278_v12  ;;  %v15334_v45 = vld [vmem:[#allocation150_spill] sm:$0xff]  ;;  %v15335_v43 = vld [vmem:[#allocation111_spill] sm:$0xff]  ;;  %v2520_v46 = vmul.f32 1.442695, %v2350_v54  ;;  %6960 = vpow2.f32 %v2622_v28  ;;  %v9930_v54 = vpop.xlane.xlu0 %2228  ;;  %v9933_v56 = vpop.eup %6954 }
 0x6af   :  { %15329 = vst [vmem:[#allocation59_spill] sm:$0xff] %v9898_v26  ;;  %v2402_v26 = vsub.f32 %v15335_v43, %v15334_v45  ;;  %v3267_v6 = vadd.f32 %v9323_v51, %v9021_v9  ;;  %v2592_v45 = vmul.f32 1.442695, %v2386_v19  ;;  %v15337_v43 = vld [vmem:[#allocation110_spill] sm:$0xff]  ;;  %6962 = vpow2.f32 %v2542_v22  ;;  %v9937_v36 = vpop.xlane.xlu2 %2300 }
 0x6b0   :  { %15333 = vst [vmem:[#allocation138_spill] sm:$0xff] %v9913_v35  ;;  %v4280_v12 = vmul.f32 %v6953_v11, %v4279_v57  ;;  %v2488_v21 = vmul.f32 1.442695, %v2334_v34  ;;  %v2383_v60 = vsub.f32 %v15337_v43, %v9399_v27  ;;  %v15340_v34 = vld [vmem:[#allocation44_spill] sm:$0xff]  ;;  %v4289_v19 = vor.u32 1.1754944e-38, %v4288_v49 }
 0x6b1   :  { %15336 = vst [vmem:[#allocation53_spill] sm:$0xff] %v9924_v3  ;;  %v2624_v28 = vmul.f32 1.442695, %v2402_v26  ;;  %v2346_v51 = vsub.f32 %v15340_v34, %v9432_v30  ;;  %6964 = vpow2.f32 %v2520_v46  ;;  %v4263_v43 = vmul.f32 %v9933_v56, %v9885_v29 }
 0x6b2   :  { %15338 = vst [vmem:[#allocation142_spill] sm:$0xff] %v9928_v50  ;;  %v4281_v57 = vadd.f32 %v6953_v11, %v4280_v12  ;;  %v6957_v27 = vpop.eup %6956  ;;  %vm4287_vm12 = vcmp.eq.f32.partialorder %v4286_v31, 8.507059e+37  ;;  %6966 = vpow2.f32 %v2488_v21  ;;  %v3209_v30 = vadd.f32 %v9367_v8, %v9924_v3 }
 0x6b3   :  { %15339 = vst [vmem:[#allocation52_spill] sm:$0xff] %v9930_v54  ;;  %v9942_v41 = vpop.eup %6958  ;;  %v3408_v26 = vmul.f32 %v6957_v27, %v9887_v14  ;;  %6968 = vpow2.f32 %v2592_v45  ;;  %v2586_v34 = vmul.f32 1.442695, %v2383_v60  ;;  %v4264_v54 = vsub.f32 1.0, %v4263_v43  ;;  %v15342_v45 = vld [vmem:[#allocation62_spill] sm:$0xff] }
 0x6b4   :  { %v4285_v12 = vsel %vm4284_vm11, %v6953_v11, %v4281_v57  ;;  %v9947_v50 = vpop.eup %6960  ;;  %6970 = vpow2.f32 %v2624_v28  ;;  %v2512_v46 = vmul.f32 1.442695, %v2346_v51  ;;  %2906 = vadd.xlane.f32.xlu0 %v9726_v20  ;;  %v4273_v11 = vand.u32 2147483648, %v9885_v29 }
 0x6b5   :  { %v4290_v22 = vsel %vm4287_vm12, %v4289_v19, %v4285_v12  ;;  %v3409_v10 = vsub.f32 1.0, %v3408_v26  ;;  %v3418_v8 = vand.u32 2147483648, %v9887_v14  ;;  %v4265_v60 = vmul.f32 %v9933_v56, %v4264_v54  ;;  %v6963_v21 = vpop.eup %6962  ;;  %v15344_v19 = vld [vmem:[#allocation112_spill] sm:$0xff]  ;;  %v9964_v54 = vpop.xlane.xlu1 %2194  ;;  %2220 = vmax.xlane.f32.xlu1 %v9858_v1 }
 0x6b6   :  { %v4291_v49 = vmul.f32 %v4290_v22, %v3267_v6  ;;  %vm4268_vm13 = vweird.f32 %v9933_v56  ;;  %v4271_v31 = vand.u32 2147483647, %v9885_v29  ;;  %v15341_v6 = vld [vmem:[#allocation154_spill] sm:$0xff]  ;;  %vm3413_vm14 = vweird.f32 %v6957_v27  ;;  %15345 = vst [vmem:[#allocation57_spill] sm:$0xff] %v9964_v54  ;;  %v9966_v12 = vpop.xlane.xlu0 %2148 }
 0x6b7   :  { %v2362_v57 = vsub.f32 %v15342_v45, %v15341_v6  ;;  %v3410_v20 = vmul.f32 %v6957_v27, %v3409_v10  ;;  %v3416_v53 = vand.u32 2147483647, %v9887_v14  ;;  %v6965_v28 = vpop.eup %6964  ;;  %v2330_v51 = vsub.f32 %v15343_v4, %v9465_v15  ;;  %15346 = vst [vmem:[#allocation150_spill] sm:$0xff] %v9966_v12  ;;  %v9970_v10 = vpop.xlane.xlu2 %2284  ;;  %vm4269_vm1 = vmor %vm4267_vm15, %vm4268_vm13  ;;  %v15348_v45 = vld [vmem:[#allocation56_spill] sm:$0xff] }
 0x6b8   :  { %5321 = vmatpush.xpose.msra.mxu2 %v4291_v49  ;;  %v2398_v43 = vsub.f32 %v15344_v19, %v9495_v52  ;;  %v4266_v26 = vadd.f32 %v9933_v56, %v4265_v60  ;;  %v6967_v22 = vpop.eup %6966  ;;  %15347 = vst [vmem:[#allocation111_spill] sm:$0xff] %v9970_v10  ;;  %v3266_v15 = vadd.f32 %v9370_v2, %v15284_v63  ;;  %v4274_v52 = vor.u32 1.1754944e-38, %v4273_v11  ;;  %vm3414_vm2 = vmor %vm3412_vm0, %vm3413_vm14  ;;  %v15349_v10 = vld [vmem:[#allocation145_spill] sm:$0xff] }
 0x6b9   :  { %v3411_v49 = vadd.f32 %v6957_v27, %v3410_v20  ;;  %v9977_v6 = vpop.eup %6968  ;;  %v2387_v60 = vsub.f32 %v15348_v45, %v9517_v16  ;;  %v3419_v29 = vor.u32 1.1754944e-38, %v3418_v8  ;;  %vm4272_vm3 = vcmp.eq.f32.partialorder %v4271_v31, 8.507059e+37  ;;  %v6636_v16 = vld [vmem:[%s14512_s2 + $0x90] sm:$0xff] }
 0x6ba   :  { %v4270_v4 = vsel %vm4269_vm1, %v9933_v56, %v4266_v26  ;;  %v6971_v20 = vpop.eup %6970  ;;  %v2544_v14 = vmul.f32 1.442695, %v2362_v57  ;;  %vm3417_vm4 = vcmp.eq.f32.partialorder %v3416_v53, 8.507059e+37  ;;  %v9985_v12 = vadd.f32 %v9443_v37, %v15349_v10  ;;  %v6635_v56 = vld [vmem:[%s14512_s2 + $0x88] sm:$0xff]  ;;  %v15352_v57 = vld [vmem:[#allocation51_spill] sm:$0xff] }
 0x6bb   :  { %v3415_v19 = vsel %vm3414_vm2, %v6957_v27, %v3411_v49  ;;  %v4275_v2 = vsel %vm4272_vm3, %v4274_v52, %v4270_v4  ;;  %v2480_v11 = vmul.f32 1.442695, %v2330_v51  ;;  %v6634_v27 = vld [vmem:[%s14512_s2 + $0x80] sm:$0xff]  ;;  %6972 = vpow2.f32 %v2586_v34 }
 0x6bc   :  { %15350 = vst [vmem:[#allocation110_spill] sm:$0xff] %v9985_v12  ;;  %v3420_v54 = vsel %vm3417_vm4, %v3419_v29, %v3415_v19  ;;  %v4276_v32 = vmul.f32 %v4275_v2, %v3266_v15  ;;  %v2616_v8 = vmul.f32 1.442695, %v2398_v43  ;;  %2874 = vadd.xlane.f32.xlu0 %v9795_v55  ;;  %v10000_v31 = vadd.f32 %v9913_v35, %v9206_v59  ;;  %v15364_v4 = vld [vmem:[#allocation115_spill] sm:$0xff] }
 0x6bd   :  { %v3421_v37 = vmul.f32 %v3420_v54, %v3209_v30  ;;  %6974 = vpow2.f32 %v2512_v46  ;;  %v2358_v53 = vsub.f32 %v15352_v57, %v9519_v39  ;;  %v2594_v51 = vmul.f32 1.442695, %v2387_v60  ;;  %2248 = vmax.xlane.f32.xlu2 %v9985_v12  ;;  %v15356_v46 = vld [vmem:[#allocation159_spill] sm:$0xff]  ;;  %v15357_v54 = vld [vmem:[#allocation46_spill] sm:$0xff]  ;;  %v10017_v26 = vpop.xlane.xlu1 %2298  ;;  %2186 = vmax.xlane.f32.xlu1 %v9745_v48  ;;  %v15393_v12 = vld [vmem:[#allocation49_spill] sm:$0xff] }
 0x6be   :  { %15351 = vst [vmem:[#allocation44_spill] sm:$0xff] %v10000_v31  ;;  %5322 = vmatpush.xpose.msra.mxu2 %v4276_v32  ;;  %v10007_v34 = vmul.f32 %v9942_v41, %v15299_v62  ;;  %6976 = vpow2.f32 %v2544_v14  ;;  %v10009_v55 = vmul.f32 6.25e-08, %v6636_v16  ;;  %v10011_v30 = vmul.f32 6.25e-08, %v6635_v56  ;;  %v2829_v10 = vpop.xlane.xlu0 %2828  ;;  %v15370_v16 = vld [vmem:[#allocation136_spill] sm:$0xff] }
 0x6bf   :  { %5262 = vmatpush.xpose.msra.mxu3 %v3421_v37  ;;  %v10013_v43 = vmul.f32 6.25e-08, %v6634_v27  ;;  %6978 = vpow2.f32 %v2480_v11  ;;  %v2347_v39 = vsub.f32 %v15357_v54, %v15356_v46  ;;  %v10021_v32 = vmul.f32 %v9947_v50, %v15173_v61  ;;  %v10026_v49 = vpop.xlane.xlu2 %2120  ;;  %v15373_v27 = vld [vmem:[#allocation45_spill] sm:$0xff]  ;;  %v15385_v31 = vld [vmem:[#allocation166_spill] sm:$0xff] }
 0x6c0   :  { %15353 = vst [vmem:[#allocation154_spill] sm:$0xff] %v10009_v55  ;;  %v10024_v41 = vmul.f32 %v6963_v21, %v9359_v47  ;;  %6980 = vpow2.f32 %v2616_v8  ;;  %v10028_v15 = vadd.f32 1e-06, %v2829_v10  ;;  %v10031_v52 = vmul.f32 %v6965_v28, %v15270_v38  ;;  %v15378_v10 = vld [vmem:[#allocation141_spill] sm:$0xff] }
 0x6c1   :  { %15354 = vst [vmem:[#allocation62_spill] sm:$0xff] %v10011_v30  ;;  %v10034_v45 = vmul.f32 %v6967_v22, %v15270_v38  ;;  %v2536_v60 = vmul.f32 1.442695, %v2358_v53  ;;  %6982 = vpow2.f32 %v2594_v51  ;;  %v10038_v50 = vadd.f32 %v9602_v44, %v9021_v9  ;;  %v6973_v29 = vpop.eup %6972  ;;  %v15376_v53 = vld [vmem:[#allocation50_spill] sm:$0xff] }
 0x6c2   :  { %15355 = vst [vmem:[#allocation43_spill] sm:$0xff] %v10013_v43  ;;  %v10042_v21 = vadd.f32 %v10007_v34, %v9206_v59  ;;  %6984 = vrcp.f32 %v10028_v15  ;;  %v10046_v14 = vmul.f32 %v6971_v20, %v15364_v4  ;;  %v10050_v28 = vadd.f32 %v9717_v17, %v10009_v55 }
 0x6c3   :  { %15358 = vst [vmem:[#allocation112_spill] sm:$0xff] %v10021_v32  ;;  %v10054_v22 = vadd.f32 %v9714_v40, %v10011_v30  ;;  %v6975_v44 = vpop.eup %6974  ;;  %v2514_v19 = vmul.f32 1.442695, %v2347_v39  ;;  %v10058_v2 = vadd.f32 %v9904_v7, %v10013_v43  ;;  %v10062_v11 = vadd.f32 %v10021_v32, %v9023_v0  ;;  %v15372_v40 = vld [vmem:[#allocation162_spill] sm:$0xff] }
 0x6c4   :  { %15359 = vst [vmem:[#allocation56_spill] sm:$0xff] %v10024_v41  ;;  %v10066_v20 = vadd.f32 %v10024_v41, %v9924_v3  ;;  %v6977_v17 = vpop.eup %6976  ;;  %v10070_v56 = vadd.f32 %v9409_v18, %v15370_v16  ;;  %v2331_v8 = vsub.f32 %v15373_v27, %v15372_v40  ;;  %v10077_v7 = vadd.f32 %v10031_v52, %v9194_v24  ;;  %v15377_v18 = vld [vmem:[#allocation64_spill] sm:$0xff]  ;;  %v15395_v30 = vld [vmem:[#allocation126_spill] sm:$0xff]  ;;  %v15413_v41 = vld [vmem:[#allocation37_spill] sm:$0xff] }
 0x6c5   :  { %15360 = vst [vmem:[#allocation145_spill] sm:$0xff] %v10026_v49  ;;  %v10081_v37 = vadd.f32 %v10034_v45, %v9194_v24  ;;  %v6979_v57 = vpop.eup %6978  ;;  %6986 = vpow2.f32 %v2536_v60  ;;  %v2419_v51 = vsub.f32 %v15376_v53, %v9698_v42  ;;  %2184 = vmax.xlane.f32.xlu2 %v9740_v25  ;;  %v10088_v46 = vadd.f32 %v15377_v18, %v9023_v0  ;;  %v15380_v40 = vld [vmem:[#allocation168_spill] sm:$0xff]  ;;  %v15381_v60 = vld [vmem:[#allocation119_spill] sm:$0xff] }
 0x6c6   :  { %15361 = vst [vmem:[#allocation51_spill] sm:$0xff] %v10034_v45  ;;  %v10092_v54 = vmul.f32 %v9977_v6, %v15364_v4  ;;  %v6981_v39 = vpop.eup %6980  ;;  %v10096_v16 = vadd.f32 %v9526_v5, %v15378_v10  ;;  %v2384_v27 = vsub.f32 %v15381_v60, %v15380_v40  ;;  %v10105_v53 = vadd.f32 %v10046_v14, %v15284_v63  ;;  %v15386_v6 = vld [vmem:[#allocation120_spill] sm:$0xff]  ;;  %v15388_v5 = vld [vmem:[#allocation173_spill] sm:$0xff] }
 0x6c7   :  { %15362 = vst [vmem:[#allocation159_spill] sm:$0xff] %v10038_v50  ;;  %v6983_v18 = vpop.eup %6982  ;;  %6988 = vpow2.f32 %v2514_v19  ;;  %v10112_v10 = vmul.f32 %v6977_v17, %v15388_v5  ;;  %v10115_v40 = vmul.f32 %v6975_v44, %v15388_v5  ;;  %v2482_v60 = vmul.f32 1.442695, %v2331_v8  ;;  %v15391_v25 = vld [vmem:[#allocation124_spill] sm:$0xff]  ;;  %v2915_v1 = vpop.xlane.xlu2 %2914 }
 0x6c8   :  { %15363 = vst [vmem:[#allocation46_spill] sm:$0xff] %v10042_v21  ;;  %v2943_v21 = vpop.xlane.xlu1 %2942  ;;  %v10124_v0 = vadd.f32 1e-06, %v2915_v1  ;;  %v10127_v17 = vmul.f32 %v6979_v57, %v15388_v5  ;;  %v2588_v44 = vmul.f32 1.442695, %v2384_v27  ;;  %v15396_v8 = vld [vmem:[#allocation188_spill] sm:$0xff]  ;;  %vm3397_vm6 = vweird.f32 %v10028_v15 }
 0x6c9   :  { %15365 = vst [vmem:[#allocation115_spill] sm:$0xff] %v10050_v28  ;;  %v10121_v43 = vadd.f32 1e-06, %v2943_v21  ;;  %v2418_v59 = vsub.f32 %v15396_v8, %v15395_v30  ;;  %v15399_v27 = vld [vmem:[#allocation84_spill] sm:$0xff]  ;;  %v3403_v30 = vand.u32 2147483648, %v10028_v15 }
 0x6ca   :  { %15366 = vst [vmem:[#allocation201_spill] sm:$0xff] %v10054_v22  ;;  %2876 = vadd.xlane.f32.xlu1 %v15399_v27  ;;  %v15405_v27 = vld [vmem:[#allocation47_spill] sm:$0xff]  ;;  %v15415_v49 = vld [vmem:[#allocation96_spill] sm:$0xff]  ;;  %vm4042_vm11 = vweird.f32 %v10124_v0 }
 0x6cb   :  { %15367 = vst [vmem:[#allocation202_spill] sm:$0xff] %v10058_v2  ;;  %6990 = vrcp.f32 %v10121_v43  ;;  %v15401_v2 = vld [vmem:[#allocation63_spill] sm:$0xff]  ;;  %v2656_v50 = vmul.f32 1.442695, %v2418_v59  ;;  %v4256_v35 = vand.u32 2147483647, %v10121_v43  ;;  %vm4252_vm12 = vweird.f32 %v10121_v43 }
 0x6cc   :  { %15368 = vst [vmem:[#allocation203_spill] sm:$0xff] %v10062_v11  ;;  %v2403_v11 = vsub.f32 %v15386_v6, %v15385_v31  ;;  %v2658_v31 = vmul.f32 1.442695, %v2419_v51  ;;  %6992 = vrcp.f32 %v10124_v0  ;;  %v15398_v51 = vld [vmem:[#allocation117_spill] sm:$0xff] }
 0x6cd   :  { %15369 = vst [vmem:[#allocation204_spill] sm:$0xff] %v10066_v20  ;;  %v15382_v20 = vld [vmem:[#allocation88_spill] sm:$0xff]  ;;  %v10137_v1 = vmul.f32 %v6983_v18, %v15398_v51  ;;  %6994 = vpow2.f32 %v2482_v60  ;;  %v15402_v60 = vld [vmem:[#allocation69_spill] sm:$0xff]  ;;  %vm10197_vm13 = vcmp.eq.f32.partialorder %v4256_v35, 8.507059e+37 }
 0x6ce   :  { %15371 = vst [vmem:[#allocation136_spill] sm:$0xff] %v10070_v56  ;;  %v10101_v42 = vmul.f32 %v6973_v29, %v15382_v20  ;;  %v6985_v29 = vpop.eup %6984  ;;  %v2626_v21 = vmul.f32 1.442695, %v2403_v11  ;;  %6996 = vpow2.f32 %v2658_v31  ;;  %v3401_v11 = vand.u32 2147483647, %v10028_v15 }
 0x6cf   :  { %15374 = vst [vmem:[#allocation162_spill] sm:$0xff] %v10077_v7  ;;  %v15390_v7 = vld [vmem:[#allocation171_spill] sm:$0xff]  ;;  %v3393_v6 = vmul.f32 %v6985_v29, %v10028_v15  ;;  %2978 = vadd.xlane.f32.xlu2 %v10137_v1  ;;  %vm3398_vm5 = vweird.f32 %v6985_v29  ;;  %6998 = vpow2.f32 %v2588_v44  ;;  %v15408_v44 = vld [vmem:[#allocation180_spill] sm:$0xff] }
 0x6d0   :  { %15375 = vst [vmem:[#allocation45_spill] sm:$0xff] %v10081_v37  ;;  %v10109_v37 = vpop.xlane.xlu0 %2226  ;;  %v2399_v48 = vsub.f32 %v15391_v25, %v15390_v7  ;;  %v10133_v25 = vmul.f32 %v6981_v39, %v15270_v38  ;;  %7000 = vpow2.f32 %v2626_v21  ;;  %v10150_v28 = vpop.xlane.xlu1 %2256  ;;  %vm3399_vm7 = vmor %vm3397_vm6, %vm3398_vm5  ;;  %v15411_v21 = vld [vmem:[#allocation127_spill] sm:$0xff]  ;;  %vm3402_vm8 = vcmp.eq.f32.partialorder %v3401_v11, 8.507059e+37 }
 0x6d1   :  { %15379 = vst [vmem:[#allocation50_spill] sm:$0xff] %v10096_v16  ;;  %v3394_v7 = vsub.f32 1.0, %v3393_v6  ;;  %v15400_v6 = vld [vmem:[#allocation179_spill] sm:$0xff] }
 0x6d2   :  { %15383 = vst [vmem:[#allocation64_spill] sm:$0xff] %v10101_v42  ;;  %v2618_v57 = vmul.f32 1.442695, %v2399_v48  ;;  %v2359_v18 = vsub.f32 %v15401_v2, %v15400_v6  ;;  %v15409_v2 = vld [vmem:[#allocation128_spill] sm:$0xff]  ;;  %v10159_v6 = vpop.xlane.xlu2 %2282  ;;  %2218 = vmax.xlane.f32.xlu1 %v15415_v49 }
 0x6d3   :  { %15384 = vst [vmem:[#allocation141_spill] sm:$0xff] %v10105_v53  ;;  %v15392_v53 = vld [vmem:[#allocation170_spill] sm:$0xff]  ;;  %v3395_v39 = vmul.f32 %v6985_v29, %v3394_v7  ;;  %v2400_v59 = vsub.f32 %v15409_v2, %v15408_v44 }
 0x6d4   :  { %15387 = vst [vmem:[#allocation168_spill] sm:$0xff] %v10109_v37  ;;  %v2348_v19 = vsub.f32 %v15393_v12, %v15392_v53  ;;  %v6987_v12 = vpop.eup %6986  ;;  %7002 = vpow2.f32 %v2618_v57  ;;  %v2538_v57 = vmul.f32 1.442695, %v2359_v18 }
 0x6d5   :  { %15389 = vst [vmem:[#allocation119_spill] sm:$0xff] %v10115_v40  ;;  %v6989_v8 = vpop.eup %6988  ;;  %v10146_v48 = vmul.f32 %v6987_v12, %v15402_v60  ;;  %v3396_v7 = vadd.f32 %v6985_v29, %v3395_v39  ;;  %v3404_v12 = vor.u32 1.1754944e-38, %v3403_v30  ;;  %v2620_v56 = vmul.f32 1.442695, %v2400_v59 }
 0x6d6   :  { %15394 = vst [vmem:[#allocation88_spill] sm:$0xff] %v10127_v17  ;;  %v2516_v53 = vmul.f32 1.442695, %v2348_v19  ;;  %v15404_v19 = vld [vmem:[#allocation175_spill] sm:$0xff]  ;;  %v10155_v37 = vpop.eup %6990 }
 0x6d7   :  { %15397 = vst [vmem:[#allocation166_spill] sm:$0xff] %v10133_v25  ;;  %v2332_v22 = vsub.f32 %v15405_v27, %v15404_v19  ;;  %v10163_v19 = vmul.f32 %v6989_v8, %v15411_v21  ;;  %v6993_v27 = vpop.eup %6992  ;;  %v4248_v39 = vmul.f32 %v10155_v37, %v10121_v43  ;;  %v3400_v15 = vsel %vm3399_vm7, %v6985_v29, %v3396_v7  ;;  %v15414_v29 = vld [vmem:[#allocation58_spill] sm:$0xff] }
 0x6d8   :  { %15403 = vst [vmem:[#allocation120_spill] sm:$0xff] %v10146_v48  ;;  %v10152_v31 = vpop.xlane.xlu0 %2088  ;;  %7004 = vpow2.f32 %v2516_v53  ;;  %v10167_v60 = vpop.eup %6994  ;;  %v4038_v44 = vmul.f32 %v6993_v27, %v10124_v0  ;;  %v3405_v2 = vsel %vm3402_vm8, %v3404_v12, %v3400_v15  ;;  %v2381_v11 = vsub.f32 %v15414_v29, %v15413_v41  ;;  %2246 = vmax.xlane.f32.xlu2 %v10096_v16  ;;  %v15416_v41 = vld [vmem:[#allocation186_spill] sm:$0xff] }
 0x6d9   :  { %15406 = vst [vmem:[#allocation171_spill] sm:$0xff] %v10150_v28  ;;  %7006 = vpow2.f32 %v2656_v50  ;;  %v4249_v30 = vsub.f32 1.0, %v4248_v39  ;;  %v15412_v28 = vld [vmem:[#allocation87_spill] sm:$0xff]  ;;  %v4258_v50 = vand.u32 2147483648, %v10121_v43  ;;  %vm4253_vm9 = vweird.f32 %v10155_v37  ;;  %v15417_v39 = vld [vmem:[#allocation132_spill] sm:$0xff] }
 0x6da   :  { %15407 = vst [vmem:[#allocation124_spill] sm:$0xff] %v10152_v31  ;;  %v2484_v31 = vmul.f32 1.442695, %v2332_v22  ;;  %v3406_v8 = vmul.f32 %v3405_v2, %v15412_v28  ;;  %v4039_v7 = vsub.f32 1.0, %v4038_v44  ;;  %v4046_v28 = vand.u32 2147483647, %v10124_v0  ;;  %vm4254_vm14 = vmor %vm4252_vm12, %vm4253_vm9 }
 0x6db   :  { %15410 = vst [vmem:[#allocation170_spill] sm:$0xff] %v10159_v6  ;;  %v6997_v6 = vpop.eup %6996  ;;  %v4048_v22 = vand.u32 2147483648, %v10124_v0  ;;  %v4250_v12 = vmul.f32 %v10155_v37, %v4249_v30  ;;  %v2385_v15 = vsub.f32 %v15417_v39, %v15416_v41  ;;  %vm4043_vm10 = vweird.f32 %v6993_v27  ;;  %v15420_v39 = vld [vmem:[#allocation67_spill] sm:$0xff] }
 0x6dc   :  { %v10172_v53 = vpop.eup %6998  ;;  %5263 = vmatpush.xpose.msra.mxu3 %v3406_v8  ;;  %v4040_v44 = vmul.f32 %v6993_v27, %v4039_v7  ;;  %v10190_v2 = vmul.f32 %v6997_v6, %v15398_v51  ;;  %v2303_v8 = vpop.xlane.xlu1 %2302  ;;  %v4259_v5 = vor.u32 1.1754944e-38, %v4258_v50  ;;  %vm4044_vm15 = vmor %vm4042_vm11, %vm4043_vm10  ;;  %vm4047_vm0 = vcmp.eq.f32.partialorder %v4046_v28, 8.507059e+37 }
 0x6dd   :  { %v10178_v18 = vpop.eup %7000  ;;  %v4251_v30 = vadd.f32 %v10155_v37, %v4250_v12  ;;  %v2941_v7 = vpop.xlane.xlu2 %2940  ;;  %v2433_v6 = vsub.f32 %v15420_v39, %v2303_v8  ;;  %v4049_v35 = vor.u32 1.1754944e-38, %v4048_v22  ;;  %v15423_v22 = vld [vmem:[#allocation118_spill] sm:$0xff]  ;;  %v2590_v16 = vmul.f32 1.442695, %v2385_v15  ;;  %v15432_v15 = vld [vmem:[#allocation197_spill] sm:$0xff] }
 0x6de   :  { %v10185_v59 = vpop.eup %7002  ;;  %v4041_v45 = vadd.f32 %v6993_v27, %v4040_v44  ;;  %v10206_v0 = vadd.f32 1e-06, %v2941_v7  ;;  %v2582_v7 = vmul.f32 1.442695, %v2381_v11  ;;  %3042 = vadd.xlane.f32.xlu1 %v10190_v2  ;;  %v15429_v11 = vld [vmem:[#allocation143_spill] sm:$0xff]  ;;  %v10235_v39 = vadd.f32 %v10127_v17, %v15423_v22 }
 0x6df   :  { %v10192_v29 = vpop.eup %7004  ;;  %v4255_v43 = vsel %vm4254_vm14, %v10155_v37, %v4251_v30  ;;  %v2686_v12 = vmul.f32 1.442695, %v2433_v6  ;;  %v15422_v37 = vld [vmem:[#allocation32_spill] sm:$0xff]  ;;  %v2432_v6 = vsub.f32 %v15432_v15, %v9937_v36  ;;  %v10258_v36 = vmul.f32 %v10178_v18, %v15398_v51  ;;  %v15438_v18 = vld [vmem:[#allocation42_spill] sm:$0xff] }
 0x6e0   :  { %v2827_v49 = vpop.xlane.xlu0 %2826  ;;  %v7007_v41 = vpop.eup %7006  ;;  %v4045_v42 = vsel %vm4044_vm15, %v6993_v27, %v4041_v45  ;;  %v10222_v45 = vadd.f32 %v10115_v40, %v15423_v22  ;;  %v15426_v27 = vld [vmem:[#allocation60_spill] sm:$0xff]  ;;  %15430 = vst [vmem:[#allocation117_spill] sm:$0xff] %v10235_v39  ;;  %vm4237_vm4 = vweird.f32 %v10206_v0  ;;  %v15446_v40 = vld [vmem:[#allocation131_spill] sm:$0xff] }
 0x6e1   :  { %v10202_v32 = vadd.f32 1e-06, %v2827_v49  ;;  %v4260_v49 = vsel %vm10197_vm13, %v4259_v5, %v4255_v43  ;;  %v10215_v44 = vmul.f32 %v7007_v41, %v15364_v4  ;;  %v4050_v50 = vsel %vm4047_vm0, %v4049_v35, %v4045_v42  ;;  %v15425_v5 = vld [vmem:[#allocation189_spill] sm:$0xff]  ;;  %v15428_v42 = vld [vmem:[#allocation198_spill] sm:$0xff]  ;;  %v15437_v15 = vld [vmem:[#allocation144_spill] sm:$0xff] }
 0x6e2   :  { %v4261_v8 = vmul.f32 %v4260_v49, %v10088_v46  ;;  %v4051_v28 = vmul.f32 %v4050_v50, %v15422_v37  ;;  %15424 = vst [vmem:[#allocation126_spill] sm:$0xff] %v10222_v45  ;;  %v2360_v30 = vsub.f32 %v15426_v27, %v15425_v5  ;;  %v10229_v46 = vadd.f32 %v10112_v10, %v15423_v22 }
 0x6e3   :  { %7008 = vrcp.f32 %v10202_v32  ;;  %15421 = vst [vmem:[#allocation49_spill] sm:$0xff] %v10215_v44  ;;  %3040 = vadd.xlane.f32.xlu2 %v10215_v44  ;;  %v2382_v41 = vsub.f32 %v15429_v11, %v15428_v42  ;;  %v10262_v37 = vmul.f32 %v10167_v60, %v15411_v21  ;;  %v2684_v45 = vmul.f32 1.442695, %v2432_v6 }
 0x6e4   :  { %7010 = vrcp.f32 %v10206_v0  ;;  %5323 = vmatpush.xpose.msra.mxu2 %v4261_v8  ;;  %15427 = vst [vmem:[#allocation188_spill] sm:$0xff] %v10229_v46  ;;  %5298 = vmatpush.xpose.msrb.mxu1 %v4051_v28  ;;  %v2305_v35 = vpop.xlane.xlu1 %2304  ;;  %v15435_v8 = vld [vmem:[#allocation54_spill] sm:$0xff]  ;;  %v10264_v5 = vmul.f32 1.442695, %v2360_v30  ;;  %v15440_v30 = vld [vmem:[#allocation41_spill] sm:$0xff]  ;;  %vm3382_vm3 = vweird.f32 %v10202_v32 }
 0x6e5   :  { %7012 = vpow2.f32 %v2686_v12  ;;  %v10251_v12 = vadd.f32 %v10146_v48, %v10009_v55  ;;  %v10253_v50 = vpop.xlane.xlu2 %2254  ;;  %v10271_v11 = vmul.f32 1.442695, %v2382_v41  ;;  %v15445_v46 = vld [vmem:[#allocation169_spill] sm:$0xff]  ;;  %v15480_v55 = vld [vmem:[#allocation75_spill] sm:$0xff] }
 0x6e6   :  { %7014 = vpow2.f32 %v2538_v57  ;;  %v10239_v57 = vadd.f32 %v10133_v25, %v9194_v24  ;;  %2932 = vadd.xlane.f32.xlu1 %v9820_v33  ;;  %v15443_v33 = vld [vmem:[#allocation164_spill] sm:$0xff] }
 0x6e7   :  { %7016 = vpow2.f32 %v2484_v31  ;;  %v10247_v31 = vadd.f32 %v10163_v19, %v9364_v58  ;;  %15434 = vst [vmem:[#allocation63_spill] sm:$0xff] %v10251_v12 }
 0x6e8   :  { %15431 = vst [vmem:[#allocation84_spill] sm:$0xff] %v10239_v57  ;;  %7018 = vpow2.f32 %v2620_v56  ;;  %v10243_v43 = vpop.xlane.xlu0 %2118  ;;  %v2434_v56 = vsub.f32 %v15435_v8, %v2305_v35  ;;  %v2345_v35 = vsub.f32 %v15438_v18, %v15437_v15  ;;  %v3386_v15 = vand.u32 2147483647, %v10202_v32 }
 0x6e9   :  { %15433 = vst [vmem:[#allocation179_spill] sm:$0xff] %v10247_v31  ;;  %v7009_v49 = vpop.eup %7008  ;;  %7020 = vpow2.f32 %v2582_v7  ;;  %v10269_v7 = vmul.f32 %v10185_v59, %v15382_v20 }
 0x6ea   :  { %v7011_v28 = vpop.eup %7010  ;;  %7022 = vpow2.f32 %v2590_v16  ;;  %v3378_v27 = vmul.f32 %v7009_v49, %v10202_v32  ;;  %v2688_v60 = vmul.f32 1.442695, %v2434_v56  ;;  %v15439_v16 = vld [vmem:[#allocation160_spill] sm:$0xff]  ;;  %v3388_v56 = vand.u32 2147483648, %v10202_v32 }
 0x6eb   :  { %15436 = vst [vmem:[#allocation175_spill] sm:$0xff] %v10269_v7  ;;  %v7013_v42 = vpop.eup %7012  ;;  %v4233_v8 = vmul.f32 %v7011_v28, %v10206_v0  ;;  %v2329_v39 = vsub.f32 %v15440_v30, %v15439_v16  ;;  %2930 = vadd.xlane.f32.xlu2 %v9823_v13  ;;  %vm3383_vm1 = vweird.f32 %v7009_v49  ;;  %v15444_v30 = vld [vmem:[#allocation65_spill] sm:$0xff]  ;;  %vm4238_vm2 = vweird.f32 %v7011_v28 }
 0x6ec   :  { %v10276_v57 = vpop.eup %7014  ;;  %v3379_v12 = vsub.f32 1.0, %v3378_v27  ;;  %v10281_v31 = vmul.f32 %v7013_v42, %v15173_v61  ;;  %7024 = vpow2.f32 %v2688_v60  ;;  %v4241_v27 = vand.u32 2147483647, %v10206_v0  ;;  %v15442_v60 = vld [vmem:[#allocation153_spill] sm:$0xff]  ;;  %v2307_v13 = vpop.xlane.xlu1 %2306  ;;  %vm3384_vm5 = vmor %vm3382_vm3, %vm3383_vm1 }
 0x6ed   :  { %v10283_v59 = vpop.eup %7016  ;;  %v4234_v41 = vsub.f32 1.0, %v4233_v8  ;;  %v4243_v42 = vand.u32 2147483648, %v10206_v0  ;;  %v2413_v16 = vsub.f32 %v15443_v33, %v15442_v60  ;;  %v2414_v25 = vsub.f32 %v15445_v46, %v15444_v30  ;;  %vm4239_vm7 = vmor %vm4237_vm4, %vm4238_vm2 }
 0x6ee   :  { %15441 = vst [vmem:[#allocation47_spill] sm:$0xff] %v10281_v31  ;;  %v10288_v18 = vpop.eup %7018  ;;  %3070 = vadd.xlane.f32.xlu0 %v10281_v31  ;;  %v3380_v6 = vmul.f32 %v7009_v49, %v3379_v12  ;;  %7026 = vpow2.f32 %v2684_v45  ;;  %v10304_v31 = vpop.xlane.xlu2 %2190  ;;  %v2435_v48 = vsub.f32 %v15446_v40, %v2307_v13  ;;  %v3389_v46 = vor.u32 1.1754944e-38, %v3388_v56  ;;  %v15448_v13 = vld [vmem:[#allocation139_spill] sm:$0xff] }
 0x6ef   :  { %v10294_v8 = vpop.eup %7020  ;;  %v4235_v22 = vmul.f32 %v7011_v28, %v4234_v41  ;;  %vm3387_vm6 = vcmp.eq.f32.partialorder %v3386_v15, 8.507059e+37  ;;  %vm4242_vm8 = vcmp.eq.f32.partialorder %v4241_v27, 8.507059e+37  ;;  %v4244_v45 = vor.u32 1.1754944e-38, %v4243_v42  ;;  %v15451_v27 = vld [vmem:[#allocation109_spill] sm:$0xff] }
 0x6f0   :  { %v10300_v17 = vpop.eup %7022  ;;  %v2913_v12 = vpop.xlane.xlu0 %2912  ;;  %v3381_v24 = vadd.f32 %v7009_v49, %v3380_v6  ;;  %v2690_v32 = vmul.f32 1.442695, %v2435_v48  ;;  %v2510_v44 = vmul.f32 1.442695, %v2345_v35  ;;  %2216 = vmax.xlane.f32.xlu1 %v15451_v27  ;;  %v15452_v35 = vld [vmem:[#allocation146_spill] sm:$0xff] }
 0x6f1   :  { %v10307_v60 = vadd.f32 1e-06, %v2913_v12  ;;  %v4236_v41 = vadd.f32 %v7011_v28, %v4235_v22  ;;  %v2478_v22 = vmul.f32 1.442695, %v2329_v39  ;;  %v10329_v39 = vadd.f32 %v10262_v37, %v9364_v58 }
 0x6f2   :  { %v3385_v33 = vsel %vm3384_vm5, %v7009_v49, %v3381_v24  ;;  %v7025_v6 = vpop.eup %7024  ;;  %v15449_v24 = vld [vmem:[#allocation199_spill] sm:$0xff]  ;;  %v15450_v49 = vld [vmem:[#allocation40_spill] sm:$0xff] }
 0x6f3   :  { %7028 = vrcp.f32 %v10307_v60  ;;  %v3390_v0 = vsel %vm3387_vm6, %v3389_v46, %v3385_v33  ;;  %v4240_v30 = vsel %vm4239_vm7, %v7011_v28, %v4236_v41  ;;  %v10313_v40 = vmul.f32 %v7025_v6, %v15364_v4  ;;  %2214 = vmax.xlane.f32.xlu2 %v15452_v35  ;;  %v15453_v4 = vld [vmem:[#allocation137_spill] sm:$0xff]  ;;  %15454 = vst [vmem:[#allocation128_spill] sm:$0xff] %v10329_v39  ;;  %v15456_v33 = vld [vmem:[#allocation172_spill] sm:$0xff] }
 0x6f4   :  { %v3391_v12 = vmul.f32 %v3390_v0, %v15448_v13  ;;  %v4245_v56 = vsel %vm4242_vm8, %v4244_v45, %v4240_v30  ;;  %v2344_v15 = vsub.f32 %v15450_v49, %v15449_v24  ;;  %7030 = vpow2.f32 %v2690_v32  ;;  %v7027_v42 = vpop.eup %7026  ;;  %v15458_v6 = vld [vmem:[#allocation121_spill] sm:$0xff]  ;;  %v10340_v0 = vpop.xlane.xlu1 %2192 }
 0x6f5   :  { %15447 = vst [vmem:[#allocation180_spill] sm:$0xff] %v10313_v40  ;;  %v4246_v48 = vmul.f32 %v4245_v56, %v9894_v23  ;;  %7032 = vpow2.f32 %v10264_v5  ;;  %v2646_v28 = vmul.f32 1.442695, %v2413_v16  ;;  %v10325_v46 = vmul.f32 %v10192_v29, %v15453_v4  ;;  %v15455_v23 = vld [vmem:[#allocation200_spill] sm:$0xff]  ;;  %v15457_v5 = vld [vmem:[#allocation94_spill] sm:$0xff]  ;;  %v15459_v29 = vld [vmem:[#allocation177_spill] sm:$0xff] }
 0x6f6   :  { %3072 = vadd.xlane.f32.xlu0 %v10313_v40  ;;  %7034 = vpow2.f32 %v10271_v11  ;;  %v2648_v41 = vmul.f32 1.442695, %v2414_v25  ;;  %v2415_v45 = vsub.f32 %v15456_v33, %v15455_v23  ;;  %5264 = vmatpush.xpose.msra.mxu3 %v3391_v12  ;;  %v10336_v16 = vmul.f32 %v10172_v53, %v15457_v5  ;;  %v15462_v11 = vld [vmem:[#allocation176_spill] sm:$0xff]  ;;  %v15464_v56 = vld [vmem:[#allocation106_spill] sm:$0xff]  ;;  %v10354_v49 = vpop.xlane.xlu2 %2880  ;;  %v15475_v40 = vld [vmem:[#allocation81_spill] sm:$0xff] }
 0x6f7   :  { %5324 = vmatpush.xpose.msra.mxu2 %v4246_v48  ;;  %7036 = vpow2.f32 %v2510_v44  ;;  %v2416_v32 = vsub.f32 %v15459_v29, %v15458_v6  ;;  %v10346_v25 = vadd.f32 %v10258_v36, %v9021_v9  ;;  %v10350_v13 = vadd.f32 %v10269_v7, %v15462_v11  ;;  %v15465_v44 = vld [vmem:[#allocation178_spill] sm:$0xff]  ;;  %v15466_v48 = vld [vmem:[#allocation156_spill] sm:$0xff] }
 0x6f8   :  { %v10342_v30 = vpop.xlane.xlu0 %2280  ;;  %7038 = vpow2.f32 %v2478_v22  ;;  %v2508_v53 = vmul.f32 1.442695, %v2344_v15  ;;  %v2426_v24 = vsub.f32 %v15465_v44, %v15464_v56  ;;  %v10358_v23 = vmul.f32 %v10276_v57, %v15466_v48  ;;  %v15467_v33 = vld [vmem:[#allocation66_spill] sm:$0xff]  ;;  %v15468_v6 = vld [vmem:[#allocation184_spill] sm:$0xff]  ;;  %v15471_v56 = vld [vmem:[#allocation77_spill] sm:$0xff] }
 0x6f9   :  { %15460 = vst [vmem:[#allocation87_spill] sm:$0xff] %v10342_v30  ;;  %v7029_v12 = vpop.eup %7028  ;;  %7040 = vpow2.f32 %v2646_v28  ;;  %v2412_v29 = vsub.f32 %v15468_v6, %v15467_v33  ;;  %v2650_v15 = vmul.f32 1.442695, %v2415_v45  ;;  %v15472_v44 = vld [vmem:[#allocation195_spill] sm:$0xff]  ;;  %v10371_v57 = vmul.f32 %v10283_v59, %v15453_v4  ;;  %v15487_v30 = vld [vmem:[#allocation152_spill] sm:$0xff] }
 0x6fa   :  { %15461 = vst [vmem:[#allocation37_spill] sm:$0xff] %v10346_v25  ;;  %v4023_v39 = vmul.f32 %v7029_v12, %v10307_v60  ;;  %v15469_v25 = vld [vmem:[#allocation194_spill] sm:$0xff]  ;;  %v7031_v22 = vpop.eup %7030  ;;  %7042 = vpow2.f32 %v2648_v41  ;;  %v2430_v35 = vsub.f32 %v15472_v44, %v15471_v56  ;;  %v2652_v27 = vmul.f32 1.442695, %v2416_v32  ;;  %v15477_v32 = vld [vmem:[#allocation157_spill] sm:$0xff] }
 0x6fb   :  { %15463 = vst [vmem:[#allocation58_spill] sm:$0xff] %v10350_v13  ;;  %v10365_v13 = vadd.f32 %v10325_v46, %v15469_v25  ;;  %v7033_v28 = vpop.eup %7032  ;;  %v10374_v33 = vmul.f32 %v7027_v42, %v15457_v5  ;;  %v10377_v6 = vmul.f32 %v7031_v22, %v15398_v51  ;;  %7044 = vpow2.f32 %v2508_v53  ;;  %3008 = vadd.xlane.f32.xlu2 %v10046_v14  ;;  %v15478_v53 = vld [vmem:[#allocation185_spill] sm:$0xff] }
 0x6fc   :  { %v4024_v58 = vsub.f32 1.0, %v4023_v39  ;;  %v2672_v41 = vmul.f32 1.442695, %v2426_v24  ;;  %v4033_v45 = vand.u32 2147483648, %v10307_v60  ;;  %v10382_v56 = vadd.f32 %v10358_v23, %v15475_v40  ;;  %v10394_v14 = vpop.xlane.xlu1 %2882 }
 0x6fd   :  { %15470 = vst [vmem:[#allocation186_spill] sm:$0xff] %v10365_v13  ;;  %v7035_v13 = vpop.eup %7034  ;;  %v2644_v44 = vmul.f32 1.442695, %v2412_v29  ;;  %vm4028_vm9 = vweird.f32 %v7029_v12  ;;  %v4031_v51 = vand.u32 2147483647, %v10307_v60  ;;  %7046 = vpow2.f32 %v2650_v15  ;;  %3074 = vadd.xlane.f32.xlu1 %v10377_v6 }
 0x6fe   :  { %15473 = vst [vmem:[#allocation132_spill] sm:$0xff] %v10374_v33  ;;  %v7037_v59 = vpop.eup %7036  ;;  %3068 = vadd.xlane.f32.xlu0 %v10374_v33  ;;  %v4025_v42 = vmul.f32 %v7029_v12, %v4024_v58  ;;  %v2417_v24 = vsub.f32 %v15478_v53, %v15477_v32  ;;  %v2680_v22 = vmul.f32 1.442695, %v2430_v35  ;;  %7048 = vpow2.f32 %v2652_v27  ;;  %v10400_v35 = vpop.xlane.xlu2 %2116  ;;  %v15484_v53 = vld [vmem:[#allocation92_spill] sm:$0xff] }
 0x6ff   :  { %15474 = vst [vmem:[#allocation67_spill] sm:$0xff] %v10377_v6  ;;  %v7039_v39 = vpop.eup %7038  ;;  %vm4027_vm10 = vweird.f32 %v10307_v60  ;;  %v10398_v15 = vmul.f32 %v7033_v28, %v15480_v55  ;;  %7050 = vpow2.f32 %v2672_v41  ;;  %v10406_v27 = vmul.f32 %v7037_v59, %v9359_v47  ;;  %v15486_v41 = vld [vmem:[#allocation163_spill] sm:$0xff] }
 0x700   :  { %15476 = vst [vmem:[#allocation32_spill] sm:$0xff] %v10382_v56  ;;  %v10392_v56 = vmul.f32 %v10288_v18, %v15457_v5  ;;  %v7041_v29 = vpop.eup %7040  ;;  %v2939_v58 = vpop.xlane.xlu0 %2938  ;;  %v4026_v7 = vadd.f32 %v7029_v12, %v4025_v42  ;;  %vm4029_vm11 = vmor %vm4027_vm10, %vm4028_vm9  ;;  %v4034_v18 = vor.u32 1.1754944e-38, %v4033_v45  ;;  %7052 = vpow2.f32 %v2644_v44  ;;  %v15485_v42 = vld [vmem:[#allocation182_spill] sm:$0xff] }
 0x701   :  { %15481 = vst [vmem:[#allocation60_spill] sm:$0xff] %v10398_v15  ;;  %v7043_v33 = vpop.eup %7042  ;;  %v10402_v32 = vadd.f32 1e-06, %v2939_v58  ;;  %v2427_v6 = vsub.f32 %v15485_v42, %v15484_v53  ;;  %vm4032_vm12 = vcmp.eq.f32.partialorder %v4031_v51, 8.507059e+37  ;;  %v2654_v40 = vmul.f32 1.442695, %v2417_v24 }
 0x702   :  { %15479 = vst [vmem:[#allocation189_spill] sm:$0xff] %v10392_v56  ;;  %v4030_v60 = vsel %vm4029_vm11, %v7029_v12, %v4026_v7  ;;  %v7045_v28 = vpop.eup %7044  ;;  %7054 = vpow2.f32 %v2680_v22  ;;  %v10415_v59 = vmul.f32 %v7039_v39, %v9359_v47  ;;  %v10419_v44 = vadd.f32 %v10371_v57, %v15469_v25  ;;  %v15495_v53 = vld [vmem:[#allocation39_spill] sm:$0xff] }
 0x703   :  { %15482 = vst [vmem:[#allocation198_spill] sm:$0xff] %v10400_v35  ;;  %v2431_v35 = vsub.f32 %v15486_v41, %v10017_v26  ;;  %v4035_v58 = vsel %vm4032_vm12, %v4034_v18, %v4030_v60  ;;  %7056 = vrcp.f32 %v10402_v32  ;;  %v7047_v7 = vpop.eup %7046  ;;  %v10423_v12 = vadd.f32 %v10137_v1, %v9021_v9  ;;  %v15494_v18 = vld [vmem:[#allocation70_spill] sm:$0xff]  ;;  %2870 = vadd.xlane.f32.xlu2 %v10007_v34 }
 0x704   :  { %15483 = vst [vmem:[#allocation143_spill] sm:$0xff] %v10406_v27  ;;  %v4036_v45 = vmul.f32 %v4035_v58, %v15487_v30  ;;  %v10427_v26 = vmul.f32 %v10300_v17, %v15173_v61  ;;  %v10431_v51 = vmul.f32 %v10294_v8, %v15299_v62  ;;  %v15492_v30 = vld [vmem:[#allocation174_spill] sm:$0xff]  ;;  %v7049_v24 = vpop.eup %7048  ;;  %v2674_v22 = vmul.f32 1.442695, %v2427_v6  ;;  %v15502_v58 = vld [vmem:[#allocation187_spill] sm:$0xff] }
 0x705   :  { %15488 = vst [vmem:[#allocation197_spill] sm:$0xff] %v10415_v59  ;;  %v10435_v39 = vadd.f32 %v10392_v56, %v15492_v30  ;;  %v2328_v42 = vsub.f32 %v15495_v53, %v15494_v18  ;;  %v10442_v17 = vmul.f32 %v7045_v28, %v15480_v55  ;;  %v15497_v1 = vld [vmem:[#allocation134_spill] sm:$0xff]  ;;  %v7051_v60 = vpop.eup %7050  ;;  %7058 = vpow2.f32 %v2654_v40  ;;  %3010 = vadd.xlane.f32.xlu1 %v10258_v36  ;;  %v15501_v28 = vld [vmem:[#allocation68_spill] sm:$0xff]  ;;  %v10458_v53 = vpop.xlane.xlu1 %2224 }
 0x706   :  { %15489 = vst [vmem:[#allocation54_spill] sm:$0xff] %v10419_v44  ;;  %2904 = vadd.xlane.f32.xlu0 %v10031_v52  ;;  %v10446_v8 = vadd.f32 %v10398_v15, %v15497_v1  ;;  %v2682_v41 = vmul.f32 1.442695, %v2431_v35  ;;  %5299 = vmatpush.xpose.msrb.mxu1 %v4036_v45  ;;  %v10450_v6 = vmul.f32 %v7035_v13, %v15270_v38  ;;  %v7053_v52 = vpop.eup %7052  ;;  %v15507_v13 = vld [vmem:[#allocation64_spill] sm:$0xff]  ;;  %7060 = vpow2.f32 %v2674_v22 }
 0x707   :  { %15490 = vst [vmem:[#allocation144_spill] sm:$0xff] %v10423_v12  ;;  %v10454_v34 = vadd.f32 %v10406_v27, %v9924_v3  ;;  %v2380_v18 = vsub.f32 %v15502_v58, %v15501_v28  ;;  %v10464_v40 = vadd.f32 %v10415_v59, %v9924_v3  ;;  %v10468_v36 = vadd.f32 %v10092_v54, %v15284_v63  ;;  %v2911_v58 = vpop.xlane.xlu2 %2910  ;;  %v15516_v3 = vld [vmem:[#allocation34_spill] sm:$0xff]  ;;  %v15533_v63 = vld [vmem:[#allocation80_spill] sm:$0xff] }
 0x708   :  { %15491 = vst [vmem:[#allocation42_spill] sm:$0xff] %v10431_v51  ;;  %v10460_v12 = vpop.xlane.xlu0 %2222  ;;  %v10472_v35 = vadd.f32 %v15507_v13, %v15462_v11  ;;  %v7055_v45 = vpop.eup %7054  ;;  %v10480_v44 = vmul.f32 %v7047_v7, %v15382_v20  ;;  %v10485_v51 = vadd.f32 1e-06, %v2911_v58  ;;  %7062 = vpow2.f32 %v2682_v41  ;;  %v15514_v7 = vld [vmem:[#allocation173_spill] sm:$0xff]  ;;  %v15517_v27 = vld [vmem:[#allocation190_spill] sm:$0xff] }
 0x709   :  { %15493 = vst [vmem:[#allocation160_spill] sm:$0xff] %v10435_v39  ;;  %v10477_v39 = vmul.f32 %v7043_v33, %v15270_v38  ;;  %v7057_v59 = vpop.eup %7056  ;;  %v10493_v33 = vmul.f32 %v7049_v24, %v15457_v5  ;;  %v2397_v22 = vsub.f32 %v15517_v27, %v15516_v3  ;;  %v15519_v41 = vld [vmem:[#allocation33_spill] sm:$0xff]  ;;  %v10507_v5 = vmul.f32 %v7053_v52, %v15453_v4  ;;  %v15522_v24 = vld [vmem:[#allocation79_spill] sm:$0xff] }
 0x70a   :  { %15496 = vst [vmem:[#allocation41_spill] sm:$0xff] %v10442_v17  ;;  %7064 = vrcp.f32 %v10485_v51  ;;  %v10512_v3 = vadd.f32 1e-06, %v10354_v49  ;;  %v4228_v27 = vand.u32 2147483648, %v10402_v32  ;;  %vm4223_vm13 = vweird.f32 %v7057_v59 }
 0x70b   :  { %15498 = vst [vmem:[#allocation153_spill] sm:$0xff] %v10446_v8  ;;  %v15510_v8 = vld [vmem:[#allocation191_spill] sm:$0xff]  ;;  %v7059_v58 = vpop.eup %7058  ;;  %v2614_v49 = vmul.f32 1.442695, %v2397_v22  ;;  %vm4222_vm14 = vweird.f32 %v10402_v32  ;;  %vm4012_vm2 = vweird.f32 %v10485_v51 }
 0x70c   :  { %15499 = vst [vmem:[#allocation164_spill] sm:$0xff] %v10450_v6  ;;  %vm4224_vm15 = vmor %vm4222_vm14, %vm4223_vm13  ;;  %vm3787_vm14 = vweird.f32 %v10512_v3 }
 0x70d   :  { %15500 = vst [vmem:[#allocation65_spill] sm:$0xff] %v10454_v34  ;;  %v15509_v34 = vld [vmem:[#allocation125_spill] sm:$0xff] }
 0x70e   :  { %15503 = vst [vmem:[#allocation169_spill] sm:$0xff] %v10458_v53  ;;  %v2428_v28 = vsub.f32 %v15510_v8, %v15509_v34  ;;  %v4218_v8 = vmul.f32 %v7057_v59, %v10402_v32  ;;  %v10496_v34 = vmul.f32 %v7051_v60, %v15514_v7  ;;  %v15523_v60 = vld [vmem:[#allocation193_spill] sm:$0xff] }
 0x70f   :  { %15504 = vst [vmem:[#allocation131_spill] sm:$0xff] %v10460_v12 }
 0x710   :  { %15505 = vst [vmem:[#allocation139_spill] sm:$0xff] %v10464_v40  ;;  %v10483_v40 = vmul.f32 %v7041_v29, %v15299_v62  ;;  %v2580_v29 = vmul.f32 1.442695, %v2380_v18  ;;  %v4219_v11 = vsub.f32 1.0, %v4218_v8  ;;  %v2429_v18 = vsub.f32 %v15523_v60, %v15522_v24  ;;  %v15526_v8 = vld [vmem:[#allocation130_spill] sm:$0xff]  ;;  %v10526_v60 = vpop.xlane.xlu1 %2086 }
 0x711   :  { %15506 = vst [vmem:[#allocation199_spill] sm:$0xff] %v10468_v36  ;;  %v2476_v36 = vmul.f32 1.442695, %v2328_v42  ;;  %v10502_v42 = vmul.f32 %v7055_v45, %v15270_v38  ;;  %v15524_v38 = vld [vmem:[#allocation140_spill] sm:$0xff]  ;;  %v10518_v45 = vadd.f32 1e-06, %v10394_v14  ;;  %v10531_v14 = vmul.f32 %v7059_v58, %v15173_v61 }
 0x712   :  { %15508 = vst [vmem:[#allocation40_spill] sm:$0xff] %v10472_v35  ;;  %v10489_v35 = vadd.f32 %v10442_v17, %v15497_v1  ;;  %v15520_v17 = vld [vmem:[#allocation192_spill] sm:$0xff]  ;;  %2182 = vmax.xlane.f32.xlu0 %v15524_v38  ;;  %v4220_v52 = vmul.f32 %v7057_v59, %v4219_v11  ;;  %v2678_v22 = vmul.f32 1.442695, %v2429_v18  ;;  %v15536_v18 = vld [vmem:[#allocation142_spill] sm:$0xff] }
 0x713   :  { %15511 = vst [vmem:[#allocation200_spill] sm:$0xff] %v10480_v44  ;;  %v2425_v6 = vsub.f32 %v15520_v17, %v15519_v41  ;;  %7066 = vpow2.f32 %v2476_v36  ;;  %3064 = vadd.xlane.f32.xlu2 %v10502_v42  ;;  %v15525_v17 = vld [vmem:[#allocation51_spill] sm:$0xff]  ;;  %v4226_v36 = vand.u32 2147483647, %v10402_v32  ;;  %v15535_v32 = vld [vmem:[#allocation38_spill] sm:$0xff] }
 0x714   :  { %15512 = vst [vmem:[#allocation172_spill] sm:$0xff] %v10483_v40  ;;  %2872 = vadd.xlane.f32.xlu1 %v15525_v17  ;;  %7068 = vpow2.f32 %v2580_v29  ;;  %v15527_v41 = vld [vmem:[#allocation107_spill] sm:$0xff]  ;;  %v10533_v17 = vpop.xlane.xlu2 %2278 }
 0x715   :  { %15513 = vst [vmem:[#allocation94_spill] sm:$0xff] %v10489_v35  ;;  %v2676_v35 = vmul.f32 1.442695, %v2428_v28  ;;  %v10522_v28 = vpop.eup %7060  ;;  %v2357_v24 = vsub.f32 %v15527_v41, %v15526_v8  ;;  %v2670_v11 = vmul.f32 1.442695, %v2425_v6  ;;  %v4229_v41 = vor.u32 1.1754944e-38, %v4228_v27 }
 0x716   :  { %15515 = vst [vmem:[#allocation121_spill] sm:$0xff] %v10496_v34  ;;  %v7063_v38 = vpop.eup %7062  ;;  %v4221_v34 = vadd.f32 %v7057_v59, %v4220_v52  ;;  %vm4227_vm0 = vcmp.eq.f32.partialorder %v4226_v36, 8.507059e+37  ;;  %v15534_v52 = vld [vmem:[#allocation161_spill] sm:$0xff]  ;;  %v15539_v27 = vld [vmem:[#allocation59_spill] sm:$0xff] }
 0x717   :  { %15518 = vst [vmem:[#allocation177_spill] sm:$0xff] %v10502_v42  ;;  %7070 = vpow2.f32 %v2676_v35  ;;  %v7065_v29 = vpop.eup %7064  ;;  %v15532_v42 = vld [vmem:[#allocation114_spill] sm:$0xff]  ;;  %v2534_v58 = vmul.f32 1.442695, %v2357_v24  ;;  %v2327_v13 = vsub.f32 %v15535_v32, %v15534_v52  ;;  %v10547_v40 = vmul.f32 %v7063_v38, %v15382_v20  ;;  %v15541_v36 = vld [vmem:[#allocation61_spill] sm:$0xff] }
 0x718   :  { %15521 = vst [vmem:[#allocation106_spill] sm:$0xff] %v10507_v5  ;;  %v10528_v5 = vpop.xlane.xlu0 %2084  ;;  %v2343_v8 = vsub.f32 %v15533_v63, %v15532_v42  ;;  %7072 = vrcp.f32 %v10512_v3  ;;  %v4008_v61 = vmul.f32 %v7065_v29, %v10485_v51  ;;  %v4225_v6 = vsel %vm4224_vm15, %v7057_v59, %v4221_v34  ;;  %v15540_v34 = vld [vmem:[#allocation52_spill] sm:$0xff] }
 0x719   :  { %15528 = vst [vmem:[#allocation178_spill] sm:$0xff] %v10526_v60  ;;  %7074 = vrcp.f32 %v10518_v45  ;;  %v7067_v35 = vpop.eup %7066  ;;  %v4230_v63 = vsel %vm4227_vm0, %v4229_v41, %v4225_v6  ;;  %v2396_v24 = vsub.f32 %v15541_v36, %v15540_v34  ;;  %v15542_v60 = vld [vmem:[#allocation112_spill] sm:$0xff]  ;;  %vm4013_vm1 = vweird.f32 %v7065_v29 }
 0x71a   :  { %15529 = vst [vmem:[#allocation156_spill] sm:$0xff] %v10528_v5  ;;  %7076 = vpow2.f32 %v2614_v49  ;;  %v4009_v42 = vsub.f32 1.0, %v4008_v61  ;;  %v4231_v5 = vmul.f32 %v4230_v63, %v15539_v27  ;;  %v7069_v7 = vpop.eup %7068  ;;  %v2506_v59 = vmul.f32 1.442695, %v2343_v8  ;;  %2976 = vadd.xlane.f32.xlu0 %v10092_v54  ;;  %v2825_v61 = vpop.xlane.xlu1 %2824  ;;  %vm4014_vm3 = vmor %vm4012_vm2, %vm4013_vm1  ;;  %v15545_v63 = vld [vmem:[#allocation93_spill] sm:$0xff] }
 0x71b   :  { %15530 = vst [vmem:[#allocation66_spill] sm:$0xff] %v10531_v14  ;;  %7078 = vpow2.f32 %v2678_v22  ;;  %3006 = vadd.xlane.f32.xlu2 %v15542_v60  ;;  %v4016_v38 = vand.u32 2147483647, %v10485_v51  ;;  %v2474_v22 = vmul.f32 1.442695, %v2327_v13  ;;  %v10560_v54 = vmul.f32 %v7067_v35, %v15480_v55  ;;  %v15544_v35 = vld [vmem:[#allocation57_spill] sm:$0xff] }
 0x71c   :  { %15531 = vst [vmem:[#allocation184_spill] sm:$0xff] %v10533_v17  ;;  %v15537_v17 = vld [vmem:[#allocation105_spill] sm:$0xff]  ;;  %7080 = vpow2.f32 %v2670_v11  ;;  %3066 = vadd.xlane.f32.xlu1 %v10547_v40  ;;  %5325 = vmatpush.xpose.msra.mxu2 %v4231_v5  ;;  %v4010_v20 = vmul.f32 %v7065_v29, %v4009_v42  ;;  %v2937_v11 = vpop.xlane.xlu2 %2936  ;;  %v10564_v52 = vadd.f32 1e-06, %v2825_v61  ;;  %v2379_v42 = vsub.f32 %v15545_v63, %v15544_v35  ;;  %v15551_v35 = vld [vmem:[#allocation76_spill] sm:$0xff] }
 0x71d   :  { %v2411_v15 = vsub.f32 %v15537_v17, %v15536_v18  ;;  %15538 = vst [vmem:[#allocation77_spill] sm:$0xff] %v10547_v40  ;;  %v4018_v17 = vand.u32 2147483648, %v10485_v51  ;;  %v7071_v41 = vpop.eup %7070  ;;  %7082 = vpow2.f32 %v2534_v58  ;;  %v2612_v18 = vmul.f32 1.442695, %v2396_v24 }
 0x71e   :  { %v10557_v49 = vpop.eup %7072  ;;  %15543 = vst [vmem:[#allocation195_spill] sm:$0xff] %v10560_v54  ;;  %v4011_v32 = vadd.f32 %v7065_v29, %v4010_v20  ;;  %7084 = vpow2.f32 %v2506_v59  ;;  %v10569_v58 = vadd.f32 1e-06, %v2937_v11  ;;  %vm4017_vm4 = vcmp.eq.f32.partialorder %v4016_v38, 8.507059e+37  ;;  %v15547_v20 = vld [vmem:[#allocation48_spill] sm:$0xff] }
 0x71f   :  { %v2642_v8 = vmul.f32 1.442695, %v2411_v15  ;;  %v10562_v6 = vpop.eup %7074  ;;  %v4019_v15 = vor.u32 1.1754944e-38, %v4018_v17  ;;  %7086 = vrcp.f32 %v10564_v52  ;;  %v3783_v36 = vmul.f32 %v10557_v49, %v10512_v3  ;;  %v15546_v17 = vld [vmem:[#allocation150_spill] sm:$0xff] }
 0x720   :  { %v2823_v60 = vpop.xlane.xlu0 %2822  ;;  %v7077_v13 = vpop.eup %7076  ;;  %v4015_v27 = vsel %vm4014_vm3, %v7065_v29, %v4011_v32  ;;  %v3798_v51 = vmul.f32 %v10562_v6, %v10518_v45  ;;  %7088 = vrcp.f32 %v10569_v58  ;;  %v2356_v61 = vsub.f32 %v15547_v20, %v15546_v17  ;;  %v15550_v32 = vld [vmem:[#allocation145_spill] sm:$0xff] }
 0x721   :  { %v10566_v5 = vadd.f32 1e-06, %v2823_v60  ;;  %v7079_v34 = vpop.eup %7078  ;;  %v4020_v59 = vsel %vm4017_vm4, %v4019_v15, %v4015_v27  ;;  %v15548_v60 = vld [vmem:[#allocation151_spill] sm:$0xff]  ;;  %v10588_v38 = vmul.f32 %v10522_v28, %v15411_v21  ;;  %v2342_v63 = vsub.f32 %v15551_v35, %v15550_v32  ;;  %v15552_v15 = vld [vmem:[#allocation56_spill] sm:$0xff]  ;;  %v15556_v28 = vld [vmem:[#allocation138_spill] sm:$0xff] }
 0x722   :  { %v10580_v24 = vpop.eup %7080  ;;  %v4021_v29 = vmul.f32 %v4020_v59, %v15548_v60  ;;  %v15553_v27 = vld [vmem:[#allocation136_spill] sm:$0xff]  ;;  %v10597_v17 = vmul.f32 %v7069_v7, %v15453_v4  ;;  %v10601_v59 = vadd.f32 %v10560_v54, %v15497_v1  ;;  %v10608_v20 = vmul.f32 %v7079_v34, %v15299_v62 }
 0x723   :  { %7090 = vrcp.f32 %v10566_v5  ;;  %15549 = vst [vmem:[#allocation157_spill] sm:$0xff] %v10588_v38  ;;  %v10590_v11 = vpop.eup %7082  ;;  %2926 = vadd.xlane.f32.xlu2 %v15552_v15  ;;  %2244 = vmax.xlane.f32.xlu0 %v15553_v27  ;;  %v10611_v60 = vmul.f32 %v7077_v13, %v15299_v62  ;;  %v10615_v7 = vmul.f32 1.442695, %v2379_v42  ;;  %v3784_v35 = vsub.f32 1.0, %v3783_v36  ;;  %v15561_v36 = vld [vmem:[#allocation168_spill] sm:$0xff] }
 0x724   :  { %7092 = vpow2.f32 %v2474_v22  ;;  %15554 = vst [vmem:[#allocation185_spill] sm:$0xff] %v10597_v17  ;;  %2902 = vadd.xlane.f32.xlu1 %v15556_v28  ;;  %5300 = vmatpush.xpose.msrb.mxu1 %v4021_v29  ;;  %v10605_v22 = vmul.f32 %v7071_v41, %v15453_v4  ;;  %v10613_v32 = vpop.eup %7084  ;;  %v3799_v15 = vsub.f32 1.0, %v3798_v51  ;;  %v15559_v41 = vld [vmem:[#allocation122_spill] sm:$0xff]  ;;  %v10621_v27 = vmul.f32 1.442695, %v2356_v61  ;;  %v10623_v34 = vpop.xlane.xlu2 %2250  ;;  %v15562_v51 = vld [vmem:[#allocation55_spill] sm:$0xff] }
 0x725   :  { %15555 = vst [vmem:[#allocation92_spill] sm:$0xff] %v10601_v59  ;;  %7094 = vpow2.f32 %v2642_v8  ;;  %v10617_v8 = vpop.xlane.xlu1 %2252  ;;  %v7087_v29 = vpop.eup %7086  ;;  %v15558_v59 = vld [vmem:[#allocation111_spill] sm:$0xff]  ;;  %v3371_v13 = vand.u32 2147483647, %v10564_v52  ;;  %v10628_v42 = vmul.f32 1.442695, %v2342_v63  ;;  %v3785_v40 = vmul.f32 %v10557_v49, %v3784_v35 }
 0x726   :  { %7096 = vpow2.f32 %v2612_v18  ;;  %15557 = vst [vmem:[#allocation182_spill] sm:$0xff] %v10617_v8  ;;  %v7089_v18 = vpop.eup %7088  ;;  %v3363_v54 = vmul.f32 %v7087_v29, %v10564_v52  ;;  %v10643_v63 = vmul.f32 %v10562_v6, %v3799_v15  ;;  %vm3367_vm5 = vweird.f32 %v10564_v52 }
 0x727   :  { %15560 = vst [vmem:[#allocation163_spill] sm:$0xff] %v10623_v34  ;;  %v4203_v61 = vmul.f32 %v7089_v18, %v10569_v58  ;;  %vm10651_vm6 = vcmp.eq.f32.partialorder %v3371_v13, 8.507059e+37  ;;  %vm4207_vm7 = vweird.f32 %v10569_v58  ;;  %vm3368_vm8 = vweird.f32 %v7087_v29 }
 0x728   :  { %v2909_v28 = vpop.xlane.xlu0 %2908  ;;  %v3364_v17 = vsub.f32 1.0, %v3363_v54  ;;  %v4213_v35 = vand.u32 2147483648, %v10569_v58  ;;  %vm4208_vm9 = vweird.f32 %v7089_v18  ;;  %vm3352_vm10 = vweird.f32 %v10566_v5  ;;  %vm3369_vm11 = vmor %vm3367_vm5, %vm3368_vm8 }
 0x729   :  { %v10625_v62 = vadd.f32 1e-06, %v2909_v28  ;;  %v10634_v8 = vpop.eup %7090  ;;  %v3373_v28 = vand.u32 2147483648, %v10564_v52  ;;  %v4204_v55 = vsub.f32 1.0, %v4203_v61  ;;  %v15567_v61 = vld [vmem:[#allocation35_spill] sm:$0xff]  ;;  %vm4209_vm13 = vmor %vm4207_vm7, %vm4208_vm9  ;;  %vm3788_vm3 = vweird.f32 %v10557_v49 }
 0x72a   :  { %v10640_v34 = vpop.eup %7092  ;;  %v3348_v12 = vmul.f32 %v10634_v8, %v10566_v5  ;;  %v3365_v54 = vmul.f32 %v7087_v29, %v3364_v17  ;;  %vm3353_vm12 = vweird.f32 %v10634_v8  ;;  %vm3802_vm9 = vweird.f32 %v10518_v45 }
 0x72b   :  { %7098 = vrcp.f32 %v10625_v62  ;;  %v10648_v53 = vpop.eup %7094  ;;  %2898 = vadd.xlane.f32.xlu2 %v10163_v19  ;;  %3038 = vadd.xlane.f32.xlu0 %v10531_v14  ;;  %v3374_v44 = vor.u32 1.1754944e-38, %v3373_v28  ;;  %v4205_v13 = vmul.f32 %v7089_v18, %v4204_v55  ;;  %v3358_v19 = vand.u32 2147483648, %v10566_v5  ;;  %vm3354_vm0 = vmor %vm3352_vm10, %vm3353_vm12 }
 0x72c   :  { %15563 = vst [vmem:[#allocation152_spill] sm:$0xff] %v10648_v53  ;;  %v10656_v1 = vpop.eup %7096  ;;  %v3349_v15 = vsub.f32 1.0, %v3348_v12  ;;  %2180 = vmax.xlane.f32.xlu1 %v15567_v61  ;;  %v4211_v53 = vand.u32 2147483647, %v10569_v58  ;;  %v3366_v38 = vadd.f32 %v7087_v29, %v3365_v54  ;;  %v10668_v14 = vpop.xlane.xlu2 %2276  ;;  %v3356_v28 = vand.u32 2147483647, %v10566_v5  ;;  %vm10727_vm10 = vmor %vm3787_vm14, %vm3788_vm3 }
 0x72d   :  { %15566 = vst [vmem:[#allocation174_spill] sm:$0xff] %v10656_v1  ;;  %v10663_v21 = vpop.xlane.xlu1 %2188  ;;  %v4206_v55 = vadd.f32 %v7089_v18, %v4205_v13  ;;  %v4214_v61 = vor.u32 1.1754944e-38, %v4213_v35  ;;  %v3359_v58 = vor.u32 1.1754944e-38, %v3358_v19  ;;  %v4003_v25 = vand.u32 2147483648, %v10625_v62 }
 0x72e   :  { %15568 = vst [vmem:[#allocation70_spill] sm:$0xff] %v10663_v21  ;;  %v3350_v12 = vmul.f32 %v10634_v8, %v3349_v15  ;;  %v3370_v54 = vsel %vm3369_vm11, %v7087_v29, %v3366_v38  ;;  %vm4212_vm15 = vcmp.eq.f32.partialorder %v4211_v53, 8.507059e+37  ;;  %v15570_v21 = vld [vmem:[#allocation115_spill] sm:$0xff]  ;;  %v15571_v29 = vld [vmem:[#allocation100_spill] sm:$0xff]  ;;  %vm3357_vm1 = vcmp.eq.f32.partialorder %v3356_v28, 8.507059e+37 }
 0x72f   :  { %15569 = vst [vmem:[#allocation39_spill] sm:$0xff] %v10668_v14  ;;  %v3375_v52 = vsel %vm10651_vm6, %v3374_v44, %v3370_v54  ;;  %v4210_v13 = vsel %vm4209_vm13, %v7089_v18, %v4206_v55  ;;  %v4001_v53 = vand.u32 2147483647, %v10625_v62  ;;  %v3808_v5 = vand.u32 2147483648, %v10518_v45 }
 0x730   :  { %v2821_v56 = vpop.xlane.xlu0 %2820  ;;  %v3376_v4 = vmul.f32 %v3375_v52, %v15570_v21  ;;  %v4215_v38 = vsel %vm4212_vm15, %v4214_v61, %v4210_v13  ;;  %v3786_v18 = vadd.f32 %v10557_v49, %v3785_v40  ;;  %vm3997_vm5 = vweird.f32 %v10625_v62 }
 0x731   :  { %v7099_v17 = vpop.eup %7098  ;;  %v10670_v1 = vadd.f32 1e-06, %v2821_v56  ;;  %v3351_v56 = vadd.f32 %v10634_v8, %v3350_v12  ;;  %v4216_v35 = vmul.f32 %v4215_v38, %v15571_v29  ;;  %vm3803_vm6 = vweird.f32 %v10562_v6 }
 0x732   :  { %v3993_v15 = vmul.f32 %v7099_v17, %v10625_v62  ;;  %vm3998_vm2 = vweird.f32 %v7099_v17  ;;  %5265 = vmatpush.xpose.msra.mxu3 %v3376_v4  ;;  %v3801_v4 = vadd.f32 %v10562_v6, %v10643_v63  ;;  %vm4002_vm8 = vcmp.eq.f32.partialorder %v4001_v53, 8.507059e+37  ;;  %vm10735_vm11 = vmor %vm3802_vm9, %vm3803_vm6 }
 0x733   :  { %7100 = vrcp.f32 %v10670_v1  ;;  %v3355_v12 = vsel %vm3354_vm0, %v10634_v8, %v3351_v56  ;;  %2866 = vadd.xlane.f32.xlu2 %v10262_v37  ;;  %2928 = vadd.xlane.f32.xlu0 %v10112_v10  ;;  %v15572_v8 = vand.u32 2147483647, %v10512_v3  ;;  %vm3999_vm7 = vmor %vm3997_vm5, %vm3998_vm2  ;;  %v4004_v56 = vor.u32 1.1754944e-38, %v4003_v25  ;;  %v15587_v37 = vld [vmem:[#allocation124_spill] sm:$0xff] }
 0x734   :  { %v3994_v14 = vsub.f32 1.0, %v3993_v15  ;;  %v3360_v44 = vsel %vm3357_vm1, %v3359_v58, %v3355_v12  ;;  %2974 = vadd.xlane.f32.xlu1 %v10427_v26  ;;  %5326 = vmatpush.xpose.msra.mxu2 %v4216_v35  ;;  %v2935_v19 = vpop.xlane.xlu2 %2934  ;;  %v15575_v15 = vld [vmem:[#allocation201_spill] sm:$0xff]  ;;  %v3806_v38 = vand.u32 2147483647, %v10518_v45  ;;  %v3790_v45 = vsel %vm10727_vm10, %v10557_v49, %v3786_v18 }
 0x735   :  { %vm10703_vm4 = vcmp.eq.f32.partialorder %v15572_v8, 8.507059e+37  ;;  %v2879_v10 = vpop.xlane.xlu1 %2878  ;;  %v3361_v54 = vmul.f32 %v3360_v44, %v15575_v15  ;;  %v10718_v13 = vadd.f32 1e-06, %v2935_v19  ;;  %v3343_v25 = vand.u32 2147483648, %v10670_v1  ;;  %v15582_v8 = vld [vmem:[#allocation148_spill] sm:$0xff] }
 0x736   :  { %v3995_v21 = vmul.f32 %v7099_v17, %v3994_v14  ;;  %v10711_v55 = vadd.f32 1e-06, %v2879_v10  ;;  %v3805_v44 = vsel %vm10735_vm11, %v10562_v6, %v3801_v4  ;;  %v3809_v49 = vor.u32 1.1754944e-38, %v3808_v5  ;;  %v15586_v19 = vld [vmem:[#allocation104_spill] sm:$0xff] }
 0x737   :  { %5266 = vmatpush.xpose.msra.mxu3 %v3361_v54  ;;  %v15583_v18 = vsub.f32 %v15559_v41, %v15558_v59  ;;  %vm3807_vm13 = vcmp.eq.f32.partialorder %v3806_v38, 8.507059e+37  ;;  %vm3337_vm14 = vweird.f32 %v10670_v1  ;;  %v15588_v54 = vld [vmem:[#allocation85_spill] sm:$0xff]  ;;  %vm4192_vm6 = vweird.f32 %v10718_v13 }
 0x738   :  { %v2907_v14 = vpop.xlane.xlu0 %2906  ;;  %v3996_v61 = vadd.f32 %v7099_v17, %v3995_v21  ;;  %7102 = vrcp.f32 %v10711_v55  ;;  %v15581_v21 = vand.u32 2147483648, %v10512_v3  ;;  %v3810_v5 = vsel %vm3807_vm13, %v3809_v49, %v3805_v44  ;;  %v15591_v44 = vld [vmem:[#allocation202_spill] sm:$0xff] }
 0x739   :  { %v7101_v40 = vpop.eup %7100  ;;  %v10713_v28 = vadd.f32 1e-06, %v2907_v14  ;;  %7104 = vrcp.f32 %v10718_v13  ;;  %v3341_v14 = vand.u32 2147483647, %v10670_v1  ;;  %v3776_v49 = vand.u32 2147483647, %v10711_v55 }
 0x73a   :  { %v3333_v52 = vmul.f32 %v7101_v40, %v10670_v1  ;;  %v4000_v62 = vsel %vm3999_vm7, %v7099_v17, %v3996_v61  ;;  %v15578_v17 = vld [vmem:[#allocation95_spill] sm:$0xff]  ;;  %v3794_v53 = vor.u32 1.1754944e-38, %v15581_v21  ;;  %vm3338_vm12 = vweird.f32 %v7101_v40 }
 0x73b   :  { %v4005_v63 = vsel %vm4002_vm8, %v4004_v56, %v4000_v62  ;;  %7106 = vrcp.f32 %v10713_v28  ;;  %3060 = vadd.xlane.f32.xlu2 %v10605_v22  ;;  %2212 = vmax.xlane.f32.xlu0 %v15582_v8  ;;  %v10755_v61 = vmul.f32 1.442695, %v15583_v18  ;;  %v2326_v56 = vsub.f32 %v15588_v54, %v15587_v37  ;;  %vm3339_vm15 = vmor %vm3337_vm14, %vm3338_vm12 }
 0x73c   :  { %v3334_v29 = vsub.f32 1.0, %v3333_v52  ;;  %v4006_v35 = vmul.f32 %v4005_v63, %v15578_v17  ;;  %7108 = vpow2.f32 %v10621_v27  ;;  %2900 = vadd.xlane.f32.xlu1 %v10325_v46  ;;  %v3795_v3 = vsel %vm10703_vm4, %v3794_v53, %v3790_v45  ;;  %v15585_v46 = vld [vmem:[#allocation171_spill] sm:$0xff] }
 0x73d   :  { %7110 = vpow2.f32 %v10628_v42  ;;  %v10762_v6 = vpop.xlane.xlu1 %2220  ;;  %v15584_v27 = vsub.f32 %v15562_v51, %v15561_v36  ;;  %v2410_v15 = vsub.f32 %v15586_v19, %v15585_v46  ;;  %v10776_v42 = vpop.xlane.xlu2 %2248  ;;  %v3344_v52 = vor.u32 1.1754944e-38, %v3343_v25  ;;  %v15589_v36 = vld [vmem:[#allocation89_spill] sm:$0xff]  ;;  %v15600_v19 = vld [vmem:[#allocation183_spill] sm:$0xff] }
 0x73e   :  { %v3335_v10 = vmul.f32 %v7101_v40, %v3334_v29  ;;  %5301 = vmatpush.xpose.msrb.mxu1 %v4006_v35  ;;  %v10765_v59 = vpop.eup %7102  ;;  %vm3342_vm0 = vcmp.eq.f32.partialorder %v3341_v14, 8.507059e+37  ;;  %v3796_v51 = vmul.f32 %v3795_v3, %v15589_v36  ;;  %v15590_v35 = vld [vmem:[#allocation159_spill] sm:$0xff]  ;;  %vm3982_vm1 = vweird.f32 %v10713_v28 }
 0x73f   :  { %v10770_v41 = vmul.f32 1.442695, %v15584_v27  ;;  %v7105_v1 = vpop.eup %7104  ;;  %v3768_v62 = vmul.f32 %v10765_v59, %v10711_v55  ;;  %v3811_v12 = vmul.f32 %v3810_v5, %v15590_v35  ;;  %v3986_v53 = vand.u32 2147483647, %v10713_v28 }
 0x740   :  { %v3336_v4 = vadd.f32 %v7101_v40, %v3335_v10  ;;  %v4188_v58 = vmul.f32 %v7105_v1, %v10718_v13  ;;  %v2875_v29 = vpop.xlane.xlu0 %2874  ;;  %v4198_v14 = vand.u32 2147483648, %v10718_v13  ;;  %v3778_v18 = vand.u32 2147483648, %v10711_v55 }
 0x741   :  { %v7107_v38 = vpop.eup %7106  ;;  %v3769_v45 = vsub.f32 1.0, %v3768_v62  ;;  %v10795_v5 = vadd.f32 1e-06, %v2875_v29  ;;  %vm3773_vm2 = vweird.f32 %v10765_v59  ;;  %vm4193_vm3 = vweird.f32 %v7105_v1 }
 0x742   :  { %v3340_v63 = vsel %vm3339_vm15, %v7101_v40, %v3336_v4  ;;  %v3978_v25 = vmul.f32 %v7107_v38, %v10713_v28  ;;  %v10788_v40 = vpop.eup %7108  ;;  %v4189_v10 = vsub.f32 1.0, %v4188_v58  ;;  %vm3983_vm4 = vweird.f32 %v7107_v38  ;;  %vm4194_vm8 = vmor %vm4192_vm6, %vm4193_vm3 }
 0x743   :  { %v3345_v17 = vsel %vm3342_vm0, %v3344_v52, %v3340_v63  ;;  %v10793_v3 = vpop.eup %7110  ;;  %3032 = vadd.xlane.f32.xlu2 %v10477_v39  ;;  %3036 = vadd.xlane.f32.xlu0 %v10493_v33  ;;  %v3770_v27 = vmul.f32 %v10765_v59, %v3769_v45  ;;  %v3988_v52 = vand.u32 2147483648, %v10713_v28  ;;  %v4196_v63 = vand.u32 2147483647, %v10718_v13  ;;  %vm3984_vm10 = vmor %vm3982_vm1, %vm3983_vm4  ;;  %v15595_v28 = vld [vmem:[#allocation149_spill] sm:$0xff] }
 0x744   :  { %v3346_v21 = vmul.f32 %v3345_v17, %v15591_v44  ;;  %v3979_v4 = vsub.f32 1.0, %v3978_v25  ;;  %2868 = vadd.xlane.f32.xlu1 %v10371_v57  ;;  %v4190_v62 = vmul.f32 %v7105_v1, %v4189_v10  ;;  %vm3772_vm5 = vweird.f32 %v10711_v55  ;;  %v15593_v10 = vld [vmem:[#allocation113_spill] sm:$0xff] }
 0x745   :  { %v10804_v36 = vpop.xlane.xlu1 %2186  ;;  %v3771_v29 = vadd.f32 %v10765_v59, %v3770_v27  ;;  %v10808_v17 = vpop.xlane.xlu2 %2184  ;;  %v4199_v57 = vor.u32 1.1754944e-38, %v4198_v14  ;;  %vm3774_vm7 = vmor %vm3772_vm5, %vm3773_vm2  ;;  %v3779_v45 = vor.u32 1.1754944e-38, %v3778_v18  ;;  %7112 = vrcp.f32 %v10795_v5 }
 0x746   :  { %5267 = vmatpush.xpose.msra.mxu3 %v3346_v21  ;;  %v3980_v58 = vmul.f32 %v7107_v38, %v3979_v4  ;;  %v4191_v35 = vadd.f32 %v7105_v1, %v4190_v62  ;;  %vm3777_vm9 = vcmp.eq.f32.partialorder %v3776_v49, 8.507059e+37  ;;  %v3989_v55 = vor.u32 1.1754944e-38, %v3988_v52  ;;  %v15592_v21 = vld [vmem:[#allocation170_spill] sm:$0xff]  ;;  %v15594_v49 = vld [vmem:[#allocation101_spill] sm:$0xff] }
 0x747   :  { %v3775_v25 = vsel %vm3774_vm7, %v10765_v59, %v3771_v29  ;;  %vm4197_vm11 = vcmp.eq.f32.partialorder %v4196_v63, 8.507059e+37  ;;  %v2423_v14 = vsub.f32 %v15593_v10, %v15592_v21  ;;  %vm3987_vm12 = vcmp.eq.f32.partialorder %v3986_v53, 8.507059e+37  ;;  %v15597_v53 = vld [vmem:[#allocation123_spill] sm:$0xff]  ;;  %v15605_v52 = vld [vmem:[#allocation73_spill] sm:$0xff]  ;;  %v15616_v10 = vld [vmem:[#allocation116_spill] sm:$0xff] }
 0x748   :  { %v4195_v44 = vsel %vm4194_vm8, %v7105_v1, %v4191_v35  ;;  %v3780_v13 = vsel %vm3777_vm9, %v3779_v45, %v3775_v25  ;;  %v2640_v27 = vmul.f32 1.442695, %v2410_v15  ;;  %7114 = vpow2.f32 %v10615_v7  ;;  %v15609_v45 = vld [vmem:[#allocation62_spill] sm:$0xff]  ;;  %v15615_v21 = vld [vmem:[#allocation87_spill] sm:$0xff] }
 0x749   :  { %v4200_v4 = vsel %vm4197_vm11, %v4199_v57, %v4195_v44  ;;  %v2472_v1 = vmul.f32 1.442695, %v2326_v56  ;;  %v10834_v46 = vmul.f32 %v10590_v11, %v15597_v53  ;;  %7116 = vpow2.f32 %v10755_v61  ;;  %v15603_v61 = vld [vmem:[#allocation78_spill] sm:$0xff]  ;;  %v346_v57 = vld [vmem:[#allocation5 + $0x100] sm:$0xff] }
 0x74a   :  { %5275 = vmatpush.xpose.msrb.mxu3 %v3811_v12  ;;  %v3981_v12 = vadd.f32 %v7107_v38, %v3980_v58  ;;  %v4201_v62 = vmul.f32 %v4200_v4, %v15594_v49  ;;  %v3781_v58 = vmul.f32 %v3780_v13, %v15595_v28  ;;  %v10840_v7 = vmul.f32 %v10580_v24, %v9359_v47  ;;  %v15620_v49 = vld [vmem:[#allocation71_spill] sm:$0xff] }
 0x74b   :  { %2922 = vadd.xlane.f32.xlu2 %v10358_v23  ;;  %2972 = vadd.xlane.f32.xlu0 %v10336_v16  ;;  %15598 = vst [vmem:[#allocation68_spill] sm:$0xff] %v10834_v46  ;;  %v10844_v23 = vadd.f32 %v10611_v60, %v15600_v19  ;;  %v10848_v15 = vadd.f32 %v10336_v16, %v15492_v30  ;;  %v10850_v37 = vpop.eup %7112  ;;  %7118 = vpow2.f32 %v10770_v41  ;;  %v2666_v11 = vmul.f32 1.442695, %v2423_v14  ;;  %v15621_v28 = vld [vmem:[#allocation99_spill] sm:$0xff] }
 0x74c   :  { %v3985_v18 = vsel %vm3984_vm10, %v7107_v38, %v3981_v12  ;;  %3062 = vadd.xlane.f32.xlu1 %v10608_v20  ;;  %5327 = vmatpush.xpose.msra.mxu2 %v4201_v62  ;;  %15599 = vst [vmem:[#allocation187_spill] sm:$0xff] %v10840_v7  ;;  %v2409_v54 = vsub.f32 %v15603_v61, %v10253_v50  ;;  %7120 = vpow2.f32 %v2640_v27  ;;  %v15611_v12 = vld [vmem:[#allocation91_spill] sm:$0xff]  ;;  %v15625_v61 = vld [vmem:[#allocation189_spill] sm:$0xff]  ;;  %vm3743_vm14 = vweird.f32 %v10850_v37 }
 0x74d   :  { %v3990_v59 = vsel %vm3987_vm12, %v3989_v55, %v3985_v18  ;;  %15601 = vst [vmem:[#allocation125_spill] sm:$0xff] %v10844_v23  ;;  %v2877_v24 = vpop.xlane.xlu1 %2876  ;;  %v10857_v56 = vmul.f32 %v10613_v32, %v15466_v48  ;;  %v2341_v16 = vsub.f32 %v15605_v52, %v10243_v43  ;;  %v10861_v63 = vpop.xlane.xlu2 %2978  ;;  %v10867_v41 = vmul.f32 %v10640_v34, %v15466_v48  ;;  %v15608_v32 = vld [vmem:[#allocation72_spill] sm:$0xff]  ;;  %v15612_v55 = vld [vmem:[#allocation137_spill] sm:$0xff]  ;;  %v15628_v52 = vld [vmem:[#allocation127_spill] sm:$0xff] }
 0x74e   :  { %5276 = vmatpush.xpose.msrb.mxu3 %v3796_v51  ;;  %v15596_v51 = vld [vmem:[#allocation133_spill] sm:$0xff]  ;;  %15602 = vst [vmem:[#allocation191_spill] sm:$0xff] %v10848_v15  ;;  %v10863_v29 = vadd.f32 1e-06, %v2877_v24  ;;  %7122 = vpow2.f32 %v2472_v1  ;;  %v10871_v50 = vadd.f32 %v10190_v2, %v9021_v9  ;;  %v2377_v35 = vsub.f32 %v15608_v32, %v10304_v31  ;;  %714 = vmatmul.f32.gmra.mxu0 %v346_v57  ;;  %v15613_v2 = vld [vmem:[#allocation174_spill] sm:$0xff]  ;;  %v7115_v13 = vpop.eup %7114 }
 0x74f   :  { %v3991_v38 = vmul.f32 %v3990_v59, %v15596_v51  ;;  %15604 = vst [vmem:[#allocation34_spill] sm:$0xff] %v10857_v56  ;;  %v10877_v43 = vadd.f32 %v10834_v46, %v15609_v45  ;;  %v2378_v25 = vsub.f32 %v15611_v12, %v10340_v0  ;;  %v3738_v34 = vmul.f32 %v10850_v37, %v10795_v5  ;;  %v15617_v18 = vld [vmem:[#allocation81_spill] sm:$0xff]  ;;  %v7117_v0 = vpop.eup %7116  ;;  %v15619_v59 = vld [vmem:[#allocation198_spill] sm:$0xff]  ;;  %v15663_v46 = vld [vmem:[#allocation163_spill] sm:$0xff] }
 0x750   :  { %15606 = vst [vmem:[#allocation190_spill] sm:$0xff] %v10867_v41  ;;  %7124 = vrcp.f32 %v10863_v29  ;;  %v10886_v44 = vmul.f32 %v15613_v2, %v15612_v55  ;;  %v2638_v31 = vmul.f32 1.442695, %v2409_v54  ;;  %v2422_v14 = vsub.f32 %v15616_v10, %v15615_v21  ;;  %v15626_v54 = vld [vmem:[#allocation69_spill] sm:$0xff]  ;;  %v15634_v21 = vld [vmem:[#allocation194_spill] sm:$0xff] }
 0x751   :  { %5302 = vmatpush.xpose.msrb.mxu1 %v3991_v38  ;;  %15607 = vst [vmem:[#allocation33_spill] sm:$0xff] %v10871_v50  ;;  %7126 = vpow2.f32 %v2666_v11  ;;  %v10892_v4 = vadd.f32 %v10857_v56, %v15617_v18  ;;  %v2502_v27 = vmul.f32 1.442695, %v2341_v16  ;;  %v2340_v62 = vsub.f32 %v15620_v49, %v15619_v59  ;;  %v7119_v51 = vpop.eup %7118  ;;  %v15624_v11 = vld [vmem:[#allocation157_spill] sm:$0xff]  ;;  %v15629_v16 = vld [vmem:[#allocation152_spill] sm:$0xff]  ;;  %v15636_v59 = vld [vmem:[#allocation167_spill] sm:$0xff] }
 0x752   :  { %5277 = vmatpush.xpose.msrb.mxu3 %v3781_v58  ;;  %15610 = vst [vmem:[#allocation192_spill] sm:$0xff] %v10877_v43  ;;  %v10898_v58 = vmul.f32 %v10788_v40, %v15621_v28  ;;  %v10902_v1 = vadd.f32 %v10867_v41, %v15617_v18  ;;  %v2574_v38 = vmul.f32 1.442695, %v2377_v35  ;;  %v10908_v24 = vmul.f32 %v10793_v3, %v15626_v54  ;;  %v15631_v40 = vld [vmem:[#allocation132_spill] sm:$0xff]  ;;  %v7121_v12 = vpop.eup %7120  ;;  %v15642_v43 = vld [vmem:[#allocation74_spill] sm:$0xff] }
 0x753   :  { %15614 = vst [vmem:[#allocation79_spill] sm:$0xff] %v10886_v44  ;;  %3058 = vadd.xlane.f32.xlu2 %v15624_v11  ;;  %3004 = vadd.xlane.f32.xlu0 %v15625_v61  ;;  %v10912_v32 = vmul.f32 %v15629_v16, %v15628_v52  ;;  %v10916_v57 = vadd.f32 %v15631_v40, %v15492_v30  ;;  %v2576_v55 = vmul.f32 1.442695, %v2378_v25  ;;  %v3739_v2 = vsub.f32 1.0, %v3738_v34  ;;  %v15633_v35 = vld [vmem:[#allocation200_spill] sm:$0xff]  ;;  %v15639_v25 = vld [vmem:[#allocation75_spill] sm:$0xff] }
 0x754   :  { %15618 = vst [vmem:[#allocation193_spill] sm:$0xff] %v10892_v4  ;;  %3034 = vadd.xlane.f32.xlu1 %v15633_v35  ;;  %v10921_v10 = vadd.f32 %v10886_v44, %v15634_v21  ;;  %v10925_v3 = vadd.f32 %v10427_v26, %v15636_v59  ;;  %v7123_v49 = vpop.eup %7122  ;;  %7128 = vpow2.f32 %v2638_v31  ;;  %v2664_v61 = vmul.f32 1.442695, %v2422_v14  ;;  %v15641_v4 = vld [vmem:[#allocation169_spill] sm:$0xff]  ;;  %v15643_v26 = vld [vmem:[#allocation43_spill] sm:$0xff]  ;;  %v15660_v41 = vld [vmem:[#allocation64_spill] sm:$0xff] }
 0x755   :  { %15622 = vst [vmem:[#allocation51_spill] sm:$0xff] %v10898_v58  ;;  %v10927_v16 = vpop.xlane.xlu1 %2218  ;;  %v10930_v40 = vmul.f32 %v7115_v13, %v15628_v52  ;;  %v10933_v34 = vmul.f32 %v7117_v0, %v15639_v25  ;;  %7130 = vpow2.f32 %v2502_v27  ;;  %v10937_v18 = vpop.xlane.xlu2 %2246  ;;  %v10941_v31 = vadd.f32 %v10898_v58, %v15643_v26  ;;  %v15645_v0 = vld [vmem:[#allocation154_spill] sm:$0xff] }
 0x756   :  { %15623 = vst [vmem:[#allocation130_spill] sm:$0xff] %v10902_v1  ;;  %v7125_v15 = vpop.eup %7124  ;;  %v2500_v1 = vmul.f32 1.442695, %v2340_v62  ;;  %7132 = vpow2.f32 %v2574_v38  ;;  %v10949_v27 = vadd.f32 %v10908_v24, %v15645_v0  ;;  %v15647_v62 = vld [vmem:[#allocation131_spill] sm:$0xff]  ;;  %v3740_v23 = vmul.f32 %v10850_v37, %v3739_v2  ;;  %v15649_v38 = vld [vmem:[#allocation178_spill] sm:$0xff]  ;;  %v15654_v2 = vld [vmem:[#allocation156_spill] sm:$0xff] }
 0x757   :  { %15627 = vst [vmem:[#allocation107_spill] sm:$0xff] %v10908_v24  ;;  %v7127_v14 = vpop.eup %7126  ;;  %v3753_v13 = vmul.f32 %v7125_v15, %v10863_v29  ;;  %7134 = vpow2.f32 %v2576_v55  ;;  %v10955_v50 = vmul.f32 %v7123_v49, %v15626_v54  ;;  %v3763_v55 = vand.u32 2147483648, %v10863_v29 }
 0x758   :  { %15630 = vst [vmem:[#allocation114_spill] sm:$0xff] %v10912_v32  ;;  %7136 = vpow2.f32 %v2664_v61  ;;  %v15657_v61 = vld [vmem:[#allocation60_spill] sm:$0xff]  ;;  %vm3758_vm13 = vweird.f32 %v7125_v15  ;;  %vm3757_vm15 = vweird.f32 %v10863_v29  ;;  %v15661_v32 = vld [vmem:[#allocation182_spill] sm:$0xff]  ;;  %vm3742_vm1 = vweird.f32 %v10795_v5 }
 0x759   :  { %15632 = vst [vmem:[#allocation80_spill] sm:$0xff] %v10916_v57  ;;  %7138 = vpow2.f32 %v2500_v1  ;;  %vm3759_vm0 = vmor %vm3757_vm15, %vm3758_vm13 }
 0x75a   :  { %15635 = vst [vmem:[#allocation161_spill] sm:$0xff] %v10921_v10  ;;  %v2394_v10 = vsub.f32 %v15642_v43, %v15641_v4  ;;  %v15648_v43 = vld [vmem:[#allocation135_spill] sm:$0xff]  ;;  %vm10995_vm3 = vmor %vm3742_vm1, %vm3743_vm14 }
 0x75b   :  { %15637 = vst [vmem:[#allocation38_spill] sm:$0xff] %v10925_v3  ;;  %v10945_v3 = vmul.f32 %v7119_v51, %v15628_v52  ;;  %v2393_v4 = vsub.f32 %v15648_v43, %v15647_v62  ;;  %v15651_v51 = vld [vmem:[#allocation173_spill] sm:$0xff]  ;;  %v7129_v62 = vpop.eup %7128  ;;  %2924 = vadd.xlane.f32.xlu0 %v15657_v61  ;;  %v3748_v61 = vand.u32 2147483648, %v10795_v5 }
 0x75c   :  { %15638 = vst [vmem:[#allocation142_spill] sm:$0xff] %v10930_v40  ;;  %v10960_v52 = vmul.f32 %v7121_v12, %v15651_v51  ;;  %v2608_v8 = vmul.f32 1.442695, %v2394_v10  ;;  %v15655_v43 = vld [vmem:[#allocation129_spill] sm:$0xff]  ;;  %v15656_v40 = vld [vmem:[#allocation172_spill] sm:$0xff]  ;;  %2970 = vadd.xlane.f32.xlu1 %v15660_v41 }
 0x75d   :  { %15640 = vst [vmem:[#allocation105_spill] sm:$0xff] %v10933_v34  ;;  %v3754_v34 = vsub.f32 1.0, %v3753_v13  ;;  %v2324_v49 = vsub.f32 %v15655_v43, %v15654_v2  ;;  %3030 = vadd.xlane.f32.xlu2 %v15656_v40  ;;  %v3761_v12 = vand.u32 2147483647, %v10863_v29  ;;  %v7131_v13 = vpop.eup %7130  ;;  %v2606_v1 = vmul.f32 1.442695, %v2393_v4  ;;  %v10986_v41 = vpop.xlane.xlu2 %3040 }
 0x75e   :  { %15644 = vst [vmem:[#allocation59_spill] sm:$0xff] %v10941_v31  ;;  %v15650_v31 = vld [vmem:[#allocation102_spill] sm:$0xff]  ;;  %v15658_v10 = vld [vmem:[#allocation184_spill] sm:$0xff]  ;;  %v10976_v2 = vpop.eup %7132  ;;  %7140 = vpow2.f32 %v2608_v8 }
 0x75f   :  { %15646 = vst [vmem:[#allocation52_spill] sm:$0xff] %v10949_v27  ;;  %v2325_v57 = vsub.f32 %v15650_v31, %v15649_v38  ;;  %v10964_v27 = vmul.f32 %v7127_v14, %v15466_v48  ;;  %v3755_v31 = vmul.f32 %v7125_v15, %v3754_v34  ;;  %v15659_v38 = vld [vmem:[#allocation103_spill] sm:$0xff]  ;;  %v3741_v14 = vadd.f32 %v10850_v37, %v3740_v23  ;;  %v10982_v4 = vpop.eup %7134  ;;  %v15664_v29 = vld [vmem:[#allocation90_spill] sm:$0xff] }
 0x760   :  { %15652 = vst [vmem:[#allocation61_spill] sm:$0xff] %v10960_v52  ;;  %v2421_v52 = vsub.f32 %v15659_v38, %v15658_v10  ;;  %v15662_v10 = vld [vmem:[#allocation86_spill] sm:$0xff]  ;;  %v3764_v23 = vor.u32 1.1754944e-38, %v3763_v55  ;;  %v7137_v56 = vpop.eup %7136  ;;  %v2407_v24 = vsub.f32 %v15664_v29, %v15663_v46  ;;  %vm3762_vm2 = vcmp.eq.f32.partialorder %v3761_v12, 8.507059e+37  ;;  %v15669_v29 = vld [vmem:[#allocation49_spill] sm:$0xff] }
 0x761   :  { %15653 = vst [vmem:[#allocation112_spill] sm:$0xff] %v10964_v27  ;;  %v2470_v43 = vmul.f32 1.442695, %v2325_v57  ;;  %v10978_v27 = vpop.xlane.xlu1 %3042  ;;  %v3756_v34 = vadd.f32 %v7125_v15, %v3755_v31  ;;  %v2408_v38 = vsub.f32 %v15662_v10, %v15661_v32  ;;  %v3746_v57 = vand.u32 2147483647, %v10795_v5  ;;  %v7139_v10 = vpop.eup %7138  ;;  %v15682_v32 = vld [vmem:[#allocation82_spill] sm:$0xff] }
 0x762   :  { %v2468_v31 = vmul.f32 1.442695, %v2324_v49  ;;  %v2662_v55 = vmul.f32 1.442695, %v2421_v52  ;;  %v3745_v5 = vsel %vm10995_vm3, %v10850_v37, %v3741_v14  ;;  %7142 = vpow2.f32 %v2606_v1  ;;  %v15667_v49 = vld [vmem:[#allocation97_spill] sm:$0xff]  ;;  %v15672_v52 = vld [vmem:[#allocation119_spill] sm:$0xff] }
 0x763   :  { %v3760_v58 = vsel %vm3759_vm0, %v7125_v15, %v3756_v34  ;;  %v3749_v46 = vor.u32 1.1754944e-38, %v3748_v61  ;;  %v11004_v15 = vmul.f32 %v7131_v13, %v15597_v53  ;;  %7144 = vpow2.f32 %v2470_v43  ;;  %v15668_v34 = vld [vmem:[#allocation165_spill] sm:$0xff]  ;;  %2896 = vadd.xlane.f32.xlu0 %v15672_v52  ;;  %v15673_v1 = vld [vmem:[#allocation176_spill] sm:$0xff]  ;;  %v15676_v13 = vld [vmem:[#allocation70_spill] sm:$0xff] }
 0x764   :  { %v3765_v44 = vsel %vm3762_vm2, %v3764_v23, %v3760_v58  ;;  %v2636_v12 = vmul.f32 1.442695, %v2408_v38  ;;  %vm3747_vm4 = vcmp.eq.f32.partialorder %v3746_v57, 8.507059e+37  ;;  %v11008_v11 = vadd.f32 %v15669_v29, %v15668_v34  ;;  %v15671_v58 = vld [vmem:[#allocation120_spill] sm:$0xff]  ;;  %v15677_v43 = vld [vmem:[#allocation147_spill] sm:$0xff] }
 0x765   :  { %v3766_v7 = vmul.f32 %v3765_v44, %v15667_v49  ;;  %7146 = vpow2.f32 %v2468_v31  ;;  %v2634_v8 = vmul.f32 1.442695, %v2407_v24  ;;  %2920 = vadd.xlane.f32.xlu2 %v15671_v58  ;;  %v3750_v37 = vsel %vm3747_vm4, %v3749_v46, %v3745_v5  ;;  %v15674_v44 = vld [vmem:[#allocation77_spill] sm:$0xff]  ;;  %v15678_v38 = vld [vmem:[#allocation175_spill] sm:$0xff]  ;;  %v15683_v46 = vld [vmem:[#allocation180_spill] sm:$0xff] }
 0x766   :  { %15670 = vst [vmem:[#allocation57_spill] sm:$0xff] %v11008_v11  ;;  %v11014_v14 = vadd.f32 %v15674_v44, %v15673_v1  ;;  %7148 = vpow2.f32 %v2662_v55  ;;  %v2376_v61 = vsub.f32 %v15677_v43, %v15676_v13  ;;  %3002 = vadd.xlane.f32.xlu1 %v15678_v38  ;;  %v11020_v23 = vmul.f32 %v7129_v62, %v9359_v47  ;;  %v15680_v24 = vld [vmem:[#allocation47_spill] sm:$0xff]  ;;  %v7141_v62 = vpop.eup %7140  ;;  %v15686_v58 = vld [vmem:[#allocation98_spill] sm:$0xff]  ;;  %v2931_v13 = vpop.xlane.xlu2 %2930 }
 0x767   :  { %5278 = vmatpush.xpose.msrb.mxu3 %v3766_v7  ;;  %v11024_v57 = vadd.f32 %v15680_v24, %v15636_v59  ;;  %v15681_v31 = vld [vmem:[#allocation39_spill] sm:$0xff]  ;;  %v11030_v55 = vadd.f32 %v15683_v46, %v15668_v34  ;;  %v11034_v29 = vadd.f32 %v11004_v15, %v15609_v45  ;;  %v11038_v7 = vadd.f32 %v10955_v50, %v15645_v0  ;;  %v3071_v43 = vpop.xlane.xlu0 %3070  ;;  %v15689_v0 = vld [vmem:[#allocation181_spill] sm:$0xff] }
 0x768   :  { %15675 = vst [vmem:[#allocation93_spill] sm:$0xff] %v11014_v14  ;;  %v2420_v5 = vsub.f32 %v15682_v32, %v15681_v31  ;;  %7150 = vpow2.f32 %v2636_v12  ;;  %v2392_v52 = vsub.f32 %v15686_v58, %v10762_v6  ;;  %v15687_v38 = vld [vmem:[#allocation155_spill] sm:$0xff]  ;;  %v7143_v24 = vpop.eup %7142  ;;  %v15688_v31 = vld [vmem:[#allocation110_spill] sm:$0xff]  ;;  %v11047_v46 = vadd.f32 1e-06, %v2931_v13  ;;  %v15692_v6 = vld [vmem:[#allocation36_spill] sm:$0xff] }
 0x769   :  { %15679 = vst [vmem:[#allocation150_spill] sm:$0xff] %v11020_v23  ;;  %v2933_v49 = vpop.xlane.xlu1 %2932  ;;  %v3751_v34 = vmul.f32 %v3750_v37, %v15687_v38  ;;  %7152 = vpow2.f32 %v2634_v8  ;;  %v2406_v32 = vsub.f32 %v15688_v31, %v10776_v42  ;;  %v7145_v12 = vpop.eup %7144  ;;  %v2572_v11 = vmul.f32 1.442695, %v2376_v61  ;;  %v15694_v42 = vld [vmem:[#allocation67_spill] sm:$0xff]  ;;  %v15759_v14 = vld [vmem:[#allocation37_spill] sm:$0xff] }
 0x76a   :  { %15684 = vst [vmem:[#allocation48_spill] sm:$0xff] %v11034_v29  ;;  %v11042_v44 = vadd.f32 1e-06, %v2933_v49  ;;  %v2375_v49 = vsub.f32 %v15692_v6, %v10804_v36  ;;  %v11058_v8 = vmul.f32 %v10976_v2, %v9359_v47  ;;  %v11062_v58 = vadd.f32 %v15694_v42, %v9021_v9  ;;  %v15702_v6 = vld [vmem:[#allocation88_spill] sm:$0xff] }
 0x76b   :  { %15685 = vst [vmem:[#allocation151_spill] sm:$0xff] %v11038_v7  ;;  %v15690_v7 = vld [vmem:[#allocation177_spill] sm:$0xff]  ;;  %5279 = vmatpush.xpose.msrb.mxu3 %v3751_v34  ;;  %v7147_v37 = vpop.eup %7146  ;;  %v2660_v13 = vmul.f32 1.442695, %v2420_v5  ;;  %v11067_v61 = vmul.f32 %v10982_v4, %v15651_v51  ;;  %v11070_v38 = vmul.f32 %v7139_v10, %v15621_v28  ;;  %v11073_v2 = vmul.f32 %v7137_v56, %v15626_v54 }
 0x76c   :  { %v11051_v29 = vadd.f32 %v15690_v7, %v15689_v0  ;;  %7154 = vrcp.f32 %v11042_v44  ;;  %15693 = vst [vmem:[#allocation76_spill] sm:$0xff] %v11058_v8  ;;  %v7149_v36 = vpop.eup %7148  ;;  %v2604_v7 = vmul.f32 1.442695, %v2392_v52  ;;  %v11077_v34 = vadd.f32 %v10608_v20, %v15600_v19  ;;  %v15698_v5 = vld [vmem:[#allocation121_spill] sm:$0xff] }
 0x76d   :  { %7156 = vrcp.f32 %v11047_v46  ;;  %15695 = vst [vmem:[#allocation56_spill] sm:$0xff] %v11067_v61  ;;  %v2632_v9 = vmul.f32 1.442695, %v2406_v32  ;;  %3056 = vadd.xlane.f32.xlu2 %v15698_v5  ;;  %v11081_v31 = vmul.f32 %v7141_v62, %v15651_v51  ;;  %v11084_v4 = vmul.f32 %v7143_v24, %v9359_v47  ;;  %v15703_v47 = vld [vmem:[#allocation83_spill] sm:$0xff] }
 0x76e   :  { %15691 = vst [vmem:[#allocation145_spill] sm:$0xff] %v11051_v29  ;;  %v11088_v10 = vadd.f32 %v15656_v40, %v15600_v19  ;;  %v7151_v52 = vpop.eup %7150  ;;  %7158 = vpow2.f32 %v2572_v11  ;;  %v2570_v56 = vmul.f32 1.442695, %v2375_v49  ;;  %2864 = vadd.xlane.f32.xlu1 %v15702_v6  ;;  %v11092_v20 = vmul.f32 %v7145_v12, %v15597_v53  ;;  %v11107_v12 = vpop.xlane.xlu2 %2214 }
 0x76f   :  { %15696 = vst [vmem:[#allocation138_spill] sm:$0xff] %v11073_v2  ;;  %v11095_v32 = vmul.f32 %v7147_v37, %v15621_v28  ;;  %v7153_v51 = vpop.eup %7152  ;;  %7160 = vpow2.f32 %v2660_v13  ;;  %v2374_v62 = vsub.f32 %v15703_v47, %v10808_v17  ;;  %v11100_v24 = vadd.f32 1e-06, %v10861_v63  ;;  %v11109_v42 = vpop.xlane.xlu0 %3072  ;;  %v15708_v63 = vld [vmem:[#allocation164_spill] sm:$0xff]  ;;  %v15710_v47 = vld [vmem:[#allocation66_spill] sm:$0xff] }
 0x770   :  { %15697 = vst [vmem:[#allocation111_spill] sm:$0xff] %v11077_v34  ;;  %v11105_v11 = vmul.f32 %v7149_v36, %v15597_v53  ;;  %7162 = vpow2.f32 %v2604_v7  ;;  %v11113_v37 = vadd.f32 %v11070_v38, %v15643_v26  ;;  %v11117_v17 = vadd.f32 %v10477_v39, %v15689_v0 }
 0x771   :  { %15699 = vst [vmem:[#allocation122_spill] sm:$0xff] %v11081_v31  ;;  %v11102_v40 = vpop.xlane.xlu1 %2216  ;;  %v11121_v13 = vadd.f32 %v15708_v63, %v15689_v0  ;;  %7164 = vpow2.f32 %v2632_v9  ;;  %v11126_v6 = vadd.f32 1e-06, %v3071_v43  ;;  %v11138_v0 = vmul.f32 %v7153_v51, %v15466_v48 }
 0x772   :  { %15700 = vst [vmem:[#allocation168_spill] sm:$0xff] %v11084_v4  ;;  %v7155_v49 = vpop.eup %7154  ;;  %7166 = vpow2.f32 %v2570_v56  ;;  %v11142_v43 = vadd.f32 1e-06, %v10978_v27  ;;  %v4181_v27 = vand.u32 2147483647, %v11042_v44  ;;  %vm4177_vm7 = vweird.f32 %v11042_v44 }
 0x773   :  { %15701 = vst [vmem:[#allocation55_spill] sm:$0xff] %v11088_v10  ;;  %v11123_v36 = vpop.eup %7156  ;;  %v4173_v7 = vmul.f32 %v7155_v49, %v11042_v44  ;;  %v11130_v10 = vadd.f32 %v15710_v47, %v15636_v59  ;;  %7168 = vrcp.f32 %v11100_v24  ;;  %v15715_v59 = vld [vmem:[#allocation50_spill] sm:$0xff]  ;;  %v15716_v47 = vld [vmem:[#allocation96_spill] sm:$0xff]  ;;  %vm4178_vm5 = vweird.f32 %v7155_v49 }
 0x774   :  { %15704 = vst [vmem:[#allocation115_spill] sm:$0xff] %v11100_v24  ;;  %v4158_v39 = vmul.f32 %v11123_v36, %v11047_v46  ;;  %v7159_v34 = vpop.eup %7158  ;;  %v2405_v56 = vsub.f32 %v15715_v59, %v10937_v18  ;;  %7170 = vrcp.f32 %v11126_v6  ;;  %v191_v18 = vld [vmem:[%s14518_s8 + $0x100] sm:$0xff]  ;;  %vm4163_vm6 = vweird.f32 %v11123_v36  ;;  %vm4179_vm8 = vmor %vm4177_vm7, %vm4178_vm5 }
 0x775   :  { %15705 = vst [vmem:[#allocation100_spill] sm:$0xff] %v11105_v11  ;;  %v4174_v9 = vsub.f32 1.0, %v4173_v7  ;;  %v7161_v29 = vpop.eup %7160  ;;  %2998 = vadd.xlane.f32.xlu2 %v10611_v60  ;;  %v11153_v7 = vadd.f32 1e-06, %v10986_v41  ;;  %v4168_v60 = vand.u32 2147483648, %v11047_v46  ;;  %7172 = vrcp.f32 %v11142_v43 }
 0x776   :  { %15706 = vst [vmem:[#allocation201_spill] sm:$0xff] %v11113_v37  ;;  %v4159_v37 = vsub.f32 1.0, %v4158_v39  ;;  %2968 = vadd.xlane.f32.xlu1 %v15708_v63  ;;  %v4166_v41 = vand.u32 2147483647, %v11047_v46  ;;  %vm4162_vm9 = vweird.f32 %v11047_v46  ;;  %vm4182_vm10 = vcmp.eq.f32.partialorder %v4181_v27, 8.507059e+37 }
 0x777   :  { %15707 = vst [vmem:[#allocation95_spill] sm:$0xff] %v11117_v17  ;;  %v11135_v17 = vmul.f32 %v7151_v52, %v15639_v25  ;;  %v4183_v52 = vand.u32 2147483648, %v11042_v44  ;;  %v4175_v51 = vmul.f32 %v7155_v49, %v4174_v9  ;;  %v11167_v26 = vpop.xlane.xlu0 %3068  ;;  %524 = vperm.xlu0 %6832, %v191_v18   ;;  %vm4164_vm11 = vmor %vm4162_vm9, %vm4163_vm6  ;;  %7174 = vrcp.f32 %v11153_v7 }
 0x778   :  { %15709 = vst [vmem:[#allocation171_spill] sm:$0xff] %v11121_v13  ;;  %v2568_v13 = vmul.f32 1.442695, %v2374_v62  ;;  %v7163_v62 = vpop.eup %7162  ;;  %vm4167_vm12 = vcmp.eq.f32.partialorder %v4166_v41, 8.507059e+37  ;;  %v11191_v18 = vmul.f32 %v7161_v29, %v15621_v28  ;;  %v11217_v41 = vadd.f32 %v10605_v22, %v15634_v21  ;;  %v15734_v22 = vld [vmem:[#allocation109_spill] sm:$0xff] }
 0x779   :  { %15711 = vst [vmem:[#allocation104_spill] sm:$0xff] %v11130_v10  ;;  %v2391_v10 = vsub.f32 %v15716_v47, %v10927_v16  ;;  %v4160_v16 = vmul.f32 %v11123_v36, %v4159_v37  ;;  %v7165_v39 = vpop.eup %7164  ;;  %v4176_v9 = vadd.f32 %v7155_v49, %v4175_v51  ;;  %v3009_v47 = vpop.xlane.xlu2 %3008  ;;  %v4184_v37 = vor.u32 1.1754944e-38, %v4183_v52 }
 0x77a   :  { %15712 = vst [vmem:[#allocation124_spill] sm:$0xff] %v11135_v17  ;;  %v11165_v59 = vpop.eup %7166  ;;  %v2630_v51 = vmul.f32 1.442695, %v2405_v56  ;;  %v11174_v17 = vadd.f32 1e-06, %v3009_v47  ;;  %v11176_v44 = vpop.xlane.xlu1 %3074  ;;  %v15719_v56 = vld [vmem:[#allocation158_spill] sm:$0xff] }
 0x77b   :  { %15713 = vst [vmem:[#allocation85_spill] sm:$0xff] %v11138_v0  ;;  %v2602_v63 = vmul.f32 1.442695, %v2391_v10  ;;  %v4161_v0 = vadd.f32 %v11123_v36, %v4160_v16  ;;  %v11172_v11 = vpop.eup %7168  ;;  %v4180_v4 = vsel %vm4179_vm8, %v7155_v49, %v4176_v9  ;;  %v4169_v16 = vor.u32 1.1754944e-38, %v4168_v60  ;;  %v15723_v60 = vld [vmem:[#allocation195_spill] sm:$0xff] }
 0x77c   :  { %15714 = vst [vmem:[#allocation89_spill] sm:$0xff] %v11142_v43  ;;  %v4185_v10 = vsel %vm4182_vm10, %v4184_v37, %v4180_v4  ;;  %v11182_v46 = vpop.eup %7170  ;;  %7176 = vrcp.f32 %v11174_v17  ;;  %v11188_v49 = vadd.f32 %v15633_v35, %v15673_v1  ;;  %v11194_v4 = vmul.f32 %v7159_v34, %v15639_v25  ;;  %v15725_v1 = vld [vmem:[#allocation196_spill] sm:$0xff]  ;;  %v15727_v9 = vld [vmem:[#allocation143_spill] sm:$0xff] }
 0x77d   :  { %15717 = vst [vmem:[#allocation159_spill] sm:$0xff] %v11153_v7  ;;  %v4165_v52 = vsel %vm4164_vm11, %v11123_v36, %v4161_v0  ;;  %v4186_v47 = vmul.f32 %v4185_v10, %v15719_v56  ;;  %7178 = vpow2.f32 %v2568_v13  ;;  %v11196_v36 = vpop.eup %7172  ;;  %v4518_v0 = vmul.f32 %v11172_v11, %v11100_v24  ;;  %2860 = vadd.xlane.f32.xlu2 %v15723_v60 }
 0x77e   :  { %15718 = vst [vmem:[#allocation202_spill] sm:$0xff] %v11172_v11  ;;  %v4170_v27 = vsel %vm4167_vm12, %v4169_v16, %v4165_v52  ;;  %7180 = vpow2.f32 %v2602_v63  ;;  %v11203_v35 = vadd.f32 %v11092_v20, %v15609_v45  ;;  %v11207_v29 = vadd.f32 %v10945_v3, %v15725_v1  ;;  %2894 = vadd.xlane.f32.xlu1 %v15727_v9  ;;  %v15729_v63 = vld [vmem:[#allocation108_spill] sm:$0xff]  ;;  %v15739_v9 = vld [vmem:[#allocation146_spill] sm:$0xff] }
 0x77f   :  { %15720 = vst [vmem:[#allocation170_spill] sm:$0xff] %v11188_v49  ;;  %5328 = vmatpush.xpose.msra.mxu2 %v4186_v47  ;;  %7182 = vpow2.f32 %v2630_v51  ;;  %v5208_v34 = vmul.f32 %v11182_v46, %v11126_v6  ;;  %v11212_v13 = vadd.f32 1e-06, %v11109_v42  ;;  %v4171_v37 = vmul.f32 %v4170_v27, %v15729_v63  ;;  %v11230_v42 = vpop.eup %7174  ;;  %v2905_v27 = vpop.xlane.xlu0 %2904 }
 0x780   :  { %15721 = vst [vmem:[#allocation113_spill] sm:$0xff] %v11191_v18  ;;  %v11221_v10 = vmul.f32 %v7163_v62, %v15639_v25  ;;  %v11224_v52 = vmul.f32 %v7165_v39, %v15626_v54  ;;  %v11228_v51 = vadd.f32 %v10493_v33, %v15492_v30  ;;  %v4998_v16 = vmul.f32 %v11196_v36, %v11142_v43  ;;  %v15735_v25 = vld [vmem:[#allocation157_spill] sm:$0xff]  ;;  %v15737_v39 = vld [vmem:[#allocation118_spill] sm:$0xff] }
 0x781   :  { %15722 = vst [vmem:[#allocation101_spill] sm:$0xff] %v11194_v4  ;;  %v2390_v56 = vsub.f32 %v15734_v22, %v11102_v40  ;;  %v2871_v47 = vpop.xlane.xlu2 %2870  ;;  %v11238_v62 = vadd.f32 %v15735_v25, %v15725_v1  ;;  %v11242_v60 = vadd.f32 %v15698_v5, %v15737_v39  ;;  %v4519_v33 = vsub.f32 1.0, %v4518_v0 }
 0x782   :  { %15724 = vst [vmem:[#allocation149_spill] sm:$0xff] %v11203_v35  ;;  %v11244_v30 = vpop.eup %7176  ;;  %v2389_v63 = vsub.f32 %v15739_v9, %v11107_v12  ;;  %v11248_v45 = vadd.f32 1e-06, %v2871_v47  ;;  %v3011_v49 = vpop.xlane.xlu1 %3010  ;;  %v11250_v40 = vadd.f32 1e-06, %v2905_v27  ;;  %7184 = vrcp.f32 %v11212_v13  ;;  %v15741_v12 = vld [vmem:[#allocation53_spill] sm:$0xff] }
 0x783   :  { %15726 = vst [vmem:[#allocation133_spill] sm:$0xff] %v11207_v29  ;;  %5329 = vmatpush.xpose.msra.mxu2 %v4171_v37  ;;  %v7179_v22 = vpop.eup %7178  ;;  %v11253_v25 = vadd.f32 1e-06, %v3011_v49  ;;  %v4743_v5 = vmul.f32 %v11244_v30, %v11174_v17  ;;  %v11259_v0 = vmul.f32 %v11230_v42, %v11153_v7  ;;  %v15742_v47 = vld [vmem:[#allocation187_spill] sm:$0xff]  ;;  %v4999_v9 = vsub.f32 1.0, %v4998_v16  ;;  %v15746_v35 = vld [vmem:[#allocation185_spill] sm:$0xff] }
 0x784   :  { %15728 = vst [vmem:[#allocation123_spill] sm:$0xff] %v11217_v41  ;;  %7186 = vrcp.f32 %v11248_v45  ;;  %v11264_v27 = vadd.f32 %v15742_v47, %v15741_v12  ;;  %v5218_v41 = vand.u32 2147483648, %v11126_v6  ;;  %v2598_v29 = vmul.f32 1.442695, %v2389_v63  ;;  %v15749_v16 = vld [vmem:[#allocation197_spill] sm:$0xff] }
 0x785   :  { %15730 = vst [vmem:[#allocation183_spill] sm:$0xff] %v11221_v10  ;;  %7188 = vrcp.f32 %v11253_v25  ;;  %2964 = vadd.xlane.f32.xlu2 %v15746_v35  ;;  %v11276_v12 = vmul.f32 %v11165_v59, %v15466_v48  ;;  %v11289_v35 = vadd.f32 1e-06, %v11176_v44  ;;  %vm4747_vm13 = vweird.f32 %v11174_v17 }
 0x786   :  { %15731 = vst [vmem:[#allocation78_spill] sm:$0xff] %v11224_v52  ;;  %7190 = vrcp.f32 %v11250_v40  ;;  %2862 = vadd.xlane.f32.xlu1 %v15749_v16  ;;  %v11307_v44 = vor.u32 1.1754944e-38, %v5218_v41  ;;  %vm4748_vm14 = vweird.f32 %v11244_v30  ;;  %v4768_v7 = vand.u32 2147483648, %v11253_v25 }
 0x787   :  { %15732 = vst [vmem:[#allocation73_spill] sm:$0xff] %v11228_v51  ;;  %v5209_v51 = vsub.f32 1.0, %v5208_v34  ;;  %v15744_v34 = vld [vmem:[#allocation42_spill] sm:$0xff]  ;;  %vm3967_vm1 = vweird.f32 %v11250_v40  ;;  %vm4762_vm3 = vweird.f32 %v11253_v25  ;;  %vm11366_vm4 = vmor %vm4747_vm13, %vm4748_vm14  ;;  %v3718_v31 = vand.u32 2147483648, %v11248_v45 }
 0x788   :  { %15733 = vst [vmem:[#allocation72_spill] sm:$0xff] %v11230_v42  ;;  %v11268_v37 = vadd.f32 %v15744_v34, %v15600_v19  ;;  %v11280_v19 = vmul.f32 %v11172_v11, %v4519_v33  ;;  %vm3712_vm11 = vweird.f32 %v11248_v45  ;;  %vm5213_vm14 = vweird.f32 %v11182_v46 }
 0x789   :  { %15736 = vst [vmem:[#allocation91_spill] sm:$0xff] %v11238_v62  ;;  %v2600_v62 = vmul.f32 1.442695, %v2390_v56  ;;  %v4744_v56 = vsub.f32 1.0, %v4743_v5  ;;  %v5210_v63 = vmul.f32 %v11182_v46, %v5209_v51  ;;  %v11300_v5 = vmul.f32 %v11196_v36, %v4999_v9  ;;  %v11304_v51 = vpop.xlane.xlu0 %2182 }
 0x78a   :  { %15738 = vst [vmem:[#allocation137_spill] sm:$0xff] %v11242_v60  ;;  %v7181_v60 = vpop.eup %7180 }
 0x78b   :  { %15740 = vst [vmem:[#allocation174_spill] sm:$0xff] %v11259_v0  ;;  %v7183_v49 = vpop.eup %7182  ;;  %v11292_v59 = vmul.f32 %v7181_v60, %v15466_v48  ;;  %7192 = vpow2.f32 %v2600_v62  ;;  %v2873_v48 = vpop.xlane.xlu1 %2872  ;;  %v4751_v60 = vand.u32 2147483647, %v11174_v17  ;;  %v11316_v62 = vadd.f32 1e-06, %v11167_v26 }
 0x78c   :  { %15743 = vst [vmem:[#allocation87_spill] sm:$0xff] %v11264_v27  ;;  %v5233_v27 = vand.u32 2147483648, %v11212_v13  ;;  %v11295_v52 = vmul.f32 %v7183_v49, %v15597_v53  ;;  %v11297_v33 = vpop.eup %7184  ;;  %7194 = vpow2.f32 %v2598_v29  ;;  %v4745_v16 = vmul.f32 %v11244_v30, %v4744_v56  ;;  %v15753_v56 = vld [vmem:[#allocation79_spill] sm:$0xff] }
 0x78d   :  { %15745 = vst [vmem:[#allocation116_spill] sm:$0xff] %v11268_v37  ;;  %v11284_v37 = vmul.f32 %v7179_v22, %v15626_v54  ;;  %v11302_v22 = vpop.xlane.xlu2 %3064  ;;  %v11309_v1 = vpop.eup %7186  ;;  %v11322_v41 = vadd.f32 %v11182_v46, %v5210_v63  ;;  %7196 = vrcp.f32 %v11289_v35  ;;  %v4753_v49 = vand.u32 2147483648, %v11174_v17  ;;  %2996 = vadd.xlane.f32.xlu2 %v15753_v56 }
 0x78e   :  { %15747 = vst [vmem:[#allocation198_spill] sm:$0xff] %v11276_v12  ;;  %v7189_v9 = vpop.eup %7188  ;;  %v3708_v29 = vmul.f32 %v11309_v1, %v11248_v45  ;;  %v11331_v26 = vmul.f32 %v11297_v33, %v11212_v13  ;;  %v3973_v63 = vand.u32 2147483648, %v11250_v40  ;;  %vm11339_vm15 = vcmp.eq.f32.partialorder %v4751_v60, 8.507059e+37  ;;  %2966 = vadd.xlane.f32.xlu1 %v15744_v34 }
 0x78f   :  { %15748 = vst [vmem:[#allocation71_spill] sm:$0xff] %v11280_v19  ;;  %v11318_v19 = vadd.f32 1e-06, %v2873_v48  ;;  %v7191_v11 = vpop.eup %7190  ;;  %v4766_v12 = vand.u32 2147483647, %v11253_v25  ;;  %v4746_v56 = vadd.f32 %v11244_v30, %v4745_v16  ;;  %vm4763_vm0 = vweird.f32 %v7189_v9 }
 0x790   :  { %15750 = vst [vmem:[#allocation99_spill] sm:$0xff] %v11284_v37  ;;  %v3963_v48 = vmul.f32 %v7191_v11, %v11250_v40  ;;  %v4754_v60 = vor.u32 1.1754944e-38, %v4753_v49  ;;  %vm3968_vm2 = vweird.f32 %v7191_v11  ;;  %v3971_v34 = vand.u32 2147483647, %v11250_v40  ;;  %vm4764_vm5 = vmor %vm4762_vm3, %vm4763_vm0  ;;  %v15760_v40 = vld [vmem:[#allocation41_spill] sm:$0xff] }
 0x791   :  { %15751 = vst [vmem:[#allocation189_spill] sm:$0xff] %v11292_v59  ;;  %7198 = vrcp.f32 %v11318_v19  ;;  %v11343_v21 = vpop.eup %7192  ;;  %v11351_v8 = vpop.xlane.xlu0 %2976  ;;  %v3974_v0 = vor.u32 1.1754944e-38, %v3973_v63  ;;  %vm4767_vm6 = vcmp.eq.f32.partialorder %v4766_v12, 8.507059e+37  ;;  %vm3969_vm7 = vmor %vm3967_vm1, %vm3968_vm2  ;;  %v3733_v43 = vand.u32 2147483648, %v11318_v19 }
 0x792   :  { %15752 = vst [vmem:[#allocation69_spill] sm:$0xff] %v11295_v52  ;;  %v11313_v52 = vor.u32 1.1754944e-38, %v5233_v27  ;;  %v4758_v27 = vmul.f32 %v7189_v9, %v11253_v25  ;;  %v3964_v39 = vsub.f32 1.0, %v3963_v48  ;;  %v11349_v4 = vpop.eup %7194  ;;  %vm3972_vm8 = vcmp.eq.f32.partialorder %v3971_v34, 8.507059e+37 }
 0x793   :  { %v11355_v48 = vpop.eup %7196  ;;  %v11359_v16 = vpop.xlane.xlu1 %3066  ;;  %vm3713_vm9 = vweird.f32 %v11309_v1  ;;  %v5224_v34 = vsub.f32 1.0, %v11331_v26  ;;  %vm3727_vm12 = vweird.f32 %v11318_v19  ;;  %vm5212_vm1 = vweird.f32 %v11126_v6 }
 0x794   :  { %v4759_v24 = vsub.f32 1.0, %v4758_v27  ;;  %v3709_v27 = vsub.f32 1.0, %v3708_v29  ;;  %v3965_v23 = vmul.f32 %v7191_v11, %v3964_v39  ;;  %vm11407_vm13 = vmor %vm3712_vm11, %vm3713_vm9  ;;  %vm5227_vm9 = vweird.f32 %v11212_v13 }
 0x795   :  { %v3007_v37 = vpop.xlane.xlu2 %3006  ;;  %vm11492_vm11 = vmor %vm5212_vm1, %vm5213_vm14 }
 0x796   :  { %v4760_v2 = vmul.f32 %v7189_v9, %v4759_v24  ;;  %v11357_v42 = vadd.f32 1e-06, %v3007_v37  ;;  %v3966_v49 = vadd.f32 %v7191_v11, %v3965_v23  ;;  %v4769_v37 = vor.u32 1.1754944e-38, %v4768_v7  ;;  %2892 = vadd.xlane.f32.xlu1 %v15760_v40 }
 0x797   :  { %v7199_v39 = vpop.eup %7198  ;;  %v3710_v63 = vmul.f32 %v11309_v1, %v3709_v27  ;;  %v11382_v23 = vmul.f32 %v11355_v48, %v11289_v35  ;;  %v3719_v40 = vor.u32 1.1754944e-38, %v3718_v31 }
 0x798   :  { %v4761_v29 = vadd.f32 %v7189_v9, %v4760_v2  ;;  %v4750_v2 = vsel %vm11366_vm4, %v11244_v30, %v4746_v56  ;;  %v3723_v25 = vmul.f32 %v7199_v39, %v11318_v19  ;;  %7200 = vrcp.f32 %v11357_v42  ;;  %v15758_v30 = vld [vmem:[#allocation51_spill] sm:$0xff] }
 0x799   :  { %v3970_v7 = vsel %vm3969_vm7, %v7191_v11, %v3966_v49  ;;  %2916 = vadd.xlane.f32.xlu2 %v15758_v30  ;;  %v4755_v27 = vsel %vm11339_vm15, %v4754_v60, %v4750_v2  ;;  %vm3728_vm10 = vweird.f32 %v7199_v39  ;;  %v5239_v49 = vsub.f32 1.0, %v11382_v23  ;;  %v11398_v60 = vpop.xlane.xlu0 %2244  ;;  %v15762_v2 = vld [vmem:[#allocation141_spill] sm:$0xff] }
 0x79a   :  { %v4765_v17 = vsel %vm4764_vm5, %v7189_v9, %v4761_v29  ;;  %v3724_v24 = vsub.f32 1.0, %v3723_v25  ;;  %v3975_v56 = vsel %vm3972_vm8, %v3974_v0, %v3970_v7  ;;  %v15761_v9 = vld [vmem:[#allocation162_spill] sm:$0xff]  ;;  %v3731_v0 = vand.u32 2147483647, %v11318_v19  ;;  %v15765_v7 = vld [vmem:[#allocation140_spill] sm:$0xff]  ;;  %vm3729_vm15 = vmor %vm3727_vm12, %vm3728_vm10 }
 0x79b   :  { %v4770_v12 = vsel %vm4767_vm6, %v4769_v37, %v4765_v17  ;;  %v3976_v29 = vmul.f32 %v3975_v56, %v15761_v9  ;;  %7202 = vrcp.f32 %v11316_v62  ;;  %v4756_v25 = vmul.f32 %v4755_v27, %v15762_v2 }
 0x79c   :  { %v4771_v18 = vmul.f32 %v4770_v12, %v15759_v14  ;;  %v3725_v11 = vmul.f32 %v7199_v39, %v3724_v24  ;;  %v3711_v14 = vadd.f32 %v11309_v1, %v3710_v63  ;;  %v3716_v23 = vand.u32 2147483647, %v11248_v45 }
 0x79d   :  { %5303 = vmatpush.xpose.msrb.mxu1 %v3976_v29  ;;  %v2927_v59 = vpop.xlane.xlu2 %2926  ;;  %v2373_v12 = vsub.f32 %v15765_v7, %v11304_v51  ;;  %v3734_v30 = vor.u32 1.1754944e-38, %v3733_v43  ;;  %vm3732_vm0 = vcmp.eq.f32.partialorder %v3731_v0, 8.507059e+37  ;;  %v347_v43 = vld [vmem:[#allocation5 + $0x108] sm:$0xff]  ;;  %v11428_v27 = vadd.f32 1e-06, %v11302_v22 }
 0x79e   :  { %5367 = vmatpush.xpose.msrb.mxu0 %v4771_v18  ;;  %v11401_v37 = vpop.eup %7200  ;;  %v2903_v18 = vpop.xlane.xlu1 %2902  ;;  %v3726_v17 = vadd.f32 %v7199_v39, %v3725_v11  ;;  %v3715_v45 = vsel %vm11407_vm13, %v11309_v1, %v3711_v14  ;;  %v11424_v9 = vadd.f32 1e-06, %v2927_v59  ;;  %v15766_v11 = vld [vmem:[#allocation107_spill] sm:$0xff]  ;;  %vm3717_vm2 = vcmp.eq.f32.partialorder %v3716_v23, 8.507059e+37  ;;  %v15768_v14 = vld [vmem:[#allocation106_spill] sm:$0xff] }
 0x79f   :  { %v11415_v24 = vadd.f32 1e-06, %v2903_v18  ;;  %v4728_v19 = vmul.f32 %v11401_v37, %v11357_v42  ;;  %v4738_v1 = vand.u32 2147483648, %v11357_v42  ;;  %717 = vmatmul.f32.gmra.mxu0 %v347_v43  ;;  %3028 = vadd.xlane.f32.xlu1 %v15768_v14  ;;  %v3720_v59 = vsel %vm3717_vm2, %v3719_v40, %v3715_v45  ;;  %v15776_v43 = vld [vmem:[#allocation166_spill] sm:$0xff] }
 0x7a0   :  { %v3730_v56 = vsel %vm3729_vm15, %v7199_v39, %v3726_v17  ;;  %v15767_v39 = vld [vmem:[#allocation45_spill] sm:$0xff]  ;;  %vm4733_vm3 = vweird.f32 %v11401_v37  ;;  %v4736_v22 = vand.u32 2147483647, %v11357_v42  ;;  %v5240_v2 = vmul.f32 %v11355_v48, %v5239_v49 }
 0x7a1   :  { %7204 = vrcp.f32 %v11415_v24  ;;  %v3735_v51 = vsel %vm3732_vm0, %v3734_v30, %v3730_v56  ;;  %v4729_v29 = vsub.f32 1.0, %v4728_v19  ;;  %2888 = vadd.xlane.f32.xlu2 %v15766_v11  ;;  %v11433_v31 = vpop.eup %7202  ;;  %v11446_v17 = vmul.f32 %v11349_v4, %v15597_v53  ;;  %v11456_v30 = vpop.xlane.xlu0 %3038  ;;  %v15774_v19 = vld [vmem:[#allocation46_spill] sm:$0xff]  ;;  %3000 = vadd.xlane.f32.xlu0 %v15776_v43 }
 0x7a2   :  { %5368 = vmatpush.xpose.msrb.mxu0 %v4756_v25  ;;  %v3736_v0 = vmul.f32 %v3735_v51, %v15767_v39  ;;  %v11442_v25 = vmul.f32 %v11343_v21, %v15626_v54  ;;  %vm5242_vm4 = vweird.f32 %v11289_v35  ;;  %v15771_v63 = vand.u32 2147483647, %v11126_v6  ;;  %v15780_v6 = vld [vmem:[#allocation136_spill] sm:$0xff] }
 0x7a3   :  { %v4730_v18 = vmul.f32 %v11401_v37, %v4729_v29  ;;  %15770 = vst [vmem:[#allocation152_spill] sm:$0xff] %v11446_v17  ;;  %v2566_v7 = vmul.f32 1.442695, %v2373_v12  ;;  %7206 = vrcp.f32 %v11424_v9  ;;  %vm4732_vm6 = vweird.f32 %v11357_v42 }
 0x7a4   :  { %5280 = vmatpush.xpose.msrb.mxu3 %v3736_v0  ;;  %15769 = vst [vmem:[#allocation127_spill] sm:$0xff] %v11442_v25  ;;  %vm11451_vm5 = vcmp.eq.f32.partialorder %v15771_v63, 8.507059e+37  ;;  %v11461_v21 = vadd.f32 1e-06, %v11359_v16  ;;  %v3721_v56 = vmul.f32 %v3720_v59, %v15774_v19  ;;  %vm4734_vm7 = vmor %vm4732_vm6, %vm4733_vm3  ;;  %v4739_v12 = vor.u32 1.1754944e-38, %v4738_v1  ;;  %v15781_v63 = vld [vmem:[#allocation68_spill] sm:$0xff] }
 0x7a5   :  { %v2899_v49 = vpop.xlane.xlu2 %2898  ;;  %v4731_v54 = vadd.f32 %v11401_v37, %v4730_v18  ;;  %v5246_v45 = vand.u32 2147483647, %v11289_v35  ;;  %7208 = vrcp.f32 %v11428_v27  ;;  %v11473_v51 = vadd.f32 1e-06, %v11351_v8  ;;  %v15777_v8 = vld [vmem:[#allocation203_spill] sm:$0xff] }
 0x7a6   :  { %v11463_v4 = vpop.xlane.xlu1 %2180  ;;  %vm4737_vm8 = vcmp.eq.f32.partialorder %v4736_v22, 8.507059e+37  ;;  %v11479_v29 = vadd.f32 1e-06, %v2899_v49  ;;  %v5225_v39 = vmul.f32 %v11297_v33, %v5224_v34  ;;  %7210 = vpow2.f32 %v2566_v7  ;;  %v15796_v49 = vld [vmem:[#allocation114_spill] sm:$0xff] }
 0x7a7   :  { %v11469_v40 = vpop.eup %7204  ;;  %15775 = vst [vmem:[#allocation132_spill] sm:$0xff] %v11473_v51  ;;  %v4735_v42 = vsel %vm4734_vm7, %v11401_v37, %v4731_v54  ;;  %v348_v37 = vld [vmem:[#allocation5 + $0x110] sm:$0xff]  ;;  %v5241_v1 = vadd.f32 %v11355_v48, %v5240_v2  ;;  %vm5243_vm10 = vweird.f32 %v11355_v48  ;;  %7212 = vrcp.f32 %v11461_v21  ;;  %2918 = vadd.xlane.f32.xlu1 %v15781_v63 }
 0x7a8   :  { %v3948_v16 = vmul.f32 %v11469_v40, %v11415_v24  ;;  %5281 = vmatpush.xpose.msrb.mxu3 %v3721_v56  ;;  %v4740_v11 = vsel %vm4737_vm8, %v4739_v12, %v4735_v42  ;;  %720 = vmatmul.f32.gmra.mxu0 %v348_v37  ;;  %v5248_v34 = vand.u32 2147483648, %v11289_v35  ;;  %v5215_v18 = vsel %vm11492_vm11, %v11182_v46, %v11322_v41  ;;  %vm11519_vm14 = vmor %vm5242_vm4, %vm5243_vm10 }
 0x7a9   :  { %v4741_v0 = vmul.f32 %v4740_v11, %v15777_v8  ;;  %2856 = vadd.xlane.f32.xlu2 %v10955_v50  ;;  %v11503_v22 = vpop.eup %7206  ;;  %7214 = vrcp.f32 %v11473_v51  ;;  %v2404_v2 = vsub.f32 %v15780_v6, %v11398_v60  ;;  %v3958_v50 = vand.u32 2147483648, %v11415_v24  ;;  %v2929_v12 = vpop.xlane.xlu0 %2928  ;;  %3054 = vadd.xlane.f32.xlu0 %v15742_v47  ;;  %v349_v6 = vld [vmem:[#allocation5 + $0x118] sm:$0xff] }
 0x7aa   :  { %v3949_v26 = vsub.f32 1.0, %v3948_v16  ;;  %vm5228_vm12 = vweird.f32 %v11297_v33  ;;  %7216 = vrcp.f32 %v11479_v29  ;;  %vm3953_vm13 = vweird.f32 %v11469_v40 }
 0x7ab   :  { %5369 = vmatpush.xpose.msrb.mxu0 %v4741_v0  ;;  %v3956_v46 = vand.u32 2147483647, %v11415_v24  ;;  %v15784_v60 = vand.u32 2147483647, %v11212_v13  ;;  %v11529_v54 = vpop.eup %7208  ;;  %v5193_v19 = vmul.f32 %v11433_v31, %v11316_v62  ;;  %v5245_v35 = vsel %vm11519_vm14, %v11355_v48, %v5241_v1  ;;  %vm11562_vm4 = vmor %vm5227_vm9, %vm5228_vm12 }
 0x7ac   :  { %v3950_v7 = vmul.f32 %v11469_v40, %v3949_v26  ;;  %v5226_v42 = vadd.f32 %v11297_v33, %v5225_v39  ;;  %v5220_v16 = vsel %vm11451_vm5, %v11307_v44, %v5215_v18  ;;  %v4128_v43 = vmul.f32 %v11503_v22, %v11424_v9  ;;  %v7211_v37 = vpop.eup %7210 }
 0x7ad   :  { %vm11525_vm15 = vcmp.eq.f32.partialorder %v15784_v60, 8.507059e+37  ;;  %v2867_v56 = vpop.xlane.xlu2 %2866  ;;  %v11544_v8 = vadd.f32 1e-06, %v2929_v12  ;;  %vm3952_vm0 = vweird.f32 %v11415_v24  ;;  %v2628_v59 = vmul.f32 1.442695, %v2404_v2  ;;  %v11550_v44 = vpop.eup %7212  ;;  %v15793_v60 = vld [vmem:[#allocation34_spill] sm:$0xff] }
 0x7ae   :  { %v11542_v11 = vpop.xlane.xlu1 %2974  ;;  %v3951_v0 = vadd.f32 %v11469_v40, %v3950_v7  ;;  %vm3954_vm1 = vmor %vm3952_vm0, %vm3953_vm13  ;;  %v3959_v48 = vor.u32 1.1754944e-38, %v3958_v50  ;;  %vm5247_vm2 = vcmp.eq.f32.partialorder %v5246_v45, 8.507059e+37  ;;  %v5249_v23 = vor.u32 1.1754944e-38, %v5248_v34  ;;  %v351_v12 = vld [vmem:[#allocation5 + $0x128] sm:$0xff] }
 0x7af   :  { %v11554_v39 = vmul.f32 %v11529_v54, %v11428_v27  ;;  %vm3957_vm3 = vcmp.eq.f32.partialorder %v3956_v46, 8.507059e+37  ;;  %v11567_v45 = vmul.f32 %v5220_v16, %v11024_v57  ;;  %v11569_v26 = vpop.eup %7214  ;;  %v5194_v34 = vsub.f32 1.0, %v5193_v19  ;;  %v15790_v57 = vld [vmem:[#allocation44_spill] sm:$0xff]  ;;  %v15791_v46 = vld [vmem:[#allocation35_spill] sm:$0xff]  ;;  %2890 = vadd.xlane.f32.xlu1 %v15793_v60 }
 0x7b0   :  { %v3955_v1 = vsel %vm3954_vm1, %v11469_v40, %v3951_v0  ;;  %15789 = vst [vmem:[#allocation200_spill] sm:$0xff] %v11569_v26  ;;  %v5250_v47 = vsel %vm5247_vm2, %v5249_v23, %v5245_v35  ;;  %v5230_v40 = vsel %vm11562_vm4, %v11297_v33, %v5226_v42  ;;  %v11574_v2 = vpop.eup %7216  ;;  %v4129_v13 = vsub.f32 1.0, %v4128_v43  ;;  %723 = vmatmul.f32.gmra.mxu0 %v349_v6 }
 0x7b1   :  { %v3960_v18 = vsel %vm3957_vm3, %v3959_v48, %v3955_v1  ;;  %v11576_v63 = vadd.f32 1e-06, %v2867_v56  ;;  %7218 = vrcp.f32 %v11544_v8  ;;  %2886 = vadd.xlane.f32.xlu2 %v11004_v15  ;;  %v11583_v7 = vmul.f32 %v11550_v44, %v11461_v21  ;;  %v11605_v35 = vpop.xlane.xlu0 %2212  ;;  %3026 = vadd.xlane.f32.xlu0 %v15796_v49 }
 0x7b2   :  { %v3961_v50 = vmul.f32 %v3960_v18, %v15790_v57  ;;  %7220 = vpow2.f32 %v2628_v59  ;;  %v2372_v33 = vsub.f32 %v15791_v46, %v11463_v4  ;;  %v11588_v41 = vadd.f32 1e-06, %v11456_v30 }
 0x7b3   :  { %v11594_v15 = vmul.f32 %v11569_v26, %v11473_v51  ;;  %v11597_v56 = vmul.f32 %v7211_v37, %v15597_v53  ;;  %vm5197_vm5 = vweird.f32 %v11316_v62  ;;  %v3918_v30 = vmul.f32 %v11574_v2, %v11479_v29 }
 0x7b4   :  { %15792 = vst [vmem:[#allocation167_spill] sm:$0xff] %v11588_v41  ;;  %5304 = vmatpush.xpose.msrb.mxu1 %v3961_v50  ;;  %v4136_v42 = vand.u32 2147483647, %v11424_v9  ;;  %v11609_v16 = vmul.f32 %v5250_v47, %v11062_v58  ;;  %v5235_v53 = vsel %vm11525_vm15, %v11313_v52, %v5230_v40  ;;  %7222 = vrcp.f32 %v11576_v63  ;;  %v15817_v40 = vld [vmem:[#allocation204_spill] sm:$0xff] }
 0x7b5   :  { %15794 = vst [vmem:[#allocation75_spill] sm:$0xff] %v11594_v15  ;;  %v11603_v4 = vpop.xlane.xlu2 %3060  ;;  %v4130_v0 = vmul.f32 %v11503_v22, %v4129_v13  ;;  %v4138_v37 = vand.u32 2147483648, %v11424_v9  ;;  %v5195_v59 = vmul.f32 %v11433_v31, %v5194_v34  ;;  %v2564_v23 = vmul.f32 1.442695, %v2372_v33  ;;  %v350_v13 = vld [vmem:[#allocation5 + $0x120] sm:$0xff]  ;;  %v15799_v33 = vld [vmem:[#allocation190_spill] sm:$0xff] }
 0x7b6   :  { %15795 = vst [vmem:[#allocation169_spill] sm:$0xff] %v11597_v56  ;;  %v2901_v43 = vpop.xlane.xlu1 %2900  ;;  %7224 = vrcp.f32 %v11588_v41  ;;  %vm4132_vm6 = vweird.f32 %v11424_v9  ;;  %v3928_v24 = vand.u32 2147483648, %v11479_v29  ;;  %v11629_v18 = vmul.f32 %v5235_v53, %v11030_v55  ;;  %v15808_v53 = vld [vmem:[#allocation142_spill] sm:$0xff] }
 0x7b7   :  { %v11620_v58 = vadd.f32 1e-06, %v2901_v43  ;;  %v11622_v1 = vpop.eup %7218  ;;  %v3919_v6 = vsub.f32 1.0, %v3918_v30  ;;  %vm4133_vm7 = vweird.f32 %v11503_v22  ;;  %vm11635_vm8 = vcmp.eq.f32.partialorder %v4136_v42, 8.507059e+37  ;;  %2858 = vadd.xlane.f32.xlu1 %v15799_v33 }
 0x7b8   :  { %v7221_v34 = vpop.eup %7220  ;;  %v4143_v47 = vmul.f32 %v11622_v1, %v11544_v8  ;;  %v4131_v57 = vadd.f32 %v11503_v22, %v4130_v0  ;;  %v4139_v55 = vor.u32 1.1754944e-38, %v4138_v37  ;;  %726 = vmatmul.f32.gmra.mxu0 %v350_v13  ;;  %v11642_v50 = vadd.f32 %v11433_v31, %v5195_v59  ;;  %vm11658_vm11 = vmor %vm4132_vm6, %vm4133_vm7 }
 0x7b9   :  { %7226 = vrcp.f32 %v11620_v58  ;;  %2854 = vadd.xlane.f32.xlu2 %v11092_v20  ;;  %vm5198_vm9 = vweird.f32 %v11433_v31  ;;  %vm3922_vm10 = vweird.f32 %v11479_v29  ;;  %v3926_v60 = vand.u32 2147483647, %v11479_v29  ;;  %2962 = vadd.xlane.f32.xlu0 %v15808_v53 }
 0x7ba   :  { %7228 = vpow2.f32 %v2564_v23  ;;  %v4144_v46 = vsub.f32 1.0, %v4143_v47  ;;  %v11648_v30 = vpop.eup %7222  ;;  %v11651_v20 = vadd.f32 1e-06, %v11542_v11  ;;  %v4153_v42 = vand.u32 2147483648, %v11544_v8  ;;  %v11669_v11 = vpop.xlane.xlu0 %3036  ;;  %vm11679_vm13 = vmor %vm5197_vm5, %vm5198_vm9 }
 0x7bb   :  { %v11662_v43 = vor.u32 1.1754944e-38, %v3928_v24  ;;  %v11665_v0 = vmul.f32 %v7221_v34, %v15621_v28  ;;  %vm4148_vm12 = vweird.f32 %v11622_v1  ;;  %v4151_v9 = vand.u32 2147483647, %v11544_v8 }
 0x7bc   :  { %15800 = vst [vmem:[#allocation74_spill] sm:$0xff] %v11651_v20  ;;  %v11667_v37 = vpop.eup %7224  ;;  %v4145_v23 = vmul.f32 %v11622_v1, %v4144_v46  ;;  %v3920_v47 = vmul.f32 %v11574_v2, %v3919_v6  ;;  %v4135_v13 = vsel %vm11658_vm11, %v11503_v22, %v4131_v57  ;;  %vm3923_vm14 = vweird.f32 %v11574_v2 }
 0x7bd   :  { %15803 = vst [vmem:[#allocation131_spill] sm:$0xff] %v11665_v0  ;;  %v3033_v59 = vpop.xlane.xlu2 %3032  ;;  %v3678_v52 = vmul.f32 %v11648_v30, %v11576_v63  ;;  %vm4147_vm15 = vweird.f32 %v11544_v8  ;;  %v11702_v22 = vmul.f32 %v11667_v37, %v11588_v41  ;;  %7230 = vrcp.f32 %v11651_v20  ;;  %vm11736_vm4 = vmor %vm3922_vm10, %vm3923_vm14 }
 0x7be   :  { %15804 = vst [vmem:[#allocation135_spill] sm:$0xff] %v11667_v37  ;;  %v2869_v34 = vpop.xlane.xlu1 %2868  ;;  %v4146_v48 = vadd.f32 %v11622_v1, %v4145_v23  ;;  %vm4149_vm0 = vmor %vm4147_vm15, %vm4148_vm12  ;;  %vm4152_vm1 = vcmp.eq.f32.partialorder %v4151_v9, 8.507059e+37  ;;  %v3921_v23 = vadd.f32 %v11574_v2, %v3920_v47  ;;  %vm11713_vm2 = vcmp.eq.f32.partialorder %v3926_v60, 8.507059e+37  ;;  %v15813_v60 = vld [vmem:[#allocation105_spill] sm:$0xff]  ;;  %v15814_v47 = vld [vmem:[#allocation188_spill] sm:$0xff] }
 0x7bf   :  { %v11692_v33 = vpop.eup %7226  ;;  %v11696_v19 = vadd.f32 1e-06, %v2869_v34  ;;  %15807 = vst [vmem:[#allocation178_spill] sm:$0xff] %v11702_v22  ;;  %v4154_v34 = vor.u32 1.1754944e-38, %v4153_v42  ;;  %v11718_v51 = vadd.f32 1e-06, %v11603_v4  ;;  %v4140_v26 = vsel %vm11635_vm8, %v4139_v55, %v4135_v13  ;;  %3052 = vadd.xlane.f32.xlu1 %v15813_v60 }
 0x7c0   :  { %v3933_v57 = vmul.f32 %v11692_v33, %v11620_v58  ;;  %v7229_v6 = vpop.eup %7228  ;;  %v4150_v8 = vsel %vm4149_vm0, %v11622_v1, %v4146_v48  ;;  %729 = vmatmul.f32.gmra.mxu0 %v351_v12  ;;  %v3679_v48 = vsub.f32 1.0, %v3678_v52  ;;  %v15812_v1 = vld [vmem:[#allocation148_spill] sm:$0xff]  ;;  %v3943_v41 = vand.u32 2147483648, %v11620_v58  ;;  %v15890_v22 = vld [vmem:[#allocation63_spill] sm:$0xff] }
 0x7c1   :  { %7232 = vrcp.f32 %v11696_v19  ;;  %15811 = vst [vmem:[#allocation102_spill] sm:$0xff] %v11718_v51  ;;  %2884 = vadd.xlane.f32.xlu2 %v11070_v38  ;;  %v4155_v42 = vsel %vm4152_vm1, %v4154_v34, %v4150_v8  ;;  %v2388_v9 = vsub.f32 %v15812_v1, %v11605_v35  ;;  %vm3938_vm3 = vweird.f32 %v11692_v33  ;;  %2994 = vadd.xlane.f32.xlu0 %v10945_v3  ;;  %v15826_v3 = vld [vmem:[#allocation186_spill] sm:$0xff] }
 0x7c2   :  { %v3934_v53 = vsub.f32 1.0, %v3933_v57  ;;  %v4156_v15 = vmul.f32 %v4155_v42, %v15814_v47  ;;  %v3941_v38 = vand.u32 2147483647, %v11620_v58  ;;  %v11740_v52 = vpop.xlane.xlu0 %2972  ;;  %v4141_v55 = vmul.f32 %v4140_v26, %v15817_v40 }
 0x7c3   :  { %v3925_v13 = vsel %vm11736_vm4, %v11574_v2, %v3921_v23  ;;  %vm3682_vm5 = vweird.f32 %v11576_v63  ;;  %v3688_v29 = vand.u32 2147483648, %v11576_v63  ;;  %v11749_v34 = vpop.eup %7230  ;;  %7234 = vrcp.f32 %v11718_v51 }
 0x7c4   :  { %v3935_v57 = vmul.f32 %v11692_v33, %v3934_v53  ;;  %5330 = vmatpush.xpose.msra.mxu2 %v4156_v15  ;;  %v3686_v53 = vand.u32 2147483647, %v11576_v63  ;;  %15818 = vst [vmem:[#allocation173_spill] sm:$0xff] %v11749_v34  ;;  %vm3937_vm6 = vweird.f32 %v11620_v58  ;;  %v2596_v2 = vmul.f32 1.442695, %v2388_v9  ;;  %v352_v9 = vld [vmem:[#allocation5 + $0x130] sm:$0xff] }
 0x7c5   :  { %v2923_v35 = vpop.xlane.xlu2 %2922  ;;  %v11760_v23 = vadd.f32 1e-06, %v3033_v59  ;;  %vm3939_vm7 = vmor %vm3937_vm6, %vm3938_vm3  ;;  %v3944_v1 = vor.u32 1.1754944e-38, %v3943_v41  ;;  %v3680_v47 = vmul.f32 %v11648_v30, %v3679_v48  ;;  %v15820_v12 = vand.u32 2147483647, %v11316_v62 }
 0x7c6   :  { %v11752_v15 = vadd.f32 1e-06, %v2923_v35  ;;  %v11754_v8 = vpop.xlane.xlu1 %3062  ;;  %v3936_v26 = vadd.f32 %v11692_v33, %v3935_v57  ;;  %vm3942_vm9 = vcmp.eq.f32.partialorder %v3941_v38, 8.507059e+37  ;;  %v11777_v41 = vadd.f32 1e-06, %v11669_v11 }
 0x7c7   :  { %v11758_v42 = vpop.eup %7232  ;;  %15819 = vst [vmem:[#allocation156_spill] sm:$0xff] %v11760_v23  ;;  %vm11767_vm8 = vcmp.eq.f32.partialorder %v15820_v12, 8.507059e+37  ;;  %v11780_v57 = vmul.f32 %v7229_v6, %v15621_v28  ;;  %v15825_v40 = vand.u32 2147483648, %v11316_v62  ;;  %vm5182_vm10 = vweird.f32 %v11461_v21  ;;  %v15827_v6 = vld [vmem:[#allocation61_spill] sm:$0xff] }
 0x7c8   :  { %v3693_v58 = vmul.f32 %v11758_v42, %v11696_v19  ;;  %7236 = vrcp.f32 %v11752_v15  ;;  %v3940_v59 = vsel %vm3939_vm7, %v11692_v33, %v3936_v26  ;;  %15823 = vst [vmem:[#allocation129_spill] sm:$0xff] %v11777_v41  ;;  %5331 = vmatpush.xpose.msra.mxu2 %v4141_v55  ;;  %v3930_v11 = vsel %vm11713_vm2, %v11662_v43, %v3925_v13 }
 0x7c9   :  { %v3945_v48 = vsel %vm3942_vm9, %v3944_v1, %v3940_v59  ;;  %15824 = vst [vmem:[#allocation172_spill] sm:$0xff] %v11780_v57  ;;  %v5204_v12 = vor.u32 1.1754944e-38, %v15825_v40  ;;  %2852 = vadd.xlane.f32.xlu2 %v11095_v32  ;;  %vm3683_vm11 = vweird.f32 %v11648_v30  ;;  %732 = vmatmul.f32.gmra.mxu0 %v352_v9  ;;  %7238 = vrcp.f32 %v11760_v23  ;;  %v11798_v1 = vpop.eup %7234 }
 0x7ca   :  { %v3694_v4 = vsub.f32 1.0, %v3693_v58  ;;  %v3946_v33 = vmul.f32 %v3945_v48, %v15826_v3  ;;  %3024 = vadd.xlane.f32.xlu1 %v15827_v6  ;;  %v3703_v62 = vand.u32 2147483648, %v11696_v19  ;;  %v3681_v38 = vadd.f32 %v11648_v30, %v3680_v47  ;;  %15829 = vst [vmem:[#allocation60_spill] sm:$0xff] %v11798_v1  ;;  %v15833_v48 = vld [vmem:[#allocation179_spill] sm:$0xff]  ;;  %vm11828_vm1 = vmor %vm3682_vm5, %vm3683_vm11  ;;  %2960 = vadd.xlane.f32.xlu0 %v11067_v61  ;;  %v15859_v61 = vld [vmem:[#allocation174_spill] sm:$0xff] }
 0x7cb   :  { %v15828_v55 = vsub.f32 1.0, %v11583_v7  ;;  %7240 = vpow2.f32 %v2596_v2  ;;  %vm3698_vm12 = vweird.f32 %v11758_v42  ;;  %v3701_v46 = vand.u32 2147483647, %v11696_v19  ;;  %v3005_v7 = vpop.xlane.xlu0 %3004 }
 0x7cc   :  { %5305 = vmatpush.xpose.msrb.mxu1 %v3946_v33  ;;  %v3695_v43 = vmul.f32 %v11758_v42, %v3694_v4  ;;  %v11805_v13 = vmul.f32 %v11749_v34, %v11651_v20  ;;  %7242 = vrcp.f32 %v11777_v41  ;;  %vm11810_vm14 = vcmp.eq.f32.partialorder %v3686_v53, 8.507059e+37 }
 0x7cd   :  { %v5180_v26 = vmul.f32 %v11550_v44, %v15828_v55  ;;  %v11808_v47 = vpop.xlane.xlu2 %3058  ;;  %vm5183_vm15 = vweird.f32 %v11550_v44  ;;  %v11819_v59 = vadd.f32 1e-06, %v3005_v7  ;;  %v3931_v9 = vmul.f32 %v3930_v11, %v15833_v48  ;;  %v15843_v48 = vld [vmem:[#allocation112_spill] sm:$0xff] }
 0x7ce   :  { %15830 = vst [vmem:[#allocation184_spill] sm:$0xff] %v11805_v13  ;;  %v11815_v4 = vpop.eup %7236  ;;  %v11817_v2 = vpop.xlane.xlu1 %3034  ;;  %v3696_v40 = vadd.f32 %v11758_v42, %v3695_v43  ;;  %vm3697_vm0 = vweird.f32 %v11696_v19  ;;  %v3704_v3 = vor.u32 1.1754944e-38, %v3703_v62  ;;  %v3685_v33 = vsel %vm11828_vm1, %v11648_v30, %v3681_v38 }
 0x7cf   :  { %vm3699_vm2 = vmor %vm3697_vm0, %vm3698_vm12  ;;  %v5181_v11 = vadd.f32 %v11550_v44, %v5180_v26  ;;  %v5186_v19 = vand.u32 2147483647, %v11461_v21  ;;  %vm3702_vm3 = vcmp.eq.f32.partialorder %v3701_v46, 8.507059e+37  ;;  %v3689_v43 = vor.u32 1.1754944e-38, %v3688_v29  ;;  %v11850_v38 = vpop.eup %7238 }
 0x7d0   :  { %5306 = vmatpush.xpose.msrb.mxu1 %v3931_v9  ;;  %v3700_v55 = vsel %vm3699_vm2, %v11758_v42, %v3696_v40  ;;  %v15836_v62 = vsel %vm11679_vm13, %v11433_v31, %v11642_v50  ;;  %15837 = vst [vmem:[#allocation103_spill] sm:$0xff] %v11850_v38  ;;  %v11854_v26 = vmul.f32 %v11798_v1, %v11718_v51  ;;  %v5188_v63 = vand.u32 2147483648, %v11461_v21  ;;  %v15839_v31 = vld [vmem:[#allocation54_spill] sm:$0xff]  ;;  %vm11871_vm13 = vmor %vm5182_vm10, %vm5183_vm15  ;;  %v15844_v9 = vld [vmem:[#allocation80_spill] sm:$0xff] }
 0x7d1   :  { %v5205_v30 = vsel %vm11767_vm8, %v5204_v12, %v15836_v62  ;;  %v4098_v42 = vmul.f32 %v11815_v4, %v11752_v15  ;;  %v3705_v46 = vsel %vm3702_vm3, %v3704_v3, %v3700_v55  ;;  %v7241_v29 = vpop.eup %7240  ;;  %v11860_v24 = vadd.f32 1e-06, %v11754_v8  ;;  %2988 = vadd.xlane.f32.xlu2 %v11221_v10  ;;  %v15882_v51 = vld [vmem:[#allocation124_spill] sm:$0xff] }
 0x7d2   :  { %15838 = vst [vmem:[#allocation64_spill] sm:$0xff] %v11854_v26  ;;  %7244 = vrcp.f32 %v11819_v59  ;;  %v3706_v50 = vmul.f32 %v3705_v46, %v15839_v31  ;;  %v3690_v35 = vsel %vm11810_vm14, %v3689_v43, %v3685_v33  ;;  %v11875_v7 = vpop.eup %7242  ;;  %3050 = vadd.xlane.f32.xlu1 %v15843_v48  ;;  %v11880_v40 = vmul.f32 %v5205_v30, %v15844_v9  ;;  %v15849_v43 = vld [vmem:[#allocation128_spill] sm:$0xff]  ;;  %v15851_v31 = vld [vmem:[#allocation89_spill] sm:$0xff] }
 0x7d3   :  { %15842 = vst [vmem:[#allocation182_spill] sm:$0xff] %v11875_v7  ;;  %v5185_v58 = vsel %vm11871_vm13, %v11550_v44, %v5181_v11  ;;  %vm11885_vm4 = vcmp.eq.f32.partialorder %v5186_v19, 8.507059e+37  ;;  %v11891_v21 = vmul.f32 %v11850_v38, %v11760_v23  ;;  %v11894_v3 = vadd.f32 1e-06, %v11740_v52  ;;  %v2925_v55 = vpop.xlane.xlu0 %2924  ;;  %v15856_v44 = vld [vmem:[#allocation113_spill] sm:$0xff]  ;;  %v15862_v23 = vld [vmem:[#allocation150_spill] sm:$0xff] }
 0x7d4   :  { %5282 = vmatpush.xpose.msrb.mxu3 %v3706_v50  ;;  %v11898_v33 = vadd.f32 %v11196_v36, %v11300_v5  ;;  %vm5003_vm5 = vweird.f32 %v11196_v36  ;;  %v4099_v11 = vsub.f32 1.0, %v4098_v42  ;;  %v3691_v62 = vmul.f32 %v3690_v35, %v15849_v43  ;;  %v15854_v43 = vld [vmem:[#allocation122_spill] sm:$0xff] }
 0x7d5   :  { %15847 = vst [vmem:[#allocation86_spill] sm:$0xff] %v11891_v21  ;;  %v3031_v19 = vpop.xlane.xlu2 %3030  ;;  %v5189_v30 = vor.u32 1.1754944e-38, %v5188_v63  ;;  %v11905_v46 = vmul.f32 %v11875_v7, %v11777_v41  ;;  %7246 = vrcp.f32 %v11860_v24  ;;  %v11910_v5 = vadd.f32 1e-06, %v2925_v55  ;;  %2992 = vadd.xlane.f32.xlu0 %v15854_v43 }
 0x7d6   :  { %15848 = vst [vmem:[#allocation163_spill] sm:$0xff] %v11894_v3  ;;  %v11908_v52 = vpop.xlane.xlu1 %2970  ;;  %vm5002_vm6 = vweird.f32 %v15851_v31  ;;  %v4106_v50 = vand.u32 2147483647, %v11752_v15  ;;  %v4108_v42 = vand.u32 2147483648, %v11752_v15  ;;  %v5006_v12 = vand.u32 2147483647, %v15851_v31 }
 0x7d7   :  { %15850 = vst [vmem:[#allocation90_spill] sm:$0xff] %v11905_v46  ;;  %v5190_v35 = vsel %vm11885_vm4, %v5189_v30, %v5185_v58  ;;  %vm11919_vm7 = vmor %vm5002_vm6, %vm5003_vm5  ;;  %7248 = vrcp.f32 %v11894_v3  ;;  %v11928_v8 = vmul.f32 %v7241_v29, %v15621_v28  ;;  %v4100_v30 = vmul.f32 %v11815_v4, %v4099_v11  ;;  %v15857_v28 = vld [vmem:[#allocation93_spill] sm:$0xff]  ;;  %v15861_v58 = vld [vmem:[#allocation72_spill] sm:$0xff] }
 0x7d8   :  { %v7245_v9 = vpop.eup %7244  ;;  %5283 = vmatpush.xpose.msrb.mxu3 %v3691_v62  ;;  %vm4102_vm8 = vweird.f32 %v11752_v15  ;;  %v5008_v55 = vand.u32 2147483648, %v15851_v31  ;;  %7250 = vrcp.f32 %v11910_v5  ;;  %v11942_v29 = vmul.f32 %v5190_v35, %v15857_v28 }
 0x7d9   :  { %15855 = vst [vmem:[#allocation97_spill] sm:$0xff] %v11928_v8  ;;  %v4713_v53 = vmul.f32 %v7245_v9, %v11819_v59  ;;  %3044 = vadd.xlane.f32.xlu2 %v15856_v44  ;;  %v15860_v10 = vsub.f32 1.0, %v15859_v61  ;;  %vm11948_vm9 = vcmp.eq.f32.partialorder %v4106_v50, 8.507059e+37  ;;  %v4109_v31 = vor.u32 1.1754944e-38, %v4108_v42 }
 0x7da   :  { %15858 = vst [vmem:[#allocation165_spill] sm:$0xff] %v11942_v29  ;;  %3022 = vadd.xlane.f32.xlu1 %v15862_v23  ;;  %vm11952_vm10 = vcmp.eq.f32.partialorder %v5006_v12, 8.507059e+37  ;;  %v11959_v35 = vadd.f32 1e-06, %v11808_v47  ;;  %v4721_v61 = vand.u32 2147483647, %v11819_v59  ;;  %vm4103_vm11 = vweird.f32 %v11815_v4 }
 0x7db   :  { %v4985_v6 = vmul.f32 %v15861_v58, %v15860_v10  ;;  %v4714_v11 = vsub.f32 1.0, %v4713_v53  ;;  %v11956_v44 = vpop.eup %7246  ;;  %v4723_v10 = vand.u32 2147483648, %v11819_v59  ;;  %v2897_v53 = vpop.xlane.xlu0 %2896  ;;  %vm4718_vm12 = vweird.f32 %v7245_v9  ;;  %vm11988_vm15 = vmor %vm4102_vm8, %vm4103_vm11 }
 0x7dc   :  { %v4101_v42 = vadd.f32 %v11815_v4, %v4100_v30  ;;  %v5009_v12 = vor.u32 1.1754944e-38, %v5008_v55  ;;  %v11968_v21 = vadd.f32 1e-06, %v11817_v2  ;;  %v11972_v34 = vadd.f32 1e-06, %v2897_v53 }
 0x7dd   :  { %v2921_v50 = vpop.xlane.xlu2 %2920  ;;  %v4715_v28 = vmul.f32 %v7245_v9, %v4714_v11  ;;  %v11965_v23 = vpop.eup %7248  ;;  %v11975_v13 = vadd.f32 %v15861_v58, %v4985_v6  ;;  %v11979_v11 = vmul.f32 %v11956_v44, %v11860_v24  ;;  %vm4717_vm14 = vweird.f32 %v11819_v59 }
 0x7de   :  { %15867 = vst [vmem:[#allocation49_spill] sm:$0xff] %v11965_v23  ;;  %v11970_v47 = vadd.f32 1e-06, %v2921_v50  ;;  %v3003_v20 = vpop.xlane.xlu1 %3002  ;;  %v7251_v30 = vpop.eup %7250  ;;  %v11992_v6 = vadd.f32 1e-06, %v3031_v19  ;;  %v15871_v50 = vld [vmem:[#allocation76_spill] sm:$0xff]  ;;  %vm4719_vm0 = vmor %vm4717_vm14, %vm4718_vm12  ;;  %v4105_v53 = vsel %vm11988_vm15, %v11815_v4, %v4101_v42  ;;  %vm4117_vm3 = vweird.f32 %v11910_v5 }
 0x7df   :  { %v11981_v41 = vadd.f32 1e-06, %v3003_v20  ;;  %v4716_v55 = vadd.f32 %v7245_v9, %v4715_v28  ;;  %2958 = vadd.xlane.f32.xlu0 %v15871_v50  ;;  %vm4722_vm1 = vcmp.eq.f32.partialorder %v4721_v61, 8.507059e+37  ;;  %v4724_v20 = vor.u32 1.1754944e-38, %v4723_v10  ;;  %v15872_v19 = vld [vmem:[#allocation99_spill] sm:$0xff]  ;;  %v15875_v4 = vld [vmem:[#allocation160_spill] sm:$0xff] }
 0x7e0   :  { %15870 = vst [vmem:[#allocation120_spill] sm:$0xff] %v11992_v6  ;;  %7252 = vrcp.f32 %v11970_v47  ;;  %v4113_v59 = vmul.f32 %v7251_v30, %v11910_v5  ;;  %v4121_v50 = vand.u32 2147483647, %v11910_v5  ;;  %v4123_v7 = vand.u32 2147483648, %v11910_v5  ;;  %v353_v61 = vld [vmem:[#allocation5 + $0x138] sm:$0xff] }
 0x7e1   :  { %7254 = vrcp.f32 %v11981_v41  ;;  %v4720_v15 = vsel %vm4719_vm0, %v7245_v9, %v4716_v55  ;;  %2952 = vadd.xlane.f32.xlu2 %v15872_v19  ;;  %v12008_v10 = vmul.f32 %v11965_v23, %v11894_v3  ;;  %v15874_v55 = vld [vmem:[#allocation138_spill] sm:$0xff]  ;;  %735 = vmatmul.f32.gmra.mxu0 %v353_v61  ;;  %v4110_v2 = vsel %vm11948_vm9, %v4109_v31, %v4105_v53  ;;  %v354_v23 = vld [vmem:[#allocation5 + $0x140] sm:$0xff] }
 0x7e2   :  { %7256 = vrcp.f32 %v11972_v34  ;;  %v4725_v28 = vsel %vm4722_vm1, %v4724_v20, %v4720_v15  ;;  %v4114_v9 = vsub.f32 1.0, %v4113_v59  ;;  %3048 = vadd.xlane.f32.xlu1 %v15874_v55  ;;  %v15876_v20 = vsel %vm11919_vm7, %v11196_v36, %v11898_v33 }
 0x7e3   :  { %15873 = vst [vmem:[#allocation119_spill] sm:$0xff] %v12008_v10  ;;  %7258 = vrcp.f32 %v11959_v35  ;;  %v4726_v42 = vmul.f32 %v4725_v28, %v15875_v4  ;;  %v12023_v15 = vsel %vm11952_vm10, %v5009_v12, %v15876_v20  ;;  %v12027_v19 = vadd.f32 1e-06, %v11908_v52  ;;  %v15881_v20 = vld [vmem:[#allocation168_spill] sm:$0xff] }
 0x7e4   :  { %7260 = vrcp.f32 %v11968_v21  ;;  %v4115_v61 = vmul.f32 %v7251_v30, %v4114_v9  ;;  %vm4118_vm2 = vweird.f32 %v7251_v30  ;;  %vm12036_vm13 = vcmp.eq.f32.partialorder %v4121_v50, 8.507059e+37  ;;  %v15880_v9 = vld [vmem:[#allocation32_spill] sm:$0xff] }
 0x7e5   :  { %15877 = vst [vmem:[#allocation176_spill] sm:$0xff] %v12027_v19  ;;  %5370 = vmatpush.xpose.msrb.mxu0 %v4726_v42  ;;  %v12029_v28 = vpop.xlane.xlu2 %3056  ;;  %7262 = vrcp.f32 %v11992_v6  ;;  %v4124_v52 = vor.u32 1.1754944e-38, %v4123_v7  ;;  %v4111_v4 = vmul.f32 %v4110_v2, %v15880_v9  ;;  %vm4119_vm4 = vmor %vm4117_vm3, %vm4118_vm2  ;;  %vm3907_vm5 = vweird.f32 %v11972_v34  ;;  %v358_v10 = vld [vmem:[#allocation5 + $0x160] sm:$0xff] }
 0x7e6   :  { %v12032_v63 = vpop.eup %7252  ;;  %v2865_v36 = vpop.xlane.xlu1 %2864  ;;  %v4116_v53 = vadd.f32 %v7251_v30, %v4115_v61  ;;  %v3911_v7 = vand.u32 2147483647, %v11972_v34  ;;  %v3913_v5 = vand.u32 2147483648, %v11972_v34  ;;  %v4093_v55 = vand.u32 2147483648, %v11970_v47 }
 0x7e7   :  { %v12040_v62 = vpop.eup %7254  ;;  %v4083_v31 = vmul.f32 %v12032_v63, %v11970_v47  ;;  %v12044_v12 = vadd.f32 1e-06, %v2865_v36  ;;  %2990 = vadd.xlane.f32.xlu0 %v15881_v20  ;;  %v4091_v20 = vand.u32 2147483647, %v11970_v47  ;;  %vm4088_vm6 = vweird.f32 %v12032_v63 }
 0x7e8   :  { %v12047_v42 = vpop.eup %7256  ;;  %v4698_v50 = vmul.f32 %v12040_v62, %v11981_v41  ;;  %v4120_v9 = vsel %vm4119_vm4, %v7251_v30, %v4116_v53  ;;  %vm4087_vm7 = vweird.f32 %v11970_v47  ;;  %vm4703_vm8 = vweird.f32 %v12040_v62  ;;  %v15895_v47 = vld [vmem:[#allocation159_spill] sm:$0xff] }
 0x7e9   :  { %v12056_v36 = vpop.eup %7258  ;;  %v4084_v61 = vsub.f32 1.0, %v4083_v31  ;;  %v3903_v2 = vmul.f32 %v12047_v42, %v11972_v34  ;;  %7264 = vrcp.f32 %v12044_v12  ;;  %v4125_v59 = vsel %vm12036_vm13, %v4124_v52, %v4120_v9  ;;  %v15883_v31 = vld [vmem:[#allocation153_spill] sm:$0xff]  ;;  %738 = vmatmul.f32.gmra.mxu0 %v354_v23  ;;  %vm4089_vm11 = vmor %vm4087_vm7, %vm4088_vm6 }
 0x7ea   :  { %v12061_v38 = vpop.eup %7260  ;;  %v4699_v3 = vsub.f32 1.0, %v4698_v50  ;;  %3020 = vadd.xlane.f32.xlu1 %v15882_v51  ;;  %v4126_v1 = vmul.f32 %v4125_v59, %v15883_v31  ;;  %v4708_v52 = vand.u32 2147483648, %v11981_v41  ;;  %vm3908_vm9 = vweird.f32 %v12047_v42 }
 0x7eb   :  { %v3904_v46 = vsub.f32 1.0, %v3903_v2  ;;  %v4085_v26 = vmul.f32 %v12032_v63, %v4084_v61  ;;  %v12071_v30 = vpop.eup %7262  ;;  %v4706_v23 = vand.u32 2147483647, %v11981_v41  ;;  %v715_v2 = vpop.f32.mrf.mxu0  ;;  %vm12081_vm10 = vcmp.eq.f32.partialorder %v3911_v7, 8.507059e+37  ;;  %vm3909_vm0 = vmor %vm3907_vm5, %vm3908_vm9 }
 0x7ec   :  { %15884 = vst [vmem:[#allocation77_spill] sm:$0xff] %v12071_v30  ;;  %v4700_v33 = vmul.f32 %v12040_v62, %v4699_v3  ;;  %5332 = vmatpush.xpose.msra.mxu2 %v4126_v1  ;;  %v4094_v3 = vor.u32 1.1754944e-38, %v4093_v55  ;;  %vm4702_vm12 = vweird.f32 %v11981_v41  ;;  %vm4092_vm14 = vcmp.eq.f32.partialorder %v4091_v20, 8.507059e+37  ;;  %v15889_v55 = vld [vmem:[#allocation101_spill] sm:$0xff] }
 0x7ed   :  { %v2999_v53 = vpop.xlane.xlu2 %2998  ;;  %v3905_v50 = vmul.f32 %v12047_v42, %v3904_v46  ;;  %v4086_v59 = vadd.f32 %v12032_v63, %v4085_v26  ;;  %v3914_v26 = vor.u32 1.1754944e-38, %v3913_v5  ;;  %vm12093_vm15 = vmor %vm4702_vm12, %vm4703_vm8  ;;  %v4709_v20 = vor.u32 1.1754944e-38, %v4708_v52  ;;  %v15892_v52 = vld [vmem:[#allocation126_spill] sm:$0xff] }
 0x7ee   :  { %v2969_v61 = vpop.xlane.xlu1 %2968  ;;  %v4701_v1 = vadd.f32 %v12040_v62, %v4700_v33  ;;  %v525_v33 = vpop.permute.xlu0 %524  ;;  %v12106_v5 = vadd.f32 1e-06, %v2999_v53  ;;  %vm4707_vm1 = vcmp.eq.f32.partialorder %v4706_v23, 8.507059e+37  ;;  %v15893_v53 = vld [vmem:[#allocation58_spill] sm:$0xff]  ;;  %v3671_v23 = vand.u32 2147483647, %v12044_v12 }
 0x7ef   :  { %v7265_v46 = vpop.eup %7264  ;;  %v3906_v9 = vadd.f32 %v12047_v42, %v3905_v50  ;;  %v4090_v31 = vsel %vm4089_vm11, %v12032_v63, %v4086_v59  ;;  %2956 = vadd.xlane.f32.xlu0 %v15889_v55  ;;  %v716_v50 = vadd.f32 %v715_v2, %v525_v33  ;;  %vm4988_vm3 = vweird.f32 %v15861_v58  ;;  %v197_v33 = vld [vmem:[%s14518_s8 + $0x130] sm:$0xff] }
 0x7f0   :  { %v3663_v51 = vmul.f32 %v7265_v46, %v12044_v12  ;;  %v4095_v41 = vsel %vm4092_vm14, %v4094_v3, %v4090_v31  ;;  %v4705_v63 = vsel %vm12093_vm15, %v12040_v62, %v4701_v1  ;;  %5333 = vmatpush.xpose.msra.mxu2 %v4111_v4  ;;  %v355_v3 = vld [vmem:[#allocation5 + $0x148] sm:$0xff]  ;;  %v12113_v31 = vadd.f32 1e-06, %v12029_v28 }
 0x7f1   :  { %v3910_v59 = vsel %vm3909_vm0, %v12047_v42, %v3906_v9  ;;  %v4096_v34 = vmul.f32 %v4095_v41, %v15890_v22  ;;  %v4710_v29 = vsel %vm4707_vm1, %v4709_v20, %v4705_v63  ;;  %v15891_v62 = vld [vmem:[#allocation100_spill] sm:$0xff]  ;;  %5268 = vmatmul.f32.vlgmr.msra.gmra.mxu3 %v716_v50  ;;  %v3673_v42 = vand.u32 2147483648, %v12044_v12  ;;  %741 = vmatmul.f32.gmra.mxu0 %v355_v3 }
 0x7f2   :  { %v3664_v55 = vsub.f32 1.0, %v3663_v51  ;;  %v3915_v37 = vsel %vm12081_vm10, %v3914_v26, %v3910_v59  ;;  %3046 = vadd.xlane.f32.xlu1 %v15891_v62  ;;  %v4711_v2 = vmul.f32 %v4710_v29, %v15893_v53  ;;  %vm3668_vm2 = vweird.f32 %v7265_v46 }
 0x7f3   :  { %v3916_v4 = vmul.f32 %v3915_v37, %v15892_v52  ;;  %v12123_v22 = vmul.f32 %v12056_v36, %v11959_v35  ;;  %7266 = vrcp.f32 %v12106_v5  ;;  %v15894_v29 = vsub.f32 1.0, %v11554_v39 }
 0x7f4   :  { %v3665_v51 = vmul.f32 %v7265_v46, %v3664_v55  ;;  %5334 = vmatpush.xpose.msra.mxu2 %v4096_v34  ;;  %v4993_v1 = vand.u32 2147483648, %v15895_v47  ;;  %7268 = vrcp.f32 %v12027_v19  ;;  %5371 = vmatpush.xpose.msrb.mxu0 %v4711_v2  ;;  %vm3667_vm13 = vweird.f32 %v12044_v12  ;;  %v15897_v12 = vld [vmem:[#allocation85_spill] sm:$0xff] }
 0x7f5   :  { %5307 = vmatpush.xpose.msrb.mxu1 %v3916_v4  ;;  %v2861_v37 = vpop.xlane.xlu2 %2860  ;;  %v5165_v28 = vmul.f32 %v11529_v54, %v15894_v29  ;;  %v12136_v55 = vmul.f32 %v12061_v38, %v11968_v21  ;;  %7270 = vrcp.f32 %v12113_v31  ;;  %vm3669_vm4 = vmor %vm3667_vm13, %vm3668_vm2  ;;  %v3674_v41 = vor.u32 1.1754944e-38, %v3673_v42  ;;  %v356_v4 = vld [vmem:[#allocation5 + $0x150] sm:$0xff] }
 0x7f6   :  { %v12131_v9 = vadd.f32 1e-06, %v2861_v37  ;;  %v2895_v26 = vpop.xlane.xlu1 %2894  ;;  %v3666_v7 = vadd.f32 %v7265_v46, %v3665_v51  ;;  %v12145_v63 = vadd.f32 1e-06, %v2969_v61  ;;  %vm3672_vm5 = vcmp.eq.f32.partialorder %v3671_v23, 8.507059e+37  ;;  %v15898_v61 = vld [vmem:[#allocation117_spill] sm:$0xff] }
 0x7f7   :  { %v12139_v39 = vadd.f32 1e-06, %v2895_v26  ;;  %3018 = vadd.xlane.f32.xlu0 %v15897_v12  ;;  %v5166_v59 = vadd.f32 %v11529_v54, %v5165_v28  ;;  %vm5168_vm6 = vweird.f32 %v11529_v54  ;;  %vm4987_vm7 = vweird.f32 %v15895_v47  ;;  %v15900_v2 = vld [vmem:[#allocation33_spill] sm:$0xff]  ;;  %v15916_v37 = vld [vmem:[#allocation194_spill] sm:$0xff]  ;;  %v15920_v23 = vld [vmem:[#allocation115_spill] sm:$0xff] }
 0x7f8   :  { %15896 = vst [vmem:[#allocation70_spill] sm:$0xff] %v12145_v63  ;;  %7272 = vrcp.f32 %v12131_v9  ;;  %v3670_v20 = vsel %vm3669_vm4, %v7265_v46, %v3666_v7  ;;  %v15899_v46 = vld [vmem:[#allocation198_spill] sm:$0xff]  ;;  %v12161_v42 = vmul.f32 %v12023_v15, %v15900_v2  ;;  %vm5167_vm8 = vweird.f32 %v11428_v27  ;;  %vm12172_vm10 = vmor %vm4987_vm7, %vm4988_vm3  ;;  %v15918_v34 = vld [vmem:[#allocation189_spill] sm:$0xff] }
 0x7f9   :  { %7274 = vrcp.f32 %v12139_v39  ;;  %v3675_v50 = vsel %vm3672_vm5, %v3674_v41, %v3670_v20  ;;  %554 = vperm.xlu2 %6831, %v197_v33   ;;  %v12156_v53 = vpop.eup %7266  ;;  %v15901_v51 = vand.u32 2147483647, %v11428_v27  ;;  %v4991_v29 = vand.u32 2147483647, %v15895_v47  ;;  %744 = vmatmul.f32.gmra.mxu0 %v356_v4  ;;  %vm12187_vm11 = vmor %vm5167_vm8, %vm5168_vm6  ;;  %v15912_v20 = vld [vmem:[#allocation118_spill] sm:$0xff] }
 0x7fa   :  { %v3676_v52 = vmul.f32 %v3675_v50, %v15898_v61  ;;  %2954 = vadd.xlane.f32.xlu1 %v15899_v46  ;;  %v12177_v28 = vpop.eup %7268  ;;  %v12182_v26 = vmul.f32 %v12071_v30, %v11992_v6  ;;  %7276 = vrcp.f32 %v12145_v63  ;;  %v15910_v47 = vand.u32 2147483648, %v11428_v27 }
 0x7fb   :  { %vm12166_vm9 = vcmp.eq.f32.partialorder %v15901_v51, 8.507059e+37  ;;  %15906 = vst [vmem:[#allocation147_spill] sm:$0xff] %v12177_v28  ;;  %v12193_v41 = vpop.eup %7270  ;;  %v5170_v61 = vsel %vm12187_vm11, %v11529_v54, %v5166_v59  ;;  %v4994_v4 = vor.u32 1.1754944e-38, %v4993_v1  ;;  %v4668_v27 = vmul.f32 %v12156_v53, %v12106_v5  ;;  %v15914_v54 = vld [vmem:[#allocation134_spill] sm:$0xff] }
 0x7fc   :  { %15907 = vst [vmem:[#allocation175_spill] sm:$0xff] %v12182_v26  ;;  %5284 = vmatpush.xpose.msrb.mxu3 %v3676_v52  ;;  %v5174_v33 = vor.u32 1.1754944e-38, %v15910_v47  ;;  %v4990_v52 = vsel %vm12172_vm10, %v15861_v58, %v11975_v13  ;;  %v15911_v47 = vld [vmem:[#allocation43_spill] sm:$0xff]  ;;  %v12213_v7 = vadd.f32 %v15854_v43, %v15912_v20  ;;  %v12217_v59 = vadd.f32 %v15813_v60, %v15914_v54  ;;  %v15922_v54 = vld [vmem:[#allocation78_spill] sm:$0xff] }
 0x7fd   :  { %v2965_v50 = vpop.xlane.xlu2 %2964  ;;  %v12209_v3 = vadd.f32 %v11095_v32, %v15911_v47  ;;  %vm4992_vm12 = vcmp.eq.f32.partialorder %v4991_v29, 8.507059e+37  ;;  %v12225_v15 = vadd.f32 %v15768_v14, %v15916_v37  ;;  %v12230_v43 = vmul.f32 %v12177_v28, %v12027_v19  ;;  %v357_v47 = vld [vmem:[#allocation5 + $0x158] sm:$0xff]  ;;  %v15928_v19 = vld [vmem:[#allocation65_spill] sm:$0xff] }
 0x7fe   :  { %v12203_v2 = vpop.eup %7272  ;;  %v2863_v51 = vpop.xlane.xlu1 %2862  ;;  %15913 = vst [vmem:[#allocation47_spill] sm:$0xff] %v12213_v7  ;;  %v12236_v46 = vsel %vm12166_vm9, %v5174_v33, %v5170_v61  ;;  %v12240_v29 = vmul.f32 %v12193_v41, %v12113_v31  ;;  %v4678_v14 = vand.u32 2147483648, %v12106_v5  ;;  %v4669_v62 = vsub.f32 1.0, %v4668_v27 }
 0x7ff   :  { %15915 = vst [vmem:[#allocation39_spill] sm:$0xff] %v12217_v59  ;;  %v7275_v13 = vpop.eup %7274  ;;  %v3633_v58 = vmul.f32 %v12203_v2, %v12131_v9  ;;  %v12221_v1 = vadd.f32 1e-06, %v2863_v51  ;;  %2986 = vadd.xlane.f32.xlu0 %v15918_v34  ;;  %v12244_v51 = vsel %vm4992_vm12, %v4994_v4, %v4990_v52  ;;  %v4676_v34 = vand.u32 2147483647, %v12106_v5 }
 0x800   :  { %15917 = vst [vmem:[#allocation82_spill] sm:$0xff] %v12225_v15  ;;  %v3888_v60 = vmul.f32 %v7275_v13, %v12139_v39  ;;  %v12246_v32 = vpop.eup %7276  ;;  %vm4522_vm14 = vweird.f32 %v15920_v23  ;;  %v12250_v61 = vadd.f32 1e-06, %v2965_v50  ;;  %v3898_v20 = vand.u32 2147483648, %v12139_v39  ;;  %v15923_v15 = vld [vmem:[#allocation202_spill] sm:$0xff] }
 0x801   :  { %7278 = vrcp.f32 %v12221_v1  ;;  %15919 = vst [vmem:[#allocation180_spill] sm:$0xff] %v12246_v32  ;;  %v3634_v33 = vsub.f32 1.0, %v3633_v58  ;;  %vm4523_vm15 = vweird.f32 %v15923_v15  ;;  %vm3893_vm0 = vweird.f32 %v7275_v13  ;;  %747 = vmatmul.f32.gmra.mxu0 %v357_v47 }
 0x802   :  { %v3889_v12 = vsub.f32 1.0, %v3888_v60  ;;  %15921 = vst [vmem:[#allocation98_spill] sm:$0xff] %v12250_v61  ;;  %3016 = vadd.xlane.f32.xlu1 %v15922_v54  ;;  %v3896_v4 = vand.u32 2147483647, %v12139_v39  ;;  %vm4672_vm1 = vweird.f32 %v12106_v5  ;;  %v4526_v27 = vand.u32 2147483647, %v15920_v23  ;;  %vm12295_vm7 = vmor %vm4522_vm14, %vm4523_vm15 }
 0x803   :  { %v12260_v58 = vmul.f32 %v12246_v32, %v12145_v63  ;;  %vm4673_vm2 = vweird.f32 %v12156_v53  ;;  %v12263_v60 = vor.u32 1.1754944e-38, %v4678_v14  ;;  %v15924_v54 = vld [vmem:[#allocation71_spill] sm:$0xff]  ;;  %vm3892_vm3 = vweird.f32 %v12139_v39 }
 0x804   :  { %v3890_v52 = vmul.f32 %v7275_v13, %v3889_v12  ;;  %v12267_v12 = vadd.f32 %v15923_v15, %v15924_v54  ;;  %v4670_v6 = vmul.f32 %v12156_v53, %v4669_v62  ;;  %7280 = vrcp.f32 %v12250_v61  ;;  %vm3894_vm13 = vmor %vm3892_vm3, %vm3893_vm0 }
 0x805   :  { %v2997_v50 = vpop.xlane.xlu2 %2996  ;;  %v3899_v63 = vor.u32 1.1754944e-38, %v3898_v20  ;;  %v3635_v14 = vmul.f32 %v12203_v2, %v3634_v33  ;;  %v3641_v32 = vand.u32 2147483647, %v12131_v9  ;;  %vm3897_vm4 = vcmp.eq.f32.partialorder %v3896_v4, 8.507059e+37  ;;  %vm12319_vm12 = vmor %vm4672_vm1, %vm4673_vm2 }
 0x806   :  { %v12269_v59 = vadd.f32 1e-06, %v2997_v50  ;;  %v2967_v47 = vpop.xlane.xlu1 %2966  ;;  %v3891_v7 = vadd.f32 %v7275_v13, %v3890_v52  ;;  %vm12280_vm5 = vcmp.eq.f32.partialorder %v4676_v34, 8.507059e+37  ;;  %vm3637_vm6 = vweird.f32 %v12131_v9  ;;  %v15931_v34 = vld [vmem:[#allocation69_spill] sm:$0xff] }
 0x807   :  { %v7279_v30 = vpop.eup %7278  ;;  %2984 = vadd.xlane.f32.xlu0 %v11442_v25  ;;  %v3643_v20 = vand.u32 2147483648, %v12131_v9  ;;  %v4528_v33 = vand.u32 2147483648, %v15920_v23  ;;  %v12287_v26 = vadd.f32 1e-06, %v2967_v47  ;;  %v3636_v4 = vadd.f32 %v12203_v2, %v3635_v14  ;;  %v360_v47 = vld [vmem:[#allocation5 + $0x170] sm:$0xff] }
 0x808   :  { %v3648_v54 = vmul.f32 %v7279_v30, %v12221_v1  ;;  %7282 = vrcp.f32 %v12269_v59  ;;  %v3895_v52 = vsel %vm3894_vm13, %v7275_v13, %v3891_v7  ;;  %v4671_v7 = vadd.f32 %v12156_v53, %v4670_v6 }
 0x809   :  { %v3900_v39 = vsel %vm3897_vm4, %v3899_v63, %v3895_v52  ;;  %15927 = vst [vmem:[#allocation155_spill] sm:$0xff] %v12287_v26  ;;  %v3658_v13 = vand.u32 2147483648, %v12221_v1  ;;  %vm3638_vm8 = vweird.f32 %v12203_v2  ;;  %v4525_v6 = vsel %vm12295_vm7, %v15923_v15, %v12267_v12  ;;  %750 = vmatmul.f32.gmra.mxu0 %v358_v10 }
 0x80a   :  { %v3649_v50 = vsub.f32 1.0, %v3648_v54  ;;  %v3901_v28 = vmul.f32 %v3900_v39, %v15928_v19  ;;  %3014 = vadd.xlane.f32.xlu1 %v15931_v34  ;;  %vm3653_vm9 = vweird.f32 %v7279_v30  ;;  %v3656_v23 = vand.u32 2147483647, %v12221_v1  ;;  %v12312_v54 = vpop.eup %7280  ;;  %vm12336_vm15 = vmor %vm3637_vm6, %vm3638_vm8 }
 0x80b   :  { %vm12308_vm10 = vcmp.eq.f32.partialorder %v3641_v32, 8.507059e+37  ;;  %15934 = vst [vmem:[#allocation110_spill] sm:$0xff] %v12312_v54  ;;  %vm3652_vm11 = vweird.f32 %v12221_v1  ;;  %v3644_v52 = vor.u32 1.1754944e-38, %v3643_v20  ;;  %vm12323_vm14 = vcmp.eq.f32.partialorder %v4526_v27, 8.507059e+37 }
 0x80c   :  { %5308 = vmatpush.xpose.msrb.mxu1 %v3901_v28  ;;  %v3650_v19 = vmul.f32 %v7279_v30, %v3649_v50  ;;  %v4529_v32 = vor.u32 1.1754944e-38, %v4528_v33  ;;  %7284 = vrcp.f32 %v12287_v26  ;;  %v4675_v27 = vsel %vm12319_vm12, %v12156_v53, %v4671_v7  ;;  %vm3654_vm0 = vmor %vm3652_vm11, %vm3653_vm9  ;;  %v15955_v28 = vld [vmem:[#allocation81_spill] sm:$0xff] }
 0x80d   :  { %v2917_v14 = vpop.xlane.xlu2 %2916  ;;  %v3659_v50 = vor.u32 1.1754944e-38, %v3658_v13  ;;  %v3640_v9 = vsel %vm12336_vm15, %v12203_v2, %v3636_v4  ;;  %vm3657_vm1 = vcmp.eq.f32.partialorder %v3656_v23, 8.507059e+37  ;;  %v12357_v7 = vmul.f32 %v12312_v54, %v12250_v61  ;;  %v359_v23 = vld [vmem:[#allocation5 + $0x168] sm:$0xff] }
 0x80e   :  { %v12327_v10 = vpop.eup %7282  ;;  %v12330_v12 = vadd.f32 1e-06, %v2917_v14  ;;  %v2893_v1 = vpop.xlane.xlu1 %2892  ;;  %v3651_v39 = vadd.f32 %v7279_v30, %v3650_v19  ;;  %v4530_v53 = vsel %vm12323_vm14, %v4529_v32, %v4525_v6  ;;  %v4680_v2 = vsel %vm12280_vm5, %v12263_v60, %v4675_v27  ;;  %v15942_v19 = vld [vmem:[#allocation139_spill] sm:$0xff]  ;;  %v15943_v32 = vld [vmem:[#allocation145_spill] sm:$0xff]  ;;  %v15947_v27 = vld [vmem:[#allocation144_spill] sm:$0xff] }
 0x80f   :  { %v4653_v20 = vmul.f32 %v12327_v10, %v12269_v59  ;;  %v12345_v33 = vadd.f32 1e-06, %v2893_v1  ;;  %2950 = vadd.xlane.f32.xlu0 %v11597_v56  ;;  %15941 = vst [vmem:[#allocation181_spill] sm:$0xff] %v12357_v7  ;;  %v4661_v6 = vand.u32 2147483647, %v12269_v59  ;;  %v12372_v1 = vmul.f32 %v12236_v46, %v15943_v32  ;;  %v15944_v60 = vld [vmem:[#allocation57_spill] sm:$0xff] }
 0x810   :  { %7286 = vrcp.f32 %v12330_v12  ;;  %v3655_v63 = vsel %vm3654_vm0, %v7279_v30, %v3651_v39  ;;  %v3645_v30 = vsel %vm12308_vm10, %v3644_v52, %v3640_v9  ;;  %v12376_v62 = vmul.f32 %v12244_v51, %v15944_v60  ;;  %v15946_v52 = vld [vmem:[#allocation125_spill] sm:$0xff] }
 0x811   :  { %7288 = vrcp.f32 %v12345_v33  ;;  %v3660_v13 = vsel %vm3657_vm1, %v3659_v50, %v3655_v63  ;;  %v4654_v15 = vsub.f32 1.0, %v4653_v20  ;;  %753 = vmatmul.f32.gmra.mxu0 %v359_v23  ;;  %v12382_v5 = vmul.f32 %v4680_v2, %v15946_v52  ;;  %v15948_v20 = vld [vmem:[#allocation196_spill] sm:$0xff]  ;;  %v15953_v32 = vld [vmem:[#allocation185_spill] sm:$0xff] }
 0x812   :  { %v3661_v14 = vmul.f32 %v3660_v13, %v15942_v19  ;;  %2982 = vadd.xlane.f32.xlu1 %v11446_v17  ;;  %v12378_v39 = vpop.eup %7284  ;;  %v12385_v50 = vmul.f32 %v4530_v53, %v15947_v27  ;;  %v12389_v46 = vadd.f32 %v15796_v49, %v15948_v20  ;;  %v15950_v63 = vld [vmem:[#allocation92_spill] sm:$0xff]  ;;  %vm4657_vm2 = vweird.f32 %v12269_v59 }
 0x813   :  { %15945 = vst [vmem:[#allocation177_spill] sm:$0xff] %v12378_v39  ;;  %v3646_v13 = vmul.f32 %v3645_v30, %v15950_v63  ;;  %v4655_v19 = vmul.f32 %v12327_v10, %v4654_v15  ;;  %vm12399_vm3 = vcmp.eq.f32.partialorder %v4661_v6, 8.507059e+37  ;;  %v4663_v49 = vand.u32 2147483648, %v12269_v59 }
 0x814   :  { %5285 = vmatpush.xpose.msrb.mxu3 %v3661_v14  ;;  %15949 = vst [vmem:[#allocation36_spill] sm:$0xff] %v12389_v46  ;;  %v12406_v60 = vadd.f32 %v15953_v32, %v15916_v37  ;;  %v12410_v15 = vmul.f32 %v12378_v39, %v12287_v26  ;;  %v3881_v6 = vand.u32 2147483647, %v12345_v33  ;;  %vm4658_vm13 = vweird.f32 %v12327_v10 }
 0x815   :  { %v2889_v51 = vpop.xlane.xlu2 %2888  ;;  %v4656_v37 = vadd.f32 %v12327_v10, %v4655_v19  ;;  %v3883_v32 = vand.u32 2147483648, %v12345_v33  ;;  %vm4057_vm4 = vweird.f32 %v12330_v12  ;;  %v4664_v4 = vor.u32 1.1754944e-38, %v4663_v49  ;;  %vm12441_vm7 = vmor %vm4657_vm2, %vm4658_vm13 }
 0x816   :  { %v12395_v14 = vpop.eup %7286  ;;  %v12397_v2 = vadd.f32 1e-06, %v2889_v51  ;;  %v3029_v23 = vpop.xlane.xlu1 %3028  ;;  %15954 = vst [vmem:[#allocation67_spill] sm:$0xff] %v12406_v60  ;;  %vm3877_vm5 = vweird.f32 %v12345_v33  ;;  %vm12432_vm6 = vcmp.eq.f32.partialorder %v3881_v6, 8.507059e+37  ;;  %v4063_v59 = vand.u32 2147483648, %v12330_v12 }
 0x817   :  { %v7289_v30 = vpop.eup %7288  ;;  %v4053_v52 = vmul.f32 %v12395_v14, %v12330_v12  ;;  %v12414_v27 = vadd.f32 1e-06, %v3029_v23  ;;  %3012 = vadd.xlane.f32.xlu0 %v11665_v0  ;;  %v4061_v23 = vand.u32 2147483647, %v12330_v12  ;;  %v3001_v0 = vpop.xlane.xlu0 %3000  ;;  %v4660_v6 = vsel %vm12441_vm7, %v12327_v10, %v4656_v37 }
 0x818   :  { %v3873_v51 = vmul.f32 %v7289_v30, %v12345_v33  ;;  %7290 = vrcp.f32 %v12397_v2  ;;  %5286 = vmatpush.xpose.msrb.mxu3 %v3646_v13  ;;  %v12428_v13 = vadd.f32 %v15843_v48, %v15955_v28  ;;  %v12445_v48 = vadd.f32 1e-06, %v3001_v0  ;;  %v15963_v33 = vld [vmem:[#allocation94_spill] sm:$0xff] }
 0x819   :  { %v4054_v63 = vsub.f32 1.0, %v4053_v52  ;;  %7292 = vrcp.f32 %v12414_v27  ;;  %vm3878_vm8 = vweird.f32 %v7289_v30  ;;  %756 = vmatmul.f32.gmra.mxu0 %v360_v47  ;;  %v3884_v56 = vor.u32 1.1754944e-38, %v3883_v32 }
 0x81a   :  { %v3874_v9 = vsub.f32 1.0, %v3873_v51  ;;  %15956 = vst [vmem:[#allocation121_spill] sm:$0xff] %v12428_v13  ;;  %vm4058_vm9 = vweird.f32 %v12395_v14  ;;  %vm12451_vm10 = vcmp.eq.f32.partialorder %v4061_v23, 8.507059e+37  ;;  %7294 = vrcp.f32 %v12445_v48  ;;  %vm3879_vm11 = vmor %vm3877_vm5, %vm3878_vm8 }
 0x81b   :  { %v4055_v17 = vmul.f32 %v12395_v14, %v4054_v63  ;;  %v3851_v10 = vand.u32 2147483647, %v12397_v2  ;;  %v4691_v25 = vand.u32 2147483647, %v12445_v48  ;;  %v3853_v28 = vand.u32 2147483648, %v12397_v2  ;;  %vm12490_vm12 = vmor %vm4057_vm4, %vm4058_vm9 }
 0x81c   :  { %v3875_v51 = vmul.f32 %v7289_v30, %v3874_v9  ;;  %vm3847_vm14 = vweird.f32 %v12397_v2  ;;  %vm4687_vm0 = vweird.f32 %v12445_v48 }
 0x81d   :  { %v2857_v19 = vpop.xlane.xlu2 %2856  ;;  %v4056_v49 = vadd.f32 %v12395_v14, %v4055_v17  ;;  %vm12504_vm15 = vcmp.eq.f32.partialorder %v3851_v10, 8.507059e+37  ;;  %vm12514_vm2 = vcmp.eq.f32.partialorder %v4691_v25, 8.507059e+37 }
 0x81e   :  { %v12456_v34 = vpop.eup %7290  ;;  %v12459_v0 = vadd.f32 1e-06, %v2857_v19  ;;  %v2919_v47 = vpop.xlane.xlu1 %2918  ;;  %v3876_v9 = vadd.f32 %v7289_v30, %v3875_v51  ;;  %v4665_v19 = vsel %vm12399_vm3, %v4664_v4, %v4660_v6  ;;  %v15966_v6 = vld [vmem:[#allocation161_spill] sm:$0xff] }
 0x81f   :  { %v12462_v37 = vpop.eup %7292  ;;  %v3843_v32 = vmul.f32 %v12456_v34, %v12397_v2  ;;  %v12466_v23 = vadd.f32 1e-06, %v2919_v47  ;;  %2948 = vadd.xlane.f32.xlu0 %v11780_v57  ;;  %v3055_v52 = vpop.xlane.xlu0 %3054  ;;  %vm3848_vm1 = vweird.f32 %v12456_v34 }
 0x820   :  { %7296 = vrcp.f32 %v12459_v0  ;;  %v3880_v51 = vsel %vm3879_vm11, %v7289_v30, %v3876_v9  ;;  %v12480_v20 = vmul.f32 %v12462_v37, %v12414_v27  ;;  %v4064_v30 = vor.u32 1.1754944e-38, %v4063_v59  ;;  %v7295_v59 = vpop.eup %7294  ;;  %vm3849_vm3 = vmor %vm3847_vm14, %vm3848_vm1 }
 0x821   :  { %v3844_v47 = vsub.f32 1.0, %v3843_v32  ;;  %7298 = vrcp.f32 %v12466_v23  ;;  %v3885_v17 = vsel %vm12432_vm6, %v3884_v56, %v3880_v51  ;;  %v12495_v9 = vmul.f32 %v4665_v19, %v15966_v6 }
 0x822   :  { %v3886_v4 = vmul.f32 %v3885_v17, %v15963_v33  ;;  %2980 = vadd.xlane.f32.xlu2 %v11928_v8  ;;  %v4693_v56 = vand.u32 2147483648, %v12445_v48  ;;  %v4060_v32 = vsel %vm12490_vm12, %v12395_v14, %v4056_v49  ;;  %v12508_v19 = vadd.f32 1e-06, %v3055_v52 }
 0x823   :  { %v3845_v12 = vmul.f32 %v12456_v34, %v3844_v47  ;;  %v3854_v17 = vor.u32 1.1754944e-38, %v3853_v28  ;;  %v4683_v53 = vmul.f32 %v7295_v59, %v12445_v48  ;;  %v4076_v10 = vand.u32 2147483647, %v12466_v23 }
 0x824   :  { %5309 = vmatpush.xpose.msrb.mxu1 %v3886_v4  ;;  %v4078_v47 = vand.u32 2147483648, %v12466_v23  ;;  %7300 = vrcp.f32 %v12508_v19  ;;  %v4065_v52 = vsel %vm12451_vm10, %v4064_v30, %v4060_v32  ;;  %v4694_v46 = vor.u32 1.1754944e-38, %v4693_v56  ;;  %v192_v30 = vld [vmem:[%s14518_s8 + $0x108] sm:$0xff]  ;;  %v15971_v32 = vld [vmem:[#allocation59_spill] sm:$0xff] }
 0x825   :  { %v2887_v14 = vpop.xlane.xlu2 %2886  ;;  %v3846_v33 = vadd.f32 %v12456_v34, %v3845_v12  ;;  %v4684_v60 = vsub.f32 1.0, %v4683_v53  ;;  %vm4072_vm13 = vweird.f32 %v12466_v23  ;;  %vm4688_vm4 = vweird.f32 %v7295_v59 }
 0x826   :  { %v12520_v4 = vpop.eup %7296  ;;  %v12523_v6 = vadd.f32 1e-06, %v2887_v14  ;;  %v2891_v28 = vpop.xlane.xlu1 %2890  ;;  %v12547_v12 = vmul.f32 %v4065_v52, %v15971_v32  ;;  %vm12549_vm5 = vcmp.eq.f32.partialorder %v4076_v10, 8.507059e+37  ;;  %vm4689_vm7 = vmor %vm4687_vm0, %vm4688_vm4 }
 0x827   :  { %v7299_v25 = vpop.eup %7298  ;;  %v12530_v8 = vmul.f32 %v12520_v4, %v12459_v0  ;;  %v12532_v57 = vadd.f32 1e-06, %v2891_v28  ;;  %v3850_v63 = vsel %vm3849_vm3, %v12456_v34, %v3846_v33  ;;  %v4685_v56 = vmul.f32 %v7295_v59, %v4684_v60  ;;  %v361_v33 = vld [vmem:[#allocation5 + $0x178] sm:$0xff]  ;;  %v3027_v54 = vpop.xlane.xlu0 %3026 }
 0x828   :  { %v4068_v14 = vmul.f32 %v7299_v25, %v12466_v23  ;;  %7302 = vrcp.f32 %v12523_v6  ;;  %v4079_v28 = vor.u32 1.1754944e-38, %v4078_v47  ;;  %v3855_v34 = vsel %vm12504_vm15, %v3854_v17, %v3850_v63  ;;  %759 = vmatmul.f32.gmra.mxu0 %v361_v33  ;;  %v15975_v63 = vld [vmem:[#allocation52_spill] sm:$0xff] }
 0x829   :  { %7304 = vrcp.f32 %v12532_v57  ;;  %v3604_v61 = vsub.f32 1.0, %v12530_v8  ;;  %v4686_v7 = vadd.f32 %v7295_v59, %v4685_v56  ;;  %vm4073_vm6 = vweird.f32 %v7299_v25  ;;  %v195_v23 = vld [vmem:[%s14518_s8 + $0x120] sm:$0xff] }
 0x82a   :  { %v4069_v2 = vsub.f32 1.0, %v4068_v14  ;;  %v12557_v52 = vpop.eup %7300  ;;  %v12559_v10 = vadd.f32 1e-06, %v3027_v54  ;;  %v3866_v17 = vand.u32 2147483647, %v12532_v57  ;;  %v3868_v8 = vand.u32 2147483648, %v12532_v57  ;;  %vm4074_vm10 = vmor %vm4072_vm13, %vm4073_vm6 }
 0x82b   :  { %529 = vperm.xlu1 %6830, %v192_v30   ;;  %v4690_v14 = vsel %vm4689_vm7, %v7295_v59, %v4686_v7  ;;  %v12567_v56 = vmul.f32 %v3855_v34, %v15975_v63  ;;  %vm3832_vm8 = vweird.f32 %v12523_v6  ;;  %v3836_v30 = vand.u32 2147483647, %v12523_v6 }
 0x82c   :  { %15974 = vst [vmem:[#allocation88_spill] sm:$0xff] %v12559_v10  ;;  %v4070_v51 = vmul.f32 %v7299_v25, %v4069_v2  ;;  %7306 = vrcp.f32 %v12559_v10  ;;  %v4695_v2 = vsel %vm12514_vm2, %v4694_v46, %v4690_v14  ;;  %vm3862_vm9 = vweird.f32 %v12532_v57 }
 0x82d   :  { %v2855_v47 = vpop.xlane.xlu2 %2854  ;;  %v12583_v59 = vmul.f32 %v12557_v52, %v12508_v19  ;;  %vm12596_vm11 = vcmp.eq.f32.partialorder %v3866_v17, 8.507059e+37  ;;  %v3869_v14 = vor.u32 1.1754944e-38, %v3868_v8  ;;  %v198_v8 = vld [vmem:[%s14518_s8 + $0x138] sm:$0xff]  ;;  %vm12612_vm12 = vcmp.eq.f32.partialorder %v3836_v30, 8.507059e+37 }
 0x82e   :  { %v12571_v54 = vpop.eup %7302  ;;  %v12574_v48 = vadd.f32 1e-06, %v2855_v47  ;;  %v2859_v32 = vpop.xlane.xlu1 %2858  ;;  %v4071_v33 = vadd.f32 %v7299_v25, %v4070_v51  ;;  %v15976_v47 = vld [vmem:[#allocation84_spill] sm:$0xff]  ;;  %vm3607_vm3 = vweird.f32 %v12459_v0  ;;  %vm3608_vm4 = vweird.f32 %v12520_v4  ;;  %v16015_v51 = vld [vmem:[#allocation111_spill] sm:$0xff] }
 0x82f   :  { %v12579_v7 = vpop.eup %7304  ;;  %v3828_v34 = vmul.f32 %v12571_v54, %v12523_v6  ;;  %v12587_v63 = vadd.f32 1e-06, %v2859_v32  ;;  %v4696_v60 = vmul.f32 %v4695_v2, %v15976_v47  ;;  %v3838_v2 = vand.u32 2147483648, %v12523_v6  ;;  %v2963_v26 = vpop.xlane.xlu0 %2962  ;;  %vm12709_vm6 = vmor %vm3607_vm3, %vm3608_vm4 }
 0x830   :  { %v3858_v46 = vmul.f32 %v12579_v7, %v12532_v57  ;;  %7308 = vrcp.f32 %v12574_v48  ;;  %v4075_v49 = vsel %vm4074_vm10, %v7299_v25, %v4071_v33  ;;  %v15979_v25 = vld [vmem:[#allocation192_spill] sm:$0xff]  ;;  %vm3833_vm14 = vweird.f32 %v12571_v54 }
 0x831   :  { %v3829_v13 = vsub.f32 1.0, %v3828_v34  ;;  %7310 = vrcp.f32 %v12587_v63  ;;  %5372 = vmatpush.xpose.msrb.mxu0 %v4696_v60  ;;  %v4080_v32 = vsel %vm12549_vm5, %v4079_v28, %v4075_v49  ;;  %v3628_v33 = vand.u32 2147483648, %v12587_v63  ;;  %vm12648_vm1 = vmor %vm3832_vm8, %vm3833_vm14  ;;  %v199_v57 = vld [vmem:[%s14518_s8 + $0x140] sm:$0xff] }
 0x832   :  { %v3859_v47 = vsub.f32 1.0, %v3858_v46  ;;  %v4081_v17 = vmul.f32 %v4080_v32, %v15979_v25  ;;  %v3605_v28 = vmul.f32 %v12520_v4, %v3604_v61  ;;  %v12620_v46 = vpop.eup %7306  ;;  %v12622_v49 = vadd.f32 1e-06, %v2963_v26 }
 0x833   :  { %v3830_v53 = vmul.f32 %v12571_v54, %v3829_v13  ;;  %544 = vperm.xlu1 %6830, %v195_v23   ;;  %vm3863_vm15 = vweird.f32 %v12579_v7  ;;  %v3626_v32 = vand.u32 2147483647, %v12587_v63  ;;  %v12629_v25 = vmul.f32 %v12620_v46, %v12559_v10  ;;  %v12631_v13 = vpop.f32.mrf.mxu0  ;;  %559 = vperm.xlu0 %6832, %v198_v8  }
 0x834   :  { %5335 = vmatpush.xpose.msra.mxu2 %v4081_v17  ;;  %v3860_v30 = vmul.f32 %v12579_v7, %v3859_v47  ;;  %15982 = vst [vmem:[#allocation83_spill] sm:$0xff] %v12631_v13  ;;  %v12634_v61 = vor.u32 1.1754944e-38, %v3628_v33  ;;  %v3839_v23 = vor.u32 1.1754944e-38, %v3838_v2  ;;  %7312 = vrcp.f32 %v12622_v49  ;;  %vm12663_vm2 = vmor %vm3862_vm9, %vm3863_vm15 }
 0x835   :  { %v2885_v34 = vpop.xlane.xlu2 %2884  ;;  %5373 = vmatpush.xpose.msrb.mxu0 %v12382_v5  ;;  %v3831_v26 = vadd.f32 %v12571_v54, %v3830_v53  ;;  %vm3622_vm0 = vweird.f32 %v12587_v63  ;;  %v3606_v2 = vadd.f32 %v12520_v4, %v3605_v28  ;;  %vm12681_vm13 = vcmp.eq.f32.partialorder %v3626_v32, 8.507059e+37  ;;  %v15989_v5 = vld [vmem:[#allocation193_spill] sm:$0xff]  ;;  %v15990_v53 = vld [vmem:[#allocation48_spill] sm:$0xff] }
 0x836   :  { %v12637_v47 = vpop.eup %7308  ;;  %v12640_v17 = vadd.f32 1e-06, %v2885_v34  ;;  %v3053_v39 = vpop.xlane.xlu1 %3052  ;;  %v3861_v10 = vadd.f32 %v12579_v7, %v3860_v30  ;;  %v3613_v60 = vand.u32 2147483648, %v12459_v0  ;;  %vm3592_vm14 = vweird.f32 %v12574_v48 }
 0x837   :  { %v12653_v8 = vpop.eup %7310  ;;  %v3588_v33 = vmul.f32 %v12637_v47, %v12574_v48  ;;  %v12657_v34 = vadd.f32 1e-06, %v3053_v39  ;;  %v3835_v6 = vsel %vm12648_vm1, %v12571_v54, %v3831_v26  ;;  %vm3593_vm15 = vweird.f32 %v12637_v47 }
 0x838   :  { %v3618_v28 = vmul.f32 %v12653_v8, %v12587_v63  ;;  %7314 = vrcp.f32 %v12640_v17  ;;  %5336 = vmatpush.xpose.msra.mxu2 %v12547_v12  ;;  %v3865_v39 = vsel %vm12663_vm2, %v12579_v7, %v3861_v10  ;;  %v205_v12 = vld [vmem:[%s14518_s8 + $0x170] sm:$0xff]  ;;  %v3840_v7 = vsel %vm12612_vm12, %v3839_v23, %v3835_v6 }
 0x839   :  { %v3589_v54 = vsub.f32 1.0, %v3588_v33  ;;  %7316 = vrcp.f32 %v12657_v34  ;;  %5374 = vmatpush.xpose.msrb.mxu0 %v12495_v9  ;;  %v3870_v10 = vsel %vm12596_vm11, %v3869_v14, %v3865_v39  ;;  %vm3623_vm5 = vweird.f32 %v12653_v8  ;;  %v2995_v9 = vpop.xlane.xlu0 %2994 }
 0x83a   :  { %v3619_v26 = vsub.f32 1.0, %v3618_v28  ;;  %v3871_v33 = vmul.f32 %v3870_v10, %v15989_v5  ;;  %564 = vperm.xlu2 %6831, %v199_v57   ;;  %v12703_v13 = vmul.f32 %v3840_v7, %v15990_v53  ;;  %v3611_v14 = vand.u32 2147483647, %v12459_v0  ;;  %v12716_v6 = vpop.eup %7312  ;;  %vm3624_vm9 = vmor %vm3622_vm0, %vm3623_vm5 }
 0x83b   :  { %v3821_v23 = vand.u32 2147483647, %v12640_v17  ;;  %594 = vperm.xlu1 %6830, %v205_v12   ;;  %v12718_v28 = vadd.f32 1e-06, %v2995_v9  ;;  %v3610_v39 = vsel %vm12709_vm6, %v12520_v4, %v3606_v2  ;;  %v3823_v10 = vand.u32 2147483648, %v12640_v17  ;;  %vm12788_vm0 = vmor %vm3592_vm14, %vm3593_vm15 }
 0x83c   :  { %5413 = vmatpush.xpose.msrb.mxu2 %v11609_v16  ;;  %v193_v16 = vld [vmem:[%s14518_s8 + $0x110] sm:$0xff]  ;;  %5310 = vmatpush.xpose.msrb.mxu1 %v3871_v33  ;;  %v3620_v57 = vmul.f32 %v12653_v8, %v3619_v26  ;;  %v12727_v7 = vmul.f32 %v12716_v6, %v12622_v49  ;;  %v3614_v12 = vor.u32 1.1754944e-38, %v3613_v60  ;;  %vm3817_vm7 = vweird.f32 %v12640_v17  ;;  %v203_v60 = vld [vmem:[%s14518_s8 + $0x160] sm:$0xff] }
 0x83d   :  { %v2853_v0 = vpop.xlane.xlu2 %2852  ;;  %534 = vperm.xlu0 %6832, %v193_v16   ;;  %v3590_v5 = vmul.f32 %v12637_v47, %v3589_v54  ;;  %7318 = vrcp.f32 %v12718_v28  ;;  %vm3612_vm8 = vcmp.eq.f32.partialorder %v3611_v14, 8.507059e+37  ;;  %v12742_v16 = vpop.f32.mrf.mxu0  ;;  %vm12750_vm10 = vcmp.eq.f32.partialorder %v3821_v23, 8.507059e+37  ;;  %v194_v23 = vld [vmem:[%s14518_s8 + $0x118] sm:$0xff] }
 0x83e   :  { %v12732_v26 = vpop.eup %7314  ;;  %v12735_v4 = vadd.f32 1e-06, %v2853_v0  ;;  %v3025_v2 = vpop.xlane.xlu1 %3024  ;;  %v3621_v33 = vadd.f32 %v12653_v8, %v3620_v57  ;;  %15993 = vst [vmem:[#allocation164_spill] sm:$0xff] %v12742_v16  ;;  %v3615_v54 = vsel %vm3612_vm8, %v3614_v12, %v3610_v39  ;;  %v3824_v14 = vor.u32 1.1754944e-38, %v3823_v10  ;;  %v15996_v10 = vld [vmem:[#allocation151_spill] sm:$0xff] }
 0x83f   :  { %v12738_v9 = vpop.eup %7316  ;;  %v12744_v53 = vadd.f32 1e-06, %v3025_v2  ;;  %vm5152_vm11 = vweird.f32 %v11860_v24  ;;  %v3616_v12 = vmul.f32 %v3615_v54, %v15996_v10  ;;  %vm3818_vm12 = vweird.f32 %v12732_v26 }
 0x840   :  { %5414 = vmatpush.xpose.msrb.mxu2 %v11629_v18  ;;  %v3813_v18 = vmul.f32 %v12732_v26, %v12640_v17  ;;  %v12757_v57 = vmul.f32 %v12738_v9, %v12657_v34  ;;  %7320 = vrcp.f32 %v12735_v4  ;;  %5311 = vmatpush.xpose.msrb.mxu1 %v12567_v56  ;;  %v3625_v0 = vsel %vm3624_vm9, %v12653_v8, %v3621_v33  ;;  %v15997_v56 = vld [vmem:[#allocation130_spill] sm:$0xff]  ;;  %v196_v8 = vld [vmem:[%s14518_s8 + $0x128] sm:$0xff]  ;;  %vm3819_vm3 = vmor %vm3817_vm7, %vm3818_vm12 }
 0x841   :  { %7322 = vrcp.f32 %v12744_v53  ;;  %v3630_v39 = vsel %vm12681_vm13, %v12634_v61, %v3625_v0  ;;  %v2961_v33 = vpop.xlane.xlu0 %2960  ;;  %v3596_v61 = vand.u32 2147483647, %v12574_v48  ;;  %v3598_v30 = vand.u32 2147483648, %v12574_v48  ;;  %v16026_v0 = vld [vmem:[#allocation167_spill] sm:$0xff] }
 0x842   :  { %v3814_v63 = vsub.f32 1.0, %v3813_v18  ;;  %v3631_v2 = vmul.f32 %v3630_v39, %v15997_v56  ;;  %v12786_v39 = vadd.f32 1e-06, %v2961_v33  ;;  %vm5153_vm1 = vweird.f32 %v11956_v44  ;;  %v16012_v33 = vld [vmem:[#allocation149_spill] sm:$0xff] }
 0x843   :  { %v12783_v54 = vpop.eup %7318  ;;  %539 = vperm.xlu1 %6830, %v194_v23   ;;  %vm12803_vm2 = vcmp.eq.f32.partialorder %v3596_v61, 8.507059e+37  ;;  %vm12846_vm13 = vmor %vm5152_vm11, %vm5153_vm1  ;;  %vm4642_vm6 = vweird.f32 %v12718_v28  ;;  %vm3577_vm9 = vweird.f32 %v12735_v4  ;;  %vm4972_vm14 = vweird.f32 %v16026_v0 }
 0x844   :  { %5415 = vmatpush.xpose.msrb.mxu2 %v11567_v45  ;;  %v3591_v45 = vadd.f32 %v12637_v47, %v3590_v5  ;;  %v3815_v18 = vmul.f32 %v12732_v26, %v3814_v63  ;;  %5287 = vmatpush.xpose.msrb.mxu3 %v3631_v2  ;;  %15998 = vst [vmem:[#allocation66_spill] sm:$0xff] %v12786_v39  ;;  %v16001_v63 = vsub.f32 1.0, %v11979_v11  ;;  %7324 = vrcp.f32 %v12786_v39 }
 0x845   :  { %v4638_v48 = vmul.f32 %v12783_v54, %v12718_v28  ;;  %5312 = vmatpush.xpose.msrb.mxu1 %v12703_v13  ;;  %v2989_v56 = vpop.xlane.xlu2 %2988  ;;  %549 = vperm.xlu0 %6832, %v196_v8   ;;  %v3599_v8 = vor.u32 1.1754944e-38, %v3598_v30  ;;  %vm4643_vm5 = vweird.f32 %v12783_v54 }
 0x846   :  { %v5150_v10 = vmul.f32 %v11956_v44, %v16001_v63  ;;  %v3816_v23 = vadd.f32 %v12732_v26, %v3815_v18  ;;  %v3595_v2 = vsel %vm12788_vm0, %v12637_v47, %v3591_v45  ;;  %v12807_v11 = vpop.eup %7320  ;;  %v12810_v63 = vadd.f32 1e-06, %v2989_v56  ;;  %v3051_v13 = vpop.xlane.xlu1 %3050  ;;  %vm4644_vm8 = vmor %vm4642_vm6, %vm4643_vm5 }
 0x847   :  { %v12818_v45 = vpop.eup %7322  ;;  %v3573_v18 = vmul.f32 %v12807_v11, %v12735_v4  ;;  %v12822_v61 = vadd.f32 1e-06, %v3051_v13  ;;  %v3600_v30 = vsel %vm12803_vm2, %v3599_v8, %v3595_v2  ;;  %v12835_v13 = vpop.f32.mrf.mxu0  ;;  %v16011_v2 = vld [vmem:[#allocation165_spill] sm:$0xff] }
 0x848   :  { %5416 = vmatpush.xpose.msrb.mxu2 %v11880_v40  ;;  %v5151_v47 = vadd.f32 %v11956_v44, %v5150_v10  ;;  %v3820_v5 = vsel %vm3819_vm3, %v12732_v26, %v3816_v23  ;;  %v5158_v40 = vand.u32 2147483648, %v11860_v24  ;;  %v12828_v56 = vmul.f32 %v12818_v45, %v12744_v53  ;;  %5288 = vmatpush.xpose.msrb.mxu3 %v3616_v12  ;;  %v16005_v26 = vld [vmem:[#allocation201_spill] sm:$0xff] }
 0x849   :  { %7326 = vrcp.f32 %v12810_v63  ;;  %v3825_v17 = vsel %vm12750_vm10, %v3824_v14, %v3820_v5  ;;  %v3574_v10 = vsub.f32 1.0, %v3573_v18  ;;  %16004 = vst [vmem:[#allocation50_spill] sm:$0xff] %v12835_v13  ;;  %v16008_v14 = vand.u32 2147483647, %v11860_v24  ;;  %v206_v18 = vld [vmem:[%s14518_s8 + $0x178] sm:$0xff]  ;;  %v16031_v13 = vld [vmem:[#allocation60_spill] sm:$0xff] }
 0x84a   :  { %7328 = vrcp.f32 %v12822_v61  ;;  %v3826_v23 = vmul.f32 %v3825_v17, %v16005_v26  ;;  %v3601_v8 = vmul.f32 %v3600_v30, %v16012_v33  ;;  %v5155_v5 = vsel %vm12846_vm13, %v11956_v44, %v5151_v47  ;;  %v12868_v33 = vpop.eup %7324 }
 0x84b   :  { %vm12852_vm4 = vcmp.eq.f32.partialorder %v16008_v14, 8.507059e+37  ;;  %v5159_v17 = vor.u32 1.1754944e-38, %v5158_v40  ;;  %v4639_v26 = vsub.f32 1.0, %v4638_v48  ;;  %v2993_v14 = vpop.xlane.xlu0 %2992  ;;  %v4648_v30 = vand.u32 2147483648, %v12718_v28  ;;  %16013 = vst [vmem:[#allocation96_spill] sm:$0xff] %v12868_v33  ;;  %584 = vperm.xlu1 %6830, %v203_v60  }
 0x84c   :  { %5417 = vmatpush.xpose.msrb.mxu2 %v16011_v2  ;;  %5313 = vmatpush.xpose.msrb.mxu1 %v3826_v23  ;;  %v4646_v2 = vand.u32 2147483647, %v12718_v28  ;;  %v12870_v32 = vadd.f32 1e-06, %v2993_v14  ;;  %v3575_v47 = vmul.f32 %v12807_v11, %v3574_v10  ;;  %v12878_v40 = vmul.f32 %v12868_v33, %v12786_v39  ;;  %v16042_v39 = vld [vmem:[#allocation132_spill] sm:$0xff] }
 0x84d   :  { %5289 = vmatpush.xpose.msrb.mxu3 %v3601_v8  ;;  %v5160_v44 = vsel %vm12852_vm4, %v5159_v17, %v5155_v5  ;;  %v4640_v48 = vmul.f32 %v12783_v54, %v4639_v26  ;;  %v3045_v23 = vpop.xlane.xlu2 %3044  ;;  %599 = vperm.xlu0 %6832, %v206_v18   ;;  %v4649_v14 = vor.u32 1.1754944e-38, %v4648_v30  ;;  %vm3578_vm10 = vweird.f32 %v12807_v11 }
 0x84e   :  { %16014 = vst [vmem:[#allocation158_spill] sm:$0xff] %v12878_v40  ;;  %v5161_v60 = vmul.f32 %v5160_v44, %v16015_v51  ;;  %vm12883_vm7 = vcmp.eq.f32.partialorder %v4646_v2, 8.507059e+37  ;;  %7330 = vrcp.f32 %v12870_v32  ;;  %v12890_v10 = vadd.f32 1e-06, %v3045_v23  ;;  %v3023_v5 = vpop.xlane.xlu1 %3022  ;;  %vm12914_vm11 = vmor %vm3577_vm9, %vm3578_vm10 }
 0x84f   :  { %v12887_v12 = vpop.eup %7326  ;;  %v3576_v18 = vadd.f32 %v12807_v11, %v3575_v47  ;;  %v12898_v26 = vadd.f32 1e-06, %v3023_v5  ;;  %v3583_v47 = vand.u32 2147483648, %v12735_v4  ;;  %v16022_v5 = vld [vmem:[#allocation178_spill] sm:$0xff]  ;;  %v12937_v28 = vpop.f32.mrf.mxu0  ;;  %v4978_v30 = vand.u32 2147483648, %v16026_v0 }
 0x850   :  { %5390 = vmatpush.xpose.msra.mxu1 %v12161_v42  ;;  %16018 = vst [vmem:[#allocation195_spill] sm:$0xff] %v12890_v10  ;;  %5418 = vmatpush.xpose.msrb.mxu2 %v12372_v1  ;;  %v4641_v42 = vadd.f32 %v12783_v54, %v4640_v48  ;;  %v12895_v17 = vpop.eup %7328  ;;  %7332 = vrcp.f32 %v12890_v10  ;;  %v3581_v48 = vand.u32 2147483647, %v12735_v4  ;;  %v12925_v23 = vmul.f32 %v12887_v12, %v12810_v63  ;;  %v201_v4 = vld [vmem:[%s14518_s8 + $0x150] sm:$0xff] }
 0x851   :  { %v12905_v1 = vmul.f32 %v12895_v17, %v12822_v61  ;;  %7334 = vrcp.f32 %v12898_v26  ;;  %v3580_v8 = vsel %vm12914_vm11, %v12807_v11, %v3576_v18  ;;  %16025 = vst [vmem:[#allocation143_spill] sm:$0xff] %v12937_v28  ;;  %v3584_v24 = vor.u32 1.1754944e-38, %v3583_v47 }
 0x852   :  { %v4645_v2 = vsel %vm4644_vm8, %v12783_v54, %v4641_v42  ;;  %v204_v54 = vld [vmem:[%s14518_s8 + $0x168] sm:$0xff]  ;;  %v16023_v42 = vsub.f32 1.0, %v16022_v5  ;;  %vm3582_vm12 = vcmp.eq.f32.partialorder %v3581_v48, 8.507059e+37  ;;  %v4976_v18 = vand.u32 2147483647, %v16026_v0 }
 0x853   :  { %v4650_v44 = vsel %vm12883_vm7, %v4649_v14, %v4645_v2  ;;  %v16024_v14 = vld [vmem:[#allocation135_spill] sm:$0xff]  ;;  %589 = vperm.xlu1 %6830, %v204_v54   ;;  %v3585_v5 = vsel %vm3582_vm12, %v3584_v24, %v3580_v8  ;;  %v4979_v24 = vor.u32 1.1754944e-38, %v4978_v30  ;;  %vm5138_vm3 = vweird.f32 %v16031_v13 }
 0x854   :  { %5391 = vmatpush.xpose.msra.mxu1 %v12376_v62  ;;  %5419 = vmatpush.xpose.msrb.mxu2 %v5161_v60  ;;  %v16021_v62 = vld [vmem:[#allocation133_spill] sm:$0xff]  ;;  %v4970_v2 = vmul.f32 %v16024_v14, %v16023_v42  ;;  %vm4973_vm15 = vweird.f32 %v16024_v14  ;;  %v2959_v60 = vpop.xlane.xlu0 %2958  ;;  %vm4977_vm1 = vcmp.eq.f32.partialorder %v4976_v18, 8.507059e+37  ;;  %v16036_v18 = vld [vmem:[#allocation104_spill] sm:$0xff]  ;;  %v202_v42 = vld [vmem:[%s14518_s8 + $0x158] sm:$0xff]  ;;  %vm4507_vm5 = vweird.f32 %v16042_v39 }
 0x855   :  { %v4651_v51 = vmul.f32 %v4650_v44, %v16021_v62  ;;  %v12941_v44 = vpop.eup %7330  ;;  %v12946_v62 = vadd.f32 1e-06, %v2959_v60  ;;  %vm12953_vm0 = vmor %vm4972_vm14, %vm4973_vm15  ;;  %v2953_v54 = vpop.xlane.xlu2 %2952  ;;  %574 = vperm.xlu0 %6832, %v201_v4   ;;  %v3586_v60 = vmul.f32 %v3585_v5, %v12209_v3  ;;  %v16035_v5 = vld [vmem:[#allocation102_spill] sm:$0xff]  ;;  %vm5122_vm14 = vweird.f32 %v11959_v35 }
 0x856   :  { %v4971_v11 = vadd.f32 %v16024_v14, %v4970_v2  ;;  %v12951_v47 = vmul.f32 %v12941_v44, %v12870_v32  ;;  %v12960_v0 = vpop.eup %7332  ;;  %v12973_v4 = vadd.f32 1e-06, %v2953_v54  ;;  %vm5137_vm2 = vweird.f32 %v16035_v5 }
 0x857   :  { %5375 = vmatpush.xpose.msrb.mxu0 %v4651_v51  ;;  %v16029_v51 = vld [vmem:[#allocation64_spill] sm:$0xff]  ;;  %16032 = vst [vmem:[#allocation108_spill] sm:$0xff] %v12960_v0  ;;  %v12966_v8 = vpop.eup %7334  ;;  %v12970_v28 = vmul.f32 %v12960_v0, %v12890_v10  ;;  %7336 = vrcp.f32 %v12946_v62  ;;  %5290 = vmatpush.xpose.msrb.mxu3 %v3586_v60  ;;  %vm12986_vm13 = vmor %vm5137_vm2, %vm5138_vm3  ;;  %vm5123_vm15 = vweird.f32 %v12056_v36 }
 0x858   :  { %v16030_v2 = vsub.f32 1.0, %v16029_v51  ;;  %v4975_v48 = vsel %vm12953_vm0, %v16024_v14, %v4971_v11  ;;  %16034 = vst [vmem:[#allocation157_spill] sm:$0xff] %v12973_v4  ;;  %v5141_v14 = vand.u32 2147483647, %v16035_v5  ;;  %v12981_v11 = vmul.f32 %v12966_v8, %v12898_v26  ;;  %v16041_v10 = vld [vmem:[#allocation200_spill] sm:$0xff]  ;;  %vm13057_vm0 = vmor %vm5122_vm14, %vm5123_vm15 }
 0x859   :  { %16033 = vst [vmem:[#allocation109_spill] sm:$0xff] %v12970_v28  ;;  %v4980_v3 = vsel %vm4977_vm1, %v4979_v24, %v4975_v48  ;;  %7338 = vrcp.f32 %v12973_v4  ;;  %v5143_v48 = vand.u32 2147483648, %v16035_v5  ;;  %v200_v24 = vld [vmem:[%s14518_s8 + $0x148] sm:$0xff]  ;;  %v16039_v5 = vld [vmem:[#allocation75_spill] sm:$0xff]  ;;  %vm4508_vm6 = vweird.f32 %v16041_v10 }
 0x85a   :  { %v5135_v16 = vmul.f32 %v16031_v13, %v16030_v2  ;;  %v3049_v2 = vpop.xlane.xlu1 %3048  ;;  %v4981_v30 = vmul.f32 %v4980_v3, %v16036_v18  ;;  %vm5142_vm4 = vcmp.eq.f32.partialorder %v5141_v14, 8.507059e+37  ;;  %v16040_v18 = vsub.f32 1.0, %v16039_v5  ;;  %v16047_v28 = vld [vmem:[#allocation129_spill] sm:$0xff]  ;;  %vm4509_vm9 = vmor %vm4507_vm5, %vm4508_vm6 }
 0x85b   :  { %5344 = vmatpush.xpose.msra.mxu3 %v12385_v50  ;;  %v12998_v60 = vadd.f32 1e-06, %v3049_v2  ;;  %v5144_v3 = vor.u32 1.1754944e-38, %v5143_v48  ;;  %v16043_v2 = vld [vmem:[#allocation90_spill] sm:$0xff]  ;;  %579 = vperm.xlu1 %6830, %v202_v42   ;;  %v13016_v48 = vpop.f32.mrf.mxu0  ;;  %vm4957_vm7 = vweird.f32 %v16047_v28  ;;  %vm4943_vm5 = vweird.f32 %v12061_v38 }
 0x85c   :  { %v5136_v51 = vadd.f32 %v16031_v13, %v5135_v16  ;;  %5392 = vmatpush.xpose.msra.mxu1 %v4981_v30  ;;  %v4505_v0 = vmul.f32 %v16041_v10, %v16040_v18  ;;  %v16044_v14 = vsub.f32 1.0, %v16043_v2  ;;  %v16045_v16 = vld [vmem:[#allocation182_spill] sm:$0xff]  ;;  %16046 = vst [vmem:[#allocation146_spill] sm:$0xff] %v13016_v48  ;;  %v16048_v2 = vld [vmem:[#allocation123_spill] sm:$0xff] }
 0x85d   :  { %7340 = vrcp.f32 %v12998_v60  ;;  %v13014_v30 = vpop.eup %7336  ;;  %vm4958_vm8 = vweird.f32 %v16045_v16  ;;  %569 = vperm.xlu0 %6832, %v200_v24   ;;  %v4961_v24 = vand.u32 2147483647, %v16047_v28 }
 0x85e   :  { %v5140_v50 = vsel %vm12986_vm13, %v16031_v13, %v5136_v51  ;;  %v4511_v13 = vand.u32 2147483647, %v16042_v39  ;;  %v4513_v51 = vand.u32 2147483648, %v16042_v39  ;;  %v4955_v54 = vmul.f32 %v16045_v16, %v16044_v14  ;;  %vm4959_vm11 = vmor %vm4957_vm7, %vm4958_vm8 }
 0x85f   :  { %v5145_v5 = vsel %vm5142_vm4, %v5144_v3, %v5140_v50  ;;  %v4506_v18 = vadd.f32 %v16041_v10, %v4505_v0  ;;  %v13023_v33 = vmul.f32 %v13014_v30, %v12946_v62  ;;  %v13030_v50 = vpop.eup %7338  ;;  %v4963_v14 = vand.u32 2147483648, %v16047_v28 }
 0x860   :  { %v5146_v40 = vmul.f32 %v5145_v5, %v16048_v2  ;;  %vm4512_vm10 = vcmp.eq.f32.partialorder %v4511_v13, 8.507059e+37  ;;  %v4514_v42 = vor.u32 1.1754944e-38, %v4513_v51  ;;  %16049 = vst [vmem:[#allocation187_spill] sm:$0xff] %v13030_v50  ;;  %v4956_v3 = vadd.f32 %v16045_v16, %v4955_v54  ;;  %v16051_v51 = vld [vmem:[#allocation199_spill] sm:$0xff] }
 0x861   :  { %v4510_v0 = vsel %vm4509_vm9, %v16041_v10, %v4506_v18  ;;  %v13039_v5 = vmul.f32 %v13030_v50, %v12973_v4  ;;  %v16050_v10 = vsub.f32 1.0, %v12123_v22  ;;  %v4964_v48 = vor.u32 1.1754944e-38, %v4963_v14 }
 0x862   :  { %5420 = vmatpush.xpose.msrb.mxu2 %v5146_v40  ;;  %v4515_v39 = vsel %vm4512_vm10, %v4514_v42, %v4510_v0  ;;  %v4960_v2 = vsel %vm4959_vm11, %v16045_v16, %v4956_v3  ;;  %vm4962_vm12 = vcmp.eq.f32.partialorder %v4961_v24, 8.507059e+37  ;;  %v5126_v16 = vand.u32 2147483647, %v11959_v35  ;;  %v16054_v24 = vld [vmem:[#allocation73_spill] sm:$0xff] }
 0x863   :  { %v5120_v54 = vmul.f32 %v12056_v36, %v16050_v10  ;;  %v4516_v18 = vmul.f32 %v4515_v39, %v16051_v51  ;;  %v13051_v4 = vpop.eup %7340  ;;  %v4965_v28 = vsel %vm4962_vm12, %v4964_v48, %v4960_v2  ;;  %v5128_v0 = vand.u32 2147483648, %v11959_v35  ;;  %v16055_v10 = vld [vmem:[#allocation184_spill] sm:$0xff]  ;;  %v16058_v2 = vld [vmem:[#allocation74_spill] sm:$0xff] }
 0x864   :  { %v13065_v3 = vmul.f32 %v13051_v4, %v12998_v60  ;;  %v4966_v14 = vmul.f32 %v4965_v28, %v16054_v24  ;;  %v16056_v48 = vsub.f32 1.0, %v16055_v10  ;;  %vm5127_vm1 = vcmp.eq.f32.partialorder %v5126_v16, 8.507059e+37  ;;  %v555_v10 = vpop.permute.xlu2 %554 }
 0x865   :  { %v5121_v40 = vadd.f32 %v12056_v36, %v5120_v54  ;;  %5345 = vmatpush.xpose.msra.mxu3 %v4516_v18  ;;  %v16057_v54 = vld [vmem:[#allocation173_spill] sm:$0xff]  ;;  %v5129_v18 = vor.u32 1.1754944e-38, %v5128_v0  ;;  %vm4492_vm2 = vweird.f32 %v16058_v2  ;;  %v4496_v22 = vand.u32 2147483647, %v16058_v2 }
 0x866   :  { %v4490_v51 = vmul.f32 %v16057_v54, %v16056_v48  ;;  %vm4493_vm3 = vweird.f32 %v16057_v54  ;;  %5393 = vmatpush.xpose.msra.mxu1 %v4966_v14  ;;  %v4498_v28 = vand.u32 2147483648, %v16058_v2  ;;  %v16059_v42 = vsub.f32 1.0, %v12136_v55  ;;  %v733_v14 = vpop.f32.mrf.mxu0  ;;  %v16062_v48 = vld [vmem:[#allocation91_spill] sm:$0xff] }
 0x867   :  { %v5125_v39 = vsel %vm13057_vm0, %v12056_v36, %v5121_v40  ;;  %v2991_v40 = vpop.xlane.xlu0 %2990  ;;  %vm13082_vm13 = vmor %vm4492_vm2, %vm4493_vm3  ;;  %vm4942_vm4 = vweird.f32 %v11968_v21  ;;  %v4946_v0 = vand.u32 2147483647, %v11968_v21  ;;  %vm4497_vm6 = vcmp.eq.f32.partialorder %v4496_v22, 8.507059e+37 }
 0x868   :  { %v4491_v35 = vadd.f32 %v16057_v54, %v4490_v51  ;;  %v4940_v36 = vmul.f32 %v12061_v38, %v16059_v42  ;;  %v5130_v24 = vsel %vm5127_vm1, %v5129_v18, %v5125_v39  ;;  %v4499_v39 = vor.u32 1.1754944e-38, %v4498_v28  ;;  %vm13103_vm8 = vmor %vm4942_vm4, %vm4943_vm5  ;;  %v3021_v28 = vpop.xlane.xlu1 %3020 }
 0x869   :  { %v5131_v51 = vmul.f32 %v5130_v24, %v16062_v48  ;;  %vm13094_vm7 = vcmp.eq.f32.partialorder %v4946_v0, 8.507059e+37  ;;  %v4948_v42 = vand.u32 2147483648, %v11968_v21  ;;  %v13099_v13 = vadd.f32 1e-06, %v2991_v40 }
 0x86a   :  { %v4495_v55 = vsel %vm13082_vm13, %v16057_v54, %v4491_v35  ;;  %v4941_v18 = vadd.f32 %v12061_v38, %v4940_v36  ;;  %v734_v22 = vadd.f32 %v733_v14, %v555_v10  ;;  %v16067_v54 = vsub.f32 1.0, %v12240_v29  ;;  %v16068_v36 = vld [vmem:[#allocation38_spill] sm:$0xff] }
 0x86b   :  { %5421 = vmatpush.xpose.msrb.mxu2 %v5131_v51  ;;  %v4500_v50 = vsel %vm4497_vm6, %v4499_v39, %v4495_v55  ;;  %vm5107_vm9 = vweird.f32 %v12113_v31  ;;  %v4949_v0 = vor.u32 1.1754944e-38, %v4948_v42  ;;  %7342 = vrcp.f32 %v13099_v13  ;;  %v16071_v51 = vld [vmem:[#allocation49_spill] sm:$0xff]  ;;  %v16072_v39 = vld [vmem:[#allocation163_spill] sm:$0xff] }
 0x86c   :  { %v5105_v35 = vmul.f32 %v12193_v41, %v16067_v54  ;;  %v4501_v16 = vmul.f32 %v4500_v50, %v16068_v36  ;;  %v4945_v40 = vsel %vm13103_vm8, %v12061_v38, %v4941_v18  ;;  %vm5108_vm10 = vweird.f32 %v12193_v41  ;;  %5337 = vmatmul.f32.vlgmr.msra.gmra.mxu2 %v734_v22  ;;  %v16069_v38 = vld [vmem:[#allocation119_spill] sm:$0xff]  ;;  %v16073_v18 = vld [vmem:[#allocation170_spill] sm:$0xff] }
 0x86d   :  { %v5111_v29 = vand.u32 2147483647, %v12113_v31  ;;  %v5113_v14 = vand.u32 2147483648, %v12113_v31  ;;  %v4950_v50 = vsel %vm13094_vm7, %v4949_v0, %v4945_v40  ;;  %vm5109_vm11 = vmor %vm5107_vm9, %vm5108_vm10  ;;  %v13122_v10 = vadd.f32 1e-06, %v3021_v28  ;;  %v16076_v36 = vld [vmem:[#allocation86_spill] sm:$0xff] }
 0x86e   :  { %v5106_v21 = vadd.f32 %v12193_v41, %v5105_v35  ;;  %5346 = vmatpush.xpose.msra.mxu3 %v4501_v16  ;;  %v16070_v48 = vsub.f32 1.0, %v16069_v38  ;;  %vm4477_vm12 = vweird.f32 %v16072_v39  ;;  %v4951_v42 = vmul.f32 %v4950_v50, %v16073_v18  ;;  %v16078_v40 = vld [vmem:[#allocation103_spill] sm:$0xff]  ;;  %v16080_v38 = vld [vmem:[#allocation156_spill] sm:$0xff] }
 0x86f   :  { %vm5112_vm14 = vcmp.eq.f32.partialorder %v5111_v29, 8.507059e+37  ;;  %v5114_v31 = vor.u32 1.1754944e-38, %v5113_v14  ;;  %7344 = vrcp.f32 %v13122_v10  ;;  %vm4478_vm15 = vweird.f32 %v16071_v51  ;;  %v16079_v29 = vld [vmem:[#allocation137_spill] sm:$0xff] }
 0x870   :  { %v4475_v55 = vmul.f32 %v16071_v51, %v16070_v48  ;;  %v5110_v24 = vsel %vm5109_vm11, %v12193_v41, %v5106_v21  ;;  %v4481_v22 = vand.u32 2147483647, %v16072_v39  ;;  %v5044_v54 = vsub.f32 1.0, %v13065_v3  ;;  %5394 = vmatpush.xpose.msra.mxu1 %v4951_v42  ;;  %vm13135_vm0 = vmor %vm4477_vm12, %vm4478_vm15 }
 0x871   :  { %v5115_v35 = vsel %vm5112_vm14, %v5114_v31, %v5110_v24  ;;  %v4483_v41 = vand.u32 2147483648, %v16072_v39  ;;  %v16077_v16 = vsub.f32 1.0, %v16076_v36  ;;  %v13143_v21 = vpop.eup %7342  ;;  %vm4927_vm1 = vweird.f32 %v16080_v38 }
 0x872   :  { %v4476_v2 = vadd.f32 %v16071_v51, %v4475_v55  ;;  %v5116_v14 = vmul.f32 %v5115_v35, %v16079_v29  ;;  %vm4928_vm2 = vweird.f32 %v16078_v40  ;;  %vm4482_vm3 = vcmp.eq.f32.partialorder %v4481_v22, 8.507059e+37 }
 0x873   :  { %v4925_v0 = vmul.f32 %v16078_v40, %v16077_v16  ;;  %v4484_v48 = vor.u32 1.1754944e-38, %v4483_v41  ;;  %v4931_v39 = vand.u32 2147483647, %v16080_v38  ;;  %v13155_v18 = vmul.f32 %v13143_v21, %v13099_v13  ;;  %vm13157_vm13 = vmor %vm4927_vm1, %vm4928_vm2  ;;  %v16084_v41 = vld [vmem:[#allocation191_spill] sm:$0xff] }
 0x874   :  { %v4480_v50 = vsel %vm13135_vm0, %v16071_v51, %v4476_v2  ;;  %5422 = vmatpush.xpose.msrb.mxu2 %v5116_v14  ;;  %v4933_v51 = vand.u32 2147483648, %v16080_v38  ;;  %v16083_v24 = vsub.f32 1.0, %v12583_v59  ;;  %vm5093_vm4 = vweird.f32 %v12557_v52 }
 0x875   :  { %v4926_v55 = vadd.f32 %v16078_v40, %v4925_v0  ;;  %v4485_v2 = vsel %vm4482_vm3, %v4484_v48, %v4480_v50  ;;  %vm5092_vm5 = vweird.f32 %v12508_v19  ;;  %v5096_v35 = vand.u32 2147483647, %v12508_v19  ;;  %v13171_v28 = vpop.eup %7344  ;;  %v16085_v48 = vld [vmem:[#allocation95_spill] sm:$0xff] }
 0x876   :  { %v5090_v31 = vmul.f32 %v12557_v52, %v16083_v24  ;;  %v4486_v36 = vmul.f32 %v4485_v2, %v16084_v41  ;;  %v4934_v16 = vor.u32 1.1754944e-38, %v4933_v51  ;;  %v5098_v0 = vand.u32 2147483648, %v12508_v19  ;;  %vm5094_vm7 = vmor %vm5092_vm5, %vm5093_vm4  ;;  %v16087_v24 = vld [vmem:[#allocation147_spill] sm:$0xff]  ;;  %v16088_v2 = vld [vmem:[#allocation176_spill] sm:$0xff] }
 0x877   :  { %v4930_v22 = vsel %vm13157_vm13, %v16078_v40, %v4926_v55  ;;  %v13178_v29 = vmul.f32 %v13171_v28, %v13122_v10  ;;  %vm4932_vm6 = vcmp.eq.f32.partialorder %v4931_v39, 8.507059e+37  ;;  %vm5097_vm8 = vcmp.eq.f32.partialorder %v5096_v35, 8.507059e+37 }
 0x878   :  { %v5091_v59 = vadd.f32 %v12557_v52, %v5090_v31  ;;  %v4624_v40 = vsub.f32 1.0, %v12951_v47  ;;  %5347 = vmatpush.xpose.msra.mxu3 %v4486_v36  ;;  %v4935_v14 = vsel %vm4932_vm6, %v4934_v16, %v4930_v22  ;;  %v5099_v38 = vor.u32 1.1754944e-38, %v5098_v0 }
 0x879   :  { %vm4627_vm9 = vweird.f32 %v12870_v32  ;;  %v4936_v55 = vmul.f32 %v4935_v14, %v16085_v48  ;;  %vm4628_vm10 = vweird.f32 %v12941_v44  ;;  %v4631_v42 = vand.u32 2147483647, %v12870_v32 }
 0x87a   :  { %v5095_v50 = vsel %vm5094_vm7, %v12557_v52, %v5091_v59  ;;  %v4625_v19 = vmul.f32 %v12941_v44, %v4624_v40  ;;  %v4633_v51 = vand.u32 2147483648, %v12870_v32  ;;  %v16086_v47 = vsub.f32 1.0, %v12230_v43  ;;  %v16089_v52 = vld [vmem:[#allocation87_spill] sm:$0xff]  ;;  %vm4629_vm15 = vmor %vm4627_vm9, %vm4628_vm10  ;;  %v16092_v40 = vld [vmem:[#allocation77_spill] sm:$0xff] }
 0x87b   :  { %v5100_v39 = vsel %vm5097_vm8, %v5099_v38, %v5095_v50  ;;  %vm4462_vm11 = vweird.f32 %v16088_v2  ;;  %5395 = vmatpush.xpose.msra.mxu1 %v4936_v55  ;;  %vm4632_vm12 = vcmp.eq.f32.partialorder %v4631_v42, 8.507059e+37  ;;  %vm4463_vm14 = vweird.f32 %v16087_v24  ;;  %v16090_v59 = vld [vmem:[#allocation175_spill] sm:$0xff]  ;;  %v16093_v50 = vld [vmem:[#allocation120_spill] sm:$0xff]  ;;  %v2957_v38 = vpop.xlane.xlu0 %2956 }
 0x87c   :  { %v4460_v31 = vmul.f32 %v16087_v24, %v16086_v47  ;;  %v5101_v22 = vmul.f32 %v5100_v39, %v16089_v52  ;;  %v4626_v35 = vadd.f32 %v12941_v44, %v4625_v19  ;;  %v4634_v41 = vor.u32 1.1754944e-38, %v4633_v51  ;;  %vm4464_vm0 = vmor %vm4462_vm11, %vm4463_vm14  ;;  %v16094_v42 = vld [vmem:[#allocation47_spill] sm:$0xff] }
 0x87d   :  { %v4466_v32 = vand.u32 2147483647, %v16088_v2  ;;  %v4468_v43 = vand.u32 2147483648, %v16088_v2  ;;  %v16091_v0 = vsub.f32 1.0, %v16090_v59  ;;  %vm4912_vm1 = vweird.f32 %v16093_v50 }
 0x87e   :  { %v4461_v36 = vadd.f32 %v16087_v24, %v4460_v31  ;;  %5423 = vmatpush.xpose.msrb.mxu2 %v5101_v22  ;;  %v4630_v16 = vsel %vm4629_vm15, %v12941_v44, %v4626_v35  ;;  %vm4913_vm2 = vweird.f32 %v16092_v40  ;;  %v4916_v44 = vand.u32 2147483647, %v16093_v50  ;;  %v3047_v35 = vpop.xlane.xlu1 %3046 }
 0x87f   :  { %v4910_v14 = vmul.f32 %v16092_v40, %v16091_v0  ;;  %v4635_v48 = vsel %vm4632_vm12, %v4634_v41, %v4630_v16  ;;  %vm4467_vm3 = vcmp.eq.f32.partialorder %v4466_v32, 8.507059e+37  ;;  %v4469_v19 = vor.u32 1.1754944e-38, %v4468_v43  ;;  %vm13209_vm13 = vmor %vm4912_vm1, %vm4913_vm2  ;;  %v16098_v41 = vld [vmem:[#allocation40_spill] sm:$0xff] }
 0x880   :  { %v4465_v55 = vsel %vm4464_vm0, %v16087_v24, %v4461_v36  ;;  %v4636_v39 = vmul.f32 %v4635_v48, %v16094_v42  ;;  %v4918_v47 = vand.u32 2147483648, %v16093_v50  ;;  %v13213_v52 = vadd.f32 1e-06, %v2957_v38  ;;  %v16102_v38 = vld [vmem:[#allocation180_spill] sm:$0xff] }
 0x881   :  { %v4911_v51 = vadd.f32 %v16092_v40, %v4910_v14  ;;  %v4470_v31 = vsel %vm4467_vm3, %v4469_v19, %v4465_v55  ;;  %v16097_v22 = vsub.f32 1.0, %v12757_v57  ;;  %vm5077_vm4 = vweird.f32 %v12657_v34  ;;  %v16103_v19 = vld [vmem:[#allocation55_spill] sm:$0xff] }
 0x882   :  { %5376 = vmatpush.xpose.msrb.mxu0 %v4636_v39  ;;  %v4471_v36 = vmul.f32 %v4470_v31, %v16098_v41  ;;  %vm4917_vm5 = vcmp.eq.f32.partialorder %v4916_v44, 8.507059e+37  ;;  %v4919_v43 = vor.u32 1.1754944e-38, %v4918_v47  ;;  %7346 = vrcp.f32 %v13213_v52 }
 0x883   :  { %v5075_v24 = vmul.f32 %v12738_v9, %v16097_v22  ;;  %v4915_v32 = vsel %vm13209_vm13, %v16092_v40, %v4911_v51  ;;  %vm5078_vm6 = vweird.f32 %v12738_v9  ;;  %v5081_v57 = vand.u32 2147483647, %v12657_v34  ;;  %v16104_v51 = vld [vmem:[#allocation70_spill] sm:$0xff] }
 0x884   :  { %5348 = vmatpush.xpose.msra.mxu3 %v4471_v36  ;;  %v4920_v59 = vsel %vm4917_vm5, %v4919_v43, %v4915_v32  ;;  %vm13227_vm7 = vmor %vm5077_vm4, %vm5078_vm6  ;;  %v5083_v14 = vand.u32 2147483648, %v12657_v34  ;;  %v13232_v50 = vadd.f32 1e-06, %v3047_v35  ;;  %v16101_v40 = vsub.f32 1.0, %v12260_v58  ;;  %v16108_v36 = vld [vmem:[#allocation39_spill] sm:$0xff]  ;;  %v16116_v58 = vld [vmem:[#allocation177_spill] sm:$0xff] }
 0x885   :  { %v5076_v16 = vadd.f32 %v12738_v9, %v5075_v24  ;;  %v4834_v55 = vsub.f32 1.0, %v13178_v29  ;;  %v4921_v42 = vmul.f32 %v4920_v59, %v16103_v19  ;;  %vm4447_vm8 = vweird.f32 %v16104_v51  ;;  %v16112_v19 = vld [vmem:[#allocation171_spill] sm:$0xff] }
 0x886   :  { %v4445_v48 = vmul.f32 %v16102_v38, %v16101_v40  ;;  %v5084_v44 = vor.u32 1.1754944e-38, %v5083_v14  ;;  %7348 = vrcp.f32 %v13232_v50  ;;  %vm4448_vm9 = vweird.f32 %v16102_v38 }
 0x887   :  { %v5080_v39 = vsel %vm13227_vm7, %v12738_v9, %v5076_v16  ;;  %5396 = vmatpush.xpose.msra.mxu1 %v4921_v42  ;;  %vm5082_vm10 = vcmp.eq.f32.partialorder %v5081_v57, 8.507059e+37  ;;  %vm13246_vm11 = vmor %vm4447_vm8, %vm4448_vm9  ;;  %v4451_v47 = vand.u32 2147483647, %v16104_v51  ;;  %v4453_v31 = vand.u32 2147483648, %v16104_v51  ;;  %v3019_v57 = vpop.xlane.xlu0 %3018 }
 0x888   :  { %v4446_v34 = vadd.f32 %v16102_v38, %v4445_v48  ;;  %v16107_v9 = vsub.f32 1.0, %v12480_v20  ;;  %v5085_v22 = vsel %vm5082_vm10, %v5084_v44, %v5080_v39  ;;  %vm4898_vm12 = vweird.f32 %v12462_v37  ;;  %v13260_v41 = vpop.eup %7346 }
 0x889   :  { %v4901_v35 = vand.u32 2147483647, %v12414_v27  ;;  %v5086_v32 = vmul.f32 %v5085_v22, %v16108_v36  ;;  %v4454_v43 = vor.u32 1.1754944e-38, %v4453_v31  ;;  %vm4897_vm14 = vweird.f32 %v12414_v27  ;;  %v16117_v22 = vld [vmem:[#allocation82_spill] sm:$0xff] }
 0x88a   :  { %v4895_v2 = vmul.f32 %v12462_v37, %v16107_v9  ;;  %v4450_v24 = vsel %vm13246_vm11, %v16102_v38, %v4446_v34  ;;  %v13267_v20 = vmul.f32 %v13260_v41, %v13213_v52  ;;  %vm4452_vm15 = vcmp.eq.f32.partialorder %v4451_v47, 8.507059e+37  ;;  %vm13269_vm0 = vmor %vm4897_vm14, %vm4898_vm12 }
 0x88b   :  { %v4903_v59 = vand.u32 2147483648, %v12414_v27  ;;  %v16111_v0 = vsub.f32 1.0, %v12905_v1  ;;  %5424 = vmatpush.xpose.msrb.mxu2 %v5086_v32  ;;  %v4455_v40 = vsel %vm4452_vm15, %v4454_v43, %v4450_v24  ;;  %vm4902_vm1 = vcmp.eq.f32.partialorder %v4901_v35, 8.507059e+37  ;;  %v16118_v35 = vld [vmem:[#allocation155_spill] sm:$0xff] }
 0x88c   :  { %v4896_v16 = vadd.f32 %v12462_v37, %v4895_v2  ;;  %vm5063_vm2 = vweird.f32 %v12895_v17  ;;  %v13281_v48 = vpop.eup %7348  ;;  %v4456_v42 = vmul.f32 %v4455_v40, %v16112_v19  ;;  %vm5062_vm3 = vweird.f32 %v12822_v61 }
 0x88d   :  { %v5060_v14 = vmul.f32 %v12895_v17, %v16111_v0  ;;  %v4904_v39 = vor.u32 1.1754944e-38, %v4903_v59  ;;  %v4354_v1 = vsub.f32 1.0, %v13267_v20  ;;  %vm13287_vm13 = vmor %vm5062_vm3, %vm5063_vm2  ;;  %v5068_v44 = vand.u32 2147483648, %v12822_v61  ;;  %v16120_v59 = vld [vmem:[#allocation88_spill] sm:$0xff] }
 0x88e   :  { %v4900_v38 = vsel %vm13269_vm0, %v12462_v37, %v4896_v16  ;;  %v5066_v37 = vand.u32 2147483647, %v12822_v61  ;;  %v16115_v34 = vsub.f32 1.0, %v12410_v15  ;;  %v13298_v31 = vmul.f32 %v13281_v48, %v13232_v50  ;;  %5349 = vmatpush.xpose.msra.mxu3 %v4456_v42 }
 0x88f   :  { %v5061_v27 = vadd.f32 %v12895_v17, %v5060_v14  ;;  %v4905_v9 = vsel %vm4902_vm1, %v4904_v39, %v4900_v38  ;;  %vm4433_vm4 = vweird.f32 %v16116_v58  ;;  %v5069_v61 = vor.u32 1.1754944e-38, %v5068_v44  ;;  %v16121_v14 = vld [vmem:[#allocation121_spill] sm:$0xff]  ;;  %v16125_v44 = vld [vmem:[#allocation138_spill] sm:$0xff] }
 0x890   :  { %v4430_v47 = vmul.f32 %v16116_v58, %v16115_v34  ;;  %v4906_v24 = vmul.f32 %v4905_v9, %v16117_v22  ;;  %vm5067_vm5 = vcmp.eq.f32.partialorder %v5066_v37, 8.507059e+37  ;;  %vm4432_vm6 = vweird.f32 %v16118_v35  ;;  %v16124_v37 = vld [vmem:[#allocation154_spill] sm:$0xff]  ;;  %v16126_v9 = vld [vmem:[#allocation116_spill] sm:$0xff] }
 0x891   :  { %v5065_v2 = vsel %vm13287_vm13, %v12895_v17, %v5061_v27  ;;  %v4436_v36 = vand.u32 2147483647, %v16118_v35  ;;  %v4438_v32 = vand.u32 2147483648, %v16118_v35  ;;  %v16119_v43 = vsub.f32 1.0, %v12629_v25  ;;  %vm4434_vm7 = vmor %vm4432_vm6, %vm4433_vm4 }
 0x892   :  { %v4431_v15 = vadd.f32 %v16116_v58, %v4430_v47  ;;  %5397 = vmatpush.xpose.msra.mxu1 %v4906_v24  ;;  %v5070_v17 = vsel %vm5067_vm5, %v5069_v61, %v5065_v2  ;;  %vm4882_vm8 = vweird.f32 %v16120_v59  ;;  %vm4883_vm9 = vweird.f32 %v12620_v46  ;;  %v2955_v47 = vpop.xlane.xlu1 %2954 }
 0x893   :  { %v4880_v16 = vmul.f32 %v12620_v46, %v16119_v43  ;;  %v4886_v0 = vand.u32 2147483647, %v16120_v59  ;;  %v5071_v40 = vmul.f32 %v5070_v17, %v16121_v14  ;;  %vm4437_vm10 = vcmp.eq.f32.partialorder %v4436_v36, 8.507059e+37  ;;  %vm4884_vm12 = vmor %vm4882_vm8, %vm4883_vm9  ;;  %v16127_v36 = vld [vmem:[#allocation181_spill] sm:$0xff] }
 0x894   :  { %v4435_v38 = vsel %vm4434_vm7, %v16116_v58, %v4431_v15  ;;  %v4439_v19 = vor.u32 1.1754944e-38, %v4438_v32  ;;  %v4888_v39 = vand.u32 2147483648, %v16120_v59  ;;  %v13323_v27 = vadd.f32 1e-06, %v3019_v57  ;;  %v16129_v32 = vld [vmem:[#allocation110_spill] sm:$0xff]  ;;  %v16131_v57 = vld [vmem:[#allocation36_spill] sm:$0xff] }
 0x895   :  { %v4881_v25 = vadd.f32 %v12620_v46, %v4880_v16  ;;  %vm13318_vm11 = vcmp.eq.f32.partialorder %v4886_v0, 8.507059e+37  ;;  %5425 = vmatpush.xpose.msrb.mxu2 %v5071_v40  ;;  %v3318_v34 = vadd.f32 %v16125_v44, %v16124_v37  ;;  %v5045_v58 = vmul.f32 %v13051_v4, %v5044_v54  ;;  %v16130_v16 = vld [vmem:[#allocation98_spill] sm:$0xff] }
 0x896   :  { %v4440_v51 = vsel %vm4437_vm10, %v4439_v19, %v4435_v38  ;;  %vm5047_vm14 = vweird.f32 %v12998_v60  ;;  %v4889_v24 = vor.u32 1.1754944e-38, %v4888_v39  ;;  %7350 = vrcp.f32 %v13323_v27  ;;  %v2987_v39 = vpop.xlane.xlu0 %2986 }
 0x897   :  { %v4441_v2 = vmul.f32 %v4440_v51, %v16126_v9  ;;  %v4885_v22 = vsel %vm4884_vm12, %v12620_v46, %v4881_v25  ;;  %v5046_v61 = vadd.f32 %v13051_v4, %v5045_v58  ;;  %vm5048_vm15 = vweird.f32 %v13051_v4  ;;  %v16136_v9 = vld [vmem:[#allocation61_spill] sm:$0xff] }
 0x898   :  { %v5051_v35 = vand.u32 2147483647, %v12998_v60  ;;  %v5053_v3 = vand.u32 2147483648, %v12998_v60  ;;  %v4890_v54 = vsel %vm13318_vm11, %v4889_v24, %v4885_v22  ;;  %vm5049_vm0 = vmor %vm5047_vm14, %vm5048_vm15  ;;  %v13340_v15 = vadd.f32 1e-06, %v2955_v47  ;;  %v16135_v47 = vld [vmem:[#allocation118_spill] sm:$0xff] }
 0x899   :  { %5350 = vmatpush.xpose.msra.mxu3 %v4441_v2  ;;  %v16128_v46 = vsub.f32 1.0, %v16127_v36  ;;  %vm4417_vm1 = vweird.f32 %v16130_v16  ;;  %v4891_v17 = vmul.f32 %v4890_v54, %v16131_v57  ;;  %v5050_v59 = vsel %vm5049_vm0, %v13051_v4, %v5046_v61 }
 0x89a   :  { %vm5052_vm2 = vcmp.eq.f32.partialorder %v5051_v35, 8.507059e+37  ;;  %v5054_v0 = vor.u32 1.1754944e-38, %v5053_v3  ;;  %7352 = vrcp.f32 %v13340_v15  ;;  %vm4418_vm3 = vweird.f32 %v16129_v32 }
 0x89b   :  { %v4415_v43 = vmul.f32 %v16129_v32, %v16128_v46  ;;  %v4421_v14 = vand.u32 2147483647, %v16130_v16  ;;  %v5029_v40 = vsub.f32 1.0, %v13298_v31  ;;  %5398 = vmatpush.xpose.msra.mxu1 %v4891_v17  ;;  %vm13353_vm13 = vmor %vm4417_vm1, %vm4418_vm3  ;;  %v4423_v4 = vand.u32 2147483648, %v16130_v16  ;;  %v16141_v17 = vld [vmem:[#allocation67_spill] sm:$0xff] }
 0x89c   :  { %v5055_v38 = vsel %vm5052_vm2, %v5054_v0, %v5050_v59  ;;  %v16134_v25 = vsub.f32 1.0, %v12828_v56  ;;  %v13361_v51 = vpop.eup %7350  ;;  %v3306_v2 = vadd.f32 %v16136_v9, %v16135_v47  ;;  %vm4867_vm4 = vweird.f32 %v12744_v53  ;;  %v16144_v9 = vld [vmem:[#allocation142_spill] sm:$0xff] }
 0x89d   :  { %v4416_v60 = vadd.f32 %v16129_v32, %v4415_v43  ;;  %v5056_v44 = vmul.f32 %v5055_v38, %v3318_v34  ;;  %v13371_v22 = vmul.f32 %v13361_v51, %v13323_v27  ;;  %v4424_v56 = vor.u32 1.1754944e-38, %v4423_v4  ;;  %v16140_v43 = vld [vmem:[#allocation168_spill] sm:$0xff] }
 0x89e   :  { %v4865_v42 = vmul.f32 %v12818_v45, %v16134_v25  ;;  %vm4868_vm5 = vweird.f32 %v12818_v45  ;;  %vm4422_vm6 = vcmp.eq.f32.partialorder %v4421_v14, 8.507059e+37  ;;  %v4871_v61 = vand.u32 2147483647, %v12744_v53  ;;  %v13404_v25 = vpop.f32.mrf.mxu0 }
 0x89f   :  { %v4420_v58 = vsel %vm13353_vm13, %v16129_v32, %v4416_v60  ;;  %5426 = vmatpush.xpose.msrb.mxu2 %v5056_v44  ;;  %vm13375_vm7 = vmor %vm4867_vm4, %vm4868_vm5  ;;  %v4873_v35 = vand.u32 2147483648, %v12744_v53  ;;  %v4609_v3 = vsub.f32 1.0, %v13155_v18  ;;  %v4819_v54 = vsub.f32 1.0, %v13371_v22  ;;  %v16139_v32 = vld [vmem:[#allocation53_spill] sm:$0xff] }
 0x8a0   :  { %v4866_v24 = vadd.f32 %v12818_v45, %v4865_v42  ;;  %v4425_v36 = vsel %vm4422_vm6, %v4424_v56, %v4420_v58  ;;  %v3289_v16 = vadd.f32 %v16140_v43, %v16139_v32  ;;  %v13388_v57 = vpop.eup %7352  ;;  %vm4872_vm8 = vcmp.eq.f32.partialorder %v4871_v61, 8.507059e+37  ;;  %v16143_v58 = vld [vmem:[#allocation196_spill] sm:$0xff] }
 0x8a1   :  { %v4426_v59 = vmul.f32 %v4425_v36, %v16141_v17  ;;  %v4874_v0 = vor.u32 1.1754944e-38, %v4873_v35  ;;  %v4610_v53 = vmul.f32 %v13143_v21, %v4609_v3  ;;  %v13394_v18 = vmul.f32 %v13388_v57, %v13340_v15  ;;  %v3017_v3 = vpop.xlane.xlu1 %3016 }
 0x8a2   :  { %v4870_v46 = vsel %vm13375_vm7, %v12818_v45, %v4866_v24  ;;  %vm4613_vm9 = vweird.f32 %v13143_v21  ;;  %v4616_v60 = vand.u32 2147483647, %v13099_v13  ;;  %v4618_v45 = vand.u32 2147483648, %v13099_v13 }
 0x8a3   :  { %5351 = vmatpush.xpose.msra.mxu3 %v4426_v59  ;;  %v4875_v14 = vsel %vm4872_vm8, %v4874_v0, %v4870_v46  ;;  %v4611_v38 = vadd.f32 %v13143_v21, %v4610_v53  ;;  %vm4612_vm10 = vweird.f32 %v13099_v13  ;;  %v16142_v19 = vsub.f32 1.0, %v12727_v7 }
 0x8a4   :  { %v4876_v42 = vmul.f32 %v4875_v14, %v3306_v2  ;;  %vm4614_vm11 = vmor %vm4612_vm10, %vm4613_vm9  ;;  %vm4617_vm12 = vcmp.eq.f32.partialorder %v4616_v60, 8.507059e+37  ;;  %v4619_v44 = vor.u32 1.1754944e-38, %v4618_v45  ;;  %v3275_v56 = vadd.f32 %v16144_v9, %v16143_v58  ;;  %v16148_v60 = vld [vmem:[#allocation150_spill] sm:$0xff] }
 0x8a5   :  { %v4400_v4 = vmul.f32 %v12716_v6, %v16142_v19  ;;  %v4615_v24 = vsel %vm4614_vm11, %v13143_v21, %v4611_v38  ;;  %vm4402_vm14 = vweird.f32 %v12622_v49  ;;  %vm4403_vm15 = vweird.f32 %v12716_v6  ;;  %v13419_v21 = vpop.xlane.xlu0 %2984  ;;  %v16152_v2 = vld [vmem:[#allocation158_spill] sm:$0xff] }
 0x8a6   :  { %v4339_v7 = vsub.f32 1.0, %v13394_v18  ;;  %5399 = vmatpush.xpose.msra.mxu1 %v4876_v42  ;;  %v4620_v13 = vsel %vm4617_vm12, %v4619_v44, %v4615_v24  ;;  %vm13413_vm0 = vmor %vm4402_vm14, %vm4403_vm15  ;;  %v4406_v61 = vand.u32 2147483647, %v12622_v49  ;;  %v4408_v35 = vand.u32 2147483648, %v12622_v49  ;;  %v13449_v9 = vpop.f32.mrf.mxu0 }
 0x8a7   :  { %v4401_v34 = vadd.f32 %v12716_v6, %v4400_v4  ;;  %v4621_v36 = vmul.f32 %v4620_v13, %v3289_v16  ;;  %v16147_v43 = vsub.f32 1.0, %v12981_v11  ;;  %vm4852_vm1 = vweird.f32 %v12898_v26 }
 0x8a8   :  { %vm4407_vm2 = vcmp.eq.f32.partialorder %v4406_v61, 8.507059e+37  ;;  %v4409_v59 = vor.u32 1.1754944e-38, %v4408_v35  ;;  %vm4853_vm3 = vweird.f32 %v12966_v8  ;;  %v4856_v49 = vand.u32 2147483647, %v12898_v26  ;;  %v16154_v35 = vld [vmem:[#allocation96_spill] sm:$0xff] }
 0x8a9   :  { %v4405_v46 = vsel %vm13413_vm0, %v12716_v6, %v4401_v34  ;;  %v4850_v17 = vmul.f32 %v12966_v8, %v16147_v43  ;;  %5377 = vmatpush.xpose.msrb.mxu0 %v4621_v36  ;;  %v4858_v16 = vand.u32 2147483648, %v12898_v26  ;;  %v13432_v53 = vadd.f32 1e-06, %v2987_v39  ;;  %vm4854_vm13 = vmor %vm4852_vm1, %vm4853_vm3  ;;  %v16149_v26 = vld [vmem:[#allocation134_spill] sm:$0xff]  ;;  %v16150_v39 = vld [vmem:[#allocation183_spill] sm:$0xff] }
 0x8aa   :  { %v13434_v6 = vadd.f32 1e-06, %v3017_v3  ;;  %v4410_v11 = vsel %vm4407_vm2, %v4409_v59, %v4405_v46  ;;  %v3305_v45 = vadd.f32 %v16148_v60, %v16139_v32  ;;  %vm4857_vm4 = vcmp.eq.f32.partialorder %v4856_v49, 8.507059e+37  ;;  %v16151_v34 = vld [vmem:[#allocation56_spill] sm:$0xff]  ;;  %v16155_v46 = vld [vmem:[#allocation66_spill] sm:$0xff] }
 0x8ab   :  { %v4851_v0 = vadd.f32 %v12966_v8, %v4850_v17  ;;  %v4594_v14 = vsub.f32 1.0, %v12925_v23  ;;  %v4411_v38 = vmul.f32 %v4410_v11, %v3275_v56  ;;  %v4859_v4 = vor.u32 1.1754944e-38, %v4858_v16  ;;  %v16158_v11 = vld [vmem:[#allocation124_spill] sm:$0xff] }
 0x8ac   :  { %7354 = vrcp.f32 %v13432_v53  ;;  %v3288_v42 = vadd.f32 %v16150_v39, %v16149_v26  ;;  %vm4598_vm5 = vweird.f32 %v12887_v12  ;;  %vm4597_vm6 = vweird.f32 %v12810_v63 }
 0x8ad   :  { %v4855_v19 = vsel %vm4854_vm13, %v12966_v8, %v4851_v0  ;;  %7356 = vrcp.f32 %v13434_v6  ;;  %v4595_v44 = vmul.f32 %v12887_v12, %v4594_v14  ;;  %5352 = vmatpush.xpose.msra.mxu3 %v4411_v38  ;;  %v4601_v23 = vand.u32 2147483647, %v12810_v63  ;;  %vm4599_vm7 = vmor %vm4597_vm6, %vm4598_vm5  ;;  %v13463_v59 = vpop.xlane.xlu0 %2950 }
 0x8ae   :  { %v4860_v58 = vsel %vm4857_vm4, %v4859_v4, %v4855_v19  ;;  %v4603_v8 = vand.u32 2147483648, %v12810_v63  ;;  %v3274_v13 = vadd.f32 %v16151_v34, %v16135_v47  ;;  %v16153_v61 = vsub.f32 1.0, %v16152_v2  ;;  %v16162_v2 = vld [vmem:[#allocation76_spill] sm:$0xff] }
 0x8af   :  { %v4861_v56 = vmul.f32 %v4860_v58, %v3305_v45  ;;  %v4596_v24 = vadd.f32 %v12887_v12, %v4595_v44  ;;  %vm4387_vm8 = vweird.f32 %v16155_v46  ;;  %vm4388_vm9 = vweird.f32 %v16154_v35 }
 0x8b0   :  { %v4385_v3 = vmul.f32 %v16154_v35, %v16153_v61  ;;  %v4604_v36 = vor.u32 1.1754944e-38, %v4603_v8  ;;  %v4391_v63 = vand.u32 2147483647, %v16155_v46  ;;  %vm4602_vm10 = vcmp.eq.f32.partialorder %v4601_v23, 8.507059e+37  ;;  %vm13467_vm11 = vmor %vm4387_vm8, %vm4388_vm9 }
 0x8b1   :  { %5400 = vmatpush.xpose.msra.mxu1 %v4861_v56  ;;  %v4600_v43 = vsel %vm4599_vm7, %v12887_v12, %v4596_v24  ;;  %v4393_v47 = vand.u32 2147483648, %v16155_v46  ;;  %v3304_v60 = vadd.f32 %v16158_v11, %v16149_v26  ;;  %v4835_v12 = vmul.f32 %v13171_v28, %v4834_v55 }
 0x8b2   :  { %v4386_v17 = vadd.f32 %v16154_v35, %v4385_v3  ;;  %v13465_v49 = vpop.eup %7354  ;;  %v4605_v0 = vsel %vm4602_vm10, %v4604_v36, %v4600_v43  ;;  %vm4392_vm12 = vcmp.eq.f32.partialorder %v4391_v63, 8.507059e+37  ;;  %vm4837_vm14 = vweird.f32 %v13122_v10  ;;  %v13519_v36 = vpop.f32.mrf.mxu0  ;;  %v16165_v43 = vld [vmem:[#allocation62_spill] sm:$0xff] }
 0x8b3   :  { %v13476_v45 = vpop.eup %7356  ;;  %v4606_v14 = vmul.f32 %v4605_v0, %v3288_v42  ;;  %v4394_v19 = vor.u32 1.1754944e-38, %v4393_v47  ;;  %v4836_v39 = vadd.f32 %v13171_v28, %v4835_v12  ;;  %vm4838_vm15 = vweird.f32 %v13171_v28 }
 0x8b4   :  { %v4390_v38 = vsel %vm13467_vm11, %v16154_v35, %v4386_v17  ;;  %v13484_v4 = vmul.f32 %v13476_v45, %v13434_v6  ;;  %v4841_v29 = vand.u32 2147483647, %v13122_v10  ;;  %v13491_v55 = vmul.f32 %v13465_v49, %v13432_v53  ;;  %vm13493_vm0 = vmor %vm4837_vm14, %vm4838_vm15  ;;  %v16166_v17 = vld [vmem:[#allocation100_spill] sm:$0xff] }
 0x8b5   :  { %5378 = vmatpush.xpose.msrb.mxu0 %v4606_v14  ;;  %v4395_v42 = vsel %vm4392_vm12, %v4394_v19, %v4390_v38  ;;  %v4843_v58 = vand.u32 2147483648, %v13122_v10  ;;  %v16161_v23 = vsub.f32 1.0, %v13023_v33  ;;  %v4840_v34 = vsel %vm13493_vm0, %v13171_v28, %v4836_v39  ;;  %v13538_v12 = vpop.xlane.xlu0 %3012  ;;  %v16177_v33 = vld [vmem:[#allocation195_spill] sm:$0xff] }
 0x8b6   :  { %v4804_v56 = vsub.f32 1.0, %v13484_v4  ;;  %v4396_v24 = vmul.f32 %v4395_v42, %v3274_v13  ;;  %v3273_v61 = vadd.f32 %v16162_v2, %v16139_v32  ;;  %vm4372_vm1 = vweird.f32 %v12946_v62  ;;  %v3015_v13 = vpop.xlane.xlu1 %3014  ;;  %v16174_v2 = vld [vmem:[#allocation109_spill] sm:$0xff] }
 0x8b7   :  { %v4370_v8 = vmul.f32 %v13014_v30, %v16161_v23  ;;  %v4844_v35 = vor.u32 1.1754944e-38, %v4843_v58  ;;  %vm4373_vm2 = vweird.f32 %v13014_v30  ;;  %vm4842_vm3 = vcmp.eq.f32.partialorder %v4841_v29, 8.507059e+37  ;;  %v16169_v29 = vld [vmem:[#allocation101_spill] sm:$0xff] }
 0x8b8   :  { %5353 = vmatpush.xpose.msra.mxu3 %v4396_v24  ;;  %vm13510_vm13 = vmor %vm4372_vm1, %vm4373_vm2  ;;  %v4376_v10 = vand.u32 2147483647, %v12946_v62  ;;  %v4378_v28 = vand.u32 2147483648, %v12946_v62  ;;  %v5030_v32 = vmul.f32 %v13281_v48, %v5029_v40  ;;  %v3317_v47 = vadd.f32 %v16166_v17, %v16165_v43  ;;  %v16173_v24 = vld [vmem:[#allocation113_spill] sm:$0xff] }
 0x8b9   :  { %v4371_v3 = vadd.f32 %v13014_v30, %v4370_v8  ;;  %v4845_v46 = vsel %vm4842_vm3, %v4844_v35, %v4840_v34  ;;  %vm5033_vm4 = vweird.f32 %v13281_v48  ;;  %vm5032_vm5 = vweird.f32 %v13232_v50  ;;  %v16172_v8 = vld [vmem:[#allocation43_spill] sm:$0xff]  ;;  %v16176_v35 = vld [vmem:[#allocation108_spill] sm:$0xff] }
 0x8ba   :  { %v4846_v0 = vmul.f32 %v4845_v46, %v3304_v60  ;;  %v4379_v16 = vor.u32 1.1754944e-38, %v4378_v28  ;;  %v5031_v62 = vadd.f32 %v13281_v48, %v5030_v32  ;;  %vm4377_vm6 = vcmp.eq.f32.partialorder %v4376_v10, 8.507059e+37  ;;  %vm13529_vm7 = vmor %vm5032_vm5, %vm5033_vm4 }
 0x8bb   :  { %v4375_v63 = vsel %vm13510_vm13, %v13014_v30, %v4371_v3  ;;  %v5036_v40 = vand.u32 2147483647, %v13232_v50  ;;  %v5038_v30 = vand.u32 2147483648, %v13232_v50  ;;  %v13536_v11 = vadd.f32 1e-06, %v13419_v21 }
 0x8bc   :  { %5401 = vmatpush.xpose.msra.mxu1 %v4846_v0  ;;  %v4380_v60 = vsel %vm4377_vm6, %v4379_v16, %v4375_v63  ;;  %v5035_v14 = vsel %vm13529_vm7, %v13281_v48, %v5031_v62  ;;  %v13543_v38 = vadd.f32 1e-06, %v3015_v13  ;;  %v4355_v19 = vmul.f32 %v13260_v41, %v4354_v1  ;;  %v13577_v13 = vpop.f32.mrf.mxu0  ;;  %v16181_v0 = vld [vmem:[#allocation85_spill] sm:$0xff] }
 0x8bd   :  { %v4381_v39 = vmul.f32 %v4380_v60, %v3273_v61  ;;  %vm5037_vm8 = vcmp.eq.f32.partialorder %v5036_v40, 8.507059e+37  ;;  %v5039_v50 = vor.u32 1.1754944e-38, %v5038_v30  ;;  %7358 = vrcp.f32 %v13536_v11 }
 0x8be   :  { %7360 = vrcp.f32 %v13543_v38  ;;  %v4356_v21 = vadd.f32 %v13260_v41, %v4355_v19  ;;  %vm4357_vm9 = vweird.f32 %v13213_v52  ;;  %vm4358_vm10 = vweird.f32 %v13260_v41  ;;  %v2983_v32 = vpop.xlane.xlu1 %2982  ;;  %v13601_v19 = vpop.xlane.xlu0 %2948 }
 0x8bf   :  { %5354 = vmatpush.xpose.msra.mxu3 %v4381_v39  ;;  %v5040_v48 = vsel %vm5037_vm8, %v5039_v50, %v5035_v14  ;;  %v3272_v20 = vadd.f32 %v16169_v29, %v16149_v26  ;;  %vm13555_vm11 = vmor %vm4357_vm9, %vm4358_vm10  ;;  %v4361_v42 = vand.u32 2147483647, %v13213_v52  ;;  %v4363_v44 = vand.u32 2147483648, %v13213_v52 }
 0x8c0   :  { %v5041_v58 = vmul.f32 %v5040_v48, %v3317_v47  ;;  %v4360_v23 = vsel %vm13555_vm11, %v13260_v41, %v4356_v21  ;;  %v3316_v34 = vadd.f32 %v16173_v24, %v16172_v8  ;;  %v16175_v61 = vsub.f32 1.0, %v16174_v2  ;;  %v16180_v47 = vld [vmem:[#allocation81_spill] sm:$0xff]  ;;  %v16184_v48 = vld [vmem:[#allocation198_spill] sm:$0xff] }
 0x8c1   :  { %v4364_v3 = vor.u32 1.1754944e-38, %v4363_v44  ;;  %vm5017_vm12 = vweird.f32 %v16177_v33  ;;  %vm5018_vm14 = vweird.f32 %v16176_v35  ;;  %v5021_v10 = vand.u32 2147483647, %v16177_v33 }
 0x8c2   :  { %v5015_v26 = vmul.f32 %v16176_v35, %v16175_v61  ;;  %5427 = vmatpush.xpose.msrb.mxu2 %v5041_v58  ;;  %vm4362_vm15 = vcmp.eq.f32.partialorder %v4361_v42, 8.507059e+37  ;;  %v5023_v41 = vand.u32 2147483648, %v16177_v33  ;;  %v4820_v28 = vmul.f32 %v13361_v51, %v4819_v54  ;;  %vm13581_vm0 = vmor %vm5017_vm12, %vm5018_vm14 }
 0x8c3   :  { %v13579_v46 = vpop.eup %7358  ;;  %v4365_v63 = vsel %vm4362_vm15, %v4364_v3, %v4360_v23  ;;  %vm5022_vm1 = vcmp.eq.f32.partialorder %v5021_v10, 8.507059e+37  ;;  %v3303_v16 = vadd.f32 %v16181_v0, %v16180_v47  ;;  %vm4823_vm2 = vweird.f32 %v13361_v51 }
 0x8c4   :  { %v5016_v52 = vadd.f32 %v16176_v35, %v5015_v26  ;;  %v13588_v62 = vpop.eup %7360  ;;  %v4366_v22 = vmul.f32 %v4365_v63, %v3272_v20  ;;  %v5024_v31 = vor.u32 1.1754944e-38, %v5023_v41  ;;  %vm4822_vm3 = vweird.f32 %v13323_v27  ;;  %v16190_v41 = vld [vmem:[#allocation99_spill] sm:$0xff] }
 0x8c5   :  { %v13596_v40 = vmul.f32 %v13588_v62, %v13543_v38  ;;  %v4821_v30 = vadd.f32 %v13361_v51, %v4820_v28  ;;  %v4826_v60 = vand.u32 2147483647, %v13323_v27  ;;  %v4828_v14 = vand.u32 2147483648, %v13323_v27  ;;  %vm13607_vm13 = vmor %vm4822_vm3, %vm4823_vm2 }
 0x8c6   :  { %v5020_v54 = vsel %vm13581_vm0, %v16176_v35, %v5016_v52  ;;  %v13605_v39 = vmul.f32 %v13579_v46, %v13536_v11  ;;  %5355 = vmatpush.xpose.msra.mxu3 %v4366_v22  ;;  %v3271_v29 = vadd.f32 %v16184_v48, %v16180_v47  ;;  %v4340_v20 = vmul.f32 %v13388_v57, %v4339_v7  ;;  %v16188_v35 = vld [vmem:[#allocation187_spill] sm:$0xff]  ;;  %v13640_v3 = vpop.permute.xlu1 %529  ;;  %v13648_v52 = vpop.f32.mrf.mxu0 }
 0x8c7   :  { %v5025_v50 = vsel %vm5022_vm1, %v5024_v31, %v5020_v54  ;;  %v4789_v27 = vsub.f32 1.0, %v13596_v40  ;;  %v4825_v42 = vsel %vm13607_vm13, %v13361_v51, %v4821_v30  ;;  %vm4342_vm4 = vweird.f32 %v13340_v15  ;;  %v13658_v0 = vpop.permute.xlu0 %559  ;;  %v16193_v54 = vld [vmem:[#allocation189_spill] sm:$0xff] }
 0x8c8   :  { %v5026_v1 = vmul.f32 %v5025_v50, %v3316_v34  ;;  %v4829_v44 = vor.u32 1.1754944e-38, %v4828_v14  ;;  %v4341_v58 = vadd.f32 %v13388_v57, %v4340_v20  ;;  %vm4343_vm5 = vweird.f32 %v13388_v57  ;;  %v16194_v50 = vld [vmem:[#allocation78_spill] sm:$0xff] }
 0x8c9   :  { %v4346_v23 = vand.u32 2147483647, %v13340_v15  ;;  %vm4827_vm6 = vcmp.eq.f32.partialorder %v4826_v60, 8.507059e+37  ;;  %vm13624_vm7 = vmor %vm4342_vm4, %vm4343_vm5  ;;  %v4348_v7 = vand.u32 2147483648, %v13340_v15  ;;  %v13630_v24 = vadd.f32 1e-06, %v13463_v59 }
 0x8ca   :  { %5428 = vmatpush.xpose.msrb.mxu2 %v5026_v1  ;;  %v13632_v51 = vadd.f32 1e-06, %v2983_v32  ;;  %v4830_v34 = vsel %vm4827_vm6, %v4829_v44, %v4825_v42  ;;  %v4345_v2 = vsel %vm13624_vm7, %v13388_v57, %v4341_v58  ;;  %v16187_v61 = vsub.f32 1.0, %v13039_v5  ;;  %v16189_v15 = vld [vmem:[#allocation157_spill] sm:$0xff] }
 0x8cb   :  { %vm4347_vm8 = vcmp.eq.f32.partialorder %v4346_v23, 8.507059e+37  ;;  %v4831_v33 = vmul.f32 %v4830_v34, %v3303_v16  ;;  %v4349_v10 = vor.u32 1.1754944e-38, %v4348_v7  ;;  %7362 = vrcp.f32 %v13630_v24  ;;  %v16198_v32 = vld [vmem:[#allocation69_spill] sm:$0xff] }
 0x8cc   :  { %v4325_v26 = vmul.f32 %v16188_v35, %v16187_v61  ;;  %vm4327_vm9 = vweird.f32 %v16189_v15  ;;  %7364 = vrcp.f32 %v13632_v51  ;;  %vm4328_vm10 = vweird.f32 %v16188_v35  ;;  %v16207_v23 = vld [vmem:[#allocation169_spill] sm:$0xff] }
 0x8cd   :  { %v4331_v57 = vand.u32 2147483647, %v16189_v15  ;;  %5402 = vmatpush.xpose.msra.mxu1 %v4831_v33  ;;  %v4350_v5 = vsel %vm4347_vm8, %v4349_v10, %v4345_v2  ;;  %v3270_v28 = vadd.f32 %v16190_v41, %v16124_v37  ;;  %vm13652_vm11 = vmor %vm4327_vm9, %vm4328_vm10  ;;  %v4333_v63 = vand.u32 2147483648, %v16189_v15 }
 0x8ce   :  { %v4326_v59 = vadd.f32 %v16188_v35, %v4325_v26  ;;  %v4579_v17 = vsub.f32 1.0, %v13491_v55  ;;  %v4351_v16 = vmul.f32 %v4350_v5, %v3271_v29  ;;  %v3287_v31 = vadd.f32 %v16193_v54, %v16180_v47  ;;  %v13687_v44 = vpop.permute.xlu1 %544 }
 0x8cf   :  { %vm4332_vm12 = vcmp.eq.f32.partialorder %v4331_v57, 8.507059e+37  ;;  %v4334_v30 = vor.u32 1.1754944e-38, %v4333_v63  ;;  %vm4583_vm14 = vweird.f32 %v13465_v49  ;;  %v4586_v14 = vand.u32 2147483647, %v13432_v53  ;;  %v13706_v10 = vpop.permute.xlu0 %534  ;;  %v13713_v57 = vpop.f32.mrf.mxu0 }
 0x8d0   :  { %v4330_v22 = vsel %vm13652_vm11, %v16188_v35, %v4326_v59  ;;  %v4580_v60 = vmul.f32 %v13465_v49, %v4579_v17  ;;  %5356 = vmatpush.xpose.msra.mxu3 %v4351_v16  ;;  %vm4582_vm15 = vweird.f32 %v13432_v53  ;;  %v4588_v55 = vand.u32 2147483648, %v13432_v53  ;;  %v2981_v63 = vpop.xlane.xlu2 %2980 }
 0x8d1   :  { %v3302_v21 = vadd.f32 %v16194_v50, %v16124_v37  ;;  %v4805_v48 = vmul.f32 %v13476_v45, %v4804_v56  ;;  %v13675_v47 = vpop.eup %7362  ;;  %v4335_v29 = vsel %vm4332_vm12, %v4334_v30, %v4330_v22  ;;  %vm4807_vm0 = vweird.f32 %v13434_v6  ;;  %vm4584_vm2 = vmor %vm4582_vm15, %vm4583_vm14 }
 0x8d2   :  { %v4581_v20 = vadd.f32 %v13465_v49, %v4580_v60  ;;  %vm4808_vm1 = vweird.f32 %v13476_v45  ;;  %v13680_v1 = vpop.eup %7364  ;;  %v4308_v53 = vmul.f32 %v13675_v47, %v13630_v24  ;;  %v4336_v42 = vmul.f32 %v4335_v29, %v3270_v28 }
 0x8d3   :  { %v4589_v4 = vor.u32 1.1754944e-38, %v4588_v55  ;;  %v4806_v56 = vadd.f32 %v13476_v45, %v4805_v48  ;;  %vm4587_vm3 = vcmp.eq.f32.partialorder %v4586_v14, 8.507059e+37  ;;  %vm13690_vm13 = vmor %vm4807_vm0, %vm4808_vm1  ;;  %v4811_v18 = vand.u32 2147483647, %v13434_v6 }
 0x8d4   :  { %v4585_v58 = vsel %vm4584_vm2, %v13465_v49, %v4581_v20  ;;  %v4813_v7 = vand.u32 2147483648, %v13434_v6  ;;  %v13698_v34 = vmul.f32 %v13680_v1, %v13632_v51  ;;  %5357 = vmatpush.xpose.msra.mxu3 %v4336_v42  ;;  %v13704_v49 = vadd.f32 1e-06, %v13538_v12  ;;  %v16197_v6 = vld [vmem:[#allocation127_spill] sm:$0xff] }
 0x8d5   :  { %v4590_v2 = vsel %vm4587_vm3, %v4589_v4, %v4585_v58  ;;  %v4810_v61 = vsel %vm13690_vm13, %v13476_v45, %v4806_v56  ;;  %v4309_v35 = vsub.f32 1.0, %v4308_v53  ;;  %vm4812_vm4 = vcmp.eq.f32.partialorder %v4811_v18, 8.507059e+37 }
 0x8d6   :  { %v4591_v26 = vmul.f32 %v4590_v2, %v3287_v31  ;;  %v4814_v33 = vor.u32 1.1754944e-38, %v4813_v7  ;;  %7366 = vrcp.f32 %v13704_v49  ;;  %v3286_v15 = vadd.f32 %v16197_v6, %v16124_v37  ;;  %v13743_v30 = vpop.permute.xlu1 %594 }
 0x8d7   :  { %v4564_v59 = vsub.f32 1.0, %v13605_v39  ;;  %vm4567_vm5 = vweird.f32 %v13536_v11  ;;  %vm4568_vm6 = vweird.f32 %v13579_v46  ;;  %v4571_v12 = vand.u32 2147483647, %v13536_v11  ;;  %v13767_v53 = vpop.permute.xlu0 %549 }
 0x8d8   :  { %5379 = vmatpush.xpose.msrb.mxu0 %v4591_v26  ;;  %v4815_v45 = vsel %vm4812_vm4, %v4814_v33, %v4810_v61  ;;  %v4573_v5 = vand.u32 2147483648, %v13536_v11  ;;  %v3301_v37 = vadd.f32 %v16198_v32, %v16165_v43  ;;  %v4790_v39 = vmul.f32 %v13588_v62, %v4789_v27  ;;  %vm13734_vm10 = vmor %vm4567_vm5, %vm4568_vm6  ;;  %v13783_v61 = vpop.f32.mrf.mxu0 }
 0x8d9   :  { %v4816_v41 = vmul.f32 %v4815_v45, %v3302_v21  ;;  %v4565_v28 = vmul.f32 %v13579_v46, %v4564_v59  ;;  %vm13724_vm7 = vcmp.eq.f32.partialorder %v4571_v12, 8.507059e+37  ;;  %vm4792_vm8 = vweird.f32 %v13543_v38 }
 0x8da   :  { %vm4793_vm9 = vweird.f32 %v13588_v62  ;;  %v4796_v16 = vand.u32 2147483647, %v13543_v38  ;;  %v4791_v27 = vadd.f32 %v13588_v62, %v4790_v39  ;;  %v4798_v54 = vand.u32 2147483648, %v13543_v38 }
 0x8db   :  { %5403 = vmatpush.xpose.msra.mxu1 %v4816_v41  ;;  %v4566_v22 = vadd.f32 %v13579_v46, %v4565_v28  ;;  %v13741_v31 = vadd.f32 1e-06, %v13601_v19  ;;  %v4574_v60 = vor.u32 1.1754944e-38, %v4573_v5  ;;  %vm13745_vm11 = vmor %vm4792_vm8, %vm4793_vm9  ;;  %v13749_v11 = vadd.f32 1e-06, %v2981_v63  ;;  %v16209_v41 = vld [vmem:[#allocation152_spill] sm:$0xff] }
 0x8dc   :  { %vm4797_vm12 = vcmp.eq.f32.partialorder %v4796_v16, 8.507059e+37  ;;  %v4310_v55 = vmul.f32 %v13675_v47, %v4309_v35  ;;  %v13752_v50 = vpop.eup %7366  ;;  %v4795_v19 = vsel %vm13745_vm11, %v13588_v62, %v4791_v27  ;;  %v4799_v21 = vor.u32 1.1754944e-38, %v4798_v54 }
 0x8dd   :  { %v4570_v38 = vsel %vm13734_vm10, %v13579_v46, %v4566_v22  ;;  %7368 = vrcp.f32 %v13741_v31  ;;  %v4773_v48 = vmul.f32 %v13752_v50, %v13704_v49  ;;  %vm4312_vm14 = vweird.f32 %v13630_v24  ;;  %v16210_v22 = vld [vmem:[#allocation143_spill] sm:$0xff] }
 0x8de   :  { %v4575_v29 = vsel %vm13724_vm7, %v4574_v60, %v4570_v38  ;;  %7370 = vrcp.f32 %v13749_v11  ;;  %v4311_v20 = vadd.f32 %v13675_v47, %v4310_v55  ;;  %v4800_v42 = vsel %vm4797_vm12, %v4799_v21, %v4795_v19  ;;  %v16211_v38 = vld [vmem:[#allocation131_spill] sm:$0xff] }
 0x8df   :  { %v4576_v46 = vmul.f32 %v4575_v29, %v3286_v15  ;;  %vm4313_vm15 = vweird.f32 %v13675_v47  ;;  %v4801_v62 = vmul.f32 %v4800_v42, %v3301_v37  ;;  %v4316_v56 = vand.u32 2147483647, %v13630_v24  ;;  %v600_v14 = vpop.permute.xlu0 %599  ;;  %v16212_v42 = vld [vmem:[#allocation172_spill] sm:$0xff] }
 0x8e0   :  { %vm13771_vm0 = vmor %vm4312_vm14, %vm4313_vm15  ;;  %v4318_v58 = vand.u32 2147483648, %v13630_v24  ;;  %v3269_v18 = vadd.f32 %v16207_v23, %v16165_v43  ;;  %v4549_v2 = vsub.f32 1.0, %v13698_v34  ;;  %v4774_v35 = vsub.f32 1.0, %v4773_v48  ;;  %v13793_v34 = vpop.permute.xlu1 %539  ;;  %v757_v29 = vpop.f32.mrf.mxu0 }
 0x8e1   :  { %5380 = vmatpush.xpose.msrb.mxu0 %v4576_v46  ;;  %v4315_v7 = vsel %vm13771_vm0, %v13675_v47, %v4311_v20  ;;  %5404 = vmatpush.xpose.msra.mxu1 %v4801_v62  ;;  %vm4317_vm1 = vcmp.eq.f32.partialorder %v4316_v56, 8.507059e+37  ;;  %v4556_v33 = vand.u32 2147483647, %v13632_v51  ;;  %vm4553_vm2 = vweird.f32 %v13680_v1  ;;  %v16208_v47 = vld [vmem:[#allocation83_spill] sm:$0xff] }
 0x8e2   :  { %v4319_v26 = vor.u32 1.1754944e-38, %v4318_v58  ;;  %v4550_v24 = vmul.f32 %v13680_v1, %v4549_v2  ;;  %v4558_v15 = vand.u32 2147483648, %v13632_v51  ;;  %v719_v59 = vadd.f32 %v16208_v47, %v13640_v3  ;;  %v16215_v47 = vld [vmem:[#allocation97_spill] sm:$0xff] }
 0x8e3   :  { %v13786_v6 = vpop.eup %7368  ;;  %v3285_v28 = vadd.f32 %v16209_v41, %v16165_v43  ;;  %vm4552_vm3 = vweird.f32 %v13632_v51  ;;  %vm4557_vm13 = vcmp.eq.f32.partialorder %v4556_v33, 8.507059e+37  ;;  %v4775_v17 = vmul.f32 %v13752_v50, %v4774_v35 }
 0x8e4   :  { %v13795_v45 = vpop.eup %7370  ;;  %v4293_v12 = vmul.f32 %v13786_v6, %v13741_v31  ;;  %v4320_v5 = vsel %vm4317_vm1, %v4319_v26, %v4315_v7  ;;  %v4551_v39 = vadd.f32 %v13680_v1, %v4550_v24  ;;  %5271 = vmatmul.f32.gmra.mxu3 %v719_v59  ;;  %vm4554_vm4 = vmor %vm4552_vm3, %vm4553_vm2  ;;  %v4559_v63 = vor.u32 1.1754944e-38, %v4558_v15  ;;  %v16213_v7 = vld [vmem:[#allocation164_spill] sm:$0xff]  ;;  %v16214_v26 = vld [vmem:[#allocation146_spill] sm:$0xff] }
 0x8e5   :  { %v4533_v32 = vmul.f32 %v13795_v45, %v13749_v11  ;;  %v4321_v37 = vmul.f32 %v4320_v5, %v3269_v18  ;;  %vm4778_vm5 = vweird.f32 %v13752_v50  ;;  %v4781_v51 = vand.u32 2147483647, %v13704_v49 }
 0x8e6   :  { %v4294_v3 = vsub.f32 1.0, %v4293_v12  ;;  %v4555_v43 = vsel %vm4554_vm4, %v13680_v1, %v4551_v39  ;;  %v4783_v16 = vand.u32 2147483648, %v13704_v49  ;;  %v728_v40 = vadd.f32 %v16210_v22, %v13687_v44 }
 0x8e7   :  { %5358 = vmatpush.xpose.msra.mxu3 %v4321_v37  ;;  %v4560_v27 = vsel %vm4557_vm13, %v4559_v63, %v4555_v43  ;;  %v4776_v54 = vadd.f32 %v13752_v50, %v4775_v17  ;;  %vm4777_vm6 = vweird.f32 %v13704_v49  ;;  %v737_v60 = vadd.f32 %v13404_v25, %v13658_v0 }
 0x8e8   :  { %v4561_v55 = vmul.f32 %v4560_v27, %v3285_v28  ;;  %v3300_v1 = vadd.f32 %v16211_v38, %v16172_v8  ;;  %vm4779_vm7 = vmor %vm4777_vm6, %vm4778_vm5  ;;  %v4784_v19 = vor.u32 1.1754944e-38, %v4783_v16  ;;  %5314 = vmatmul.f32.vlgmr.msrb.gmra.mxu1 %v728_v40  ;;  %v4295_v21 = vmul.f32 %v13786_v6, %v4294_v3  ;;  %v585_v20 = vpop.permute.xlu1 %584  ;;  %v16216_v28 = vld [vmem:[#allocation50_spill] sm:$0xff] }
 0x8e9   :  { %v4780_v44 = vsel %vm4779_vm7, %v13752_v50, %v4776_v54  ;;  %vm4782_vm8 = vcmp.eq.f32.partialorder %v4781_v51, 8.507059e+37  ;;  %5340 = vmatmul.f32.gmra.mxu2 %v737_v60  ;;  %vm4298_vm9 = vweird.f32 %v13786_v6  ;;  %v4301_v49 = vand.u32 2147483647, %v13741_v31 }
 0x8ea   :  { %5381 = vmatpush.xpose.msrb.mxu0 %v4561_v55  ;;  %v4785_v25 = vsel %vm4782_vm8, %v4784_v19, %v4780_v44  ;;  %v4296_v0 = vadd.f32 %v13786_v6, %v4295_v21  ;;  %vm4297_vm10 = vweird.f32 %v13741_v31  ;;  %v4303_v48 = vand.u32 2147483648, %v13741_v31  ;;  %v13855_v19 = vld [vmem:[%s14518_s8] sm:$0xff]  ;;  %v13861_v21 = vld [vmem:[%s14518_s8 + $0x8] sm:$0xff]  ;;  %v13867_v44 = vld [vmem:[%s14518_s8 + $0x10] sm:$0xff] }
 0x8eb   :  { %v4786_v46 = vmul.f32 %v4785_v25, %v3300_v1  ;;  %v3268_v50 = vadd.f32 %v16212_v42, %v16172_v8  ;;  %vm4299_vm11 = vmor %vm4297_vm10, %vm4298_vm9  ;;  %vm4302_vm12 = vcmp.eq.f32.partialorder %v4301_v49, 8.507059e+37  ;;  %v4534_v62 = vsub.f32 1.0, %v4533_v32  ;;  %v13873_v49 = vld [vmem:[%s14518_s8 + $0x28] sm:$0xff]  ;;  %v13879_v25 = vld [vmem:[%s14518_s8 + $0x18] sm:$0xff] }
 0x8ec   :  { %v4300_v4 = vsel %vm4299_vm11, %v13786_v6, %v4296_v0  ;;  %v4304_v56 = vor.u32 1.1754944e-38, %v4303_v48  ;;  %vm4538_vm14 = vweird.f32 %v13795_v45  ;;  %v4541_v58 = vand.u32 2147483647, %v13749_v11  ;;  %v5436_v0 = vld [vmem:[#allocation7] sm:$0xff]  ;;  %v13903_v42 = vld [vmem:[%s14518_s8 + $0x38] sm:$0xff] }
 0x8ed   :  { %5405 = vmatpush.xpose.msra.mxu1 %v4786_v46  ;;  %v4535_v23 = vmul.f32 %v13795_v45, %v4534_v62  ;;  %v4543_v31 = vand.u32 2147483648, %v13749_v11  ;;  %v758_v18 = vadd.f32 %v757_v29, %v13743_v30  ;;  %v722_v2 = vadd.f32 %v16213_v7, %v13706_v10  ;;  %v575_v10 = vpop.permute.xlu0 %574  ;;  %v13885_v48 = vld [vmem:[%s14518_s8 + $0x20] sm:$0xff]  ;;  %v5437_v46 = vld [vmem:[#allocation7 + $0x8] sm:$0xff]  ;;  %v7439_v7 = vld [vmem:[%s14518_s8 + $0x78] sm:$0xff] }
 0x8ee   :  { %v4305_v35 = vsel %vm4302_vm12, %v4304_v56, %v4300_v4  ;;  %v731_v33 = vadd.f32 %v16214_v26, %v13767_v53  ;;  %vm4537_vm15 = vweird.f32 %v13749_v11  ;;  %v3284_v30 = vadd.f32 %v16215_v47, %v16172_v8  ;;  %v760_v53 = vpop.f32.mrf.mxu0  ;;  %v565_v8 = vpop.permute.xlu2 %564  ;;  %v13891_v29 = vld [vmem:[%s14518_s8 + $0x40] sm:$0xff]  ;;  %v13915_v62 = vld [vmem:[%s14518_s8 + $0x48] sm:$0xff]  ;;  %v5438_v4 = vld [vmem:[#allocation7 + $0x10] sm:$0xff] }
 0x8ef   :  { %v4306_v6 = vmul.f32 %v4305_v35, %v3268_v50  ;;  %v4536_v24 = vadd.f32 %v13795_v45, %v4535_v23  ;;  %5291 = vmatmul.f32.vlgmr.msrb.gmra.mxu3 %v722_v2  ;;  %vm4539_vm0 = vmor %vm4537_vm15, %vm4538_vm14  ;;  %v4544_v15 = vor.u32 1.1754944e-38, %v4543_v31  ;;  %vm4542_vm1 = vcmp.eq.f32.partialorder %v4541_v58, 8.507059e+37  ;;  %v5338_v43 = vpop.f32.mrf.mxu2  ;;  %v13909_v50 = vld [vmem:[%s14518_s8 + $0x58] sm:$0xff]  ;;  %v7435_v56 = vld [vmem:[%s14518_s8 + $0x50] sm:$0xff] }
 0x8f0   :  { %5317 = vmatmul.f32.gmra.mxu1 %v731_v33  ;;  %v590_v5 = vpop.permute.xlu1 %589  ;;  %v725_v11 = vadd.f32 %v16216_v28, %v13793_v34  ;;  %v752_v32 = vadd.f32 %v13713_v57, %v585_v20  ;;  %v746_v37 = vadd.f32 %v13577_v13, %v575_v10  ;;  %v761_v39 = vadd.f32 %v760_v53, %v600_v14  ;;  %v5269_v57 = vpop.f32.mrf.mxu3  ;;  %v13897_v20 = vld [vmem:[%s14518_s8 + $0x30] sm:$0xff]  ;;  %v13927_v23 = vld [vmem:[%s14518_s8 + $0x60] sm:$0xff]  ;;  %v5439_v31 = vld [vmem:[#allocation7 + $0x18] sm:$0xff] }
 0x8f1   :  { %5359 = vmatpush.xpose.msra.mxu3 %v4306_v6  ;;  %v4540_v59 = vsel %vm4539_vm0, %v13795_v45, %v4536_v24  ;;  %5429 = vmatmul.f32.vlgmr.msrb.gmra.mxu2 %v758_v18  ;;  %v755_v3 = vadd.f32 %v13783_v61, %v590_v5  ;;  %v740_v17 = vadd.f32 %v13449_v9, %v565_v8  ;;  %v7604_v1 = vmov 1   ;;  %v7436_v58 = vld [vmem:[%s14518_s8 + $0x70] sm:$0xff]  ;;  %v7438_v18 = vld [vmem:[%s14518_s8 + $0x68] sm:$0xff]  ;;  %v5440_v2 = vld [vmem:[#allocation7 + $0x20] sm:$0xff] }
 0x8f2   :  { %v4545_v12 = vsel %vm4542_vm1, %v4544_v15, %v4540_v59  ;;  %6833 = vset.pattern.permute.xlu0 %v7604_v1  ;;  %6834 = vset.pattern.permute.xlu1 %v7604_v1  ;;  %v5441_v35 = vld [vmem:[#allocation7 + $0x28] sm:$0xff]  ;;  %v5442_v26 = vld [vmem:[#allocation7 + $0x30] sm:$0xff]  ;;  %v5443_v33 = vld [vmem:[#allocation7 + $0x38] sm:$0xff]  ;;  %v7605_v10 = vmov 3   ;;  %v7606_v5 = vmov 2  }
 0x8f3   :  { %v4546_v41 = vmul.f32 %v4545_v12, %v3284_v30  ;;  %5534 = vperm.xlu0 %6833, %v13855_v19   ;;  %5538 = vperm.xlu1 %6834, %v13861_v21   ;;  %v5444_v6 = vld [vmem:[#allocation7 + $0x40] sm:$0xff]  ;;  %v5445_v24 = vld [vmem:[#allocation7 + $0x48] sm:$0xff]  ;;  %v5446_v15 = vld [vmem:[#allocation7 + $0x50] sm:$0xff] }
 0x8f4   :  { %6835 = vset.pattern.permute.xlu2 %v7604_v1  ;;  %v5447_v47 = vld [vmem:[#allocation7 + $0x58] sm:$0xff]  ;;  %v5448_v30 = vld [vmem:[#allocation7 + $0x60] sm:$0xff]  ;;  %v5449_v59 = vld [vmem:[#allocation7 + $0x68] sm:$0xff] }
 0x8f5   :  { %5382 = vmatpush.xpose.msrb.mxu0 %v4546_v41  ;;  %v570_v34 = vpop.permute.xlu0 %569  ;;  %5542 = vperm.xlu2 %6835, %v13867_v44   ;;  %v5450_v12 = vld [vmem:[#allocation7 + $0x70] sm:$0xff]  ;;  %v5451_v53 = vld [vmem:[#allocation7 + $0x78] sm:$0xff]  ;;  %v16217_v28 = vld [vmem:[#allocation16_spill] sm:$0xff] }
 0x8f6   :  { %v743_v13 = vadd.f32 %v13519_v36, %v570_v34  ;;  %v16218_v8 = vld [vmem:[#allocation17_spill] sm:$0xff] }
 0x8f7   :  { %5294 = vmatmul.f32.gmra.mxu3 %v725_v11 }
 0x8f8   :  { %5406 = vmatmul.f32.vlgmr.msra.gmra.mxu1 %v752_v32  ;;  %5383 = vmatmul.f32.vlgmr.msrb.gmra.mxu0 %v746_v37  ;;  %v580_v45 = vpop.permute.xlu1 %579 }
 0x8f9   :  { %5432 = vmatmul.f32.gmra.mxu2 %v761_v39  ;;  %v749_v63 = vadd.f32 %v13648_v52, %v580_v45 }
 0x8fb   :  { %5554 = vperm.xlu0 %6833, %v13873_v49   ;;  %5546 = vperm.xlu1 %6834, %v13879_v25  }
 0x8fd   :  { %5550 = vperm.xlu2 %6835, %v13885_v48  }
 0x8ff   :  { %5360 = vmatmul.f32.vlgmr.msra.gmra.mxu3 %v740_v17 }
 0x900   :  { %5409 = vmatmul.f32.gmra.mxu1 %v755_v3  ;;  %5386 = vmatmul.f32.gmra.mxu0 %v749_v63 }
 0x903   :  { %5566 = vperm.xlu0 %6833, %v13891_v29   ;;  %5558 = vperm.xlu1 %6834, %v13897_v20  }
 0x905   :  { %5562 = vperm.xlu2 %6835, %v13903_v42  }
 0x907   :  { %5363 = vmatmul.f32.gmra.mxu3 %v743_v13 }
 0x90b   :  { %5578 = vperm.xlu0 %6833, %v13909_v50   ;;  %5570 = vperm.xlu1 %6834, %v13915_v62  }
 0x90d   :  { %5574 = vperm.xlu2 %6835, %v7435_v56  }
 0x913   :  { %5590 = vperm.xlu0 %6833, %v7436_v58   ;;  %5582 = vperm.xlu1 %6834, %v13927_v23  }
 0x915   :  { %5586 = vperm.xlu2 %6835, %v7438_v18  }
 0x91b   :  { %5594 = vperm.xlu1 %6834, %v7439_v7   ;;  %6838 = vset.pattern.permute.xlu0 %v7605_v10 }
 0x91c   :  { %5856 = vperm.xlu0 %6838, %v7438_v18  }
 0x91d   :  { %6836 = vset.pattern.permute.xlu2 %v7606_v5 }
 0x91e   :  { %5784 = vperm.xlu2 %6836, %v7439_v7  }
 0x923   :  { %6837 = vset.pattern.permute.xlu1 %v7605_v10 }
 0x924   :  { %5864 = vperm.xlu1 %6837, %v7439_v7   ;;  %6839 = vset.pattern.permute.xlu0 %v7606_v5 }
 0x925   :  { %5780 = vperm.xlu0 %6839, %v7436_v58  }
 0x926   :  { %5776 = vperm.xlu2 %6836, %v7438_v18  }
 0x92c   :  { %5860 = vperm.xlu1 %6837, %v7436_v58  }
 0x92d   :  { %5760 = vperm.xlu0 %6839, %v13915_v62  }
 0x92e   :  { %5772 = vperm.xlu2 %6836, %v13927_v23  }
 0x934   :  { %6840 = vset.pattern.permute.xlu1 %v7606_v5 }
 0x935   :  { %5768 = vperm.xlu1 %6840, %v13909_v50   ;;  %5740 = vperm.xlu0 %6839, %v13885_v48  }
 0x936   :  { %6841 = vset.pattern.permute.xlu2 %v7605_v10 }
 0x937   :  { %5852 = vperm.xlu2 %6841, %v13927_v23  }
 0x93d   :  { %5764 = vperm.xlu1 %6840, %v7435_v56   ;;  %6846 = vset.pattern.permute.xlu0 %v7605_v10 }
 0x93e   :  { %5836 = vperm.xlu0 %6846, %v13891_v29  }
 0x93f   :  { %5848 = vperm.xlu2 %6841, %v13909_v50  }
 0x945   :  { %6842 = vset.pattern.permute.xlu1 %v7605_v10 }
 0x946   :  { %5844 = vperm.xlu1 %6842, %v7435_v56   ;;  %5816 = vperm.xlu0 %6846, %v13879_v25  }
 0x947   :  { %6843 = vset.pattern.permute.xlu2 %v7606_v5 }
 0x948   :  { %5756 = vperm.xlu2 %6843, %v13891_v29  }
 0x94e   :  { %5840 = vperm.xlu1 %6842, %v13915_v62   ;;  %5804 = vperm.xlu0 %6846, %v13855_v19  }
 0x94f   :  { %v5543_v13 = vpop.permute.xlu2 %5542 }
 0x950   :  { %5752 = vperm.xlu2 %6843, %v13903_v42  }
 0x956   :  { %6844 = vset.pattern.permute.xlu1 %v7606_v5 }
 0x957   :  { %5748 = vperm.xlu1 %6844, %v13897_v20  }
 0x958   :  { %6845 = vset.pattern.permute.xlu2 %v7605_v10 }
 0x959   :  { %5832 = vperm.xlu2 %6845, %v13903_v42  }
 0x95f   :  { %5744 = vperm.xlu1 %6844, %v13873_v49  }
 0x961   :  { %5828 = vperm.xlu2 %6845, %v13897_v20  }
 0x965   :  { %v5315_v51 = vpop.f32.mrf.mxu1  ;;  %v5535_v32 = vpop.permute.xlu0 %5534 }
 0x966   :  { %v5539_v39 = vpop.permute.xlu1 %5538 }
 0x967   :  { %v5272_v16 = vpop.f32.mrf.mxu3  ;;  %6847 = vset.pattern.permute.xlu1 %v7605_v10 }
 0x968   :  { %5824 = vperm.xlu1 %6847, %v13873_v49  }
 0x969   :  { %6848 = vset.pattern.permute.xlu2 %v7606_v5 }
 0x96a   :  { %5736 = vperm.xlu2 %6848, %v13879_v25  }
 0x96c   :  { %v5341_v22 = vpop.f32.mrf.mxu2 }
 0x96d   :  { %v5318_v40 = vpop.f32.mrf.mxu1  ;;  %v5555_v56 = vpop.permute.xlu0 %5554 }
 0x970   :  { %5820 = vperm.xlu1 %6847, %v13885_v48  }
 0x972   :  { %v5292_v27 = vpop.f32.mrf.mxu3  ;;  %5732 = vperm.xlu2 %6848, %v13867_v44  }
 0x974   :  { %v5430_v54 = vpop.f32.mrf.mxu2 }
 0x975   :  { %v5407_v61 = vpop.f32.mrf.mxu1  ;;  %v5384_v60 = vpop.f32.mrf.mxu0 }
 0x978   :  { %6849 = vset.pattern.permute.xlu1 %v7606_v5  ;;  %v16226_v5 = vld [vmem:[#allocation25_spill] sm:$0xff] }
 0x979   :  { %5728 = vperm.xlu1 %6849, %v13861_v21  }
 0x97a   :  { %v5295_v52 = vpop.f32.mrf.mxu3  ;;  %6850 = vset.pattern.permute.xlu2 %v7605_v10 }
 0x97b   :  { %5812 = vperm.xlu2 %6850, %v13867_v44  }
 0x97c   :  { %v5433_v14 = vpop.f32.mrf.mxu2 }
 0x97d   :  { %5452 = vmatpush.msrb.mxu3 %v5433_v14  ;;  %v5410_v9 = vpop.f32.mrf.mxu1  ;;  %v5387_v38 = vpop.f32.mrf.mxu0 }
 0x97e   :  { %v5551_v14 = vpop.permute.xlu2 %5550 }
 0x97f   :  { %5453 = vmatpush.msrb.mxu3 %v5430_v54 }
 0x981   :  { %5454 = vmatpush.msrb.mxu3 %v5410_v9  ;;  %v16221_v9 = vld [vmem:[#allocation20_spill] sm:$0xff]  ;;  %5724 = vperm.xlu1 %6849, %v13855_v19  }
 0x982   :  { %v5361_v55 = vpop.f32.mrf.mxu3 }
 0x983   :  { %5455 = vmatpush.msrb.mxu3 %v5407_v61  ;;  %5808 = vperm.xlu2 %6850, %v13861_v21  }
 0x985   :  { %5456 = vmatpush.msrb.mxu3 %v5387_v38 }
 0x986   :  { %v5563_v7 = vpop.permute.xlu2 %5562 }
 0x987   :  { %5457 = vmatpush.msrb.mxu3 %v5384_v60 }
 0x98a   :  { %v5364_v36 = vpop.f32.mrf.mxu3 }
 0x98b   :  { %5458 = vmatpush.msrb.mxu3 %v5364_v36 }
 0x98d   :  { %5459 = vmatpush.msrb.mxu3 %v5361_v55 }
 0x98f   :  { %5460 = vmatpush.msrb.mxu3 %v5341_v22 }
 0x991   :  { %5461 = vmatpush.msrb.mxu3 %v5338_v43 }
 0x993   :  { %5462 = vmatpush.msrb.mxu3 %v5318_v40  ;;  %v5547_v40 = vpop.permute.xlu1 %5546 }
 0x995   :  { %5463 = vmatpush.msrb.mxu3 %v5315_v51 }
 0x997   :  { %5464 = vmatpush.msrb.mxu3 %v5295_v52 }
 0x999   :  { %5465 = vmatpush.msrb.mxu3 %v5292_v27  ;;  %v16220_v27 = vld [vmem:[#allocation19_spill] sm:$0xff] }
 0x99b   :  { %5466 = vmatpush.msrb.mxu3 %v5272_v16  ;;  %v5559_v58 = vpop.permute.xlu1 %5558 }
 0x99d   :  { %5467 = vmatpush.msrb.mxu3 %v5269_v57  ;;  %v16219_v57 = vld [vmem:[#allocation18_spill] sm:$0xff] }
 0x99e   :  { %5468 = vmatmul.f32.vlgmr.msrb.gmra.mxu3 %v5436_v0 }
 0x9a6   :  { %5471 = vmatmul.f32.gmra.mxu3 %v5437_v46 }
 0x9ae   :  { %5474 = vmatmul.f32.gmra.mxu3 %v5438_v4 }
 0x9b6   :  { %5477 = vmatmul.f32.gmra.mxu3 %v5439_v31  ;;  %v16222_v31 = vld [vmem:[#allocation21_spill] sm:$0xff] }
 0x9be   :  { %5480 = vmatmul.f32.gmra.mxu3 %v5440_v2  ;;  %v16223_v2 = vld [vmem:[#allocation22_spill] sm:$0xff] }
 0x9c6   :  { %5483 = vmatmul.f32.gmra.mxu3 %v5441_v35 }
 0x9ce   :  { %5486 = vmatmul.f32.gmra.mxu3 %v5442_v26  ;;  %v5567_v26 = vpop.permute.xlu0 %5566 }
 0x9d6   :  { %5489 = vmatmul.f32.gmra.mxu3 %v5443_v33 }
 0x9de   :  { %5492 = vmatmul.f32.gmra.mxu3 %v5444_v6  ;;  %v16224_v6 = vld [vmem:[#allocation23_spill] sm:$0xff] }
 0x9e6   :  { %5495 = vmatmul.f32.gmra.mxu3 %v5445_v24 }
 0x9ee   :  { %5498 = vmatmul.f32.gmra.mxu3 %v5446_v15  ;;  %v5571_v15 = vpop.permute.xlu1 %5570 }
 0x9f6   :  { %5501 = vmatmul.f32.gmra.mxu3 %v5447_v47 }
 0x9fe   :  { %5504 = vmatmul.f32.gmra.mxu3 %v5448_v30  ;;  %v16225_v30 = vld [vmem:[#allocation24_spill] sm:$0xff] }
 0xa06   :  { %5507 = vmatmul.f32.gmra.mxu3 %v5449_v59 }
 0xa0e   :  { %5510 = vmatmul.f32.gmra.mxu3 %v5450_v12 }
 0xa16   :  { %5513 = vmatmul.f32.gmra.mxu3 %v5451_v53 }
 0xa21   :  { %v5469_v41 = vpop.f32.mrf.mxu3 }
 0xa22   :  { %v5517_v11 = vadd.f32 %v5469_v41, %v16217_v28  ;;  %v5575_v28 = vpop.permute.xlu2 %5574 }
 0xa24   :  { %v13948_v3 = vadd.f32 %v5535_v32, %v5517_v11 }
 0xa29   :  { %v5472_v37 = vpop.f32.mrf.mxu3 }
 0xa2a   :  { %v5518_v45 = vadd.f32 %v5472_v37, %v16218_v8  ;;  %v16227_v37 = vld [vmem:[#allocation26_spill] sm:$0xff]  ;;  %v5579_v8 = vpop.permute.xlu0 %5578 }
 0xa2c   :  { %v13950_v63 = vadd.f32 %v5539_v39, %v5518_v45 }
 0xa2e   :  { %v5613_v17 = vadd.f32 %v13950_v63, %v13948_v3 }
 0xa31   :  { %v5475_v34 = vpop.f32.mrf.mxu3 }
 0xa32   :  { %v5519_v43 = vadd.f32 %v5475_v34, %v16219_v57  ;;  %v16228_v34 = vld [vmem:[#allocation27_spill] sm:$0xff] }
 0xa34   :  { %v13960_v51 = vadd.f32 %v5543_v13, %v5519_v43 }
 0xa36   :  { %v5614_v16 = vadd.f32 %v5613_v17, %v13960_v51 }
 0xa39   :  { %v5478_v22 = vpop.f32.mrf.mxu3 }
 0xa3a   :  { %v5520_v54 = vadd.f32 %v5478_v22, %v16220_v27  ;;  %v5583_v27 = vpop.permute.xlu1 %5582 }
 0xa3c   :  { %v13968_v61 = vadd.f32 %v5547_v40, %v5520_v54  ;;  %v7607_v40 = vmov 128.0  }
 0xa3d   :  { %7372 = vrcp.f32 %v7607_v40 }
 0xa3e   :  { %v5615_v60 = vadd.f32 %v5614_v16, %v13968_v61  ;;  %v16229_v16 = vld [vmem:[#allocation28_spill] sm:$0xff] }
 0xa41   :  { %v5481_v52 = vpop.f32.mrf.mxu3 }
 0xa42   :  { %v5521_v55 = vadd.f32 %v5481_v52, %v16221_v9 }
 0xa44   :  { %v13976_v38 = vadd.f32 %v5551_v14, %v5521_v55  ;;  %v16230_v14 = vld [vmem:[#allocation29_spill] sm:$0xff] }
 0xa46   :  { %v5616_v36 = vadd.f32 %v5615_v60, %v13976_v38 }
 0xa49   :  { %v5484_v1 = vpop.f32.mrf.mxu3 }
 0xa4a   :  { %v5522_v18 = vadd.f32 %v5484_v1, %v16222_v31  ;;  %v16231_v1 = vld [vmem:[#allocation30_spill] sm:$0xff] }
 0xa4c   :  { %v13997_v33 = vadd.f32 %v5555_v56, %v5522_v18 }
 0xa4e   :  { %v5617_v12 = vadd.f32 %v5616_v36, %v13997_v33 }
 0xa51   :  { %v5487_v0 = vpop.f32.mrf.mxu3 }
 0xa52   :  { %v5523_v35 = vadd.f32 %v5487_v0, %v16223_v2 }
 0xa54   :  { %v14000_v47 = vadd.f32 %v5559_v58, %v5523_v35  ;;  %v5595_v35 = vpop.permute.xlu1 %5594 }
 0xa56   :  { %v5618_v11 = vadd.f32 %v5617_v12, %v14000_v47 }
 0xa59   :  { %v5490_v29 = vpop.f32.mrf.mxu3 }
 0xa5a   :  { %v5524_v24 = vadd.f32 %v5490_v29, %v16224_v6  ;;  %v5587_v29 = vpop.permute.xlu2 %5586 }
 0xa5c   :  { %v14004_v53 = vadd.f32 %v5563_v7, %v5524_v24  ;;  %v16232_v7 = vld [vmem:[#allocation31_spill] sm:$0xff] }
 0xa5e   :  { %v5619_v45 = vadd.f32 %v5618_v11, %v14004_v53 }
 0xa61   :  { %v5493_v46 = vpop.f32.mrf.mxu3 }
 0xa62   :  { %v5525_v59 = vadd.f32 %v5493_v46, %v16225_v30  ;;  %v7373_v46 = vpop.eup %7372 }
 0xa63   :  { %v5635_v31 = vmul.f32 128.0, %v7373_v46  ;;  %vm5639_vm2 = vweird.f32 %v7373_v46 }
 0xa64   :  { %v14008_v32 = vadd.f32 %v5567_v26, %v5525_v59 }
 0xa65   :  { %v5636_v24 = vsub.f32 1.0, %v5635_v31 }
 0xa66   :  { %v5620_v57 = vadd.f32 %v5619_v45, %v14008_v32 }
 0xa67   :  { %v5637_v59 = vmul.f32 %v7373_v46, %v5636_v24 }
 0xa69   :  { %v5496_v50 = vpop.f32.mrf.mxu3 }
 0xa6a   :  { %v5526_v41 = vadd.f32 %v5496_v50, %v16226_v5  ;;  %v5638_v5 = vadd.f32 %v7373_v46, %v5637_v59 }
 0xa6c   :  { %v14012_v17 = vadd.f32 %v5571_v15, %v5526_v41  ;;  %v5640_v11 = vsel %vm5639_vm2, %v7373_v46, %v5638_v5 }
 0xa6e   :  { %v5621_v60 = vadd.f32 %v5620_v57, %v14012_v17 }
 0xa71   :  { %v5499_v62 = vpop.f32.mrf.mxu3 }
 0xa72   :  { %v5527_v39 = vadd.f32 %v5499_v62, %v16227_v37 }
 0xa74   :  { %v14016_v43 = vadd.f32 %v5575_v28, %v5527_v39 }
 0xa76   :  { %v5622_v55 = vadd.f32 %v5621_v60, %v14016_v43 }
 0xa79   :  { %v5502_v4 = vpop.f32.mrf.mxu3 }
 0xa7a   :  { %v5528_v13 = vadd.f32 %v5502_v4, %v16228_v34  ;;  %v5591_v4 = vpop.permute.xlu0 %5590 }
 0xa7c   :  { %v5608_v52 = vadd.f32 %v5579_v8, %v5528_v13 }
 0xa7e   :  { %v5623_v50 = vadd.f32 %v5622_v55, %v5608_v52 }
 0xa81   :  { %v5505_v23 = vpop.f32.mrf.mxu3 }
 0xa82   :  { %v5529_v22 = vadd.f32 %v5505_v23, %v16229_v16 }
 0xa84   :  { %v5609_v36 = vadd.f32 %v5583_v27, %v5529_v22 }
 0xa86   :  { %v5624_v56 = vadd.f32 %v5623_v50, %v5609_v36 }
 0xa89   :  { %v5508_v10 = vpop.f32.mrf.mxu3 }
 0xa8a   :  { %v5530_v9 = vadd.f32 %v5508_v10, %v16230_v14 }
 0xa8c   :  { %v5610_v62 = vadd.f32 %v5587_v29, %v5530_v9 }
 0xa8e   :  { %v5625_v18 = vadd.f32 %v5624_v56, %v5610_v62 }
 0xa91   :  { %v5511_v54 = vpop.f32.mrf.mxu3 }
 0xa92   :  { %v5531_v0 = vadd.f32 %v5511_v54, %v16231_v1 }
 0xa94   :  { %v5611_v58 = vadd.f32 %v5591_v4, %v5531_v0 }
 0xa96   :  { %v5626_v26 = vadd.f32 %v5625_v18, %v5611_v58 }
 0xa99   :  { %v5514_v23 = vpop.f32.mrf.mxu3 }
 0xa9a   :  { %v5532_v2 = vadd.f32 %v5514_v23, %v16232_v7 }
 0xa9c   :  { %v5612_v6 = vadd.f32 %v5595_v35, %v5532_v2 }
 0xa9e   :  { %v5627_v15 = vadd.f32 %v5626_v26, %v5612_v6 }
 0xaa0   :  { %v5628_v30 = vrot.slane %v5627_v15, 4 }
 0xaa2   :  { %v5629_v10 = vadd.f32 %v5628_v30, %v5627_v15 }
 0xaa4   :  { %v5630_v12 = vrot.slane %v5629_v10, 2 }
 0xaa6   :  { %v5631_v41 = vadd.f32 %v5630_v12, %v5629_v10  ;;  %v5785_v10 = vpop.permute.xlu2 %5784 }
 0xaa8   :  { %v5632_v28 = vrot.slane %v5631_v41, 1 }
 0xaaa   :  { %v5633_v37 = vadd.f32 %v5632_v28, %v5631_v41  ;;  %v5865_v28 = vpop.permute.xlu1 %5864 }
 0xaac   :  { %v5641_v39 = vmul.f32 %v5640_v11, %v5633_v37 }
 0xaae   :  { %v14025_v8 = vsub.f32 %v13948_v3, %v5641_v39  ;;  %v14028_v45 = vsub.f32 %v13950_v63, %v5641_v39  ;;  %v14031_v34 = vsub.f32 %v13960_v51, %v5641_v39  ;;  %v14034_v13 = vsub.f32 %v13968_v61, %v5641_v39 }
 0xaaf   :  { %v14037_v57 = vsub.f32 %v13976_v38, %v5641_v39  ;;  %v14046_v40 = vsub.f32 %v13997_v33, %v5641_v39  ;;  %v14051_v38 = vsub.f32 %v14000_v47, %v5641_v39  ;;  %v14056_v60 = vsub.f32 %v14004_v53, %v5641_v39 }
 0xab0   :  { %v5658_v16 = vmul.f32 %v14025_v8, %v14025_v8  ;;  %v5659_v22 = vmul.f32 %v14028_v45, %v14028_v45  ;;  %v5660_v3 = vmul.f32 %v14031_v34, %v14031_v34  ;;  %v5661_v51 = vmul.f32 %v14034_v13, %v14034_v13 }
 0xab1   :  { %v5662_v27 = vmul.f32 %v14037_v57, %v14037_v57  ;;  %v5663_v14 = vmul.f32 %v14046_v40, %v14046_v40  ;;  %v14061_v33 = vsub.f32 %v14008_v32, %v5641_v39  ;;  %v5664_v55 = vmul.f32 %v14051_v38, %v14051_v38 }
 0xab2   :  { %v5674_v63 = vadd.f32 %v5659_v22, %v5658_v16  ;;  %v14066_v47 = vsub.f32 %v14012_v17, %v5641_v39  ;;  %v5665_v0 = vmul.f32 %v14056_v60, %v14056_v60  ;;  %v14071_v53 = vsub.f32 %v14016_v43, %v5641_v39 }
 0xab3   :  { %v5666_v46 = vmul.f32 %v14061_v33, %v14061_v33  ;;  %v5653_v32 = vsub.f32 %v5608_v52, %v5641_v39  ;;  %v5654_v23 = vsub.f32 %v5609_v36, %v5641_v39  ;;  %v5655_v18 = vsub.f32 %v5610_v62, %v5641_v39  ;;  %v5777_v62 = vpop.permute.xlu2 %5776 }
 0xab4   :  { %v5675_v61 = vadd.f32 %v5674_v63, %v5660_v3  ;;  %v5667_v4 = vmul.f32 %v14066_v47, %v14066_v47  ;;  %v5668_v17 = vmul.f32 %v14071_v53, %v14071_v53  ;;  %v5656_v35 = vsub.f32 %v5611_v58, %v5641_v39  ;;  %v5861_v63 = vpop.permute.xlu1 %5860 }
 0xab5   :  { %v5669_v7 = vmul.f32 %v5653_v32, %v5653_v32  ;;  %v5670_v43 = vmul.f32 %v5654_v23, %v5654_v23  ;;  %v5657_v24 = vsub.f32 %v5612_v6, %v5641_v39  ;;  %v5671_v15 = vmul.f32 %v5655_v18, %v5655_v18  ;;  %v5857_v39 = vpop.permute.xlu0 %5856 }
 0xab6   :  { %v5676_v54 = vadd.f32 %v5675_v61, %v5661_v51  ;;  %v5672_v59 = vmul.f32 %v5656_v35, %v5656_v35 }
 0xab7   :  { %v5673_v12 = vmul.f32 %v5657_v24, %v5657_v24 }
 0xab8   :  { %v5677_v9 = vadd.f32 %v5676_v54, %v5662_v27 }
 0xaba   :  { %v5678_v1 = vadd.f32 %v5677_v9, %v5663_v14 }
 0xabb   :  { %v5773_v6 = vpop.permute.xlu2 %5772 }
 0xabc   :  { %v5679_v29 = vadd.f32 %v5678_v1, %v5664_v55  ;;  %v5769_v27 = vpop.permute.xlu1 %5768 }
 0xabd   :  { %v5781_v55 = vpop.permute.xlu0 %5780 }
 0xabe   :  { %v5680_v50 = vadd.f32 %v5679_v29, %v5665_v0 }
 0xac0   :  { %v5681_v56 = vadd.f32 %v5680_v50, %v5666_v46 }
 0xac2   :  { %v5682_v31 = vadd.f32 %v5681_v56, %v5667_v4 }
 0xac3   :  { %v5853_v14 = vpop.permute.xlu2 %5852 }
 0xac4   :  { %v5683_v2 = vadd.f32 %v5682_v31, %v5668_v17  ;;  %v5765_v0 = vpop.permute.xlu1 %5764 }
 0xac5   :  { %v5761_v56 = vpop.permute.xlu0 %5760 }
 0xac6   :  { %v5684_v26 = vadd.f32 %v5683_v2, %v5669_v7 }
 0xac8   :  { %v5685_v30 = vadd.f32 %v5684_v26, %v5670_v43 }
 0xaca   :  { %v5686_v52 = vadd.f32 %v5685_v30, %v5671_v15 }
 0xacb   :  { %v5849_v50 = vpop.permute.xlu2 %5848 }
 0xacc   :  { %v5687_v5 = vadd.f32 %v5686_v52, %v5672_v59  ;;  %v5845_v17 = vpop.permute.xlu1 %5844 }
 0xace   :  { %v5688_v41 = vadd.f32 %v5687_v5, %v5673_v12 }
 0xad0   :  { %v5689_v36 = vrot.slane %v5688_v41, 4 }
 0xad2   :  { %v5690_v37 = vadd.f32 %v5689_v36, %v5688_v41  ;;  %v5741_v36 = vpop.permute.xlu0 %5740 }
 0xad3   :  { %v5757_v59 = vpop.permute.xlu2 %5756 }
 0xad4   :  { %v5691_v16 = vrot.slane %v5690_v37, 2 }
 0xad6   :  { %v5692_v22 = vadd.f32 %v5691_v16, %v5690_v37 }
 0xad8   :  { %v5693_v3 = vrot.slane %v5692_v22, 1 }
 0xada   :  { %v5694_v58 = vadd.f32 %v5693_v3, %v5692_v22 }
 0xadc   :  { %v5695_v51 = vmul.f32 %v5694_v58, %v5640_v11 }
 0xade   :  { %v5696_v61 = vadd.f32 1e-05, %v5695_v51 }
 0xae0   :  { %7374 = vrsqrt.f32 %v5696_v61  ;;  %vm5703_vm13 = vweird.f32 %v5696_v61 }
 0xae6   :  { %v7375_v54 = vpop.eup %7374 }
 0xae7   :  { %v5698_v9 = vmul.f32 %v7375_v54, %v5696_v61  ;;  %vm5704_vm3 = vweird.f32 %v7375_v54  ;;  %v5837_v61 = vpop.permute.xlu0 %5836 }
 0xae8   :  { %vm5705_vm4 = vmor %vm5703_vm13, %vm5704_vm3 }
 0xae9   :  { %v5699_v1 = vmul.f32 %v7375_v54, %v5698_v9 }
 0xaeb   :  { %v5700_v29 = vmul.f32 0.5, %v5699_v1 }
 0xaed   :  { %v5701_v46 = vsub.f32 1.5, %v5700_v29 }
 0xaef   :  { %v5702_v4 = vmul.f32 %v7375_v54, %v5701_v46 }
 0xaf1   :  { %v14079_v11 = vsel %vm5705_vm4, %v7375_v54, %v5702_v4 }
 0xaf2   :  { %v5722_v31 = vmul.f32 %v14079_v11, %v5657_v24  ;;  %v5720_v7 = vmul.f32 %v14079_v11, %v5655_v18  ;;  %v5719_v43 = vmul.f32 %v14079_v11, %v5654_v23  ;;  %v5721_v26 = vmul.f32 %v14079_v11, %v5656_v35  ;;  %v5841_v18 = vpop.permute.xlu1 %5840 }
 0xaf3   :  { %v5716_v15 = vmul.f32 %v14079_v11, %v14066_v47  ;;  %v5718_v12 = vmul.f32 %v14079_v11, %v5653_v32  ;;  %v5717_v24 = vmul.f32 %v14079_v11, %v14071_v53  ;;  %v5715_v47 = vmul.f32 %v14079_v11, %v14061_v33 }
 0xaf4   :  { %v5802_v2 = vmul.f32 %v5785_v10, %v5722_v31  ;;  %v5800_v52 = vmul.f32 %v5777_v62, %v5720_v7  ;;  %v5801_v5 = vmul.f32 %v5781_v55, %v5721_v26  ;;  %v5799_v41 = vmul.f32 %v5773_v6, %v5719_v43 }
 0xaf5   :  { %v5798_v23 = vmul.f32 %v5769_v27, %v5718_v12  ;;  %v5797_v16 = vmul.f32 %v5765_v0, %v5717_v24  ;;  %v5714_v22 = vmul.f32 %v14079_v11, %v14056_v60  ;;  %v5796_v62 = vmul.f32 %v5761_v56, %v5716_v15 }
 0xaf6   :  { %v5882_v30 = vadd.f32 %v5865_v28, %v5802_v2  ;;  %v5881_v10 = vadd.f32 %v5861_v63, %v5801_v5  ;;  %v5880_v37 = vadd.f32 %v5857_v39, %v5800_v52  ;;  %v5879_v35 = vadd.f32 %v5853_v14, %v5799_v41  ;;  %v5753_v28 = vpop.permute.xlu2 %5752 }
 0xaf7   :  { %v5878_v32 = vadd.f32 %v5849_v50, %v5798_v23  ;;  %v5877_v53 = vadd.f32 %v5845_v17, %v5797_v16  ;;  %v5795_v3 = vmul.f32 %v5757_v59, %v5715_v47  ;;  %v5794_v58 = vmul.f32 %v5753_v28, %v5714_v22  ;;  %v5885_v23 = vld [vmem:[#allocation8 + $0x10] sm:$0xff] }
 0xaf8   :  { %5923 = vmatpush.msra.mxu0 %v5882_v30  ;;  %v5876_v51 = vadd.f32 %v5841_v18, %v5796_v62  ;;  %v5713_v33 = vmul.f32 %v14079_v11, %v14051_v38  ;;  %v5712_v60 = vmul.f32 %v14079_v11, %v14046_v40  ;;  %v5711_v46 = vmul.f32 %v14079_v11, %v14037_v57  ;;  %v5817_v40 = vpop.permute.xlu0 %5816 }
 0xaf9   :  { %v5875_v6 = vadd.f32 %v5837_v61, %v5795_v3  ;;  %v5710_v38 = vmul.f32 %v14079_v11, %v14034_v13  ;;  %v5709_v43 = vmul.f32 %v14079_v11, %v14031_v34  ;;  %v5708_v13 = vmul.f32 %v14079_v11, %v14028_v45  ;;  %v5883_v34 = vld [vmem:[#allocation8] sm:$0xff] }
 0xafa   :  { %5924 = vmatpush.msra.mxu0 %v5881_v10  ;;  %v5749_v63 = vpop.permute.xlu1 %5748  ;;  %v5791_v4 = vmul.f32 %v5741_v36, %v5711_v46  ;;  %v5707_v59 = vmul.f32 %v14079_v11, %v14025_v8  ;;  %v5884_v36 = vld [vmem:[#allocation8 + $0x8] sm:$0xff]  ;;  %v7608_v45 = vmov 4   ;;  %v5886_v8 = vld [vmem:[#allocation8 + $0x18] sm:$0xff]  ;;  %v5887_v11 = vld [vmem:[#allocation8 + $0x20] sm:$0xff] }
 0xafb   :  { %v5793_v14 = vmul.f32 %v5749_v63, %v5713_v33  ;;  %6853 = vset.pattern.permute.xlu0 %v7608_v45  ;;  %6851 = vset.pattern.permute.xlu1 %v7608_v45 }
 0xafc   :  { %5925 = vmatpush.msra.mxu0 %v5880_v37  ;;  %5912 = vperm.xlu0 %6853, %v13873_v49   ;;  %v5888_v49 = vld [vmem:[#allocation8 + $0x28] sm:$0xff]  ;;  %v5890_v37 = vld [vmem:[#allocation8 + $0x38] sm:$0xff] }
 0xafd   :  { %5920 = vperm.xlu1 %6851, %v13903_v42   ;;  %6852 = vset.pattern.permute.xlu2 %v7608_v45  ;;  %v5889_v42 = vld [vmem:[#allocation8 + $0x30] sm:$0xff] }
 0xafe   :  { %5926 = vmatpush.msra.mxu0 %v5879_v35  ;;  %v5833_v39 = vpop.permute.xlu2 %5832  ;;  %5916 = vperm.xlu2 %6852, %v13897_v20  }
 0xaff   :  { %v5874_v27 = vadd.f32 %v5833_v39, %v5794_v58 }
 0xb00   :  { %5927 = vmatpush.msra.mxu0 %v5878_v32  ;;  %v5805_v24 = vpop.permute.xlu0 %5804 }
 0xb02   :  { %5928 = vmatpush.msra.mxu0 %v5877_v53  ;;  %v5745_v54 = vpop.permute.xlu1 %5744 }
 0xb03   :  { %v5792_v9 = vmul.f32 %v5745_v54, %v5712_v60 }
 0xb04   :  { %5929 = vmatpush.msra.mxu0 %v5876_v51  ;;  %5892 = vperm.xlu0 %6853, %v13855_v19  }
 0xb05   :  { %5908 = vperm.xlu1 %6851, %v13885_v48  }
 0xb06   :  { %5930 = vmatpush.msra.mxu0 %v5875_v6  ;;  %v5829_v55 = vpop.permute.xlu2 %5828  ;;  %5904 = vperm.xlu2 %6852, %v13879_v25  }
 0xb07   :  { %v5873_v1 = vadd.f32 %v5829_v55, %v5793_v14 }
 0xb08   :  { %5931 = vmatpush.msra.mxu0 %v5874_v27 }
 0xb0a   :  { %v5825_v0 = vpop.permute.xlu1 %5824  ;;  %5932 = vmatpush.msra.mxu0 %v5873_v1 }
 0xb0b   :  { %v5872_v29 = vadd.f32 %v5825_v0, %v5792_v9 }
 0xb0d   :  { %5933 = vmatpush.msra.mxu0 %v5872_v29  ;;  %5900 = vperm.xlu1 %6851, %v13867_v44  }
 0xb0e   :  { %v5737_v50 = vpop.permute.xlu2 %5736  ;;  %5896 = vperm.xlu2 %6852, %v13861_v21  }
 0xb0f   :  { %v5790_v56 = vmul.f32 %v5737_v50, %v5710_v38 }
 0xb11   :  { %v5870_v7 = vadd.f32 %v5817_v40, %v5790_v56 }
 0xb12   :  { %v5821_v17 = vpop.permute.xlu1 %5820 }
 0xb13   :  { %v5871_v31 = vadd.f32 %v5821_v17, %v5791_v4 }
 0xb15   :  { %5934 = vmatpush.msra.mxu0 %v5871_v31 }
 0xb16   :  { %v5733_v2 = vpop.permute.xlu2 %5732 }
 0xb17   :  { %5935 = vmatpush.msra.mxu0 %v5870_v7  ;;  %v5789_v15 = vmul.f32 %v5733_v2, %v5709_v43 }
 0xb1a   :  { %v5729_v26 = vpop.permute.xlu1 %5728 }
 0xb1b   :  { %v5788_v12 = vmul.f32 %v5729_v26, %v5708_v13 }
 0xb1e   :  { %v5813_v57 = vpop.permute.xlu2 %5812 }
 0xb1f   :  { %v5869_v30 = vadd.f32 %v5813_v57, %v5789_v15 }
 0xb21   :  { %5936 = vmatpush.msra.mxu0 %v5869_v30 }
 0xb22   :  { %v5725_v52 = vpop.permute.xlu1 %5724 }
 0xb23   :  { %v5787_v5 = vmul.f32 %v5725_v52, %v5707_v59 }
 0xb25   :  { %v5867_v10 = vadd.f32 %v5805_v24, %v5787_v5 }
 0xb26   :  { %v5809_v41 = vpop.permute.xlu2 %5808 }
 0xb27   :  { %v5868_v18 = vadd.f32 %v5809_v41, %v5788_v12 }
 0xb29   :  { %5937 = vmatpush.msra.mxu0 %v5868_v18 }
 0xb2b   :  { %5938 = vmatpush.msra.mxu0 %v5867_v10 }
 0xb2c   :  { %5939 = vmatmul.f32.vlgmr.msra.gmra.mxu0 %v5883_v34 }
 0xb34   :  { %5942 = vmatmul.f32.gmra.mxu0 %v5884_v36 }
 0xb3c   :  { %5945 = vmatmul.f32.gmra.mxu0 %v5885_v23 }
 0xb44   :  { %5948 = vmatmul.f32.gmra.mxu0 %v5886_v8 }
 0xb4c   :  { %5951 = vmatmul.f32.gmra.mxu0 %v5887_v11 }
 0xb54   :  { %5954 = vmatmul.f32.gmra.mxu0 %v5888_v49 }
 0xb58   :  { %v5917_v22 = vpop.permute.xlu2 %5916 }
 0xb5c   :  { %5957 = vmatmul.f32.gmra.mxu0 %v5889_v42 }
 0xb60   :  { %v5905_v61 = vpop.permute.xlu2 %5904 }
 0xb64   :  { %5960 = vmatmul.f32.gmra.mxu0 %v5890_v37 }
 0xb6e   :  { %v5913_v47 = vpop.permute.xlu0 %5912 }
 0xb6f   :  { %v5921_v2 = vpop.permute.xlu1 %5920 }
 0xb76   :  { %v5893_v52 = vpop.permute.xlu0 %5892 }
 0xba9   :  { %v5940_v20 = vpop.f32.mrf.mxu0 }
 0xbaa   :  { %v14170_v10 = vadd.f32 %v5940_v20, %v5893_v52 }
 0xbac   :  { %v14182_v37 = vmul.f32 0.70710677, %v14170_v10 }
 0xbb1   :  { %v14116_v35 = vpop.f32.mrf.mxu0 }
 0xbb9   :  { %v14118_v19 = vpop.f32.mrf.mxu0 }
 0xbc1   :  { %v5949_v48 = vpop.f32.mrf.mxu0 }
 0xbc2   :  { %v14139_v6 = vadd.f32 %v5949_v48, %v5905_v61 }
 0xbc4   :  { %v14145_v27 = vmul.f32 0.70710677, %v14139_v6 }
 0xbc6   :  { %v6100_v14 = vmul.f32 %v14145_v27, %v14145_v27 }
 0xbc8   :  { %v14151_v1 = vmin.f32 %v6100_v14, 16.0 }
 0xbc9   :  { %v14120_v16 = vpop.f32.mrf.mxu0 }
 0xbca   :  { %v6113_v38 = vmul.f32 3.8918573e-05, %v14151_v1 }
 0xbcc   :  { %v6114_v31 = vadd.f32 0.001143296, %v6113_v38 }
 0xbce   :  { %v6115_v13 = vmul.f32 %v6114_v31, %v14151_v1 }
 0xbd0   :  { %v6116_v18 = vadd.f32 0.014752088, %v6115_v13 }
 0xbd1   :  { %v5955_v25 = vpop.f32.mrf.mxu0 }
 0xbd2   :  { %v14122_v28 = vadd.f32 %v5955_v25, %v5913_v47  ;;  %v6117_v42 = vmul.f32 %v6116_v18, %v14151_v1 }
 0xbd4   :  { %v14125_v21 = vmul.f32 0.70710677, %v14122_v28 }
 0xbd6   :  { %v6180_v44 = vmul.f32 %v14125_v21, %v14125_v21 }
 0xbd8   :  { %v14129_v62 = vmin.f32 %v6180_v44, 16.0 }
 0xbd9   :  { %v5958_v32 = vpop.f32.mrf.mxu0 }
 0xbda   :  { %v14131_v53 = vadd.f32 %v5958_v32, %v5917_v22  ;;  %v6193_v3 = vmul.f32 3.8918573e-05, %v14129_v62  ;;  %v6182_v29 = vmul.f32 2.1237322e-06, %v14129_v62  ;;  %v6102_v22 = vmul.f32 2.1237322e-06, %v14151_v1 }
 0xbdc   :  { %v14135_v63 = vmul.f32 0.70710677, %v14131_v53  ;;  %v6194_v58 = vadd.f32 0.001143296, %v6193_v3  ;;  %v6183_v56 = vadd.f32 0.00028619796, %v6182_v29 }
 0xbde   :  { %v6220_v51 = vmul.f32 %v14135_v63, %v14135_v63  ;;  %v6195_v39 = vmul.f32 %v6194_v58, %v14129_v62  ;;  %v6184_v15 = vmul.f32 %v6183_v56, %v14129_v62  ;;  %v6118_v58 = vadd.f32 0.112945676, %v6117_v42 }
 0xbe0   :  { %v14142_v33 = vmin.f32 %v6220_v51, 16.0  ;;  %v6196_v54 = vadd.f32 0.014752088, %v6195_v39  ;;  %v6185_v41 = vadd.f32 0.0036580483, %v6184_v15  ;;  %v5980_v51 = vmul.f32 %v14182_v37, %v14182_v37 }
 0xbe1   :  { %v5961_v40 = vpop.f32.mrf.mxu0  ;;  %v6119_v29 = vmul.f32 %v6118_v58, %v14151_v1 }
 0xbe2   :  { %v6233_v60 = vmul.f32 3.8918573e-05, %v14142_v33  ;;  %v6197_v9 = vmul.f32 %v6196_v54, %v14129_v62  ;;  %v6222_v4 = vmul.f32 2.1237322e-06, %v14142_v33  ;;  %v14158_v26 = vadd.f32 %v5961_v40, %v5921_v2 }
 0xbe3   :  { %v6186_v11 = vmul.f32 %v6185_v41, %v14129_v62  ;;  %v6120_v15 = vadd.f32 0.4994258, %v6119_v29 }
 0xbe4   :  { %v6234_v55 = vadd.f32 0.001143296, %v6233_v60  ;;  %v6198_v0 = vadd.f32 0.112945676, %v6197_v9  ;;  %v6223_v43 = vadd.f32 0.00028619796, %v6222_v4 }
 0xbe5   :  { %v14164_v30 = vmul.f32 0.70710677, %v14158_v26  ;;  %v6187_v3 = vadd.f32 0.05243302, %v6186_v11  ;;  %v6103_v9 = vadd.f32 0.00028619796, %v6102_v22 }
 0xbe6   :  { %v6235_v46 = vmul.f32 %v6234_v55, %v14142_v33  ;;  %v6199_v50 = vmul.f32 %v6198_v0, %v14129_v62  ;;  %v6224_v12 = vmul.f32 %v6223_v43, %v14142_v33 }
 0xbe7   :  { %v6260_v5 = vmul.f32 %v14164_v30, %v14164_v30  ;;  %v6188_v0 = vmul.f32 %v6187_v3, %v14129_v62  ;;  %v6104_v40 = vmul.f32 %v6103_v9, %v14151_v1 }
 0xbe8   :  { %v6236_v17 = vadd.f32 0.014752088, %v6235_v46  ;;  %v6200_v7 = vadd.f32 0.4994258, %v6199_v50  ;;  %v6225_v23 = vadd.f32 0.0036580483, %v6224_v12 }
 0xbe9   :  { %v14172_v34 = vmin.f32 %v6260_v5, 16.0  ;;  %v14197_v46 = vmin.f32 %v5980_v51, 16.0  ;;  %v6189_v43 = vadd.f32 0.18741608, %v6188_v0  ;;  %v6105_v41 = vadd.f32 0.0036580483, %v6104_v40 }
 0xbea   :  { %v6237_v57 = vmul.f32 %v6236_v17, %v14142_v33  ;;  %v6201_v59 = vmul.f32 %v6200_v7, %v14129_v62  ;;  %v6226_v25 = vmul.f32 %v6225_v23, %v14142_v33  ;;  %v5909_v17 = vpop.permute.xlu1 %5908  ;;  %v6121_v23 = vmul.f32 %v6120_v15, %v14151_v1 }
 0xbeb   :  { %v6262_v45 = vmul.f32 2.1237322e-06, %v14172_v34  ;;  %v6273_v8 = vmul.f32 3.8918573e-05, %v14172_v34  ;;  %v14208_v2 = vadd.f32 %v14120_v16, %v5909_v17  ;;  %v6190_v18 = vmul.f32 %v6189_v43, %v14129_v62 }
 0xbec   :  { %v6238_v24 = vadd.f32 0.112945676, %v6237_v57  ;;  %v14174_v36 = vadd.f32 1.0, %v6201_v59  ;;  %v6227_v54 = vadd.f32 0.05243302, %v6226_v25  ;;  %v14229_v25 = vadd.f32 1.0, %v6121_v23 }
 0xbed   :  { %v6263_v20 = vadd.f32 0.00028619796, %v6262_v45  ;;  %v6274_v48 = vadd.f32 0.001143296, %v6273_v8  ;;  %v5993_v57 = vmul.f32 3.8918573e-05, %v14197_v46 }
 0xbee   :  { %v6239_v49 = vmul.f32 %v6238_v24, %v14142_v33  ;;  %7376 = vrcp.f32 %v14174_v36  ;;  %v6228_v56 = vmul.f32 %v6227_v54, %v14142_v33  ;;  %v14212_v52 = vmul.f32 0.70710677, %v14208_v2 }
 0xbef   :  { %v6264_v47 = vmul.f32 %v6263_v20, %v14172_v34  ;;  %v6275_v44 = vmul.f32 %v6274_v48, %v14172_v34  ;;  %v5994_v45 = vadd.f32 0.001143296, %v5993_v57  ;;  %v6106_v48 = vmul.f32 %v6105_v41, %v14151_v1 }
 0xbf0   :  { %v6240_v32 = vadd.f32 0.4994258, %v6239_v49  ;;  %v6229_v5 = vadd.f32 0.18741608, %v6228_v56  ;;  %v6140_v16 = vmul.f32 %v14212_v52, %v14212_v52  ;;  %v6214_v58 = vand.u32 2147483648, %v14174_v36 }
 0xbf1   :  { %v6265_v61 = vadd.f32 0.0036580483, %v6264_v47  ;;  %v6276_v39 = vadd.f32 0.014752088, %v6275_v44  ;;  %v5995_v22 = vmul.f32 %v5994_v45, %v14197_v46  ;;  %v6107_v54 = vadd.f32 0.05243302, %v6106_v48 }
 0xbf2   :  { %v6241_v14 = vmul.f32 %v6240_v32, %v14142_v33  ;;  %v14223_v49 = vmin.f32 %v6140_v16, 16.0  ;;  %v6230_v20 = vmul.f32 %v6229_v5, %v14142_v33  ;;  %v6191_v32 = vadd.f32 1.1283791, %v6190_v18 }
 0xbf3   :  { %v6277_v55 = vmul.f32 %v6276_v39, %v14172_v34  ;;  %v6266_v38 = vmul.f32 %v6265_v61, %v14172_v34  ;;  %vm6208_vm6 = vweird.f32 %v14174_v36  ;;  %v6212_v29 = vand.u32 2147483647, %v14174_v36 }
 0xbf4   :  { %v14191_v60 = vpop.eup %7376  ;;  %v14203_v31 = vadd.f32 1.0, %v6241_v14  ;;  %v6142_v62 = vmul.f32 2.1237322e-06, %v14223_v49  ;;  %v6153_v47 = vmul.f32 3.8918573e-05, %v14223_v49  ;;  %v14250_v56 = vmul.f32 %v6191_v32, %v14125_v21 }
 0xbf5   :  { %v6278_v50 = vadd.f32 0.112945676, %v6277_v55  ;;  %v6204_v4 = vmul.f32 %v14191_v60, %v14174_v36  ;;  %v6267_v13 = vadd.f32 0.05243302, %v6266_v38  ;;  %vm6209_vm5 = vweird.f32 %v14191_v60 }
 0xbf6   :  { %7378 = vrcp.f32 %v14203_v31  ;;  %v6143_v51 = vadd.f32 0.00028619796, %v6142_v62  ;;  %v6154_v33 = vadd.f32 0.001143296, %v6153_v47  ;;  %v6231_v39 = vadd.f32 1.1283791, %v6230_v20  ;;  %vm14252_vm7 = vmor %vm6208_vm6, %vm6209_vm5 }
 0xbf7   :  { %v6279_v7 = vmul.f32 %v6278_v50, %v14172_v34  ;;  %v6205_v12 = vsub.f32 1.0, %v6204_v4  ;;  %v6268_v8 = vmul.f32 %v6267_v13, %v14172_v34  ;;  %v5996_v38 = vadd.f32 0.014752088, %v5995_v22  ;;  %v5897_v4 = vpop.permute.xlu2 %5896 }
 0xbf8   :  { %v6144_v9 = vmul.f32 %v6143_v51, %v14223_v49  ;;  %v6155_v55 = vmul.f32 %v6154_v33, %v14223_v49  ;;  %v6215_v40 = vor.u32 1.1754944e-38, %v6214_v58  ;;  %v6108_v15 = vmul.f32 %v6107_v54, %v14151_v1 }
 0xbf9   :  { %v6280_v59 = vadd.f32 0.4994258, %v6279_v7  ;;  %v6206_v42 = vmul.f32 %v14191_v60, %v6205_v12  ;;  %v6269_v3 = vadd.f32 0.18741608, %v6268_v8  ;;  %v14263_v57 = vadd.f32 %v14116_v35, %v5897_v4 }
 0xbfa   :  { %v6156_v43 = vadd.f32 0.014752088, %v6155_v55  ;;  %v14266_v21 = vmul.f32 %v6231_v39, %v14135_v63  ;;  %vm14269_vm8 = vcmp.eq.f32.partialorder %v6212_v29, 8.507059e+37  ;;  %v5997_v41 = vmul.f32 %v5996_v38, %v14197_v46 }
 0xbfb   :  { %v6281_v24 = vmul.f32 %v6280_v59, %v14172_v34  ;;  %v14238_v61 = vadd.f32 %v14191_v60, %v6206_v42  ;;  %v6270_v50 = vmul.f32 %v6269_v3, %v14172_v34  ;;  %v6145_v34 = vadd.f32 0.0036580483, %v6144_v9 }
 0xbfc   :  { %v14233_v44 = vpop.eup %7378  ;;  %v6157_v12 = vmul.f32 %v6156_v43, %v14223_v49  ;;  %v14276_v16 = vmul.f32 0.70710677, %v14263_v57  ;;  %vm6248_vm10 = vweird.f32 %v14203_v31  ;;  %v6109_v45 = vadd.f32 0.18741608, %v6108_v15 }
 0xbfd   :  { %v14221_v11 = vadd.f32 1.0, %v6281_v24  ;;  %v6244_v14 = vmul.f32 %v14233_v44, %v14203_v31  ;;  %v6211_v36 = vsel %vm14252_vm7, %v14191_v60, %v14238_v61  ;;  %v6271_v60 = vadd.f32 1.1283791, %v6270_v50 }
 0xbfe   :  { %v6158_v23 = vadd.f32 0.112945676, %v6157_v12  ;;  %v6146_v8 = vmul.f32 %v6145_v34, %v14223_v49  ;;  %v6020_v42 = vmul.f32 %v14276_v16, %v14276_v16  ;;  %v5998_v32 = vadd.f32 0.112945676, %v5997_v41 }
 0xbff   :  { %7380 = vrcp.f32 %v14221_v11  ;;  %v6245_v13 = vsub.f32 1.0, %v6244_v14  ;;  %v6294_v24 = vand.u32 2147483648, %v14221_v11  ;;  %v6292_v18 = vand.u32 2147483647, %v14221_v11 }
 0xc00   :  { %7382 = vrcp.f32 %v14229_v25  ;;  %vm6288_vm11 = vweird.f32 %v14221_v11  ;;  %v6159_v62 = vmul.f32 %v6158_v23, %v14223_v49  ;;  %v14290_v3 = vmin.f32 %v6020_v42, 16.0 }
 0xc01   :  { %v6246_v20 = vmul.f32 %v14233_v44, %v6245_v13  ;;  %v6295_v22 = vor.u32 1.1754944e-38, %v6294_v24  ;;  %v6272_v58 = vmul.f32 %v6271_v60, %v14164_v30  ;;  %vm6293_vm14 = vcmp.eq.f32.partialorder %v6292_v18, 8.507059e+37  ;;  %v5901_v24 = vpop.permute.xlu1 %5900 }
 0xc02   :  { %v6160_v33 = vadd.f32 0.4994258, %v6159_v62  ;;  %v5982_v61 = vmul.f32 2.1237322e-06, %v14197_v46  ;;  %v6147_v54 = vadd.f32 0.05243302, %v6146_v8  ;;  %vm6249_vm15 = vweird.f32 %v14233_v44 }
 0xc03   :  { %v6254_v14 = vand.u32 2147483648, %v14203_v31  ;;  %v6247_v29 = vadd.f32 %v14233_v44, %v6246_v20  ;;  %v6110_v30 = vmul.f32 %v6109_v45, %v14151_v1  ;;  %v6216_v50 = vsel %vm14269_vm8, %v6215_v40, %v6211_v36  ;;  %vm14312_vm0 = vmor %vm6248_vm10, %vm6249_vm15 }
 0xc04   :  { %v6161_v55 = vmul.f32 %v6160_v33, %v14223_v49  ;;  %v6252_v43 = vand.u32 2147483647, %v14203_v31  ;;  %v5983_v15 = vadd.f32 0.00028619796, %v5982_v61  ;;  %v6148_v34 = vmul.f32 %v6147_v54, %v14223_v49 }
 0xc05   :  { %v7381_v0 = vpop.eup %7380  ;;  %v6255_v40 = vor.u32 1.1754944e-38, %v6254_v14  ;;  %v5971_v36 = vmul.f32 0.5, %v14158_v26  ;;  %v6251_v12 = vsel %vm14312_vm0, %v14233_v44, %v6247_v29  ;;  %v6111_v5 = vadd.f32 1.1283791, %v6110_v30 }
 0xc06   :  { %v6284_v7 = vmul.f32 %v7381_v0, %v14221_v11  ;;  %v14278_v35 = vpop.eup %7382  ;;  %vm6289_vm9 = vweird.f32 %v7381_v0  ;;  %v6033_v11 = vmul.f32 3.8918573e-05, %v14290_v3  ;;  %v6022_v60 = vmul.f32 2.1237322e-06, %v14290_v3 }
 0xc07   :  { %v6124_v47 = vmul.f32 %v14278_v35, %v14229_v25  ;;  %vm6290_vm12 = vmor %vm6288_vm11, %vm6289_vm9  ;;  %v14324_v23 = vadd.f32 %v14118_v19, %v5901_v24  ;;  %v14327_v26 = vmul.f32 %v6216_v50, %v14250_v56  ;;  %vm6253_vm1 = vcmp.eq.f32.partialorder %v6252_v43, 8.507059e+37 }
 0xc08   :  { %v6285_v59 = vsub.f32 1.0, %v6284_v7  ;;  %v6034_v38 = vadd.f32 0.001143296, %v6033_v11  ;;  %v14303_v7 = vadd.f32 1.0, %v6161_v55  ;;  %v5984_v45 = vmul.f32 %v5983_v15, %v14197_v46 }
 0xc09   :  { %v6125_v4 = vsub.f32 1.0, %v6124_v47  ;;  %v6149_v8 = vadd.f32 0.18741608, %v6148_v34  ;;  %v6256_v44 = vsel %vm6253_vm1, %v6255_v40, %v6251_v12  ;;  %v6134_v42 = vand.u32 2147483648, %v14229_v25 }
 0xc0a   :  { %v6286_v63 = vmul.f32 %v7381_v0, %v6285_v59  ;;  %v6035_v13 = vmul.f32 %v6034_v38, %v14290_v3  ;;  %7384 = vrcp.f32 %v14303_v7  ;;  %v6112_v62 = vmul.f32 %v6111_v5, %v14145_v27 }
 0xc0b   :  { %v6126_v31 = vmul.f32 %v14278_v35, %v6125_v4  ;;  %vm6128_vm2 = vweird.f32 %v14229_v25  ;;  %v6023_v56 = vadd.f32 0.00028619796, %v6022_v60  ;;  %vm6129_vm3 = vweird.f32 %v14278_v35 }
 0xc0c   :  { %v6287_v48 = vadd.f32 %v7381_v0, %v6286_v63  ;;  %v6036_v18 = vadd.f32 0.014752088, %v6035_v13  ;;  %v6132_v33 = vand.u32 2147483647, %v14229_v25  ;;  %v6150_v27 = vmul.f32 %v6149_v8, %v14223_v49  ;;  %vm14351_vm13 = vmor %vm6128_vm2, %vm6129_vm3 }
 0xc0d   :  { %v5985_v54 = vadd.f32 0.0036580483, %v5984_v45  ;;  %v6174_v29 = vand.u32 2147483648, %v14303_v7  ;;  %v6024_v49 = vmul.f32 %v6023_v56, %v14290_v3  ;;  %vm6168_vm6 = vweird.f32 %v14303_v7 }
 0xc0e   :  { %v6291_v51 = vsel %vm6290_vm12, %v7381_v0, %v6287_v48  ;;  %v5999_v0 = vmul.f32 %v5998_v32, %v14197_v46  ;;  %v6037_v20 = vmul.f32 %v6036_v18, %v14290_v3  ;;  %v14333_v48 = vmul.f32 0.70710677, %v14324_v23 }
 0xc0f   :  { %v6296_v39 = vsel %vm6293_vm14, %v6295_v22, %v6291_v51  ;;  %v6127_v32 = vadd.f32 %v14278_v35, %v6126_v31  ;;  %v6257_v51 = vmul.f32 %v6256_v44, %v14266_v21  ;;  %v6151_v50 = vadd.f32 1.1283791, %v6150_v27 }
 0xc10   :  { %v6297_v9 = vmul.f32 %v6296_v39, %v6272_v58  ;;  %v6000_v41 = vadd.f32 0.4994258, %v5999_v0  ;;  %v7385_v47 = vpop.eup %7384  ;;  %v6038_v22 = vadd.f32 0.112945676, %v6037_v20  ;;  %v6060_v58 = vmul.f32 %v14333_v48, %v14333_v48 }
 0xc11   :  { %v6164_v61 = vmul.f32 %v7385_v47, %v14303_v7  ;;  %v6135_v39 = vor.u32 1.1754944e-38, %v6134_v42  ;;  %v6131_v30 = vsel %vm14351_vm13, %v14278_v35, %v6127_v32  ;;  %vm6169_vm4 = vweird.f32 %v7385_v47 }
 0xc12   :  { %v6801_v17 = vclamps-f32 %v6297_v9, 1.0  ;;  %v6001_v19 = vmul.f32 %v6000_v41, %v14197_v46  ;;  %v6039_v11 = vmul.f32 %v6038_v22, %v14290_v3  ;;  %v14347_v14 = vmin.f32 %v6060_v58, 16.0  ;;  %vm6170_vm7 = vmor %vm6168_vm6, %vm6169_vm4 }
 0xc13   :  { %v6165_v21 = vsub.f32 1.0, %v6164_v61  ;;  %vm6133_vm5 = vcmp.eq.f32.partialorder %v6132_v33, 8.507059e+37  ;;  %v6025_v35 = vadd.f32 0.0036580483, %v6024_v49  ;;  %v6175_v40 = vor.u32 1.1754944e-38, %v6174_v29 }
 0xc14   :  { %v6307_v59 = vadd.f32 1.0, %v6801_v17  ;;  %v14355_v55 = vadd.f32 1.0, %v6001_v19  ;;  %v6040_v0 = vadd.f32 0.4994258, %v6039_v11  ;;  %v6062_v38 = vmul.f32 2.1237322e-06, %v14347_v14 }
 0xc15   :  { %v6073_v25 = vmul.f32 3.8918573e-05, %v14347_v14  ;;  %v6166_v4 = vmul.f32 %v7385_v47, %v6165_v21  ;;  %v6172_v17 = vand.u32 2147483647, %v14303_v7  ;;  %v6136_v13 = vsel %vm6133_vm5, %v6135_v39, %v6131_v30 }
 0xc16   :  { %v6315_v63 = vmul.f32 %v6307_v59, %v5971_v36  ;;  %v6041_v43 = vmul.f32 %v6040_v0, %v14290_v3  ;;  %v6063_v15 = vadd.f32 0.00028619796, %v6062_v38  ;;  %7386 = vrcp.f32 %v14355_v55 }
 0xc17   :  { %v6074_v34 = vadd.f32 0.001143296, %v6073_v25  ;;  %v6167_v1 = vadd.f32 %v7385_v47, %v6166_v4  ;;  %v6152_v5 = vmul.f32 %v6151_v50, %v14212_v52  ;;  %vm6173_vm8 = vcmp.eq.f32.partialorder %v6172_v17, 8.507059e+37 }
 0xc18   :  { %6357 = vmatpush.msrb.mxu1 %v6315_v63  ;;  %v14367_v36 = vadd.f32 1.0, %v6041_v43  ;;  %v6064_v59 = vmul.f32 %v6063_v15, %v14347_v14  ;;  %v6137_v60 = vmul.f32 %v6136_v13, %v6112_v62  ;;  %v6026_v31 = vmul.f32 %v6025_v35, %v14290_v3 }
 0xc19   :  { %v6075_v12 = vmul.f32 %v6074_v34, %v14347_v14  ;;  %v6171_v41 = vsel %vm6170_vm7, %v7385_v47, %v6167_v1  ;;  %v6800_v45 = vclamps-f32 %v6257_v51, 1.0  ;;  %v6799_v8 = vclamps-f32 %v14327_v26, 1.0 }
 0xc1a   :  { %v6176_v24 = vsel %vm6173_vm8, %v6175_v40, %v6171_v41  ;;  %7388 = vrcp.f32 %v14367_v36  ;;  %v6065_v18 = vadd.f32 0.0036580483, %v6064_v59  ;;  %v5986_v44 = vmul.f32 %v5985_v54, %v14197_v46 }
 0xc1b   :  { %v6177_v7 = vmul.f32 %v6176_v24, %v6152_v5  ;;  %v6076_v63 = vadd.f32 0.014752088, %v6075_v12  ;;  %v5970_v52 = vmul.f32 0.5, %v14131_v53  ;;  %v6306_v19 = vadd.f32 1.0, %v6800_v45 }
 0xc1c   :  { %v6305_v62 = vadd.f32 1.0, %v6799_v8  ;;  %v6797_v56 = vclamps-f32 %v6137_v60, 1.0  ;;  %v14379_v47 = vpop.eup %7386  ;;  %v6027_v32 = vadd.f32 0.05243302, %v6026_v31  ;;  %v5969_v51 = vmul.f32 0.5, %v14122_v28 }
 0xc1d   :  { %v6077_v42 = vmul.f32 %v6076_v63, %v14347_v14  ;;  %v6798_v20 = vclamps-f32 %v6177_v7, 1.0  ;;  %v6066_v26 = vmul.f32 %v6065_v18, %v14347_v14  ;;  %v6314_v33 = vmul.f32 %v6306_v19, %v5970_v52 }
 0xc1e   :  { %v5987_v61 = vadd.f32 0.05243302, %v5986_v44  ;;  %v6004_v54 = vmul.f32 %v14379_v47, %v14355_v55  ;;  %v5968_v11 = vmul.f32 0.5, %v14208_v2  ;;  %v6313_v9 = vmul.f32 %v6305_v62, %v5969_v51 }
 0xc1f   :  { %v6078_v22 = vadd.f32 0.112945676, %v6077_v42  ;;  %v6304_v27 = vadd.f32 1.0, %v6798_v20  ;;  %6358 = vmatpush.msrb.mxu1 %v6314_v33  ;;  %v6303_v21 = vadd.f32 1.0, %v6797_v56  ;;  %v6028_v28 = vmul.f32 %v6027_v32, %v14290_v3 }
 0xc20   :  { %v14381_v58 = vpop.eup %7388  ;;  %v5967_v49 = vmul.f32 0.5, %v14139_v6  ;;  %v6067_v0 = vadd.f32 0.05243302, %v6066_v26  ;;  %v5988_v25 = vmul.f32 %v5987_v61, %v14197_v46  ;;  %v6005_v4 = vsub.f32 1.0, %v6004_v54 }
 0xc21   :  { %v6044_v39 = vmul.f32 %v14381_v58, %v14367_v36  ;;  %v6079_v53 = vmul.f32 %v6078_v22, %v14347_v14  ;;  %6359 = vmatpush.msrb.mxu1 %v6313_v9  ;;  %v6312_v38 = vmul.f32 %v6304_v27, %v5968_v11  ;;  %v6029_v2 = vadd.f32 0.18741608, %v6028_v28 }
 0xc22   :  { %v6311_v17 = vmul.f32 %v6303_v21, %v5967_v49  ;;  %v6068_v34 = vmul.f32 %v6067_v0, %v14347_v14  ;;  %v5989_v13 = vadd.f32 0.18741608, %v5988_v25  ;;  %v6006_v6 = vmul.f32 %v14379_v47, %v6005_v4  ;;  %v6316_v0 = vld [vmem:[#allocation10] sm:$0xff]  ;;  %v6318_v25 = vld [vmem:[#allocation10 + $0x10] sm:$0xff] }
 0xc23   :  { %v6080_v29 = vadd.f32 0.4994258, %v6079_v53  ;;  %v6045_v30 = vsub.f32 1.0, %v6044_v39  ;;  %6360 = vmatpush.msrb.mxu1 %v6312_v38  ;;  %v6030_v1 = vmul.f32 %v6029_v2, %v14290_v3  ;;  %vm6049_vm9 = vweird.f32 %v14381_v58  ;;  %v7443_v38 = vld [vmem:[%s14518_s8] sm:$0xff] }
 0xc24   :  { %v6069_v40 = vadd.f32 0.18741608, %v6068_v34  ;;  %v5990_v59 = vmul.f32 %v5989_v13, %v14197_v46  ;;  %v6012_v12 = vand.u32 2147483647, %v14355_v55  ;;  %v6054_v5 = vand.u32 2147483648, %v14367_v36 }
 0xc25   :  { %v6081_v50 = vmul.f32 %v6080_v29, %v14347_v14  ;;  %v6046_v15 = vmul.f32 %v14381_v58, %v6045_v30  ;;  %6361 = vmatpush.msrb.mxu1 %v6311_v17  ;;  %v6007_v41 = vadd.f32 %v14379_v47, %v6006_v6  ;;  %vm6009_vm10 = vweird.f32 %v14379_v47  ;;  %v7441_v29 = vld [vmem:[%s14518_s8 + $0x8] sm:$0xff] }
 0xc26   :  { %vm6048_vm11 = vweird.f32 %v14367_v36  ;;  %v6052_v60 = vand.u32 2147483647, %v14367_v36  ;;  %v6014_v24 = vand.u32 2147483648, %v14355_v55  ;;  %v6031_v7 = vadd.f32 1.1283791, %v6030_v1 }
 0xc27   :  { %v6082_v43 = vadd.f32 1.0, %v6081_v50  ;;  %v6047_v35 = vadd.f32 %v14381_v58, %v6046_v15  ;;  %vm6050_vm12 = vmor %vm6048_vm11, %vm6049_vm9  ;;  %vm6008_vm14 = vweird.f32 %v14355_v55  ;;  %v6070_v31 = vmul.f32 %v6069_v40, %v14347_v14  ;;  %v6319_v50 = vld [vmem:[#allocation10 + $0x18] sm:$0xff] }
 0xc28   :  { %v5991_v18 = vadd.f32 1.1283791, %v5990_v59  ;;  %vm6010_vm15 = vmor %vm6008_vm14, %vm6009_vm10  ;;  %v6055_v45 = vor.u32 1.1754944e-38, %v6054_v5  ;;  %vm6013_vm0 = vcmp.eq.f32.partialorder %v6012_v12, 8.507059e+37  ;;  %vm6053_vm1 = vcmp.eq.f32.partialorder %v6052_v60, 8.507059e+37 }
 0xc29   :  { %7390 = vrcp.f32 %v6082_v43  ;;  %v6051_v46 = vsel %vm6050_vm12, %v14381_v58, %v6047_v35  ;;  %v6011_v8 = vsel %vm6010_vm15, %v14379_v47, %v6007_v41  ;;  %v6015_v44 = vor.u32 1.1754944e-38, %v6014_v24 }
 0xc2a   :  { %v6032_v42 = vmul.f32 %v6031_v7, %v14276_v16  ;;  %v6056_v20 = vsel %vm6053_vm1, %v6055_v45, %v6051_v46  ;;  %v6094_v52 = vand.u32 2147483648, %v6082_v43  ;;  %v6071_v19 = vadd.f32 1.1283791, %v6070_v31 }
 0xc2b   :  { %v6092_v62 = vand.u32 2147483647, %v6082_v43  ;;  %v6016_v56 = vsel %vm6013_vm0, %v6015_v44, %v6011_v8  ;;  %v5992_v14 = vmul.f32 %v5991_v18, %v14182_v37  ;;  %vm6088_vm3 = vweird.f32 %v6082_v43 }
 0xc2c   :  { %v6057_v32 = vmul.f32 %v6056_v20, %v6032_v42  ;;  %v6095_v47 = vor.u32 1.1754944e-38, %v6094_v52  ;;  %v6072_v51 = vmul.f32 %v6071_v19, %v14333_v48  ;;  %v5966_v53 = vmul.f32 0.5, %v14324_v23  ;;  %v7440_v48 = vld [vmem:[%s14518_s8 + $0x18] sm:$0xff] }
 0xc2d   :  { %v6017_v58 = vmul.f32 %v6016_v56, %v5992_v14  ;;  %vm6093_vm4 = vcmp.eq.f32.partialorder %v6092_v62, 8.507059e+37  ;;  %v5965_v37 = vmul.f32 0.5, %v14263_v57  ;;  %v7609_v28 = vmov 5   ;;  %v7442_v57 = vld [vmem:[%s14518_s8 + $0x10] sm:$0xff] }
 0xc2e   :  { %v6795_v27 = vclamps-f32 %v6057_v32, 1.0  ;;  %6854 = vset.pattern.permute.xlu1 %v7609_v28  ;;  %6856 = vset.pattern.permute.xlu0 %v7609_v28  ;;  %v5964_v23 = vmul.f32 0.5, %v14170_v10  ;;  %vm6336_vm5 = vcmask 523264   ;;  %v6317_v10 = vld [vmem:[#allocation10 + $0x8] sm:$0xff] }
 0xc2f   :  { %v7391_v3 = vpop.eup %7390  ;;  %v6794_v39 = vclamps-f32 %v6017_v58, 1.0  ;;  %6333 = vperm.xlu1 %6854, %v7440_v48   ;;  %6325 = vperm.xlu0 %6856, %v7441_v29  }
 0xc30   :  { %v6084_v63 = vmul.f32 %v7391_v3, %v6082_v43  ;;  %vm6089_vm2 = vweird.f32 %v7391_v3  ;;  %v6301_v11 = vadd.f32 1.0, %v6795_v27  ;;  %6855 = vset.pattern.permute.xlu2 %v7609_v28 }
 0xc31   :  { %vm6090_vm13 = vmor %vm6088_vm3, %vm6089_vm2  ;;  %v6300_v21 = vadd.f32 1.0, %v6794_v39  ;;  %6329 = vperm.xlu2 %6855, %v7442_v57  }
 0xc32   :  { %v6085_v36 = vsub.f32 1.0, %v6084_v63  ;;  %v6309_v49 = vmul.f32 %v6301_v11, %v5965_v37 }
 0xc33   :  { %v6308_v30 = vmul.f32 %v6300_v21, %v5964_v23 }
 0xc34   :  { %v6086_v55 = vmul.f32 %v7391_v3, %v6085_v36 }
 0xc36   :  { %v6087_v22 = vadd.f32 %v7391_v3, %v6086_v55 }
 0xc37   :  { %6321 = vperm.xlu1 %6854, %v7443_v38  }
 0xc38   :  { %v6091_v26 = vsel %vm6090_vm13, %v7391_v3, %v6087_v22 }
 0xc39   :  { %v6096_v16 = vsel %vm6093_vm4, %v6095_v47, %v6091_v26 }
 0xc3a   :  { %v6097_v33 = vmul.f32 %v6096_v16, %v6072_v51 }
 0xc3c   :  { %v6796_v61 = vclamps-f32 %v6097_v33, 1.0 }
 0xc3e   :  { %v6302_v54 = vadd.f32 1.0, %v6796_v61 }
 0xc40   :  { %v6310_v9 = vmul.f32 %v6302_v54, %v5966_v53 }
 0xc42   :  { %6362 = vmatpush.msrb.mxu1 %v6310_v9 }
 0xc44   :  { %6363 = vmatpush.msrb.mxu1 %v6309_v49 }
 0xc46   :  { %6364 = vmatpush.msrb.mxu1 %v6308_v30 }
 0xc47   :  { %6802 = vmatmul.msk.f32.vlgmr.msrb.gmra.mxu1 %vm6336_vm5, %v6316_v0 }
 0xc4f   :  { %6803 = vmatmul.msk.f32.gmra.mxu1 %vm6336_vm5, %v6317_v10 }
 0xc57   :  { %6804 = vmatmul.msk.f32.gmra.mxu1 %vm6336_vm5, %v6318_v25 }
 0xc5f   :  { %6805 = vmatmul.msk.f32.gmra.mxu1 %vm6336_vm5, %v6319_v50 }
 0xc8b   :  { %v6330_v31 = vpop.permute.xlu2 %6329 }
 0xca1   :  { %v6334_v43 = vpop.permute.xlu1 %6333  ;;  %v6326_v26 = vpop.permute.xlu0 %6325 }
 0xcc4   :  { %v14431_v4 = vpop.f32.mrf.mxu1 }
 0xccc   :  { %v6369_v17 = vpop.f32.mrf.mxu1 }
 0xccd   :  { %v14449_v61 = vadd.f32 %v6369_v17, %v6326_v26 }
 0xccf   :  { %v14453_v37 = vmul.f32 0.70710677, %v14449_v61 }
 0xcd1   :  { %v6426_v29 = vmul.f32 %v14453_v37, %v14453_v37 }
 0xcd3   :  { %v14459_v30 = vmin.f32 %v6426_v29, 16.0 }
 0xcd4   :  { %v6372_v2 = vpop.f32.mrf.mxu1 }
 0xcd5   :  { %v14436_v18 = vadd.f32 %v6372_v2, %v6330_v31  ;;  %v6428_v17 = vmul.f32 2.1237322e-06, %v14459_v30  ;;  %v6439_v2 = vmul.f32 3.8918573e-05, %v14459_v30 }
 0xcd7   :  { %v14439_v36 = vmul.f32 0.70710677, %v14436_v18 }
 0xcd9   :  { %v6466_v42 = vmul.f32 %v14439_v36, %v14439_v36 }
 0xcdb   :  { %v14443_v19 = vmin.f32 %v6466_v42, 16.0 }
 0xcdc   :  { %v6375_v15 = vpop.f32.mrf.mxu1 }
 0xcdd   :  { %v14433_v34 = vadd.f32 %v6375_v15, %v6334_v43  ;;  %v6468_v55 = vmul.f32 2.1237322e-06, %v14443_v19  ;;  %v6479_v62 = vmul.f32 3.8918573e-05, %v14443_v19 }
 0xcdf   :  { %v6385_v13 = vmul.f32 0.70710677, %v14433_v34  ;;  %v6469_v14 = vadd.f32 0.00028619796, %v6468_v55  ;;  %v6480_v32 = vadd.f32 0.001143296, %v6479_v62 }
 0xce1   :  { %v6506_v6 = vmul.f32 %v6385_v13, %v6385_v13  ;;  %v6470_v22 = vmul.f32 %v6469_v14, %v14443_v19  ;;  %v6481_v47 = vmul.f32 %v6480_v32, %v14443_v19 }
 0xce3   :  { %v6507_v1 = vmin.f32 %v6506_v6, 16.0  ;;  %v6482_v33 = vadd.f32 0.014752088, %v6481_v47  ;;  %v6471_v27 = vadd.f32 0.0036580483, %v6470_v22 }
 0xce4   :  { %v6429_v6 = vadd.f32 0.00028619796, %v6428_v17 }
 0xce5   :  { %v6508_v35 = vmul.f32 2.1237322e-06, %v6507_v1  ;;  %v6519_v40 = vmul.f32 3.8918573e-05, %v6507_v1  ;;  %v6483_v53 = vmul.f32 %v6482_v33, %v14443_v19  ;;  %v6472_v48 = vmul.f32 %v6471_v27, %v14443_v19 }
 0xce7   :  { %v6509_v59 = vadd.f32 0.00028619796, %v6508_v35  ;;  %v6520_v12 = vadd.f32 0.001143296, %v6519_v40  ;;  %v6484_v28 = vadd.f32 0.112945676, %v6483_v53 }
 0xce8   :  { %v6473_v50 = vadd.f32 0.05243302, %v6472_v48 }
 0xce9   :  { %v6510_v5 = vmul.f32 %v6509_v59, %v6507_v1  ;;  %v6521_v41 = vmul.f32 %v6520_v12, %v6507_v1  ;;  %v6485_v49 = vmul.f32 %v6484_v28, %v14443_v19 }
 0xcea   :  { %v6474_v59 = vmul.f32 %v6473_v50, %v14443_v19 }
 0xceb   :  { %v6511_v60 = vadd.f32 0.0036580483, %v6510_v5  ;;  %v6522_v3 = vadd.f32 0.014752088, %v6521_v41  ;;  %v6486_v10 = vadd.f32 0.4994258, %v6485_v49 }
 0xcec   :  { %v6381_v5 = vmul.f32 0.5, %v14433_v34  ;;  %v6475_v31 = vadd.f32 0.18741608, %v6474_v59 }
 0xced   :  { %v6523_v24 = vmul.f32 %v6522_v3, %v6507_v1  ;;  %v6512_v7 = vmul.f32 %v6511_v60, %v6507_v1  ;;  %v6487_v15 = vmul.f32 %v6486_v10, %v14443_v19  ;;  %v6322_v3 = vpop.permute.xlu1 %6321 }
 0xcef   :  { %v6524_v46 = vadd.f32 0.112945676, %v6523_v24  ;;  %v6513_v45 = vadd.f32 0.05243302, %v6512_v7  ;;  %v6488_v40 = vadd.f32 1.0, %v6487_v15 }
 0xcf1   :  { %v6525_v63 = vmul.f32 %v6524_v46, %v6507_v1  ;;  %v6514_v20 = vmul.f32 %v6513_v45, %v6507_v1  ;;  %v14469_v46 = vadd.f32 %v14431_v4, %v6322_v3  ;;  %v6498_v26 = vand.u32 2147483647, %v6488_v40 }
 0xcf2   :  { %vm6494_vm11 = vweird.f32 %v6488_v40 }
 0xcf3   :  { %v6526_v8 = vadd.f32 0.4994258, %v6525_v63  ;;  %v6515_v56 = vadd.f32 0.18741608, %v6514_v20  ;;  %v14473_v45 = vmul.f32 0.70710677, %v14469_v46  ;;  %v6476_v20 = vmul.f32 %v6475_v31, %v14443_v19 }
 0xcf4   :  { %vm6499_vm14 = vcmp.eq.f32.partialorder %v6498_v26, 8.507059e+37 }
 0xcf5   :  { %v6527_v44 = vmul.f32 %v6526_v8, %v6507_v1  ;;  %v6516_v51 = vmul.f32 %v6515_v56, %v6507_v1  ;;  %v6440_v1 = vadd.f32 0.001143296, %v6439_v2  ;;  %v6386_v42 = vmul.f32 %v14473_v45, %v14473_v45 }
 0xcf6   :  { %v6500_v56 = vand.u32 2147483648, %v6488_v40  ;;  %v6380_v2 = vmul.f32 0.5, %v14436_v18 }
 0xcf7   :  { %v6528_v52 = vadd.f32 1.0, %v6527_v44  ;;  %v6517_v54 = vadd.f32 1.1283791, %v6516_v51  ;;  %v6441_v12 = vmul.f32 %v6440_v1, %v14459_v30  ;;  %v14480_v55 = vmin.f32 %v6386_v42, 16.0 }
 0xcf8   :  { %v6501_v53 = vor.u32 1.1754944e-38, %v6500_v56 }
 0xcf9   :  { %7392 = vrcp.f32 %v6528_v52  ;;  %v6540_v11 = vand.u32 2147483648, %v6528_v52  ;;  %v6538_v21 = vand.u32 2147483647, %v6528_v52  ;;  %vm6534_vm7 = vweird.f32 %v6528_v52 }
 0xcfa   :  { %v6518_v0 = vmul.f32 %v6517_v54, %v6385_v13  ;;  %v6430_v13 = vmul.f32 %v6429_v6, %v14459_v30  ;;  %7394 = vrcp.f32 %v6488_v40  ;;  %v6442_v7 = vadd.f32 0.014752088, %v6441_v12 }
 0xcfb   :  { %v6541_v57 = vor.u32 1.1754944e-38, %v6540_v11  ;;  %vm6539_vm9 = vcmp.eq.f32.partialorder %v6538_v21, 8.507059e+37  ;;  %v6388_v22 = vmul.f32 2.1237322e-06, %v14480_v55  ;;  %v6399_v47 = vmul.f32 3.8918573e-05, %v14480_v55 }
 0xcfc   :  { %v6431_v60 = vadd.f32 0.0036580483, %v6430_v13  ;;  %v6443_v63 = vmul.f32 %v6442_v7, %v14459_v30  ;;  %v7610_v12 = vmov 6  }
 0xcfd   :  { %v6389_v19 = vadd.f32 0.00028619796, %v6388_v22  ;;  %v6400_v33 = vadd.f32 0.001143296, %v6399_v47  ;;  %6857 = vset.pattern.permute.xlu2 %v7610_v12  ;;  %6858 = vset.pattern.permute.xlu0 %v7610_v12 }
 0xcfe   :  { %v6432_v8 = vmul.f32 %v6431_v60, %v14459_v30  ;;  %v6444_v34 = vadd.f32 0.112945676, %v6443_v63 }
 0xcff   :  { %v7393_v58 = vpop.eup %7392  ;;  %v6390_v11 = vmul.f32 %v6389_v19, %v14480_v55 }
 0xd00   :  { %v6530_v16 = vmul.f32 %v7393_v58, %v6528_v52  ;;  %vm6535_vm6 = vweird.f32 %v7393_v58  ;;  %v7395_v44 = vpop.eup %7394  ;;  %v6445_v4 = vmul.f32 %v6444_v34, %v14459_v30  ;;  %v6433_v14 = vadd.f32 0.05243302, %v6432_v8 }
 0xd01   :  { %vm6536_vm8 = vmor %vm6534_vm7, %vm6535_vm6  ;;  %v6490_v52 = vmul.f32 %v7395_v44, %v6488_v40  ;;  %vm6495_vm10 = vweird.f32 %v7395_v44  ;;  %vm6560_vm6 = vcmask 261120   ;;  %vm6607_vm7 = vcmask 1040384  }
 0xd02   :  { %v6531_v39 = vsub.f32 1.0, %v6530_v16  ;;  %v6446_v32 = vadd.f32 0.4994258, %v6445_v4  ;;  %vm6496_vm12 = vmor %vm6494_vm11, %vm6495_vm10 }
 0xd03   :  { %v6491_v62 = vsub.f32 1.0, %v6490_v52  ;;  %v6379_v52 = vmul.f32 0.5, %v14449_v61 }
 0xd04   :  { %v6532_v9 = vmul.f32 %v7393_v58, %v6531_v39  ;;  %v6447_v16 = vmul.f32 %v6446_v32, %v14459_v30  ;;  %v6434_v39 = vmul.f32 %v6433_v14, %v14459_v30 }
 0xd05   :  { %v6492_v51 = vmul.f32 %v7395_v44, %v6491_v62 }
 0xd06   :  { %v6533_v23 = vadd.f32 %v7393_v58, %v6532_v9  ;;  %v6448_v54 = vadd.f32 1.0, %v6447_v16  ;;  %v6401_v9 = vmul.f32 %v6400_v33, %v14480_v55 }
 0xd07   :  { %v6493_v27 = vadd.f32 %v7395_v44, %v6492_v51 }
 0xd08   :  { %v6537_v38 = vsel %vm6536_vm8, %v7393_v58, %v6533_v23  ;;  %v6477_v58 = vadd.f32 1.1283791, %v6476_v20  ;;  %7396 = vrcp.f32 %v6448_v54  ;;  %v6435_v23 = vadd.f32 0.18741608, %v6434_v39 }
 0xd09   :  { %v6542_v25 = vsel %vm6539_vm9, %v6541_v57, %v6537_v38  ;;  %v6497_v28 = vsel %vm6496_vm12, %v7395_v44, %v6493_v27  ;;  %v6402_v49 = vadd.f32 0.014752088, %v6401_v9  ;;  %v6391_v57 = vadd.f32 0.0036580483, %v6390_v11 }
 0xd0a   :  { %v6543_v43 = vmul.f32 %v6542_v25, %v6518_v0  ;;  %v6478_v21 = vmul.f32 %v6477_v58, %v14439_v36  ;;  %v6502_v48 = vsel %vm6499_vm14, %v6501_v53, %v6497_v28  ;;  %v6436_v10 = vmul.f32 %v6435_v23, %v14459_v30  ;;  %v207_v30 = vld [vmem:[%s14518_s8] sm:$0xf] }
 0xd0b   :  { %v6403_v0 = vmul.f32 %v6402_v49, %v14480_v55  ;;  %v6392_v36 = vmul.f32 %v6391_v57, %v14480_v55  ;;  %v6460_v59 = vand.u32 2147483648, %v6448_v54  ;;  %v6458_v18 = vand.u32 2147483647, %v6448_v54  ;;  %6557 = vperm.xlu2 %6857, %v207_v30  }
 0xd0c   :  { %v6809_v35 = vclamps-f32 %v6543_v43, 1.0  ;;  %v6503_v29 = vmul.f32 %v6502_v48, %v6478_v21  ;;  %v6437_v1 = vadd.f32 1.1283791, %v6436_v10  ;;  %vm6454_vm0 = vweird.f32 %v6448_v54 }
 0xd0d   :  { %v6404_v25 = vadd.f32 0.112945676, %v6403_v0  ;;  %v6393_v13 = vadd.f32 0.05243302, %v6392_v36  ;;  %vm6459_vm2 = vcmp.eq.f32.partialorder %v6458_v18, 8.507059e+37  ;;  %v6378_v27 = vmul.f32 0.5, %v14469_v46 }
 0xd0e   :  { %v6549_v41 = vadd.f32 1.0, %v6809_v35  ;;  %v6808_v38 = vclamps-f32 %v6503_v29, 1.0  ;;  %v7397_v17 = vpop.eup %7396  ;;  %v6438_v31 = vmul.f32 %v6437_v1, %v14453_v37  ;;  %vm6609_vm8 = vcmask 1041408  }
 0xd0f   :  { %v6450_v43 = vmul.f32 %v7397_v17, %v6448_v54  ;;  %v6405_v15 = vmul.f32 %v6404_v25, %v14480_v55  ;;  %vm6455_vm15 = vweird.f32 %v7397_v17  ;;  %v6394_v7 = vmul.f32 %v6393_v13, %v14480_v55  ;;  %v6554_v54 = vld [vmem:[%s14517_s7] sm:$0xf]  ;;  %s7611_s7 = smov [#allocation11]  }
 0xd10   :  { %v6553_v24 = vmul.f32 %v6549_v41, %v6381_v5  ;;  %v6548_v50 = vadd.f32 1.0, %v6808_v38  ;;  %vm6456_vm1 = vmor %vm6454_vm0, %vm6455_vm15  ;;  %vm6611_vm9 = vcmask 1042432   ;;  %s6620_s18 = sshll.u32 %s7611_s7, 4  ;;  %s6621_s18 = int_to_ptr.vmem [resolvable:$true] %s6620_s18 }
 0xd11   :  { %v6451_v35 = vsub.f32 1.0, %v6450_v43  ;;  %v6406_v40 = vadd.f32 0.4994258, %v6405_v15  ;;  %v6395_v34 = vadd.f32 0.18741608, %v6394_v7 }
 0xd12   :  { %6576 = vmatpush.msra.mxu2 %v6553_v24  ;;  %v6552_v6 = vmul.f32 %v6548_v50, %v6380_v2  ;;  %v6461_v24 = vor.u32 1.1754944e-38, %v6460_v59 }
 0xd13   :  { %v6452_v5 = vmul.f32 %v7397_v17, %v6451_v35  ;;  %v6407_v41 = vmul.f32 %v6406_v40, %v14480_v55  ;;  %v6396_v62 = vmul.f32 %v6395_v34, %v14480_v55 }
 0xd14   :  { %6577 = vmatpush.msra.mxu2 %v6552_v6 }
 0xd15   :  { %v6453_v60 = vadd.f32 %v7397_v17, %v6452_v5  ;;  %v6408_v3 = vadd.f32 1.0, %v6407_v41  ;;  %v6397_v47 = vadd.f32 1.1283791, %v6396_v62 }
 0xd17   :  { %v6457_v63 = vsel %vm6456_vm1, %v7397_v17, %v6453_v60  ;;  %7398 = vrcp.f32 %v6408_v3  ;;  %v6420_v22 = vand.u32 2147483648, %v6408_v3  ;;  %v6418_v58 = vand.u32 2147483647, %v6408_v3 }
 0xd18   :  { %v6462_v8 = vsel %vm6459_vm2, %v6461_v24, %v6457_v63  ;;  %vm6414_vm13 = vweird.f32 %v6408_v3  ;;  %v6398_v16 = vmul.f32 %v6397_v47, %v14473_v45 }
 0xd19   :  { %v6463_v44 = vmul.f32 %v6462_v8, %v6438_v31  ;;  %v6421_v26 = vor.u32 1.1754944e-38, %v6420_v22  ;;  %vm6419_vm5 = vcmp.eq.f32.partialorder %v6418_v58, 8.507059e+37 }
 0xd1b   :  { %v6807_v42 = vclamps-f32 %v6463_v44, 1.0 }
 0xd1d   :  { %v7399_v20 = vpop.eup %7398  ;;  %v6547_v4 = vadd.f32 1.0, %v6807_v42 }
 0xd1e   :  { %v6410_v56 = vmul.f32 %v7399_v20, %v6408_v3  ;;  %vm6415_vm3 = vweird.f32 %v7399_v20 }
 0xd1f   :  { %v6551_v14 = vmul.f32 %v6547_v4, %v6379_v52  ;;  %vm6416_vm4 = vmor %vm6414_vm13, %vm6415_vm3 }
 0xd20   :  { %v6411_v32 = vsub.f32 1.0, %v6410_v56 }
 0xd21   :  { %6578 = vmatpush.msra.mxu2 %v6551_v14 }
 0xd22   :  { %v6412_v37 = vmul.f32 %v7399_v20, %v6411_v32 }
 0xd24   :  { %v6413_v51 = vadd.f32 %v7399_v20, %v6412_v37 }
 0xd26   :  { %v6417_v19 = vsel %vm6416_vm4, %v7399_v20, %v6413_v51 }
 0xd27   :  { %v6422_v61 = vsel %vm6419_vm5, %v6421_v26, %v6417_v19 }
 0xd28   :  { %v6423_v33 = vmul.f32 %v6422_v61, %v6398_v16 }
 0xd2a   :  { %v6806_v55 = vclamps-f32 %v6423_v33, 1.0 }
 0xd2c   :  { %v6546_v39 = vadd.f32 1.0, %v6806_v55 }
 0xd2e   :  { %v6550_v53 = vmul.f32 %v6546_v39, %v6378_v27 }
 0xd30   :  { %6579 = vmatpush.msra.mxu2 %v6550_v53 }
 0xd31   :  { %6810 = vmatmul.msk.f32.vlgmr.msra.gmra.mxu2 %vm6560_vm6, %v6554_v54 }
 0xd65   :  { %v6558_v11 = vpop.permute.xlu2 %6557 }
 0xdb4   :  { %v6581_v9 = vpop.f32.mrf.mxu2 }
 0xdb5   :  { %v6582_v21 = vadd.f32 %v6581_v9, %v6558_v11 }
 0xdb7   :  { %v6585_v45 = vrot.slane %v6582_v21, 1 }
 0xdb9   :  { %v6587_v28 = vmax.f32 %v6582_v21, %v6585_v45 }
 0xdbb   :  { %v6588_v48 = vsub.f32 %v6582_v21, %v6587_v28  ;;  %v6592_v29 = vrot.slane %v6587_v28, 7 }
 0xdbd   :  { %v6594_v23 = vsub.f32 %v6582_v21, %v6592_v29  ;;  %v6589_v49 = vmul.f32 1.442695, %v6588_v48 }
 0xdbf   :  { %v6595_v57 = vmul.f32 1.442695, %v6594_v23 }
 0xdc1   :  { %7400 = vpow2.f32 %v6595_v57 }
 0xdc2   :  { %7402 = vpow2.f32 %v6589_v49 }
 0xdc7   :  { %v7401_v46 = vpop.eup %7400 }
 0xdc8   :  { %v6598_v0 = vrot.slane %v7401_v46, 1  ;;  %v7403_v38 = vpop.eup %7402 }
 0xdca   :  { %v6600_v10 = vadd.f32 %v7403_v38, %v6598_v0 }
 0xdcc   :  { %7404 = vlog2.f32 %v6600_v10 }
 0xdd2   :  { %v7405_v25 = vpop.eup %7404 }
 0xdd3   :  { %v6602_v50 = vmul.f32 0.6931472, %v7405_v25 }
 0xdd5   :  { %v6603_v17 = vadd.f32 %v6602_v50, %v6587_v28 }
 0xdd7   :  { %v6605_v2 = vrot.slane %v6603_v17, 7 }
 0xdd9   :  { %v6608_v36 = vsel %vm6607_vm7, %v6603_v17, %v6605_v2 }
 0xdda   :  { %v6610_v43 = vsel %vm6609_vm8, %v6608_v36, %v6603_v17 }
 0xddb   :  { %v6612_v15 = vsel %vm6611_vm9, %v6610_v43, %v6605_v2 }
 0xddc   :  { %v6613_v6 = vsub.f32 %v6582_v21, %v6612_v15 }
 0xdde   :  { %6614 = vst [vmem:[#allocation11] sm:$0xf] %v6613_v6 }
 0xddf   :  { %6625 = dma.vmem_to_hbm [thread:$0]  %s6621_s18, 64, %s6623_s20, [#allocation4]  }
 0xde0   :  { %7594 = dma.done.wait [#allocation4], 64  }
 0xde1   :  { %7595 = vsyncadd [#allocation4], 4294967232 }
 0xde2   :  { %6630 = vsyncpa [#allocation3], 1 }
 0xde3   :  { %6631 = vsyncpa [#allocation6], 1 }
 0xde4   :  { %6632 = vsyncpa [#allocation9], 1 }
 0xde5   :  { %6633 = vsyncpa [#allocation4], 1 }

</bundles_post_ra>
